<compile_context>
chip_gen: v6e
topology: v6e:2x2x1
jax: 0.10.0
libtpu: 0.0.40
codegen_flags: <defaults>
</compile_context>

<pallas_src>
import functools

import jax
import jax.numpy as jnp
from jax.experimental import pallas as pl
from jax.experimental.pallas import tpu as pltpu


# ----------------------------------------------------------------------------
# Kernel 1: conv (im2col matmul, channel-major) + relu + BN(eval) + 5x5 max
# ----------------------------------------------------------------------------
def _conv_bn_pool_kernel(patch_ref, w_ref, gamma_ref, beta_ref, feat_ref,
                         *, img_w, hw, blk_n):
    # patch_ref: (9*Cin, blk_n*H*W)  im2col columns, lanes = b*H*W + h*W + w
    # w_ref:     (Cout, 9*Cin)       conv filters, columns ordered (kh, kw, ci)
    # gamma_ref: (Cout, 1)           scale / sqrt(var + eps)
    # beta_ref:  (Cout, 1)           offset - mean * gamma
    # feat_ref:  (blk_n, Cout, H*W)  channel-major, spatially padded output
    conv = jnp.dot(w_ref[...], patch_ref[...],
                   preferred_element_type=jnp.float32)        # (Cout, blk_n*H*W)
    # relu comes BEFORE the batch-norm in this model.
    y = jnp.maximum(conv, 0.0) * gamma_ref[...] + beta_ref[...]

    lanes = y.shape[1]

    def shift(a, d):
        # shift(a, d)[:, s] == a[:, s + d]  (circular).  Wrapped / cross-image
        # lanes only ever land in the h>=Hp or w>=Wp padding positions, which
        # the wrapper discards and the dense weight zeroes out.
        return pltpu.roll(a, lanes - d, axis=1)

    # two chained 3x3/stride-1 max pools == one separable 5x5 max (log tree):
    # along W (lane shifts 1, 2, 4)
    a1 = jnp.maximum(y, shift(y, 1))
    a2 = jnp.maximum(a1, shift(a1, 2))
    mw = jnp.maximum(a2, shift(y, 4))
    # along H (lane shifts W, 2W, 4W)
    b1 = jnp.maximum(mw, shift(mw, img_w))
    b2 = jnp.maximum(b1, shift(b1, 2 * img_w))
    pooled = jnp.maximum(b2, shift(mw, 4 * img_w))            # (Cout, blk_n*H*W)

    # aligned, unmasked full-width (256-lane) stores, one per image in the block
    for b in range(blk_n):
        feat_ref[b] = pooled[:, b * hw:(b + 1) * hw]


# ----------------------------------------------------------------------------
# Kernel 2: dense (single MXU matmul over the padded activation) + softmax
# ----------------------------------------------------------------------------
def _dense_softmax_kernel(act_ref, w_ref, b_ref, out_ref):
    # act_ref: (N, Cout*H*W)  padded flattened features (free HBM reshape)
    # w_ref:   (Cout*H*W, O)  zero-padded dense weights
    # b_ref:   (1, O)
    logits = jnp.dot(act_ref[...], w_ref[...],
                     preferred_element_type=jnp.float32) + b_ref[...]
    m = jnp.max(logits, axis=-1, keepdims=True)
    e = jnp.exp(logits - m)
    # exact divide: pl.reciprocal(approx=True) saves ~nothing at (N, 10)
    out_ref[...] = e / jnp.sum(e, axis=-1, keepdims=True)


def _pick_block_batch(n):
    """Images per grid step: amortize the ~600-cycle per-step overhead, but
    keep at least 2 grid steps so both v7x TensorCores get work."""
    for b in (8, 4, 2):
        if n % b == 0 and n // b >= 2:
            return b
    return 1


@jax.jit
def model_forward(x_nchw, conv_w, bn_mean, bn_var, bn_scale, bn_offset,
                  dense_w, dense_b):
    """Returns (model_block_output, probes) exactly as the PyTorch forward."""
    N, Cin, H, W = x_nchw.shape
    Cout = conv_w.shape[0]
    Hp, Wp = H - 4, W - 4
    HW = H * W
    O = dense_w.shape[0]
    eps = 1e-3
    B = _pick_block_batch(N)

    # ---- wrapper-side layout prep (tiny XLA ops) ----------------------------
    # im2col with zero padding: (9*Cin, N*H*W), rows ordered (kh, kw, ci)
    x_pad = jnp.pad(x_nchw, ((0, 0), (0, 0), (1, 1), (1, 1)))
    taps = [x_pad[:, :, kh:kh + H, kw:kw + W]
            for kh in range(3) for kw in range(3)]
    patches = jnp.stack(taps, axis=1).reshape(N, 9 * Cin, HW)
    patches = jnp.transpose(patches, (1, 0, 2)).reshape(9 * Cin, N * HW)

    # conv filters [Cout, Cin, 3, 3] -> (Cout, 9*Cin), columns (kh, kw, ci)
    w_t = jnp.transpose(conv_w, (0, 2, 3, 1)).reshape(Cout, 9 * Cin)

    # fold eval-mode batch-norm into a per-channel scale/offset
    gamma = (bn_scale / jnp.sqrt(bn_var + eps)).reshape(Cout, 1)
    beta = (bn_offset - bn_mean * gamma[:, 0]).reshape(Cout, 1)

    # ---- kernel 1: conv + relu + bn + 5x5 max pool --------------------------
    kernel1 = functools.partial(_conv_bn_pool_kernel, img_w=W, hw=HW, blk_n=B)
    feat_pad = pl.pallas_call(
        kernel1,
        out_shape=jax.ShapeDtypeStruct((N, Cout, HW), jnp.float32),
        grid=(N // B,),
        in_specs=[
            pl.BlockSpec((9 * Cin, B * HW), lambda i: (0, i)),
            pl.BlockSpec((Cout, 9 * Cin), lambda i: (0, 0)),
            pl.BlockSpec((Cout, 1), lambda i: (0, 0)),
            pl.BlockSpec((Cout, 1), lambda i: (0, 0)),
        ],
        out_specs=pl.BlockSpec((B, Cout, HW), lambda i: (i, 0, 0)),
        compiler_params=pltpu.CompilerParams(
            dimension_semantics=("parallel",)),
    )(patches, w_t, gamma, beta)

    # NCHW flatten of the valid (Hp, Wp) window -> model_block_output
    feat4 = feat_pad.reshape(N, Cout, H, W)
    model_block_output = feat4[:, :, :Hp, :Wp].reshape(N, Cout * Hp * Wp)

    # ---- kernel 2: dense + softmax (probes) ---------------------------------
    # Contract the spatially-padded activation against a zero-padded weight so
    # the kernel needs no relayout and does one clean MXU matmul.
    act_pad = feat_pad.reshape(N, Cout * HW)                  # free HBM reshape
    wd = jnp.pad(dense_w.reshape(O, Cout, Hp, Wp),
                 ((0, 0), (0, 0), (0, H - Hp), (0, W - Wp)))
    w_dense = wd.reshape(O, Cout * HW).T                      # (Cout*H*W, O)
    b_dense = dense_b.reshape(1, O)

    probes = pl.pallas_call(
        _dense_softmax_kernel,
        out_shape=jax.ShapeDtypeStruct((N, O), jnp.float32),
        grid=(1,),
        in_specs=[
            pl.BlockSpec((N, Cout * HW), lambda i: (0, 0)),
            pl.BlockSpec((Cout * HW, O), lambda i: (0, 0)),
            pl.BlockSpec((1, O), lambda i: (0, 0)),
        ],
        out_specs=pl.BlockSpec((N, O), lambda i: (0, 0)),
        compiler_params=pltpu.CompilerParams(
            dimension_semantics=("arbitrary",)),
    )(act_pad, w_dense, b_dense)

    return model_block_output, probes


# ----------------------------------------------------------------------------
# Pure-JAX reference (for in-script correctness check)
# ----------------------------------------------------------------------------
def _reference_forward(x, conv_w, bn_mean, bn_var, bn_scale, bn_offset,
                       dense_w, dense_b):
    eps = 1e-3
    conv = jax.lax.conv_general_dilated(
        x, conv_w, window_strides=(1, 1), padding=((1, 1), (1, 1)),
        dimension_numbers=("NCHW", "OIHW", "NCHW"))
    y = jnp.maximum(conv, 0.0)
    y = (y - bn_mean[None, :, None, None]) / jnp.sqrt(
        bn_var + eps)[None, :, None, None]
    y = y * bn_scale[None, :, None, None] + bn_offset[None, :, None, None]
    p = jax.lax.reduce_window(y, -jnp.inf, jax.lax.max,
                              (1, 1, 3, 3), (1, 1, 1, 1), "VALID")
    p = jax.lax.reduce_window(p, -jnp.inf, jax.lax.max,
                              (1, 1, 3, 3), (1, 1, 1, 1), "VALID")
    flat = p.reshape(p.shape[0], -1)
    logits = flat @ dense_w.T + dense_b
    return flat, jax.nn.softmax(logits, axis=-1)


# ----------------------------------------------------------------------------
# Deterministic parameter construction (mirrors Model.get_trainable_params)
# ----------------------------------------------------------------------------
def xavier_uniform(key, shape, fan_in, fan_out):
    bound = (6.0 / (fan_in + fan_out)) ** 0.5
    return jax.random.uniform(key, shape, jnp.float32, -bound, bound)


if __name__ == "__main__":
    key = jax.random.PRNGKey(0)
    k_x, k_conv, k_dense = jax.random.split(key, 3)

    # small shapes consistent with the module: input must have 3 channels
    N, Cin, H, W = 2, 3, 16, 16
    Cout = 64
    num_classes = 10
    feat_dim = Cout * (H - 4) * (W - 4)          # 64 * 12 * 12 = 9216

    x = jax.random.normal(k_x, (N, Cin, H, W), jnp.float32)

    # model_block/conv_6gw/filters : [64, 3, 3, 3], xavier uniform
    conv_w = xavier_uniform(k_conv, (Cout, Cin, 3, 3),
                            fan_in=Cin * 9, fan_out=Cout * 9)

    # model_block/batch_normalize_10kc : mean=0, var=1, scale=1, offset=0
    bn_mean = jnp.zeros((Cout,), jnp.float32)
    bn_var = jnp.ones((Cout,), jnp.float32)
    bn_scale = jnp.ones((Cout,), jnp.float32)
    bn_offset = jnp.zeros((Cout,), jnp.float32)

    # model_block/dense_18so : weights [num_classes, feat_dim], bias zeros
    # (checkpoint-loaded in the original; deterministic synthetic init here)
    dense_w = xavier_uniform(k_dense, (num_classes, feat_dim),
                             fan_in=feat_dim, fan_out=num_classes)
    dense_b = jnp.zeros((num_classes,), jnp.float32)

    out, probes = model_forward(x, conv_w, bn_mean, bn_var, bn_scale,
                                bn_offset, dense_w, dense_b)
    jax.block_until_ready(out)
    jax.block_until_ready(probes)

    assert out.shape == (N, feat_dim)
    assert probes.shape == (N, num_classes)

    # numerical check against a pure-XLA reference
    ref_out, ref_probes = _reference_forward(
        x, conv_w, bn_mean, bn_var, bn_scale, bn_offset, dense_w, dense_b)
    assert bool(jnp.allclose(out, ref_out, rtol=2e-3, atol=2e-3))
    assert bool(jnp.allclose(probes, ref_probes, rtol=2e-3, atol=2e-3))

    print("KERNEL_OK")
</pallas_src>

<mosaic_0001>
module attributes {stable_mosaic.version = 11 : i64} {
  func.func @_conv_bn_pool_kernel(%arg0: i32, %arg1: memref<27x256xf32, #tpu.memory_space<vmem>>, %arg2: memref<64x27xf32, #tpu.memory_space<vmem>>, %arg3: memref<64x1xf32, #tpu.memory_space<vmem>>, %arg4: memref<64x1xf32, #tpu.memory_space<vmem>>, %arg5: memref<1x64x256xf32, #tpu.memory_space<vmem>>) attributes {dimension_semantics = [#tpu.dimension_semantics<parallel>], iteration_bounds = array<i64: 2>, scalar_prefetch = 0 : i64, scratch_operands = 0 : i64, tpu.core_type = #tpu.core_type<tc>, window_params = [{transform_indices = @transform_0, window_bounds = array<i64: 27, 256>}, {pipeline_mode = #tpu.pipeline_mode<synchronous>, transform_indices = @transform_1, window_bounds = array<i64: 64, 27>}, {pipeline_mode = #tpu.pipeline_mode<synchronous>, transform_indices = @transform_2, window_bounds = array<i64: 64, 1>}, {pipeline_mode = #tpu.pipeline_mode<synchronous>, transform_indices = @transform_3, window_bounds = array<i64: 64, 1>}, {transform_indices = @transform_4, window_bounds = array<i64: 1, 64, 256>}]} {
    %c0 = arith.constant 0 : index
    %c0_0 = arith.constant 0 : index
    %0 = vector.load %arg2[%c0, %c0_0] : memref<64x27xf32, #tpu.memory_space<vmem>>, vector<64x27xf32>
    %c0_1 = arith.constant 0 : index
    %c0_2 = arith.constant 0 : index
    %1 = vector.load %arg1[%c0_1, %c0_2] : memref<27x256xf32, #tpu.memory_space<vmem>>, vector<27x256xf32>
    %cst = arith.constant dense<0.000000e+00> : vector<64x256xf32>
    %2 = tpu.matmul %0, %1, %cst {dimension_numbers = #tpu.dot_dimension_numbers<[1], [0], [0], [1], [0, 0, 1, 1], [], []>} : vector<64x27xf32>, vector<27x256xf32>, vector<64x256xf32> -> vector<64x256xf32>
    %cst_3 = arith.constant 0.000000e+00 : f32
    %3 = vector.broadcast %cst_3 : f32 to vector<64x256xf32>
    %4 = arith.maximumf %2, %3 : vector<64x256xf32>
    %c0_4 = arith.constant 0 : index
    %c0_5 = arith.constant 0 : index
    %5 = vector.load %arg3[%c0_4, %c0_5] : memref<64x1xf32, #tpu.memory_space<vmem>>, vector<64x1xf32>
    %6 = vector.broadcast %5 : vector<64x1xf32> to vector<64x256xf32>
    %7 = arith.mulf %4, %6 : vector<64x256xf32>
    %c0_6 = arith.constant 0 : index
    %c0_7 = arith.constant 0 : index
    %8 = vector.load %arg4[%c0_6, %c0_7] : memref<64x1xf32, #tpu.memory_space<vmem>>, vector<64x1xf32>
    %9 = vector.broadcast %8 : vector<64x1xf32> to vector<64x256xf32>
    %10 = arith.addf %7, %9 : vector<64x256xf32>
    %c255_i32 = arith.constant 255 : i32
    %11 = tpu.dynamic_rotate %10 by %c255_i32 dim 1 : vector<64x256xf32>, i32 -> vector<64x256xf32>
    %12 = arith.maximumf %10, %11 : vector<64x256xf32>
    %c254_i32 = arith.constant 254 : i32
    %13 = tpu.dynamic_rotate %12 by %c254_i32 dim 1 : vector<64x256xf32>, i32 -> vector<64x256xf32>
    %14 = arith.maximumf %12, %13 : vector<64x256xf32>
    %c252_i32 = arith.constant 252 : i32
    %15 = tpu.dynamic_rotate %10 by %c252_i32 dim 1 : vector<64x256xf32>, i32 -> vector<64x256xf32>
    %16 = arith.maximumf %14, %15 : vector<64x256xf32>
    %c240_i32 = arith.constant 240 : i32
    %17 = tpu.dynamic_rotate %16 by %c240_i32 dim 1 : vector<64x256xf32>, i32 -> vector<64x256xf32>
    %18 = arith.maximumf %16, %17 : vector<64x256xf32>
    %c224_i32 = arith.constant 224 : i32
    %19 = tpu.dynamic_rotate %18 by %c224_i32 dim 1 : vector<64x256xf32>, i32 -> vector<64x256xf32>
    %20 = arith.maximumf %18, %19 : vector<64x256xf32>
    %c192_i32 = arith.constant 192 : i32
    %21 = tpu.dynamic_rotate %16 by %c192_i32 dim 1 : vector<64x256xf32>, i32 -> vector<64x256xf32>
    %22 = arith.maximumf %20, %21 : vector<64x256xf32>
    %c0_8 = arith.constant 0 : index
    %c0_9 = arith.constant 0 : index
    %c0_10 = arith.constant 0 : index
    %23 = vector.load %arg5[%c0_8, %c0_9, %c0_10] : memref<1x64x256xf32, #tpu.memory_space<vmem>>, vector<1x64x256xf32>
    %24 = vector.shape_cast %23 : vector<1x64x256xf32> to vector<64x256xf32>
    %25 = vector.shape_cast %22 : vector<64x256xf32> to vector<1x64x256xf32>
    tpu.vector_store %arg5[%c0_8, %c0_9, %c0_10], %25 {strides = array<i32>} : memref<1x64x256xf32, #tpu.memory_space<vmem>>, vector<1x64x256xf32>,
    return
  }
  func.func @transform_0(%arg0: i32) -> (i32, i32) {
    %c0_i32 = arith.constant 0 : i32
    %c0_i32_0 = arith.constant 0 : i32
    return %c0_i32, %arg0 : i32, i32
  }
  func.func @transform_1(%arg0: i32) -> (i32, i32) {
    %c0_i32 = arith.constant 0 : i32
    %c0_i32_0 = arith.constant 0 : i32
    %c0_i32_1 = arith.constant 0 : i32
    return %c0_i32, %c0_i32_0 : i32, i32
  }
  func.func @transform_2(%arg0: i32) -> (i32, i32) {
    %c0_i32 = arith.constant 0 : i32
    %c0_i32_0 = arith.constant 0 : i32
    %c0_i32_1 = arith.constant 0 : i32
    return %c0_i32, %c0_i32_0 : i32, i32
  }
  func.func @transform_3(%arg0: i32) -> (i32, i32) {
    %c0_i32 = arith.constant 0 : i32
    %c0_i32_0 = arith.constant 0 : i32
    %c0_i32_1 = arith.constant 0 : i32
    return %c0_i32, %c0_i32_0 : i32, i32
  }
  func.func @transform_4(%arg0: i32) -> (i32, i32, i32) {
    %c0_i32 = arith.constant 0 : i32
    %c0_i32_0 = arith.constant 0 : i32
    %c0_i32_1 = arith.constant 0 : i32
    return %arg0, %c0_i32, %c0_i32_0 : i32, i32, i32
  }
}

module attributes {stable_mosaic.version = 11 : i64} {
  func.func @_dense_softmax_kernel(%arg0: i32, %arg1: memref<2x16384xf32, #tpu.memory_space<vmem>>, %arg2: memref<16384x10xf32, #tpu.memory_space<vmem>>, %arg3: memref<1x10xf32, #tpu.memory_space<vmem>>, %arg4: memref<2x10xf32, #tpu.memory_space<vmem>>) attributes {dimension_semantics = [#tpu.dimension_semantics<arbitrary>], iteration_bounds = array<i64: 1>, scalar_prefetch = 0 : i64, scratch_operands = 0 : i64, tpu.core_type = #tpu.core_type<tc>, window_params = [{pipeline_mode = #tpu.pipeline_mode<synchronous>, transform_indices = @transform_0, window_bounds = array<i64: 2, 16384>}, {pipeline_mode = #tpu.pipeline_mode<synchronous>, transform_indices = @transform_1, window_bounds = array<i64: 16384, 10>}, {pipeline_mode = #tpu.pipeline_mode<synchronous>, transform_indices = @transform_2, window_bounds = array<i64: 1, 10>}, {pipeline_mode = #tpu.pipeline_mode<synchronous>, transform_indices = @transform_3, window_bounds = array<i64: 2, 10>}]} {
    %c0 = arith.constant 0 : index
    %c0_0 = arith.constant 0 : index
    %0 = vector.load %arg1[%c0, %c0_0] : memref<2x16384xf32, #tpu.memory_space<vmem>>, vector<2x16384xf32>
    %c0_1 = arith.constant 0 : index
    %c0_2 = arith.constant 0 : index
    %1 = vector.load %arg2[%c0_1, %c0_2] : memref<16384x10xf32, #tpu.memory_space<vmem>>, vector<16384x10xf32>
    %cst = arith.constant dense<0.000000e+00> : vector<2x10xf32>
    %2 = tpu.matmul %0, %1, %cst {dimension_numbers = #tpu.dot_dimension_numbers<[1], [0], [0], [1], [0, 0, 1, 1], [], []>} : vector<2x16384xf32>, vector<16384x10xf32>, vector<2x10xf32> -> vector<2x10xf32>
    %c0_3 = arith.constant 0 : index
    %c0_4 = arith.constant 0 : index
    %3 = vector.load %arg3[%c0_3, %c0_4] : memref<1x10xf32, #tpu.memory_space<vmem>>, vector<1x10xf32>
    %4 = vector.broadcast %3 : vector<1x10xf32> to vector<2x10xf32>
    %5 = arith.addf %2, %4 : vector<2x10xf32>
    %cst_5 = arith.constant dense<0xFF800000> : vector<2xf32>
    %6 = vector.multi_reduction <maximumf>, %5, %cst_5 [1] : vector<2x10xf32> to vector<2xf32>
    %7 = vector.shape_cast %6 : vector<2xf32> to vector<2x1xf32>
    %8 = vector.broadcast %7 : vector<2x1xf32> to vector<2x10xf32>
    %9 = arith.subf %5, %8 : vector<2x10xf32>
    %10 = math.exp %9 : vector<2x10xf32>
    %cst_6 = arith.constant dense<0.000000e+00> : vector<2xf32>
    %11 = vector.multi_reduction <add>, %10, %cst_6 [1] : vector<2x10xf32> to vector<2xf32>
    %12 = vector.shape_cast %11 : vector<2xf32> to vector<2x1xf32>
    %13 = vector.broadcast %12 : vector<2x1xf32> to vector<2x10xf32>
    %14 = arith.divf %10, %13 : vector<2x10xf32>
    %c0_7 = arith.constant 0 : index
    %c0_8 = arith.constant 0 : index
    %15 = vector.load %arg4[%c0_7, %c0_8] : memref<2x10xf32, #tpu.memory_space<vmem>>, vector<2x10xf32>
    tpu.vector_store %arg4[%c0_7, %c0_8], %14 {strides = array<i32>} : memref<2x10xf32, #tpu.memory_space<vmem>>, vector<2x10xf32>,
    return
  }
  func.func @transform_0(%arg0: i32) -> (i32, i32) {
    %c0_i32 = arith.constant 0 : i32
    %c0_i32_0 = arith.constant 0 : i32
    %c0_i32_1 = arith.constant 0 : i32
    return %c0_i32, %c0_i32_0 : i32, i32
  }
  func.func @transform_1(%arg0: i32) -> (i32, i32) {
    %c0_i32 = arith.constant 0 : i32
    %c0_i32_0 = arith.constant 0 : i32
    %c0_i32_1 = arith.constant 0 : i32
    return %c0_i32, %c0_i32_0 : i32, i32
  }
  func.func @transform_2(%arg0: i32) -> (i32, i32) {
    %c0_i32 = arith.constant 0 : i32
    %c0_i32_0 = arith.constant 0 : i32
    %c0_i32_1 = arith.constant 0 : i32
    return %c0_i32, %c0_i32_0 : i32, i32
  }
  func.func @transform_3(%arg0: i32) -> (i32, i32) {
    %c0_i32 = arith.constant 0 : i32
    %c0_i32_0 = arith.constant 0 : i32
    %c0_i32_1 = arith.constant 0 : i32
    return %c0_i32, %c0_i32_0 : i32, i32
  }
}

</mosaic_0001>

<bundles_post_ra>
// kernel: model_forward.2
= control target key start
LH: loop header
LB: loop body
LE: loop exit
PB: predicated region body
PF: predicated region fallthrough
CT: control target
= control target key end

     0   :  { %s1131_s15 = smov 0   ;;  %s1133_s16 = smov 0   ;;  %s1943_s0 = inlined_call_operand.vmem [shape: f32[27,512], index: 0, kind: input, shape index: {}]   ;;  %s1944_s1 = inlined_call_operand.vmem [shape: f32[64,27], index: 1, kind: input, shape index: {}]   ;;  %s1945_s2 = inlined_call_operand.vmem [shape: f32[64,1], index: 2, kind: input, shape index: {}]   ;;  %s1946_s3 = inlined_call_operand.vmem [shape: f32[64,1], index: 3, kind: input, shape index: {}]   ;;  %s1947_s4 = inlined_call_operand.vmem [shape: f32[2,64,256], index: 4, kind: output, shape index: {}]  }
   0x1   :  { %s1135_s17 = smov 0  }
   0x2 LB: > { %s1007_s18 = sadd.s32 4294967295, %s1096_s17   ;;  %s1148_s19 = sadd.s32 1, %s1096_s17   ;;  %s1096_s17 = sphi %s1135_s17, %s1950_s17   ;;  %s1092_s16 = sphi %s1133_s16, %s1949_s16   ;;  %s1088_s15 = sphi %s1131_s15, %s1948_s15  }
   0x3   : > { %s18_s20 = ssub.s32 %s1096_s17, %s1148_s19  ;;  %s21_s21 = sadd.s32 1, %s1092_s16 }
   0x4   : > { %p19_p0 = scmp.eq.s32.totalorder %s18_s20, 0  ;;  %p28_p1 = scmp.ne.s32.totalorder %s1092_s16, %s1088_s15 }
   0x5   : > { %p29_p2 = scmp.eq.s32.totalorder %s1096_s17, 0  ;;  %p1010_p4 = scmp.ge.s32.totalorder %s1096_s17, 2 }
   0x6   : > { %s1157_s22 = scalar_select %p19_p0, %s1092_s16, %s21_s21  }
   0x7   : > { %p30_p3 = por %p29_p2, %p28_p1  ;;  %152 = sbr.rel (%p1010_p4) target bundleno = 20 (0x14), region = 28 }
   0xc   : > { %155 = sbr.rel (!%p30_p3) target bundleno = 20 (0x14), region = 32  ;;  %s157_s23 = sand.u32 (%p30_p3), 1, %s1092_s16  }
   0xd   : > { %s1030_s24 = sshll.u32 (%p30_p3), %s1096_s17, 4  ;;  %s1011_s25 = sshll.u32 (%p30_p3), %s157_s23, 6 }
   0xe   : > { %s162_s28 = scalar_lea.vmem (%p30_p3), %s1943_s0, %s1030_s24  ;;  %s159_s29 = scalar_lea.vmem (%p30_p3), [#allocation2], %s1011_s25 }
   0xf   : > { %v175_v0 = vld [vmem:[%s162_s28] sm:$0xff] (%p30_p3)  ;;  %v177_v1 = vld [vmem:[%s162_s28 + $0x8] sm:$0xff] (%p30_p3) }
  0x10   : > { %v179_v2 = vld [vmem:[%s162_s28 + $0x20] sm:$0xff] (%p30_p3)  ;;  %176 = vst [vmem:[%s159_s29] sm:$0xff] (%p30_p3), %v175_v0  ;;  %178 = vst [vmem:[%s159_s29 + $0x8] sm:$0xff] (%p30_p3), %v177_v1  ;;  %v181_v3 = vld [vmem:[%s162_s28 + $0x28] sm:$0xff] (%p30_p3) }
  0x11   : > { %180 = vst [vmem:[%s159_s29 + $0x10] sm:$0xff] %v179_v2  ;;  %v183_v4 = vld [vmem:[%s162_s28 + $0x40] sm:$0xff]  ;;  %v185_v5 = vld [vmem:[%s162_s28 + $0x48] sm:$0xff]  ;;  %182 = vst [vmem:[%s159_s29 + $0x18] sm:$0xff] %v181_v3 }
  0x12   : > { %184 = vst [vmem:[%s159_s29 + $0x20] sm:$0xff] %v183_v4  ;;  %186 = vst [vmem:[%s159_s29 + $0x28] sm:$0xff] %v185_v5  ;;  %v187_v6 = vld [vmem:[%s162_s28 + $0x60] sm:$0xff]  ;;  %v189_v7 = vld [vmem:[%s162_s28 + $0x68] sm:$0xff] }
  0x13   : > { %188 = vst [vmem:[%s159_s29 + $0x30] sm:$0xff] %v187_v6  ;;  %190 = vst [vmem:[%s159_s29 + $0x38] sm:$0xff] %v189_v7 }
  0x14 PF: > { %p1014_p5 = scmp.ge.s32.totalorder %s1096_s17, 1  ;;  %p195_p6 = scmp.lt.s32.totalorder %s1096_s17, 3 }
  0x16   : > { %p196_p7 = pnand %p1014_p5, %p195_p6 }
  0x17   : > { %s202_s30 = sand.u32 (!%p196_p7), 1, %s1088_s15   ;;  %s1100_s13 = smov (!%p196_p7), 127  }
  0x18   : > { %199 = sbr.rel (%p196_p7) target bundleno = 776 (0x308), region = 55  ;;  %s1015_s5 = sshll.u32 (!%p196_p7), %s202_s30, 6 }
  0x19   : > { %s204_s6 = scalar_lea.vmem (!%p196_p7), [#allocation2], %s1015_s5  ;;  %s1101_s14 = smov (!%p196_p7), 124  }
  0x1a   : > { %s1102_s15 = smov (!%p196_p7), 126   ;;  %s1103_s20 = smov (!%p196_p7), 112  }
  0x1b   : > { %s1104_s21 = smov (!%p196_p7), 64   ;;  %s1105_s23 = smov (!%p196_p7), 96  }
  0x1c   : > { %p228_p8 = scmp.lt.s32.totalorder (!%p196_p7), %s1007_s18, 1 }
  0x1d   : > { %vm274_vm0 = vcmask 1042432   ;;  %v1098_v8 = vmov 0.0   ;;  %v1099_v9 = vmov 0   ;;  %v248_v10 = vld [vmem:[%s204_s6 + $0x38] sm:$0x7]  ;;  %v246_v12 = vld [vmem:[%s204_s6 + $0x28] sm:$0xff] }
  0x1e   : > { %345 = vmatprep.mubr.f32.mxu0 %v1098_v8  ;;  %369 = vmatprep.mubr.f32.mxu1 %v1098_v8  ;;  %v247_v11 = vld [vmem:[%s204_s6 + $0x30] sm:$0x7]  ;;  %v245_v13 = vld [vmem:[%s204_s6 + $0x20] sm:$0xff]  ;;  %v244_v14 = vld [vmem:[%s204_s6 + $0x18] sm:$0xff]  ;;  %vm249_vm1 = vcmask 220160   ;;  %s1952_s18 = smov (!%p228_p8, %s1007_s18), 1 }
  0x1f   : > { %1073 = vset.pattern.permute.xlu1 %v1099_v9  ;;  %1072 = vset.pattern.permute.xlu0 %v1099_v9  ;;  %v243_v15 = vld [vmem:[%s204_s6 + $0x10] sm:$0xff]  ;;  %v242_v16 = vld [vmem:[%s204_s6 + $0x8] sm:$0xff]  ;;  %v241_v17 = vld [vmem:[%s204_s6] sm:$0xff]  ;;  %s1031_s24 = sshll.u32 %s1952_s18, 7 }
  0x20   : > { %1018 = vmatprep.subr.msk.mxu0 %vm274_vm0, %v248_v10  ;;  %1032 = vmatprep.subr.msk.mxu1 %vm274_vm0, %v248_v10  ;;  %v233_v18 = vld [vmem:[%s1944_s1] sm:$0xff]  ;;  %v412_v20 = vld [vmem:[%s1945_s2 + $0x10] sm:$0xff]  ;;  %v234_v22 = vld [vmem:[%s1944_s1 + $0x8] sm:$0xff]  ;;  %s1833_s25 = scalar_lea.vmem %s1947_s4, %s1031_s24 }
  0x21   : > { %1019 = vmatpush1.msk.msra.mxu0 %vm274_vm0, %v247_v11  ;;  %1036 = vmatpush1.msk.msra.mxu1 %vm274_vm0, %v247_v11  ;;  %v237_v19 = vld [vmem:[%s1944_s1 + $0x20] sm:$0xff]  ;;  %v238_v23 = vld [vmem:[%s1944_s1 + $0x28] sm:$0xff]  ;;  %v413_v24 = vld [vmem:[%s1945_s2 + $0x18] sm:$0xff] }
  0x22   : > { %307 = vmatprep.subr.mxu0 %v246_v12  ;;  %1033 = vmatprep.subr.mxu1 %v246_v12  ;;  %v410_v21 = vld [vmem:[%s1945_s2] sm:$0xff]  ;;  %v411_v25 = vld [vmem:[%s1945_s2 + $0x8] sm:$0xff]  ;;  %v235_v26 = vld [vmem:[%s1944_s1 + $0x10] sm:$0xff] }
  0x23   : > { %308 = vmatpush1.msra.mxu0 %v245_v13  ;;  %1037 = vmatpush1.msra.mxu1 %v245_v13  ;;  %v239_v27 = vld [vmem:[%s1944_s1 + $0x30] sm:$0xff]  ;;  %v415_v28 = vld [vmem:[%s1945_s2 + $0x28] sm:$0xff]  ;;  %v414_v29 = vld [vmem:[%s1945_s2 + $0x20] sm:$0xff] }
  0x24   : > { %309 = vmatprep.subr.mxu0 %v244_v14  ;;  %1034 = vmatprep.subr.mxu1 %v244_v14  ;;  %v236_v30 = vld [vmem:[%s1944_s1 + $0x18] sm:$0xff]  ;;  %v416_v33 = vld [vmem:[%s1945_s2 + $0x30] sm:$0xff]  ;;  %v475_v34 = vld [vmem:[%s1946_s3 + $0x8] sm:$0xff] }
  0x25   : > { %310 = vmatpush1.msra.mxu0 %v243_v15  ;;  %1038 = vmatpush1.msra.mxu1 %v243_v15  ;;  %v240_v31 = vld [vmem:[%s1944_s1 + $0x38] sm:$0xff]  ;;  %v474_v35 = vld [vmem:[%s1946_s3] sm:$0xff]  ;;  %v476_v37 = vld [vmem:[%s1946_s3 + $0x10] sm:$0xff] }
  0x26   : > { %311 = vmatprep.subr.mxu0 %v242_v16  ;;  %1035 = vmatprep.subr.mxu1 %v242_v16  ;;  %v417_v32 = vld [vmem:[%s1945_s2 + $0x38] sm:$0xff]  ;;  %v479_v38 = vld [vmem:[%s1946_s3 + $0x28] sm:$0xff]  ;;  %v478_v39 = vld [vmem:[%s1946_s3 + $0x20] sm:$0xff] }
  0x27   : > { %312 = vmatpush1.msra.mxu0 %v241_v17  ;;  %1039 = vmatpush1.msra.mxu1 %v241_v17  ;;  %v477_v36 = vld [vmem:[%s1946_s3 + $0x18] sm:$0xff]  ;;  %v480_v41 = vld [vmem:[%s1946_s3 + $0x30] sm:$0xff] }
  0x28   : > { %1020 = vmatmul.mubr.msk.f32.vlgmr.msra.gmra.mxu0 %vm249_vm1, %v233_v18  ;;  %1024 = vmatmul.mubr.msk.f32.vlgmr.msra.gmra.mxu1 %vm249_vm1, %v237_v19  ;;  %v481_v40 = vld [vmem:[%s1946_s3 + $0x38] sm:$0xff] }
  0x29   : > { %351 = vmatprep.mubr.f32.mxu0 %v1098_v8  ;;  %375 = vmatprep.mubr.f32.mxu1 %v1098_v8 }
  0x2a   : > { %430 = vperm.xlu1 %1073, %v412_v20   ;;  %420 = vperm.xlu0 %1072, %v410_v21  }
  0x2c   : > { %1021 = vmatmul.mubr.msk.f32.gmra.mxu0 %vm249_vm1, %v234_v22  ;;  %1025 = vmatmul.mubr.msk.f32.gmra.mxu1 %vm249_vm1, %v238_v23 }
  0x2d   : > { %357 = vmatprep.mubr.f32.mxu0 %v1098_v8  ;;  %381 = vmatprep.mubr.f32.mxu1 %v1098_v8 }
  0x2e   : > { %435 = vperm.xlu1 %1073, %v413_v24   ;;  %425 = vperm.xlu0 %1072, %v411_v25  }
  0x30   : > { %1022 = vmatmul.mubr.msk.f32.gmra.mxu0 %vm249_vm1, %v235_v26  ;;  %1026 = vmatmul.mubr.msk.f32.gmra.mxu1 %vm249_vm1, %v239_v27 }
  0x31   : > { %363 = vmatprep.mubr.f32.mxu0 %v1098_v8  ;;  %387 = vmatprep.mubr.f32.mxu1 %v1098_v8 }
  0x32   : > { %445 = vperm.xlu1 %1073, %v415_v28   ;;  %440 = vperm.xlu0 %1072, %v414_v29  }
  0x34   : > { %1023 = vmatmul.mubr.msk.f32.gmra.mxu0 %vm249_vm1, %v236_v30  ;;  %1027 = vmatmul.mubr.msk.f32.gmra.mxu1 %vm249_vm1, %v240_v31 }
  0x36   : > { %455 = vperm.xlu1 %1073, %v417_v32   ;;  %450 = vperm.xlu0 %1072, %v416_v33  }
  0x3a   : > { %489 = vperm.xlu1 %1073, %v475_v34   ;;  %484 = vperm.xlu0 %1072, %v474_v35  }
  0x3e   : > { %499 = vperm.xlu1 %1073, %v477_v36   ;;  %494 = vperm.xlu0 %1072, %v476_v37  }
  0x42   : > { %509 = vperm.xlu1 %1073, %v479_v38   ;;  %504 = vperm.xlu0 %1072, %v478_v39  }
  0x46   : > { %519 = vperm.xlu1 %1073, %v481_v40   ;;  %514 = vperm.xlu0 %1072, %v480_v41  }
  0xa5   : > { %v421_v42 = vpop.permute.xlu0 %420  ;;  %v1248_v43 = vpop.permute.xlu1 %430 }
  0xa9   : > { %v426_v44 = vpop.permute.xlu0 %425  ;;  %v1250_v45 = vpop.permute.xlu1 %435 }
  0xad   : > { %v441_v46 = vpop.permute.xlu0 %440  ;;  %v446_v47 = vpop.permute.xlu1 %445 }
  0xb1   : > { %v1252_v48 = vpop.permute.xlu0 %450  ;;  %v1254_v49 = vpop.permute.xlu1 %455 }
  0xb5   : > { %v485_v50 = vpop.permute.xlu0 %484  ;;  %v490_v53 = vpop.permute.xlu1 %489 }
  0xb9   : > { %v1256_v58 = vpop.permute.xlu0 %494  ;;  %v1260_v4 = vpop.permute.xlu1 %499 }
  0xbd   : > { %v505_v8 = vpop.permute.xlu0 %504  ;;  %v510_v17 = vpop.permute.xlu1 %509 }
  0xc1   : > { %v515_v40 = vpop.permute.xlu0 %514 }
  0xe8   : > { %v347_v51 = vpop.f32.mrf.mxu0  ;;  %v371_v52 = vpop.f32.mrf.mxu1 }
  0xe9   : > { %v394_v54 = vmax.f32 %v347_v51, 0.0  ;;  %v402_v55 = vmax.f32 %v371_v52, 0.0  ;;  %v520_v52 = vpop.permute.xlu1 %519 }
  0xea   : > { %v349_v56 = vpop.f32.mrf.mxu0  ;;  %v373_v57 = vpop.f32.mrf.mxu1 }
  0xeb   : > { %v458_v59 = vmul.f32 %v421_v42, %v394_v54  ;;  %v395_v62 = vmax.f32 %v349_v56, 0.0  ;;  %v466_v0 = vmul.f32 %v441_v46, %v402_v55  ;;  %v403_v10 = vmax.f32 %v373_v57, 0.0 }
  0xec   : > { %v353_v60 = vpop.f32.mrf.mxu0  ;;  %v377_v61 = vpop.f32.mrf.mxu1 }
  0xed   : > { %v396_v63 = vmax.f32 %v353_v60, 0.0  ;;  %v404_v1 = vmax.f32 %v377_v61, 0.0  ;;  %v1258_v3 = vadd.f32 %v485_v50, %v458_v59  ;;  %v459_v9 = vmul.f32 %v421_v42, %v395_v62 }
  0xee   : > { %v355_v2 = vpop.f32.mrf.mxu0  ;;  %v379_v6 = vpop.f32.mrf.mxu1  ;;  %v1264_v13 = vadd.f32 %v505_v8, %v466_v0  ;;  %v467_v18 = vmul.f32 %v441_v46, %v403_v10 }
  0xef   : > { %v460_v5 = vmul.f32 %v426_v44, %v396_v63  ;;  %538 = vrot.lane.b32.xlu0 %v1258_v3, %s1100_s13  ;;  %v468_v11 = vmul.f32 %v446_v47, %v404_v1  ;;  %v397_v12 = vmax.f32 %v355_v2, 0.0  ;;  %v405_v19 = vmax.f32 %v379_v6, 0.0 }
  0xf0   : > { %v359_v7 = vpop.f32.mrf.mxu0  ;;  %v383_v15 = vpop.f32.mrf.mxu1  ;;  %v1272_v22 = vadd.f32 %v485_v50, %v459_v9  ;;  %v1280_v27 = vadd.f32 %v505_v8, %v467_v18 }
  0xf1   : > { %v1266_v14 = vadd.f32 %v490_v53, %v460_v5  ;;  %v461_v20 = vmul.f32 %v426_v44, %v397_v12  ;;  %v398_v21 = vmax.f32 %v359_v7, 0.0  ;;  %v1274_v23 = vadd.f32 %v510_v17, %v468_v11 }
  0xf2   : > { %v361_v16 = vpop.f32.mrf.mxu0  ;;  %v385_v24 = vpop.f32.mrf.mxu1  ;;  %v406_v26 = vmax.f32 %v383_v15, 0.0  ;;  %v469_v28 = vmul.f32 %v446_v47, %v405_v19 }
  0xf3   : > { %546 = vrot.lane.b32.xlu0 %v1264_v13, %s1100_s13  ;;  %540 = vrot.lane.b32.xlu1 %v1266_v14, %s1100_s13  ;;  %v462_v29 = vmul.f32 %v1248_v43, %v398_v21  ;;  %v1283_v31 = vadd.f32 %v490_v53, %v461_v20  ;;  %v399_v34 = vmax.f32 %v361_v16, 0.0  ;;  %v407_v42 = vmax.f32 %v385_v24, 0.0 }
  0xf4   : > { %v365_v25 = vpop.f32.mrf.mxu0  ;;  %v389_v32 = vpop.f32.mrf.mxu1  ;;  %v470_v33 = vmul.f32 %v1252_v48, %v406_v26  ;;  %v1291_v37 = vadd.f32 %v510_v17, %v469_v28 }
  0xf5   : > { %v400_v30 = vmax.f32 %v365_v25, 0.0  ;;  %v408_v36 = vmax.f32 %v389_v32, 0.0  ;;  %v1294_v38 = vadd.f32 %v1256_v58, %v462_v29  ;;  %v463_v41 = vmul.f32 %v1248_v43, %v399_v34 }
  0xf6   : > { %v367_v39 = vpop.f32.mrf.mxu0  ;;  %v1302_v47 = vadd.f32 %v515_v40, %v470_v33  ;;  %v391_v51 = vpop.f32.mrf.mxu1  ;;  %v471_v53 = vmul.f32 %v1252_v48, %v407_v42 }
  0xf7   : > { %554 = vrot.lane.b32.xlu0 %v1272_v22, %s1100_s13  ;;  %548 = vrot.lane.b32.xlu1 %v1274_v23, %s1100_s13  ;;  %v464_v35 = vmul.f32 %v1250_v45, %v400_v30  ;;  %v472_v44 = vmul.f32 %v1254_v49, %v408_v36  ;;  %v401_v46 = vmax.f32 %v367_v39, 0.0  ;;  %v409_v54 = vmax.f32 %v391_v51, 0.0 }
  0xf8   : > { %v1314_v55 = vadd.f32 %v1256_v58, %v463_v41  ;;  %v1326_v48 = vadd.f32 %v515_v40, %v471_v53 }
  0xf9   : > { %v1305_v50 = vadd.f32 %v1260_v4, %v464_v35  ;;  %v465_v43 = vmul.f32 %v1250_v45, %v401_v46  ;;  %v1316_v56 = vadd.f32 %v520_v52, %v472_v44  ;;  %v473_v59 = vmul.f32 %v1254_v49, %v409_v54 }
  0xfa   : > { %v570_v49 = vlaneseq }
  0xfb   : > { %562 = vrot.lane.b32.xlu0 %v1280_v27, %s1100_s13  ;;  %556 = vrot.lane.b32.xlu1 %v1283_v31, %s1100_s13  ;;  %v1323_v57 = vadd.f32 %v1260_v4, %v465_v43  ;;  %v1332_v45 = vadd.f32 %v520_v52, %v473_v59 }
  0xfc   : > { %v1364_v60 = vand.u32 127, %v570_v49 }
  0xfe   : > { %vm572_vm2 = vcmp.lt.s32.totalorder %v1364_v60, 127  ;;  %vm637_vm3 = vcmp.lt.s32.totalorder %v1364_v60, 126  ;;  %vm702_vm4 = vcmp.lt.s32.totalorder %v1364_v60, 124  ;;  %vm767_vm5 = vcmp.lt.s32.totalorder %v1364_v60, 112 }
  0xff   : > { %564 = vrot.lane.b32.xlu1 %v1291_v37, %s1100_s13  ;;  %542 = vrot.lane.b32.xlu0 %v1294_v38, %s1100_s13  ;;  %vm832_vm6 = vcmp.lt.s32.totalorder %v1364_v60, 96  ;;  %vm897_vm7 = vcmp.lt.s32.totalorder %v1364_v60, 64 }
 0x103   : > { %550 = vrot.lane.b32.xlu0 %v1302_v47, %s1100_s13  ;;  %544 = vrot.lane.b32.xlu1 %v1305_v50, %s1100_s13 }
 0x107   : > { %558 = vrot.lane.b32.xlu0 %v1314_v55, %s1100_s13  ;;  %552 = vrot.lane.b32.xlu1 %v1316_v56, %s1100_s13 }
 0x10b   : > { %566 = vrot.lane.b32.xlu0 %v1326_v48, %s1100_s13  ;;  %560 = vrot.lane.b32.xlu1 %v1323_v57, %s1100_s13 }
 0x10f   : > { %670 = vrot.lane.b32.xlu0 %v1258_v3, %s1101_s14  ;;  %568 = vrot.lane.b32.xlu1 %v1332_v45, %s1100_s13 }
 0x113   : > { %674 = vrot.lane.b32.xlu0 %v1294_v38, %s1101_s14  ;;  %672 = vrot.lane.b32.xlu1 %v1266_v14, %s1101_s14 }
 0x117   : > { %678 = vrot.lane.b32.xlu0 %v1264_v13, %s1101_s14  ;;  %676 = vrot.lane.b32.xlu1 %v1305_v50, %s1101_s14 }
 0x11b   : > { %682 = vrot.lane.b32.xlu0 %v1302_v47, %s1101_s14  ;;  %680 = vrot.lane.b32.xlu1 %v1274_v23, %s1101_s14 }
 0x11f   : > { %686 = vrot.lane.b32.xlu0 %v1272_v22, %s1101_s14  ;;  %684 = vrot.lane.b32.xlu1 %v1316_v56, %s1101_s14 }
 0x123   : > { %690 = vrot.lane.b32.xlu0 %v1314_v55, %s1101_s14  ;;  %688 = vrot.lane.b32.xlu1 %v1283_v31, %s1101_s14 }
 0x127   : > { %694 = vrot.lane.b32.xlu0 %v1280_v27, %s1101_s14  ;;  %696 = vrot.lane.b32.xlu1 %v1291_v37, %s1101_s14 }
 0x12b   : > { %692 = vrot.lane.b32.xlu1 %v1323_v57, %s1101_s14 }
 0x161   : > { %v539_v58 = vpop.permute.xlu0 %538 }
 0x165   : > { %v547_v61 = vpop.permute.xlu0 %546  ;;  %v541_v62 = vpop.permute.xlu1 %540 }
 0x169   : > { %v555_v63 = vpop.permute.xlu0 %554  ;;  %v549_v0 = vpop.permute.xlu1 %548 }
 0x16a   : > { %v573_v1 = vsel %vm572_vm2, %v539_v58, %v555_v63 }
 0x16b   : > { %v1370_v2 = vmax.f32 %v1258_v3, %v573_v1  ;;  %v581_v3 = vsel %vm572_vm2, %v555_v63, %v539_v58 }
 0x16d   : > { %v563_v4 = vpop.permute.xlu0 %562  ;;  %v557_v5 = vpop.permute.xlu1 %556  ;;  %605 = vrot.lane.b32.xlu0 %v1370_v2, %s1102_s15 }
 0x16e   : > { %v577_v6 = vsel %vm572_vm2, %v547_v61, %v563_v4  ;;  %v574_v7 = vsel %vm572_vm2, %v541_v62, %v557_v5  ;;  %v585_v15 = vsel %vm572_vm2, %v563_v4, %v547_v61  ;;  %v582_v16 = vsel %vm572_vm2, %v557_v5, %v541_v62 }
 0x16f   : > { %v1379_v8 = vmax.f32 %v1264_v13, %v577_v6  ;;  %v1382_v9 = vmax.f32 %v1266_v14, %v574_v7  ;;  %v1393_v13 = vmax.f32 %v1272_v22, %v581_v3  ;;  %v1407_v19 = vmax.f32 %v1280_v27, %v585_v15 }
 0x170   : > { %v1410_v20 = vmax.f32 %v1283_v31, %v582_v16 }
 0x171   : > { %v565_v10 = vpop.permute.xlu1 %564  ;;  %v543_v11 = vpop.permute.xlu0 %542  ;;  %613 = vrot.lane.b32.xlu0 %v1379_v8, %s1102_s15  ;;  %607 = vrot.lane.b32.xlu1 %v1382_v9, %s1102_s15 }
 0x172   : > { %v578_v12 = vsel %vm572_vm2, %v549_v0, %v565_v10  ;;  %v586_v21 = vsel %vm572_vm2, %v565_v10, %v549_v0 }
 0x173   : > { %v1396_v14 = vmax.f32 %v1274_v23, %v578_v12  ;;  %v1421_v25 = vmax.f32 %v1291_v37, %v586_v21 }
 0x175   : > { %v551_v17 = vpop.permute.xlu0 %550  ;;  %621 = vrot.lane.b32.xlu0 %v1393_v13, %s1102_s15  ;;  %v545_v18 = vpop.permute.xlu1 %544  ;;  %615 = vrot.lane.b32.xlu1 %v1396_v14, %s1102_s15 }
 0x179   : > { %629 = vrot.lane.b32.xlu0 %v1407_v19, %s1102_s15  ;;  %v559_v22 = vpop.permute.xlu0 %558  ;;  %v553_v23 = vpop.permute.xlu1 %552  ;;  %623 = vrot.lane.b32.xlu1 %v1410_v20, %s1102_s15 }
 0x17a   : > { %v575_v24 = vsel %vm572_vm2, %v543_v11, %v559_v22  ;;  %v583_v33 = vsel %vm572_vm2, %v559_v22, %v543_v11 }
 0x17b   : > { %v1424_v26 = vmax.f32 %v1294_v38, %v575_v24  ;;  %v1449_v36 = vmax.f32 %v1314_v55, %v583_v33 }
 0x17d   : > { %609 = vrot.lane.b32.xlu0 %v1424_v26, %s1102_s15  ;;  %v567_v27 = vpop.permute.xlu0 %566  ;;  %631 = vrot.lane.b32.xlu1 %v1421_v25, %s1102_s15  ;;  %v561_v28 = vpop.permute.xlu1 %560 }
 0x17e   : > { %v579_v29 = vsel %vm572_vm2, %v551_v17, %v567_v27  ;;  %v576_v30 = vsel %vm572_vm2, %v545_v18, %v561_v28  ;;  %v587_v38 = vsel %vm572_vm2, %v567_v27, %v551_v17  ;;  %v584_v39 = vsel %vm572_vm2, %v561_v28, %v545_v18 }
 0x17f   : > { %v1435_v31 = vmax.f32 %v1302_v47, %v579_v29  ;;  %v1438_v32 = vmax.f32 %v1305_v50, %v576_v30  ;;  %v1463_v40 = vmax.f32 %v1326_v48, %v587_v38  ;;  %v1466_v41 = vmax.f32 %v1323_v57, %v584_v39 }
 0x181   : > { %617 = vrot.lane.b32.xlu0 %v1435_v31, %s1102_s15  ;;  %611 = vrot.lane.b32.xlu1 %v1438_v32, %s1102_s15  ;;  %v569_v34 = vpop.permute.xlu1 %568  ;;  %v671_v46 = vpop.permute.xlu0 %670 }
 0x182   : > { %v580_v35 = vsel %vm572_vm2, %v553_v23, %v569_v34  ;;  %v588_v42 = vsel %vm572_vm2, %v569_v34, %v553_v23 }
 0x183   : > { %v1452_v37 = vmax.f32 %v1316_v56, %v580_v35  ;;  %v1475_v44 = vmax.f32 %v1332_v45, %v588_v42 }
 0x185   : > { %625 = vrot.lane.b32.xlu0 %v1449_v36, %s1102_s15  ;;  %619 = vrot.lane.b32.xlu1 %v1452_v37, %s1102_s15  ;;  %v673_v47 = vpop.permute.xlu1 %672  ;;  %v1483_v50 = vpop.permute.xlu0 %674 }
 0x189   : > { %633 = vrot.lane.b32.xlu0 %v1463_v40, %s1102_s15  ;;  %627 = vrot.lane.b32.xlu1 %v1466_v41, %s1102_s15  ;;  %v1485_v51 = vpop.permute.xlu1 %676  ;;  %v679_v52 = vpop.permute.xlu0 %678 }
 0x18d   : > { %698 = vrot.lane.b32.xlu0 %v1326_v48, %s1101_s14  ;;  %635 = vrot.lane.b32.xlu1 %v1475_v44, %s1102_s15  ;;  %v1487_v53 = vpop.permute.xlu1 %680  ;;  %v1489_v43 = vpop.permute.xlu0 %682 }
 0x191   : > { %700 = vrot.lane.b32.xlu1 %v1332_v45, %s1101_s14  ;;  %v1491_v54 = vpop.permute.xlu1 %684  ;;  %v687_v55 = vpop.permute.xlu0 %686 }
 0x192   : > { %v703_v4 = vsel %vm702_vm4, %v671_v46, %v687_v55 }
 0x195   : > { %v689_v56 = vpop.permute.xlu1 %688  ;;  %v1493_v57 = vpop.permute.xlu0 %690 }
 0x196   : > { %v704_v15 = vsel %vm702_vm4, %v673_v47, %v689_v56 }
 0x199   : > { %v697_v59 = vpop.permute.xlu1 %696  ;;  %v695_v48 = vpop.permute.xlu0 %694 }
 0x19a   : > { %v707_v16 = vsel %vm702_vm4, %v679_v52, %v695_v48  ;;  %v708_v28 = vsel %vm702_vm4, %v1487_v53, %v697_v59 }
 0x19d   : > { %v1495_v45 = vpop.permute.xlu1 %692 }
 0x1df   : > { %v606_v49 = vpop.permute.xlu0 %605 }
 0x1e3   : > { %v614_v58 = vpop.permute.xlu0 %613  ;;  %v608_v61 = vpop.permute.xlu1 %607 }
 0x1e7   : > { %v622_v62 = vpop.permute.xlu0 %621  ;;  %v616_v63 = vpop.permute.xlu1 %615 }
 0x1e8   : > { %v638_v0 = vsel %vm637_vm3, %v606_v49, %v622_v62  ;;  %v646_v3 = vsel %vm637_vm3, %v622_v62, %v606_v49 }
 0x1e9   : > { %v654_v1 = vmax.f32 %v1370_v2, %v638_v0  ;;  %v655_v17 = vmax.f32 %v1393_v13, %v646_v3  ;;  %v711_v13 = vsel %vm702_vm4, %v687_v55, %v671_v46 }
 0x1eb   : > { %v630_v5 = vpop.permute.xlu0 %629  ;;  %v624_v6 = vpop.permute.xlu1 %623  ;;  %v1504_v7 = vmax.f32 %v654_v1, %v703_v4 }
 0x1ec   : > { %v642_v10 = vsel %vm637_vm3, %v614_v58, %v630_v5  ;;  %v639_v11 = vsel %vm637_vm3, %v608_v61, %v624_v6 }
 0x1ed   : > { %v662_v12 = vmax.f32 %v1379_v8, %v642_v10  ;;  %v656_v2 = vmax.f32 %v1382_v9, %v639_v11  ;;  %735 = vrot.lane.b32.xlu0 %v1504_v7, %s1103_s20  ;;  %v650_v8 = vsel %vm637_vm3, %v630_v5, %v614_v58  ;;  %v647_v9 = vsel %vm637_vm3, %v624_v6, %v608_v61 }
 0x1ee   : > { %v663_v29 = vmax.f32 %v1407_v19, %v650_v8  ;;  %v657_v30 = vmax.f32 %v1410_v20, %v647_v9  ;;  %v712_v19 = vsel %vm702_vm4, %v689_v56, %v673_v47  ;;  %v715_v20 = vsel %vm702_vm4, %v695_v48, %v679_v52 }
 0x1ef   : > { %v610_v18 = vpop.permute.xlu0 %609  ;;  %v632_v21 = vpop.permute.xlu1 %631  ;;  %v1521_v22 = vmax.f32 %v662_v12, %v707_v16  ;;  %v1523_v23 = vmax.f32 %v656_v2, %v704_v15  ;;  %v705_v47 = vsel %vm702_vm4, %v1483_v50, %v1493_v57  ;;  %v713_v15 = vsel %vm702_vm4, %v1493_v57, %v1483_v50 }
 0x1f0   : > { %v643_v24 = vsel %vm637_vm3, %v616_v63, %v632_v21  ;;  %v651_v38 = vsel %vm637_vm3, %v632_v21, %v616_v63  ;;  %v1557_v46 = vmax.f32 %v663_v29, %v715_v20  ;;  %v1559_v55 = vmax.f32 %v657_v30, %v712_v19 }
 0x1f1   : > { %v664_v27 = vmax.f32 %v1396_v14, %v643_v24  ;;  %743 = vrot.lane.b32.xlu0 %v1521_v22, %s1103_s20  ;;  %737 = vrot.lane.b32.xlu1 %v1523_v23, %s1103_s20  ;;  %v1543_v14 = vmax.f32 %v655_v17, %v711_v13  ;;  %v665_v49 = vmax.f32 %v1421_v25, %v651_v38 }
 0x1f2   : > { %v716_v25 = vsel %vm702_vm4, %v697_v59, %v1487_v53  ;;  %v706_v53 = vsel %vm702_vm4, %v1485_v51, %v1495_v45 }
 0x1f3   : > { %v618_v33 = vpop.permute.xlu0 %617  ;;  %v612_v34 = vpop.permute.xlu1 %611  ;;  %v1545_v35 = vmax.f32 %v664_v27, %v708_v28  ;;  %v1582_v63 = vmax.f32 %v665_v49, %v716_v25 }
 0x1f5   : > { %751 = vrot.lane.b32.xlu0 %v1543_v14, %s1103_s20  ;;  %745 = vrot.lane.b32.xlu1 %v1545_v35, %s1103_s20 }
 0x1f7   : > { %v626_v39 = vpop.permute.xlu0 %625  ;;  %v620_v42 = vpop.permute.xlu1 %619 }
 0x1f8   : > { %v640_v58 = vsel %vm637_vm3, %v610_v18, %v626_v39  ;;  %v648_v59 = vsel %vm637_vm3, %v626_v39, %v610_v18 }
 0x1f9   : > { %v658_v61 = vmax.f32 %v1424_v26, %v640_v58  ;;  %759 = vrot.lane.b32.xlu0 %v1557_v46, %s1103_s20  ;;  %753 = vrot.lane.b32.xlu1 %v1559_v55, %s1103_s20  ;;  %v659_v10 = vmax.f32 %v1449_v36, %v648_v59 }
 0x1fb   : > { %v634_v52 = vpop.permute.xlu0 %633  ;;  %v628_v56 = vpop.permute.xlu1 %627  ;;  %v1576_v48 = vmax.f32 %v658_v61, %v705_v47 }
 0x1fc   : > { %v644_v26 = vsel %vm637_vm3, %v618_v33, %v634_v52  ;;  %v641_v62 = vsel %vm637_vm3, %v612_v34, %v628_v56  ;;  %v649_v12 = vsel %vm637_vm3, %v628_v56, %v612_v34  ;;  %v652_v36 = vsel %vm637_vm3, %v634_v52, %v618_v33 }
 0x1fd   : > { %v660_v0 = vmax.f32 %v1438_v32, %v641_v62  ;;  %739 = vrot.lane.b32.xlu0 %v1576_v48, %s1103_s20  ;;  %761 = vrot.lane.b32.xlu1 %v1582_v63, %s1103_s20  ;;  %v666_v1 = vmax.f32 %v1435_v31, %v644_v26  ;;  %v661_v17 = vmax.f32 %v1466_v41, %v649_v12 }
 0x1fe   : > { %v667_v8 = vmax.f32 %v1463_v40, %v652_v36  ;;  %v714_v41 = vsel %vm702_vm4, %v1495_v45, %v1485_v51 }
 0x1ff   : > { %v699_v4 = vpop.permute.xlu0 %698  ;;  %v636_v5 = vpop.permute.xlu1 %635  ;;  %v1596_v6 = vmax.f32 %v660_v0, %v706_v53  ;;  %v1643_v9 = vmax.f32 %v661_v17, %v714_v41 }
 0x200   : > { %v709_v32 = vsel %vm702_vm4, %v1489_v43, %v699_v4  ;;  %v645_v3 = vsel %vm637_vm3, %v620_v42, %v636_v5  ;;  %v717_v21 = vsel %vm702_vm4, %v699_v4, %v1489_v43  ;;  %v653_v50 = vsel %vm637_vm3, %v636_v5, %v620_v42 }
 0x201   : > { %v1604_v11 = vmax.f32 %v666_v1, %v709_v32  ;;  %741 = vrot.lane.b32.xlu1 %v1596_v6, %s1103_s20  ;;  %v668_v31 = vmax.f32 %v1452_v37, %v645_v3  ;;  %v1625_v37 = vmax.f32 %v659_v10, %v713_v15  ;;  %v1641_v57 = vmax.f32 %v667_v8, %v717_v21 }
 0x202   : > { %v669_v43 = vmax.f32 %v1475_v44, %v653_v50 }
 0x203   : > { %747 = vrot.lane.b32.xlu0 %v1604_v11, %s1103_s20  ;;  %v701_v2 = vpop.permute.xlu1 %700 }
 0x204   : > { %v710_v16 = vsel %vm702_vm4, %v1491_v54, %v701_v2  ;;  %v718_v40 = vsel %vm702_vm4, %v701_v2, %v1491_v54 }
 0x205   : > { %v1623_v18 = vmax.f32 %v668_v31, %v710_v16  ;;  %v1653_v51 = vmax.f32 %v669_v43, %v718_v40 }
 0x207   : > { %755 = vrot.lane.b32.xlu0 %v1625_v37, %s1103_s20  ;;  %749 = vrot.lane.b32.xlu1 %v1623_v18, %s1103_s20 }
 0x20b   : > { %763 = vrot.lane.b32.xlu0 %v1641_v57, %s1103_s20  ;;  %757 = vrot.lane.b32.xlu1 %v1643_v9, %s1103_s20 }
 0x20f   : > { %865 = vrot.lane.b32.xlu0 %v1504_v7, %s1104_s21  ;;  %765 = vrot.lane.b32.xlu1 %v1653_v51, %s1103_s20 }
 0x213   : > { %869 = vrot.lane.b32.xlu0 %v1576_v48, %s1104_s21  ;;  %867 = vrot.lane.b32.xlu1 %v1523_v23, %s1104_s21 }
 0x217   : > { %873 = vrot.lane.b32.xlu0 %v1521_v22, %s1104_s21  ;;  %875 = vrot.lane.b32.xlu1 %v1545_v35, %s1104_s21 }
 0x21b   : > { %877 = vrot.lane.b32.xlu0 %v1604_v11, %s1104_s21  ;;  %883 = vrot.lane.b32.xlu1 %v1559_v55, %s1104_s21 }
 0x21f   : > { %881 = vrot.lane.b32.xlu0 %v1543_v14, %s1104_s21  ;;  %891 = vrot.lane.b32.xlu1 %v1582_v63, %s1104_s21 }
 0x223   : > { %885 = vrot.lane.b32.xlu0 %v1625_v37, %s1104_s21  ;;  %871 = vrot.lane.b32.xlu1 %v1596_v6, %s1104_s21 }
 0x227   : > { %889 = vrot.lane.b32.xlu0 %v1557_v46, %s1104_s21  ;;  %879 = vrot.lane.b32.xlu1 %v1623_v18, %s1104_s21 }
 0x22b   : > { %887 = vrot.lane.b32.xlu1 %v1643_v9, %s1104_s21 }
 0x25f   : > { %v736_v44 = vpop.permute.xlu0 %735 }
 0x263   : > { %v744_v54 = vpop.permute.xlu0 %743  ;;  %v738_v45 = vpop.permute.xlu1 %737 }
 0x267   : > { %v752_v24 = vpop.permute.xlu0 %751  ;;  %v746_v27 = vpop.permute.xlu1 %745 }
 0x268   : > { %v768_v13 = vsel %vm767_vm5, %v736_v44, %v752_v24 }
 0x269   : > { %v1689_v28 = vmax.f32 %v1504_v7, %v768_v13  ;;  %v776_v7 = vsel %vm767_vm5, %v752_v24, %v736_v44 }
 0x26a   : > { %v1710_v39 = vmax.f32 %v1543_v14, %v776_v7 }
 0x26b   : > { %800 = vrot.lane.b32.xlu0 %v1689_v28, %s1105_s23  ;;  %v760_v29 = vpop.permute.xlu0 %759  ;;  %v754_v30 = vpop.permute.xlu1 %753 }
 0x26c   : > { %v772_v33 = vsel %vm767_vm5, %v744_v54, %v760_v29  ;;  %v769_v34 = vsel %vm767_vm5, %v738_v45, %v754_v30  ;;  %v777_v58 = vsel %vm767_vm5, %v754_v30, %v738_v45 }
 0x26d   : > { %v1698_v38 = vmax.f32 %v1521_v22, %v772_v33  ;;  %v1701_v19 = vmax.f32 %v1523_v23, %v769_v34  ;;  %v780_v23 = vsel %vm767_vm5, %v760_v29, %v744_v54  ;;  %v1729_v25 = vmax.f32 %v1559_v55, %v777_v58 }
 0x26e   : > { %v1726_v14 = vmax.f32 %v1557_v46, %v780_v23 }
 0x26f   : > { %808 = vrot.lane.b32.xlu0 %v1698_v38, %s1105_s23  ;;  %802 = vrot.lane.b32.xlu1 %v1701_v19, %s1105_s23  ;;  %v762_v20 = vpop.permute.xlu1 %761  ;;  %v740_v42 = vpop.permute.xlu0 %739 }
 0x270   : > { %v773_v22 = vsel %vm767_vm5, %v746_v27, %v762_v20 }
 0x271   : > { %v1717_v49 = vmax.f32 %v1545_v35, %v773_v22  ;;  %v781_v35 = vsel %vm767_vm5, %v762_v20, %v746_v27 }
 0x272   : > { %v1738_v26 = vmax.f32 %v1582_v63, %v781_v35 }
 0x273   : > { %816 = vrot.lane.b32.xlu0 %v1710_v39, %s1105_s23  ;;  %810 = vrot.lane.b32.xlu1 %v1717_v49, %s1105_s23  ;;  %v742_v61 = vpop.permute.xlu1 %741 }
 0x275   : > { %v748_v47 = vpop.permute.xlu0 %747 }
 0x277   : > { %824 = vrot.lane.b32.xlu0 %v1726_v14, %s1105_s23  ;;  %818 = vrot.lane.b32.xlu1 %v1729_v25, %s1105_s23 }
 0x279   : > { %v756_v52 = vpop.permute.xlu0 %755  ;;  %v750_v56 = vpop.permute.xlu1 %749 }
 0x27a   : > { %v770_v46 = vsel %vm767_vm5, %v740_v42, %v756_v52  ;;  %v778_v1 = vsel %vm767_vm5, %v756_v52, %v740_v42 }
 0x27b   : > { %v1743_v55 = vmax.f32 %v1576_v48, %v770_v46  ;;  %826 = vrot.lane.b32.xlu1 %v1738_v26, %s1105_s23  ;;  %v1768_v32 = vmax.f32 %v1625_v37, %v778_v1 }
 0x27d   : > { %804 = vrot.lane.b32.xlu0 %v1743_v55, %s1105_s23  ;;  %v764_v62 = vpop.permute.xlu0 %763  ;;  %v758_v0 = vpop.permute.xlu1 %757 }
 0x27e   : > { %v774_v53 = vsel %vm767_vm5, %v748_v47, %v764_v62  ;;  %v771_v63 = vsel %vm767_vm5, %v742_v61, %v758_v0  ;;  %v779_v10 = vsel %vm767_vm5, %v758_v0, %v742_v61 }
 0x27f   : > { %v1754_v59 = vmax.f32 %v1604_v11, %v774_v53  ;;  %v1757_v48 = vmax.f32 %v1596_v6, %v771_v63  ;;  %v782_v6 = vsel %vm767_vm5, %v764_v62, %v748_v47  ;;  %v1785_v12 = vmax.f32 %v1643_v9, %v779_v10 }
 0x280   : > { %v1782_v11 = vmax.f32 %v1641_v57, %v782_v6 }
 0x281   : > { %812 = vrot.lane.b32.xlu0 %v1754_v59, %s1105_s23  ;;  %806 = vrot.lane.b32.xlu1 %v1757_v48, %s1105_s23  ;;  %v766_v4 = vpop.permute.xlu1 %765  ;;  %v866_v15 = vpop.permute.xlu0 %865 }
 0x282   : > { %v775_v5 = vsel %vm767_vm5, %v750_v56, %v766_v4  ;;  %v783_v31 = vsel %vm767_vm5, %v766_v4, %v750_v56 }
 0x283   : > { %v1771_v3 = vmax.f32 %v1623_v18, %v775_v5  ;;  %v1794_v2 = vmax.f32 %v1653_v51, %v783_v31 }
 0x285   : > { %820 = vrot.lane.b32.xlu0 %v1768_v32, %s1105_s23  ;;  %814 = vrot.lane.b32.xlu1 %v1771_v3, %s1105_s23  ;;  %v868_v36 = vpop.permute.xlu1 %867  ;;  %v1802_v16 = vpop.permute.xlu0 %869 }
 0x289   : > { %828 = vrot.lane.b32.xlu0 %v1782_v11, %s1105_s23  ;;  %822 = vrot.lane.b32.xlu1 %v1785_v12, %s1105_s23  ;;  %v876_v17 = vpop.permute.xlu1 %875  ;;  %v874_v18 = vpop.permute.xlu0 %873 }
 0x28d   : > { %893 = vrot.lane.b32.xlu0 %v1641_v57, %s1104_s21  ;;  %830 = vrot.lane.b32.xlu1 %v1794_v2, %s1105_s23  ;;  %v884_v37 = vpop.permute.xlu1 %883  ;;  %v1804_v21 = vpop.permute.xlu0 %877 }
 0x28e   : > { %v907_v46 = vsel %vm897_vm7, %v884_v37, %v868_v36 }
 0x291   : > { %895 = vrot.lane.b32.xlu1 %v1653_v51, %s1104_s21  ;;  %v892_v8 = vpop.permute.xlu1 %891  ;;  %v882_v41 = vpop.permute.xlu0 %881 }
 0x292   : > { %v898_v33 = vsel %vm897_vm7, %v866_v15, %v882_v41  ;;  %v906_v34 = vsel %vm897_vm7, %v882_v41, %v866_v15  ;;  %v903_v10 = vsel %vm897_vm7, %v876_v17, %v892_v8  ;;  %v911_v31 = vsel %vm897_vm7, %v892_v8, %v876_v17 }
 0x295   : > { %v1806_v50 = vpop.permute.xlu1 %871  ;;  %v1808_v57 = vpop.permute.xlu0 %885 }
 0x296   : > { %v900_v8 = vsel %vm897_vm7, %v1802_v16, %v1808_v57 }
 0x299   : > { %v1810_v9 = vpop.permute.xlu1 %879  ;;  %v890_v40 = vpop.permute.xlu0 %889 }
 0x29a   : > { %v902_v35 = vsel %vm897_vm7, %v874_v18, %v890_v40  ;;  %v910_v52 = vsel %vm897_vm7, %v890_v40, %v874_v18 }
 0x29d   : > { %v1812_v43 = vpop.permute.xlu1 %887 }
 0x2dd   : > { %v801_v51 = vpop.permute.xlu0 %800 }
 0x2e1   : > { %v809_v44 = vpop.permute.xlu0 %808  ;;  %v803_v54 = vpop.permute.xlu1 %802 }
 0x2e5   : > { %v817_v45 = vpop.permute.xlu0 %816  ;;  %v811_v13 = vpop.permute.xlu1 %810 }
 0x2e6   : > { %v833_v24 = vsel %vm832_vm6, %v801_v51, %v817_v45  ;;  %v841_v27 = vsel %vm832_vm6, %v817_v45, %v801_v51 }
 0x2e7   : > { %v849_v29 = vmax.f32 %v1689_v28, %v833_v24  ;;  %v850_v30 = vmax.f32 %v1710_v39, %v841_v27 }
 0x2e9   : > { %v914_v7 = vmax.f32 %v849_v29, %v898_v33  ;;  %v915_v20 = vmax.f32 %v850_v30, %v906_v34  ;;  %v825_v42 = vpop.permute.xlu0 %824  ;;  %v819_v22 = vpop.permute.xlu1 %818  ;;  %v901_v30 = vsel %vm897_vm7, %v1806_v50, %v1812_v43  ;;  %v909_v33 = vsel %vm897_vm7, %v1812_v43, %v1806_v50 }
 0x2ea   : > { %v837_v28 = vsel %vm832_vm6, %v809_v44, %v825_v42  ;;  %v845_v39 = vsel %vm832_vm6, %v825_v42, %v809_v44  ;;  %v834_v61 = vsel %vm832_vm6, %v803_v54, %v819_v22  ;;  %v842_v47 = vsel %vm832_vm6, %v819_v22, %v803_v54 }
 0x2eb   : > { %930 = vst [vmem:[%s1833_s25] sm:$0xff] %v914_v7  ;;  %931 = vst [vmem:[%s1833_s25 + $0x8] sm:$0xff] %v915_v20  ;;  %v857_v23 = vmax.f32 %v1698_v38, %v837_v28  ;;  %v858_v58 = vmax.f32 %v1726_v14, %v845_v39  ;;  %v851_v56 = vmax.f32 %v1701_v19, %v834_v61 }
 0x2ec   : > { %v852_v38 = vmax.f32 %v1729_v25, %v842_v47  ;;  %v899_v14 = vsel %vm897_vm7, %v868_v36, %v884_v37  ;;  %v908_v44 = vsel %vm897_vm7, %v1808_v57, %v1802_v16 }
 0x2ed   : > { %v922_v62 = vmax.f32 %v857_v23, %v902_v35  ;;  %v923_v0 = vmax.f32 %v858_v58, %v910_v52  ;;  %v916_v53 = vmax.f32 %v851_v56, %v899_v14  ;;  %v827_v1 = vpop.permute.xlu1 %826 }
 0x2ee   : > { %v917_v63 = vmax.f32 %v852_v38, %v907_v46  ;;  %v838_v19 = vsel %vm832_vm6, %v811_v13, %v827_v1  ;;  %v846_v25 = vsel %vm832_vm6, %v827_v1, %v811_v13 }
 0x2ef   : > { %938 = vst [vmem:[%s1833_s25 + $0x40] sm:$0xff] %v922_v62  ;;  %939 = vst [vmem:[%s1833_s25 + $0x48] sm:$0xff] %v923_v0  ;;  %v805_v4 = vpop.permute.xlu0 %804  ;;  %v859_v5 = vmax.f32 %v1717_v49, %v838_v19  ;;  %v860_v6 = vmax.f32 %v1738_v26, %v846_v25 }
 0x2f0   : > { %932 = vst [vmem:[%s1833_s25 + $0x10] sm:$0xff] %v916_v53  ;;  %933 = vst [vmem:[%s1833_s25 + $0x18] sm:$0xff] %v917_v63 }
 0x2f1   : > { %v924_v15 = vmax.f32 %v859_v5, %v903_v10  ;;  %v925_v36 = vmax.f32 %v860_v6, %v911_v31 }
 0x2f3   : > { %v813_v18 = vpop.permute.xlu0 %812  ;;  %v807_v37 = vpop.permute.xlu1 %806  ;;  %940 = vst [vmem:[%s1833_s25 + $0x50] sm:$0xff] %v924_v15  ;;  %941 = vst [vmem:[%s1833_s25 + $0x58] sm:$0xff] %v925_v36 }
 0x2f7   : > { %v821_v41 = vpop.permute.xlu0 %820  ;;  %v815_v40 = vpop.permute.xlu1 %814 }
 0x2f8   : > { %v835_v49 = vsel %vm832_vm6, %v805_v4, %v821_v41  ;;  %v843_v26 = vsel %vm832_vm6, %v821_v41, %v805_v4 }
 0x2f9   : > { %v853_v51 = vmax.f32 %v1743_v55, %v835_v49  ;;  %v854_v17 = vmax.f32 %v1768_v32, %v843_v26 }
 0x2fb   : > { %v918_v54 = vmax.f32 %v853_v51, %v900_v8  ;;  %v919_v45 = vmax.f32 %v854_v17, %v908_v44  ;;  %v829_v24 = vpop.permute.xlu0 %828  ;;  %v823_v27 = vpop.permute.xlu1 %822 }
 0x2fc   : > { %v839_v13 = vsel %vm832_vm6, %v813_v18, %v829_v24  ;;  %v847_v55 = vsel %vm832_vm6, %v829_v24, %v813_v18  ;;  %v836_v32 = vsel %vm832_vm6, %v807_v37, %v823_v27  ;;  %v844_v29 = vsel %vm832_vm6, %v823_v27, %v807_v37 }
 0x2fd   : > { %934 = vst [vmem:[%s1833_s25 + $0x20] sm:$0xff] %v918_v54  ;;  %935 = vst [vmem:[%s1833_s25 + $0x28] sm:$0xff] %v919_v45  ;;  %v855_v16 = vmax.f32 %v1757_v48, %v836_v32  ;;  %v856_v57 = vmax.f32 %v1785_v12, %v844_v29  ;;  %v861_v34 = vmax.f32 %v1754_v59, %v839_v13 }
 0x2fe   : > { %v862_v7 = vmax.f32 %v1782_v11, %v847_v55 }
 0x2ff   : > { %v920_v20 = vmax.f32 %v855_v16, %v901_v30  ;;  %v921_v48 = vmax.f32 %v856_v57, %v909_v33  ;;  %v894_v42 = vpop.permute.xlu0 %893  ;;  %v831_v12 = vpop.permute.xlu1 %830 }
 0x300   : > { %v904_v28 = vsel %vm897_vm7, %v1804_v21, %v894_v42  ;;  %v912_v39 = vsel %vm897_vm7, %v894_v42, %v1804_v21  ;;  %v840_v50 = vsel %vm832_vm6, %v815_v40, %v831_v12  ;;  %v848_v59 = vsel %vm832_vm6, %v831_v12, %v815_v40 }
 0x301   : > { %936 = vst [vmem:[%s1833_s25 + $0x30] sm:$0xff] %v920_v20  ;;  %937 = vst [vmem:[%s1833_s25 + $0x38] sm:$0xff] %v921_v48  ;;  %v926_v11 = vmax.f32 %v861_v34, %v904_v28  ;;  %v927_v43 = vmax.f32 %v862_v7, %v912_v39  ;;  %v863_v22 = vmax.f32 %v1771_v3, %v840_v50 }
 0x302   : > { %v864_v23 = vmax.f32 %v1794_v2, %v848_v59 }
 0x303   : > { %942 = vst [vmem:[%s1833_s25 + $0x60] sm:$0xff] %v926_v11  ;;  %943 = vst [vmem:[%s1833_s25 + $0x68] sm:$0xff] %v927_v43  ;;  %v896_v58 = vpop.permute.xlu1 %895 }
 0x304   : > { %v905_v21 = vsel %vm897_vm7, %v1810_v9, %v896_v58  ;;  %v913_v61 = vsel %vm897_vm7, %v896_v58, %v1810_v9 }
 0x305   : > { %v928_v47 = vmax.f32 %v863_v22, %v905_v21  ;;  %v929_v35 = vmax.f32 %v864_v23, %v913_v61 }
 0x307   : > { %944 = vst [vmem:[%s1833_s25 + $0x70] sm:$0xff] %v928_v47  ;;  %945 = vst [vmem:[%s1833_s25 + $0x78] sm:$0xff] %v929_v35 }
 0x308 PF: > { %p11_p9 = scmp.ge.s32.totalorder %s1148_s19, 4   ;;  %s1948_s15 = smov %s1092_s16 }
 0x309   : > { %s1949_s16 = smov %s1157_s22  ;;  %s1950_s17 = smov %s1148_s19 }
 0x30a   :  { %13 = sbr.rel (!%p11_p9) target bundleno = 2 (0x2), region = 94 }

// kernel: model_forward.3
= control target key start
LH: loop header
LB: loop body
LE: loop exit
PB: predicated region body
PF: predicated region fallthrough
CT: control target
= control target key end

     0   :  { %v9614_v30 = vmov 1983009808   ;;  %v2138_v32 = vlaneseq  ;;  %s15951_s0 = inlined_call_operand.vmem [shape: f32[2,16384], index: 0, kind: input, shape index: {}]   ;;  %s15952_s1 = inlined_call_operand.vmem [shape: f32[16384,10], index: 1, kind: input, shape index: {}]   ;;  %s15953_s2 = inlined_call_operand.vmem [shape: f32[1,10], index: 2, kind: input, shape index: {}]   ;;  %s15954_s3 = inlined_call_operand.hbm [shape: f32[2,10], index: 3, kind: output, shape index: {}]  }
   0x1   :  { %v78_v0 = vld [vmem:[%s15952_s1 + $0xf8] sm:$0xff]  ;;  %v77_v4 = vld [vmem:[%s15952_s1 + $0xf0] sm:$0xff]  ;;  %v76_v8 = vld [vmem:[%s15952_s1 + $0xe8] sm:$0xff]  ;;  %v2136_v31 = vunpack.c.l.s4 %v9614_v30 }
   0x2   :  { %v110_v1 = vld [vmem:[%s15952_s1 + $0x1f8] sm:$0xff]  ;;  %7314 = vmatprep.subr.mxu0 %v78_v0  ;;  %v109_v5 = vld [vmem:[%s15952_s1 + $0x1f0] sm:$0xff]  ;;  %v108_v9 = vld [vmem:[%s15952_s1 + $0x1e8] sm:$0xff]  ;;  %v2139_v42 = vshrl.u32 %v2138_v32, 7 }
   0x3   :  { %v62_v2 = vld [vmem:[%s15952_s1 + $0x78] sm:$0xff]  ;;  %7349 = vmatprep.subr.mxu1 %v110_v1  ;;  %v61_v6 = vld [vmem:[%s15952_s1 + $0x70] sm:$0xff]  ;;  %v60_v10 = vld [vmem:[%s15952_s1 + $0x68] sm:$0xff]  ;;  %v2137_v41 = vunpack.c.0.s8 %v2136_v31 }
   0x4   :  { %v94_v3 = vld [vmem:[%s15952_s1 + $0x178] sm:$0xff]  ;;  %7315 = vmatpush3.msra.mxu0 %v62_v2  ;;  %v93_v7 = vld [vmem:[%s15952_s1 + $0x170] sm:$0xff]  ;;  %v92_v11 = vld [vmem:[%s15952_s1 + $0x168] sm:$0xff] }
   0x5   :  { %7350 = vmatpush3.msra.mxu1 %v94_v3  ;;  %7316 = vmatprep.subr.mxu0 %v77_v4  ;;  %v75_v12 = vld [vmem:[%s15952_s1 + $0xe0] sm:$0xff]  ;;  %v74_v16 = vld [vmem:[%s15952_s1 + $0xd8] sm:$0xff]  ;;  %v73_v20 = vld [vmem:[%s15952_s1 + $0xd0] sm:$0xff]  ;;  %v9774_v51 = vsub.s32 %v2137_v41, %v2139_v42 }
   0x6   :  { %7351 = vmatprep.subr.mxu1 %v109_v5  ;;  %7317 = vmatpush3.msra.mxu0 %v61_v6  ;;  %v107_v13 = vld [vmem:[%s15952_s1 + $0x1e0] sm:$0xff]  ;;  %v106_v17 = vld [vmem:[%s15952_s1 + $0x1d8] sm:$0xff]  ;;  %v105_v21 = vld [vmem:[%s15952_s1 + $0x1d0] sm:$0xff] }
   0x7   :  { %7352 = vmatpush3.msra.mxu1 %v93_v7  ;;  %7318 = vmatprep.subr.mxu0 %v76_v8  ;;  %v59_v14 = vld [vmem:[%s15952_s1 + $0x60] sm:$0xff]  ;;  %v58_v18 = vld [vmem:[%s15952_s1 + $0x58] sm:$0xff]  ;;  %v57_v22 = vld [vmem:[%s15952_s1 + $0x50] sm:$0xff] }
   0x8   :  { %7353 = vmatprep.subr.mxu1 %v108_v9  ;;  %v91_v15 = vld [vmem:[%s15952_s1 + $0x160] sm:$0xff]  ;;  %7319 = vmatpush3.msra.mxu0 %v60_v10  ;;  %v90_v19 = vld [vmem:[%s15952_s1 + $0x158] sm:$0xff]  ;;  %v89_v23 = vld [vmem:[%s15952_s1 + $0x150] sm:$0xff] }
   0x9   :  { %7354 = vmatpush3.msra.mxu1 %v92_v11  ;;  %7320 = vmatprep.subr.mxu0 %v75_v12  ;;  %v72_v24 = vld [vmem:[%s15952_s1 + $0xc8] sm:$0xff]  ;;  %v71_v28 = vld [vmem:[%s15952_s1 + $0xc0] sm:$0xff]  ;;  %v70_v35 = vld [vmem:[%s15952_s1 + $0xb8] sm:$0xff] }
   0xa   :  { %7355 = vmatprep.subr.mxu1 %v107_v13  ;;  %7321 = vmatpush3.msra.mxu0 %v59_v14  ;;  %v104_v25 = vld [vmem:[%s15952_s1 + $0x1c8] sm:$0xff]  ;;  %v103_v29 = vld [vmem:[%s15952_s1 + $0x1c0] sm:$0xff]  ;;  %v102_v36 = vld [vmem:[%s15952_s1 + $0x1b8] sm:$0xff] }
   0xb   :  { %7356 = vmatpush3.msra.mxu1 %v91_v15  ;;  %7322 = vmatprep.subr.mxu0 %v74_v16  ;;  %v56_v26 = vld [vmem:[%s15952_s1 + $0x48] sm:$0xff]  ;;  %v55_v33 = vld [vmem:[%s15952_s1 + $0x40] sm:$0xff]  ;;  %v54_v37 = vld [vmem:[%s15952_s1 + $0x38] sm:$0xff] }
   0xc   :  { %7357 = vmatprep.subr.mxu1 %v106_v17  ;;  %7323 = vmatpush3.msra.mxu0 %v58_v18  ;;  %v88_v27 = vld [vmem:[%s15952_s1 + $0x148] sm:$0xff]  ;;  %v87_v34 = vld [vmem:[%s15952_s1 + $0x140] sm:$0xff]  ;;  %v86_v38 = vld [vmem:[%s15952_s1 + $0x138] sm:$0xff] }
   0xd   :  { %7358 = vmatpush3.msra.mxu1 %v90_v19  ;;  %7324 = vmatprep.subr.mxu0 %v73_v20  ;;  %v69_v39 = vld [vmem:[%s15952_s1 + $0xb0] sm:$0xff]  ;;  %v68_v45 = vld [vmem:[%s15952_s1 + $0xa8] sm:$0xff]  ;;  %v67_v49 = vld [vmem:[%s15952_s1 + $0xa0] sm:$0xff] }
   0xe   :  { %7359 = vmatprep.subr.mxu1 %v105_v21  ;;  %7325 = vmatpush3.msra.mxu0 %v57_v22  ;;  %v101_v40 = vld [vmem:[%s15952_s1 + $0x1b0] sm:$0xff]  ;;  %v100_v46 = vld [vmem:[%s15952_s1 + $0x1a8] sm:$0xff]  ;;  %v99_v50 = vld [vmem:[%s15952_s1 + $0x1a0] sm:$0xff] }
   0xf   :  { %7360 = vmatpush3.msra.mxu1 %v89_v23  ;;  %7326 = vmatprep.subr.mxu0 %v72_v24  ;;  %v53_v43 = vld [vmem:[%s15952_s1 + $0x30] sm:$0xff]  ;;  %v52_v47 = vld [vmem:[%s15952_s1 + $0x28] sm:$0xff]  ;;  %v51_v52 = vld [vmem:[%s15952_s1 + $0x20] sm:$0xff] }
  0x10   :  { %7361 = vmatprep.subr.mxu1 %v104_v25  ;;  %7327 = vmatpush3.msra.mxu0 %v56_v26  ;;  %v85_v44 = vld [vmem:[%s15952_s1 + $0x130] sm:$0xff]  ;;  %v84_v48 = vld [vmem:[%s15952_s1 + $0x128] sm:$0xff]  ;;  %v83_v53 = vld [vmem:[%s15952_s1 + $0x120] sm:$0xff] }
  0x11   :  { %7362 = vmatpush3.msra.mxu1 %v88_v27  ;;  %7328 = vmatprep.subr.mxu0 %v71_v28  ;;  %v15_v54 = vld [vmem:[%s15951_s0] sm:$0xff]  ;;  %v66_v55 = vld [vmem:[%s15952_s1 + $0x98] sm:$0xff]  ;;  %v65_v60 = vld [vmem:[%s15952_s1 + $0x90] sm:$0xff] }
  0x12   :  { %7363 = vmatprep.subr.mxu1 %v103_v29  ;;  %7329 = vmatpush3.msra.mxu0 %v55_v33  ;;  %v98_v56 = vld [vmem:[%s15952_s1 + $0x198] sm:$0xff]  ;;  %v2134_v57 = vcombine.high %v15_v54, %v15_v54  ;;  %v97_v61 = vld [vmem:[%s15952_s1 + $0x190] sm:$0xff]  ;;  %v2141_v62 = vrot.slane %v15_v54, %v9774_v51  ;;  %v64_v1 = vld [vmem:[%s15952_s1 + $0x88] sm:$0xff] }
  0x13   :  { %7364 = vmatpush3.msra.mxu1 %v87_v34  ;;  %7330 = vmatprep.subr.mxu0 %v70_v35  ;;  %v50_v58 = vld [vmem:[%s15952_s1 + $0x18] sm:$0xff]  ;;  %v49_v63 = vld [vmem:[%s15952_s1 + $0x10] sm:$0xff]  ;;  %v96_v2 = vld [vmem:[%s15952_s1 + $0x188] sm:$0xff] }
  0x14   :  { %7365 = vmatprep.subr.mxu1 %v102_v36  ;;  %7331 = vmatpush3.msra.mxu0 %v54_v37  ;;  %v82_v59 = vld [vmem:[%s15952_s1 + $0x118] sm:$0xff]  ;;  %v81_v0 = vld [vmem:[%s15952_s1 + $0x110] sm:$0xff]  ;;  %v2148_v3 = vrot.slane %v2134_v57, %v9774_v51  ;;  %v48_v4 = vld [vmem:[%s15952_s1 + $0x8] sm:$0xff]  ;;  %v2149_v8 = vcombine.high %v2141_v62, %v2141_v62 }
  0x15   :  { %7366 = vmatpush3.msra.mxu1 %v86_v38  ;;  %7332 = vmatprep.subr.mxu0 %v69_v39  ;;  %v80_v5 = vld [vmem:[%s15952_s1 + $0x108] sm:$0xff]  ;;  %v63_v6 = vld [vmem:[%s15952_s1 + $0x80] sm:$0xff]  ;;  %v142_v12 = vld [vmem:[%s15952_s1 + $0x2f8] sm:$0xff] }
  0x16   :  { %7367 = vmatprep.subr.mxu1 %v101_v40  ;;  %7333 = vmatpush3.msra.mxu0 %v53_v43  ;;  %v95_v7 = vld [vmem:[%s15952_s1 + $0x180] sm:$0xff]  ;;  %v2150_v11 = vcombine.high %v2148_v3, %v2148_v3  ;;  %v174_v13 = vld [vmem:[%s15952_s1 + $0x3f8] sm:$0xff]  ;;  %v141_v16 = vld [vmem:[%s15952_s1 + $0x2f0] sm:$0xff] }
  0x17   :  { %7368 = vmatpush3.msra.mxu1 %v85_v44  ;;  %7334 = vmatprep.subr.mxu0 %v68_v45  ;;  %v47_v9 = vld [vmem:[%s15952_s1] sm:$0xff]  ;;  %v126_v14 = vld [vmem:[%s15952_s1 + $0x278] sm:$0xff]  ;;  %v173_v17 = vld [vmem:[%s15952_s1 + $0x3f0] sm:$0xff] }
  0x18   :  { %7369 = vmatprep.subr.mxu1 %v100_v46  ;;  %7335 = vmatpush3.msra.mxu0 %v52_v47  ;;  %v79_v10 = vld [vmem:[%s15952_s1 + $0x100] sm:$0xff]  ;;  %v158_v15 = vld [vmem:[%s15952_s1 + $0x378] sm:$0xff]  ;;  %v125_v18 = vld [vmem:[%s15952_s1 + $0x270] sm:$0xff] }
  0x19   :  { %7370 = vmatpush3.msra.mxu1 %v84_v48  ;;  %7336 = vmatprep.subr.mxu0 %v67_v49  ;;  %v157_v19 = vld [vmem:[%s15952_s1 + $0x370] sm:$0xff]  ;;  %v140_v20 = vld [vmem:[%s15952_s1 + $0x2e8] sm:$0xff]  ;;  %v139_v24 = vld [vmem:[%s15952_s1 + $0x2e0] sm:$0xff] }
  0x1a   :  { %7371 = vmatprep.subr.mxu1 %v99_v50  ;;  %7337 = vmatpush3.msra.mxu0 %v51_v52  ;;  %v172_v21 = vld [vmem:[%s15952_s1 + $0x3e8] sm:$0xff]  ;;  %v171_v25 = vld [vmem:[%s15952_s1 + $0x3e0] sm:$0xff]  ;;  %v138_v28 = vld [vmem:[%s15952_s1 + $0x2d8] sm:$0xff] }
  0x1b   :  { %7372 = vmatpush3.msra.mxu1 %v83_v53  ;;  %7338 = vmatprep.subr.mxu0 %v66_v55  ;;  %v124_v22 = vld [vmem:[%s15952_s1 + $0x268] sm:$0xff]  ;;  %v123_v26 = vld [vmem:[%s15952_s1 + $0x260] sm:$0xff]  ;;  %v170_v29 = vld [vmem:[%s15952_s1 + $0x3d8] sm:$0xff] }
  0x1c   :  { %7373 = vmatprep.subr.mxu1 %v98_v56  ;;  %7339 = vmatpush3.msra.mxu0 %v50_v58  ;;  %v156_v23 = vld [vmem:[%s15952_s1 + $0x368] sm:$0xff]  ;;  %v155_v27 = vld [vmem:[%s15952_s1 + $0x360] sm:$0xff]  ;;  %v122_v30 = vld [vmem:[%s15952_s1 + $0x258] sm:$0xff] }
  0x1d   :  { %7374 = vmatpush3.msra.mxu1 %v82_v59  ;;  %7340 = vmatprep.subr.mxu0 %v65_v60  ;;  %v154_v31 = vld [vmem:[%s15952_s1 + $0x358] sm:$0xff]  ;;  %v137_v32 = vld [vmem:[%s15952_s1 + $0x2d0] sm:$0xff]  ;;  %v136_v36 = vld [vmem:[%s15952_s1 + $0x2c8] sm:$0xff] }
  0x1e   :  { %7375 = vmatprep.subr.mxu1 %v97_v61  ;;  %7341 = vmatpush3.msra.mxu0 %v49_v63  ;;  %v169_v33 = vld [vmem:[%s15952_s1 + $0x3d0] sm:$0xff]  ;;  %v168_v37 = vld [vmem:[%s15952_s1 + $0x3c8] sm:$0xff]  ;;  %v135_v40 = vld [vmem:[%s15952_s1 + $0x2c0] sm:$0xff] }
  0x1f   :  { %7376 = vmatpush3.msra.mxu1 %v81_v0  ;;  %7342 = vmatprep.subr.mxu0 %v64_v1  ;;  %v121_v34 = vld [vmem:[%s15952_s1 + $0x250] sm:$0xff]  ;;  %v120_v38 = vld [vmem:[%s15952_s1 + $0x248] sm:$0xff]  ;;  %v167_v41 = vld [vmem:[%s15952_s1 + $0x3c0] sm:$0xff] }
  0x20   :  { %7377 = vmatprep.subr.mxu1 %v96_v2  ;;  %7343 = vmatpush3.msra.mxu0 %v48_v4  ;;  %v153_v35 = vld [vmem:[%s15952_s1 + $0x350] sm:$0xff]  ;;  %v152_v39 = vld [vmem:[%s15952_s1 + $0x348] sm:$0xff]  ;;  %v119_v42 = vld [vmem:[%s15952_s1 + $0x240] sm:$0xff] }
  0x21   :  { %7378 = vmatpush3.msra.mxu1 %v80_v5  ;;  %7344 = vmatprep.subr.mxu0 %v63_v6  ;;  %v151_v43 = vld [vmem:[%s15952_s1 + $0x340] sm:$0xff]  ;;  %v134_v44 = vld [vmem:[%s15952_s1 + $0x2b8] sm:$0xff]  ;;  %v133_v48 = vld [vmem:[%s15952_s1 + $0x2b0] sm:$0xff] }
  0x22   :  { %7379 = vmatprep.subr.mxu1 %v95_v7  ;;  %7345 = vmatpush3.msra.mxu0 %v47_v9  ;;  %v166_v45 = vld [vmem:[%s15952_s1 + $0x3b8] sm:$0xff]  ;;  %v165_v49 = vld [vmem:[%s15952_s1 + $0x3b0] sm:$0xff]  ;;  %v132_v53 = vld [vmem:[%s15952_s1 + $0x2a8] sm:$0xff] }
  0x23   :  { %2870 = vmatprep.mubr.f32.mxu0 %v2149_v8  ;;  %7380 = vmatpush3.msra.mxu1 %v79_v10  ;;  %v118_v46 = vld [vmem:[%s15952_s1 + $0x238] sm:$0xff]  ;;  %v117_v50 = vld [vmem:[%s15952_s1 + $0x230] sm:$0xff]  ;;  %v164_v54 = vld [vmem:[%s15952_s1 + $0x3a8] sm:$0xff] }
  0x24   :  { %2871 = vmatmul.mubr.f32.vlgmr.msra.gmra.mxu0 %v2141_v62  ;;  %2940 = vmatprep.mubr.f32.mxu1 %v2150_v11  ;;  %v150_v47 = vld [vmem:[%s15952_s1 + $0x338] sm:$0xff]  ;;  %v149_v52 = vld [vmem:[%s15952_s1 + $0x330] sm:$0xff]  ;;  %v116_v55 = vld [vmem:[%s15952_s1 + $0x228] sm:$0xff] }
  0x25   :  { %7384 = vmatprep.subr.mxu0 %v142_v12  ;;  %7419 = vmatprep.subr.mxu1 %v174_v13  ;;  %v148_v56 = vld [vmem:[%s15952_s1 + $0x328] sm:$0xff]  ;;  %v131_v58 = vld [vmem:[%s15952_s1 + $0x2a0] sm:$0xff]  ;;  %v130_v62 = vld [vmem:[%s15952_s1 + $0x298] sm:$0xff] }
  0x26   :  { %2941 = vmatmul.mubr.f32.vlgmr.msra.gmra.mxu1 %v2148_v3  ;;  %7385 = vmatpush3.msra.mxu0 %v126_v14  ;;  %v16_v57 = vld [vmem:[%s15951_s0 + $0x8] sm:$0xff]  ;;  %v163_v59 = vld [vmem:[%s15952_s1 + $0x3a0] sm:$0xff]  ;;  %v162_v63 = vld [vmem:[%s15952_s1 + $0x398] sm:$0xff] }
  0x27   :  { %7420 = vmatpush3.msra.mxu1 %v158_v15  ;;  %7386 = vmatprep.subr.mxu0 %v141_v16  ;;  %v115_v60 = vld [vmem:[%s15952_s1 + $0x220] sm:$0xff]  ;;  %v2151_v0 = vcombine.high %v16_v57, %v16_v57  ;;  %v114_v1 = vld [vmem:[%s15952_s1 + $0x218] sm:$0xff]  ;;  %v129_v3 = vld [vmem:[%s15952_s1 + $0x290] sm:$0xff]  ;;  %v2158_v5 = vrot.slane %v16_v57, %v9774_v51 }
  0x28   :  { %7421 = vmatprep.subr.mxu1 %v173_v17  ;;  %7387 = vmatpush3.msra.mxu0 %v125_v18  ;;  %v147_v61 = vld [vmem:[%s15952_s1 + $0x320] sm:$0xff]  ;;  %v146_v2 = vld [vmem:[%s15952_s1 + $0x318] sm:$0xff]  ;;  %v161_v4 = vld [vmem:[%s15952_s1 + $0x390] sm:$0xff] }
  0x29   :  { %7422 = vmatpush3.msra.mxu1 %v157_v19  ;;  %7388 = vmatprep.subr.mxu0 %v140_v20  ;;  %v113_v6 = vld [vmem:[%s15952_s1 + $0x210] sm:$0xff]  ;;  %v128_v8 = vld [vmem:[%s15952_s1 + $0x288] sm:$0xff]  ;;  %v2165_v10 = vrot.slane %v2151_v0, %v9774_v51  ;;  %v127_v13 = vld [vmem:[%s15952_s1 + $0x280] sm:$0xff]  ;;  %v2166_v15 = vcombine.high %v2158_v5, %v2158_v5 }
  0x2a   :  { %7423 = vmatprep.subr.mxu1 %v172_v21  ;;  %7389 = vmatpush3.msra.mxu0 %v124_v22  ;;  %v145_v7 = vld [vmem:[%s15952_s1 + $0x310] sm:$0xff]  ;;  %v160_v9 = vld [vmem:[%s15952_s1 + $0x388] sm:$0xff]  ;;  %v159_v14 = vld [vmem:[%s15952_s1 + $0x380] sm:$0xff] }
  0x2b   :  { %7424 = vmatpush3.msra.mxu1 %v156_v23  ;;  %7390 = vmatprep.subr.mxu0 %v139_v24  ;;  %v112_v11 = vld [vmem:[%s15952_s1 + $0x208] sm:$0xff]  ;;  %v111_v16 = vld [vmem:[%s15952_s1 + $0x200] sm:$0xff]  ;;  %v2167_v18 = vcombine.high %v2165_v10, %v2165_v10  ;;  %v206_v19 = vld [vmem:[%s15952_s1 + $0x4f8] sm:$0xff] }
  0x2c   :  { %7425 = vmatprep.subr.mxu1 %v171_v25  ;;  %7391 = vmatpush3.msra.mxu0 %v123_v26  ;;  %v144_v12 = vld [vmem:[%s15952_s1 + $0x308] sm:$0xff]  ;;  %v143_v17 = vld [vmem:[%s15952_s1 + $0x300] sm:$0xff]  ;;  %v238_v20 = vld [vmem:[%s15952_s1 + $0x5f8] sm:$0xff] }
  0x2d   :  { %7426 = vmatpush3.msra.mxu1 %v155_v27  ;;  %7392 = vmatprep.subr.mxu0 %v138_v28  ;;  %v190_v21 = vld [vmem:[%s15952_s1 + $0x478] sm:$0xff]  ;;  %v205_v23 = vld [vmem:[%s15952_s1 + $0x4f0] sm:$0xff]  ;;  %v204_v27 = vld [vmem:[%s15952_s1 + $0x4e8] sm:$0xff] }
  0x2e   :  { %7427 = vmatprep.subr.mxu1 %v170_v29  ;;  %7393 = vmatpush3.msra.mxu0 %v122_v30  ;;  %v222_v22 = vld [vmem:[%s15952_s1 + $0x578] sm:$0xff]  ;;  %v237_v24 = vld [vmem:[%s15952_s1 + $0x5f0] sm:$0xff]  ;;  %v236_v28 = vld [vmem:[%s15952_s1 + $0x5e8] sm:$0xff] }
  0x2f   :  { %7428 = vmatpush3.msra.mxu1 %v154_v31  ;;  %7394 = vmatprep.subr.mxu0 %v137_v32  ;;  %v189_v25 = vld [vmem:[%s15952_s1 + $0x470] sm:$0xff]  ;;  %v188_v29 = vld [vmem:[%s15952_s1 + $0x468] sm:$0xff]  ;;  %v203_v31 = vld [vmem:[%s15952_s1 + $0x4e0] sm:$0xff] }
  0x30   :  { %7429 = vmatprep.subr.mxu1 %v169_v33  ;;  %7395 = vmatpush3.msra.mxu0 %v121_v34  ;;  %v221_v26 = vld [vmem:[%s15952_s1 + $0x570] sm:$0xff]  ;;  %v220_v30 = vld [vmem:[%s15952_s1 + $0x568] sm:$0xff]  ;;  %v235_v32 = vld [vmem:[%s15952_s1 + $0x5e0] sm:$0xff] }
  0x31   :  { %7430 = vmatpush3.msra.mxu1 %v153_v35  ;;  %7396 = vmatprep.subr.mxu0 %v136_v36  ;;  %v187_v33 = vld [vmem:[%s15952_s1 + $0x460] sm:$0xff]  ;;  %v202_v35 = vld [vmem:[%s15952_s1 + $0x4d8] sm:$0xff]  ;;  %v229_v57 = vld [vmem:[%s15952_s1 + $0x5b0] sm:$0xff] }
  0x32   :  { %7431 = vmatprep.subr.mxu1 %v168_v37  ;;  %7397 = vmatpush3.msra.mxu0 %v120_v38  ;;  %v219_v34 = vld [vmem:[%s15952_s1 + $0x560] sm:$0xff]  ;;  %v234_v36 = vld [vmem:[%s15952_s1 + $0x5d8] sm:$0xff]  ;;  %v17_v0 = vld [vmem:[%s15951_s0 + $0x10] sm:$0xff] }
  0x33   :  { %7432 = vmatpush3.msra.mxu1 %v152_v39  ;;  %7398 = vmatprep.subr.mxu0 %v135_v40  ;;  %v186_v37 = vld [vmem:[%s15952_s1 + $0x458] sm:$0xff]  ;;  %v201_v39 = vld [vmem:[%s15952_s1 + $0x4d0] sm:$0xff] }
  0x34   :  { %7433 = vmatprep.subr.mxu1 %v167_v41  ;;  %7399 = vmatpush3.msra.mxu0 %v119_v42  ;;  %v218_v38 = vld [vmem:[%s15952_s1 + $0x558] sm:$0xff]  ;;  %v233_v40 = vld [vmem:[%s15952_s1 + $0x5d0] sm:$0xff] }
  0x35   :  { %7434 = vmatpush3.msra.mxu1 %v151_v43  ;;  %7400 = vmatprep.subr.mxu0 %v134_v44  ;;  %v185_v41 = vld [vmem:[%s15952_s1 + $0x450] sm:$0xff]  ;;  %v200_v43 = vld [vmem:[%s15952_s1 + $0x4c8] sm:$0xff] }
  0x36   :  { %7435 = vmatprep.subr.mxu1 %v166_v45  ;;  %7401 = vmatpush3.msra.mxu0 %v118_v46  ;;  %v217_v42 = vld [vmem:[%s15952_s1 + $0x550] sm:$0xff]  ;;  %v232_v44 = vld [vmem:[%s15952_s1 + $0x5c8] sm:$0xff] }
  0x37   :  { %7436 = vmatpush3.msra.mxu1 %v150_v47  ;;  %7402 = vmatprep.subr.mxu0 %v133_v48  ;;  %v184_v45 = vld [vmem:[%s15952_s1 + $0x448] sm:$0xff]  ;;  %v199_v47 = vld [vmem:[%s15952_s1 + $0x4c0] sm:$0xff] }
  0x38   :  { %7437 = vmatprep.subr.mxu1 %v165_v49  ;;  %7403 = vmatpush3.msra.mxu0 %v117_v50  ;;  %v216_v46 = vld [vmem:[%s15952_s1 + $0x548] sm:$0xff]  ;;  %v231_v48 = vld [vmem:[%s15952_s1 + $0x5c0] sm:$0xff] }
  0x39   :  { %7438 = vmatpush3.msra.mxu1 %v149_v52  ;;  %7404 = vmatprep.subr.mxu0 %v132_v53  ;;  %v183_v49 = vld [vmem:[%s15952_s1 + $0x440] sm:$0xff]  ;;  %v198_v52 = vld [vmem:[%s15952_s1 + $0x4b8] sm:$0xff] }
  0x3a   :  { %7439 = vmatprep.subr.mxu1 %v164_v54  ;;  %7405 = vmatpush3.msra.mxu0 %v116_v55  ;;  %v215_v50 = vld [vmem:[%s15952_s1 + $0x540] sm:$0xff]  ;;  %v230_v53 = vld [vmem:[%s15952_s1 + $0x5b8] sm:$0xff] }
  0x3b   :  { %7440 = vmatpush3.msra.mxu1 %v148_v56  ;;  %7406 = vmatprep.subr.mxu0 %v131_v58  ;;  %v182_v54 = vld [vmem:[%s15952_s1 + $0x438] sm:$0xff]  ;;  %v197_v56 = vld [vmem:[%s15952_s1 + $0x4b0] sm:$0xff] }
  0x3c   :  { %7441 = vmatprep.subr.mxu1 %v163_v59  ;;  %7407 = vmatpush3.msra.mxu0 %v115_v60  ;;  %v214_v55 = vld [vmem:[%s15952_s1 + $0x538] sm:$0xff]  ;;  %v181_v58 = vld [vmem:[%s15952_s1 + $0x430] sm:$0xff]  ;;  %v196_v60 = vld [vmem:[%s15952_s1 + $0x4a8] sm:$0xff] }
  0x3d   :  { %7442 = vmatpush3.msra.mxu1 %v147_v61  ;;  %7408 = vmatprep.subr.mxu0 %v130_v62  ;;  %v213_v59 = vld [vmem:[%s15952_s1 + $0x530] sm:$0xff]  ;;  %v228_v61 = vld [vmem:[%s15952_s1 + $0x5a8] sm:$0xff] }
  0x3e   :  { %7443 = vmatprep.subr.mxu1 %v162_v63  ;;  %7409 = vmatpush3.msra.mxu0 %v114_v1  ;;  %v180_v62 = vld [vmem:[%s15952_s1 + $0x428] sm:$0xff]  ;;  %v195_v1 = vld [vmem:[%s15952_s1 + $0x4a0] sm:$0xff] }
  0x3f   :  { %7444 = vmatpush3.msra.mxu1 %v146_v2  ;;  %7410 = vmatprep.subr.mxu0 %v129_v3  ;;  %v212_v63 = vld [vmem:[%s15952_s1 + $0x528] sm:$0xff]  ;;  %v227_v2 = vld [vmem:[%s15952_s1 + $0x5a0] sm:$0xff] }
  0x40   :  { %7445 = vmatprep.subr.mxu1 %v161_v4  ;;  %7411 = vmatpush3.msra.mxu0 %v113_v6  ;;  %v179_v3 = vld [vmem:[%s15952_s1 + $0x420] sm:$0xff]  ;;  %v226_v6 = vld [vmem:[%s15952_s1 + $0x598] sm:$0xff] }
  0x41   :  { %7446 = vmatpush3.msra.mxu1 %v145_v7  ;;  %7412 = vmatprep.subr.mxu0 %v128_v8  ;;  %v211_v4 = vld [vmem:[%s15952_s1 + $0x520] sm:$0xff]  ;;  %v2168_v7 = vcombine.high %v17_v0, %v17_v0  ;;  %v178_v8 = vld [vmem:[%s15952_s1 + $0x418] sm:$0xff] }
  0x42   :  { %7447 = vmatprep.subr.mxu1 %v160_v9  ;;  %7413 = vmatpush3.msra.mxu0 %v112_v11  ;;  %v210_v9 = vld [vmem:[%s15952_s1 + $0x518] sm:$0xff]  ;;  %v225_v11 = vld [vmem:[%s15952_s1 + $0x590] sm:$0xff] }
  0x43   :  { %7448 = vmatpush3.msra.mxu1 %v144_v12  ;;  %7414 = vmatprep.subr.mxu0 %v127_v13  ;;  %v2175_v12 = vrot.slane %v17_v0, %v9774_v51  ;;  %v177_v13 = vld [vmem:[%s15952_s1 + $0x410] sm:$0xff] }
  0x44   :  { %7449 = vmatprep.subr.mxu1 %v159_v14  ;;  %7415 = vmatpush3.msra.mxu0 %v111_v16  ;;  %v209_v14 = vld [vmem:[%s15952_s1 + $0x510] sm:$0xff]  ;;  %v224_v16 = vld [vmem:[%s15952_s1 + $0x588] sm:$0xff] }
  0x45   :  { %3010 = vmatprep.mubr.f32.mxu0 %v2166_v15  ;;  %7450 = vmatpush3.msra.mxu1 %v143_v17  ;;  %v192_v15 = vld [vmem:[%s15952_s1 + $0x488] sm:$0xff]  ;;  %v2182_v17 = vrot.slane %v2168_v7, %v9774_v51  ;;  %v293_v0 = vld [vmem:[%s15952_s1 + $0x7b0] sm:$0xff]  ;;  %v18_v7 = vld [vmem:[%s15951_s0 + $0x18] sm:$0xff] }
  0x46   :  { %3011 = vmatmul.mubr.f32.vlgmr.msra.gmra.mxu0 %v2158_v5  ;;  %3080 = vmatprep.mubr.f32.mxu1 %v2167_v18  ;;  %v194_v5 = vld [vmem:[%s15952_s1 + $0x498] sm:$0xff]  ;;  %v176_v18 = vld [vmem:[%s15952_s1 + $0x408] sm:$0xff] }
  0x47   :  { %7454 = vmatprep.subr.mxu0 %v206_v19  ;;  %7489 = vmatprep.subr.mxu1 %v238_v20  ;;  %v208_v19 = vld [vmem:[%s15952_s1 + $0x508] sm:$0xff]  ;;  %v191_v20 = vld [vmem:[%s15952_s1 + $0x480] sm:$0xff] }
  0x48   :  { %3081 = vmatmul.mubr.f32.vlgmr.msra.gmra.mxu1 %v2165_v10  ;;  %7455 = vmatpush3.msra.mxu0 %v190_v21  ;;  %v193_v10 = vld [vmem:[%s15952_s1 + $0x490] sm:$0xff]  ;;  %v223_v21 = vld [vmem:[%s15952_s1 + $0x580] sm:$0xff] }
  0x49   :  { %7490 = vmatpush3.msra.mxu1 %v222_v22  ;;  %7456 = vmatprep.subr.mxu0 %v205_v23  ;;  %v2183_v22 = vcombine.high %v2175_v12, %v2175_v12  ;;  %v175_v23 = vld [vmem:[%s15952_s1 + $0x400] sm:$0xff] }
  0x4a   :  { %7491 = vmatprep.subr.mxu1 %v237_v24  ;;  %7457 = vmatpush3.msra.mxu0 %v189_v25  ;;  %v207_v24 = vld [vmem:[%s15952_s1 + $0x500] sm:$0xff]  ;;  %v2184_v25 = vcombine.high %v2182_v17, %v2182_v17 }
  0x4b   :  { %7492 = vmatpush3.msra.mxu1 %v221_v26  ;;  %7458 = vmatprep.subr.mxu0 %v204_v27  ;;  %v270_v26 = vld [vmem:[%s15952_s1 + $0x6f8] sm:$0xff] }
  0x4c   :  { %7493 = vmatprep.subr.mxu1 %v236_v28  ;;  %7459 = vmatpush3.msra.mxu0 %v188_v29  ;;  %v302_v27 = vld [vmem:[%s15952_s1 + $0x7f8] sm:$0xff] }
  0x4d   :  { %7494 = vmatpush3.msra.mxu1 %v220_v30  ;;  %7460 = vmatprep.subr.mxu0 %v203_v31  ;;  %v254_v28 = vld [vmem:[%s15952_s1 + $0x678] sm:$0xff]  ;;  %v269_v30 = vld [vmem:[%s15952_s1 + $0x6f0] sm:$0xff] }
  0x4e   :  { %7495 = vmatprep.subr.mxu1 %v235_v32  ;;  %7461 = vmatpush3.msra.mxu0 %v187_v33  ;;  %v286_v29 = vld [vmem:[%s15952_s1 + $0x778] sm:$0xff]  ;;  %v301_v31 = vld [vmem:[%s15952_s1 + $0x7f0] sm:$0xff] }
  0x4f   :  { %7496 = vmatpush3.msra.mxu1 %v219_v34  ;;  %7462 = vmatprep.subr.mxu0 %v202_v35  ;;  %v253_v32 = vld [vmem:[%s15952_s1 + $0x670] sm:$0xff]  ;;  %v268_v34 = vld [vmem:[%s15952_s1 + $0x6e8] sm:$0xff] }
  0x50   :  { %7497 = vmatprep.subr.mxu1 %v234_v36  ;;  %7463 = vmatpush3.msra.mxu0 %v186_v37  ;;  %v285_v33 = vld [vmem:[%s15952_s1 + $0x770] sm:$0xff]  ;;  %v300_v35 = vld [vmem:[%s15952_s1 + $0x7e8] sm:$0xff] }
  0x51   :  { %7498 = vmatpush3.msra.mxu1 %v218_v38  ;;  %7464 = vmatprep.subr.mxu0 %v201_v39  ;;  %v252_v36 = vld [vmem:[%s15952_s1 + $0x668] sm:$0xff]  ;;  %v267_v38 = vld [vmem:[%s15952_s1 + $0x6e0] sm:$0xff] }
  0x52   :  { %7499 = vmatprep.subr.mxu1 %v233_v40  ;;  %7465 = vmatpush3.msra.mxu0 %v185_v41  ;;  %v284_v37 = vld [vmem:[%s15952_s1 + $0x768] sm:$0xff]  ;;  %v299_v39 = vld [vmem:[%s15952_s1 + $0x7e0] sm:$0xff] }
  0x53   :  { %7500 = vmatpush3.msra.mxu1 %v217_v42  ;;  %7466 = vmatprep.subr.mxu0 %v200_v43  ;;  %v251_v40 = vld [vmem:[%s15952_s1 + $0x660] sm:$0xff]  ;;  %v266_v42 = vld [vmem:[%s15952_s1 + $0x6d8] sm:$0xff] }
  0x54   :  { %7501 = vmatprep.subr.mxu1 %v232_v44  ;;  %7467 = vmatpush3.msra.mxu0 %v184_v45  ;;  %v283_v41 = vld [vmem:[%s15952_s1 + $0x760] sm:$0xff]  ;;  %v298_v43 = vld [vmem:[%s15952_s1 + $0x7d8] sm:$0xff] }
  0x55   :  { %7502 = vmatpush3.msra.mxu1 %v216_v46  ;;  %7468 = vmatprep.subr.mxu0 %v199_v47  ;;  %v250_v44 = vld [vmem:[%s15952_s1 + $0x658] sm:$0xff]  ;;  %v265_v46 = vld [vmem:[%s15952_s1 + $0x6d0] sm:$0xff] }
  0x56   :  { %7503 = vmatprep.subr.mxu1 %v231_v48  ;;  %7469 = vmatpush3.msra.mxu0 %v183_v49  ;;  %v282_v45 = vld [vmem:[%s15952_s1 + $0x758] sm:$0xff]  ;;  %v297_v47 = vld [vmem:[%s15952_s1 + $0x7d0] sm:$0xff] }
  0x57   :  { %7504 = vmatpush3.msra.mxu1 %v215_v50  ;;  %7470 = vmatprep.subr.mxu0 %v198_v52  ;;  %v249_v48 = vld [vmem:[%s15952_s1 + $0x650] sm:$0xff]  ;;  %v264_v50 = vld [vmem:[%s15952_s1 + $0x6c8] sm:$0xff] }
  0x58   :  { %7505 = vmatprep.subr.mxu1 %v230_v53  ;;  %7471 = vmatpush3.msra.mxu0 %v182_v54  ;;  %v281_v49 = vld [vmem:[%s15952_s1 + $0x750] sm:$0xff]  ;;  %v296_v52 = vld [vmem:[%s15952_s1 + $0x7c8] sm:$0xff] }
  0x59   :  { %7506 = vmatpush3.msra.mxu1 %v214_v55  ;;  %7472 = vmatprep.subr.mxu0 %v197_v56  ;;  %v248_v53 = vld [vmem:[%s15952_s1 + $0x648] sm:$0xff]  ;;  %v263_v55 = vld [vmem:[%s15952_s1 + $0x6c0] sm:$0xff] }
  0x5a   :  { %7507 = vmatprep.subr.mxu1 %v229_v57  ;;  %7473 = vmatpush3.msra.mxu0 %v181_v58  ;;  %v280_v54 = vld [vmem:[%s15952_s1 + $0x748] sm:$0xff]  ;;  %v295_v56 = vld [vmem:[%s15952_s1 + $0x7c0] sm:$0xff] }
  0x5b   :  { %7508 = vmatpush3.msra.mxu1 %v213_v59  ;;  %7474 = vmatprep.subr.mxu0 %v196_v60  ;;  %v247_v57 = vld [vmem:[%s15952_s1 + $0x640] sm:$0xff]  ;;  %v262_v59 = vld [vmem:[%s15952_s1 + $0x6b8] sm:$0xff] }
  0x5c   :  { %7509 = vmatprep.subr.mxu1 %v228_v61  ;;  %7475 = vmatpush3.msra.mxu0 %v180_v62  ;;  %v279_v58 = vld [vmem:[%s15952_s1 + $0x740] sm:$0xff]  ;;  %v294_v60 = vld [vmem:[%s15952_s1 + $0x7b8] sm:$0xff] }
  0x5d   :  { %7510 = vmatpush3.msra.mxu1 %v212_v63  ;;  %7476 = vmatprep.subr.mxu0 %v195_v1  ;;  %v246_v61 = vld [vmem:[%s15952_s1 + $0x638] sm:$0xff]  ;;  %v261_v63 = vld [vmem:[%s15952_s1 + $0x6b0] sm:$0xff] }
  0x5e   :  { %7511 = vmatprep.subr.mxu1 %v227_v2  ;;  %7477 = vmatpush3.msra.mxu0 %v179_v3  ;;  %v278_v62 = vld [vmem:[%s15952_s1 + $0x738] sm:$0xff]  ;;  %v245_v1 = vld [vmem:[%s15952_s1 + $0x630] sm:$0xff]  ;;  %v260_v3 = vld [vmem:[%s15952_s1 + $0x6a8] sm:$0xff] }
  0x5f   :  { %7512 = vmatpush3.msra.mxu1 %v211_v4  ;;  %7478 = vmatprep.subr.mxu0 %v194_v5  ;;  %v277_v2 = vld [vmem:[%s15952_s1 + $0x730] sm:$0xff]  ;;  %v292_v4 = vld [vmem:[%s15952_s1 + $0x7a8] sm:$0xff] }
  0x60   :  { %7513 = vmatprep.subr.mxu1 %v226_v6  ;;  %7479 = vmatpush3.msra.mxu0 %v178_v8  ;;  %v244_v5 = vld [vmem:[%s15952_s1 + $0x628] sm:$0xff]  ;;  %v259_v8 = vld [vmem:[%s15952_s1 + $0x6a0] sm:$0xff] }
  0x61   :  { %7514 = vmatpush3.msra.mxu1 %v210_v9  ;;  %7480 = vmatprep.subr.mxu0 %v193_v10  ;;  %v276_v6 = vld [vmem:[%s15952_s1 + $0x728] sm:$0xff]  ;;  %v291_v9 = vld [vmem:[%s15952_s1 + $0x7a0] sm:$0xff] }
  0x62   :  { %7515 = vmatprep.subr.mxu1 %v225_v11  ;;  %7481 = vmatpush3.msra.mxu0 %v177_v13  ;;  %v243_v10 = vld [vmem:[%s15952_s1 + $0x620] sm:$0xff]  ;;  %v290_v13 = vld [vmem:[%s15952_s1 + $0x798] sm:$0xff] }
  0x63   :  { %7516 = vmatpush3.msra.mxu1 %v209_v14  ;;  %7482 = vmatprep.subr.mxu0 %v192_v15  ;;  %v275_v11 = vld [vmem:[%s15952_s1 + $0x720] sm:$0xff]  ;;  %v2185_v14 = vcombine.high %v18_v7, %v18_v7  ;;  %v242_v15 = vld [vmem:[%s15952_s1 + $0x618] sm:$0xff] }
  0x64   :  { %7517 = vmatprep.subr.mxu1 %v224_v16  ;;  %7483 = vmatpush3.msra.mxu0 %v176_v18  ;;  %v274_v16 = vld [vmem:[%s15952_s1 + $0x718] sm:$0xff]  ;;  %v289_v18 = vld [vmem:[%s15952_s1 + $0x790] sm:$0xff] }
  0x65   :  { %7518 = vmatpush3.msra.mxu1 %v208_v19  ;;  %7484 = vmatprep.subr.mxu0 %v191_v20  ;;  %v2192_v19 = vrot.slane %v18_v7, %v9774_v51  ;;  %v241_v20 = vld [vmem:[%s15952_s1 + $0x610] sm:$0xff] }
  0x66   :  { %7519 = vmatprep.subr.mxu1 %v223_v21  ;;  %7485 = vmatpush3.msra.mxu0 %v175_v23  ;;  %v273_v21 = vld [vmem:[%s15952_s1 + $0x710] sm:$0xff]  ;;  %v288_v23 = vld [vmem:[%s15952_s1 + $0x788] sm:$0xff] }
  0x67   :  { %3150 = vmatprep.mubr.f32.mxu0 %v2183_v22  ;;  %7520 = vmatpush3.msra.mxu1 %v207_v24  ;;  %v256_v22 = vld [vmem:[%s15952_s1 + $0x688] sm:$0xff]  ;;  %v2199_v24 = vrot.slane %v2185_v14, %v9774_v51  ;;  %v357_v7 = vld [vmem:[%s15952_s1 + $0x9b0] sm:$0xff]  ;;  %v19_v14 = vld [vmem:[%s15951_s0 + $0x20] sm:$0xff] }
  0x68   :  { %3151 = vmatmul.mubr.f32.vlgmr.msra.gmra.mxu0 %v2175_v12  ;;  %3220 = vmatprep.mubr.f32.mxu1 %v2184_v25  ;;  %v258_v12 = vld [vmem:[%s15952_s1 + $0x698] sm:$0xff]  ;;  %v240_v25 = vld [vmem:[%s15952_s1 + $0x608] sm:$0xff] }
  0x69   :  { %7524 = vmatprep.subr.mxu0 %v270_v26  ;;  %7559 = vmatprep.subr.mxu1 %v302_v27  ;;  %v272_v26 = vld [vmem:[%s15952_s1 + $0x708] sm:$0xff]  ;;  %v255_v27 = vld [vmem:[%s15952_s1 + $0x680] sm:$0xff] }
  0x6a   :  { %3221 = vmatmul.mubr.f32.vlgmr.msra.gmra.mxu1 %v2182_v17  ;;  %7525 = vmatpush3.msra.mxu0 %v254_v28  ;;  %v257_v17 = vld [vmem:[%s15952_s1 + $0x690] sm:$0xff]  ;;  %v287_v28 = vld [vmem:[%s15952_s1 + $0x780] sm:$0xff] }
  0x6b   :  { %7560 = vmatpush3.msra.mxu1 %v286_v29  ;;  %7526 = vmatprep.subr.mxu0 %v269_v30  ;;  %v2200_v29 = vcombine.high %v2192_v19, %v2192_v19  ;;  %v239_v30 = vld [vmem:[%s15952_s1 + $0x600] sm:$0xff] }
  0x6c   :  { %7561 = vmatprep.subr.mxu1 %v301_v31  ;;  %7527 = vmatpush3.msra.mxu0 %v253_v32  ;;  %v271_v31 = vld [vmem:[%s15952_s1 + $0x700] sm:$0xff]  ;;  %v2201_v32 = vcombine.high %v2199_v24, %v2199_v24 }
  0x6d   :  { %7562 = vmatpush3.msra.mxu1 %v285_v33  ;;  %7528 = vmatprep.subr.mxu0 %v268_v34  ;;  %v334_v33 = vld [vmem:[%s15952_s1 + $0x8f8] sm:$0xff] }
  0x6e   :  { %7563 = vmatprep.subr.mxu1 %v300_v35  ;;  %7529 = vmatpush3.msra.mxu0 %v252_v36  ;;  %v366_v34 = vld [vmem:[%s15952_s1 + $0x9f8] sm:$0xff] }
  0x6f   :  { %7564 = vmatpush3.msra.mxu1 %v284_v37  ;;  %7530 = vmatprep.subr.mxu0 %v267_v38  ;;  %v318_v35 = vld [vmem:[%s15952_s1 + $0x878] sm:$0xff]  ;;  %v333_v37 = vld [vmem:[%s15952_s1 + $0x8f0] sm:$0xff] }
  0x70   :  { %7565 = vmatprep.subr.mxu1 %v299_v39  ;;  %7531 = vmatpush3.msra.mxu0 %v251_v40  ;;  %v350_v36 = vld [vmem:[%s15952_s1 + $0x978] sm:$0xff]  ;;  %v365_v38 = vld [vmem:[%s15952_s1 + $0x9f0] sm:$0xff] }
  0x71   :  { %7566 = vmatpush3.msra.mxu1 %v283_v41  ;;  %7532 = vmatprep.subr.mxu0 %v266_v42  ;;  %v317_v39 = vld [vmem:[%s15952_s1 + $0x870] sm:$0xff]  ;;  %v332_v41 = vld [vmem:[%s15952_s1 + $0x8e8] sm:$0xff] }
  0x72   :  { %7567 = vmatprep.subr.mxu1 %v298_v43  ;;  %7533 = vmatpush3.msra.mxu0 %v250_v44  ;;  %v349_v40 = vld [vmem:[%s15952_s1 + $0x970] sm:$0xff]  ;;  %v364_v42 = vld [vmem:[%s15952_s1 + $0x9e8] sm:$0xff] }
  0x73   :  { %7568 = vmatpush3.msra.mxu1 %v282_v45  ;;  %7534 = vmatprep.subr.mxu0 %v265_v46  ;;  %v316_v43 = vld [vmem:[%s15952_s1 + $0x868] sm:$0xff]  ;;  %v331_v45 = vld [vmem:[%s15952_s1 + $0x8e0] sm:$0xff] }
  0x74   :  { %7569 = vmatprep.subr.mxu1 %v297_v47  ;;  %7535 = vmatpush3.msra.mxu0 %v249_v48  ;;  %v348_v44 = vld [vmem:[%s15952_s1 + $0x968] sm:$0xff]  ;;  %v363_v46 = vld [vmem:[%s15952_s1 + $0x9e0] sm:$0xff] }
  0x75   :  { %7570 = vmatpush3.msra.mxu1 %v281_v49  ;;  %7536 = vmatprep.subr.mxu0 %v264_v50  ;;  %v315_v47 = vld [vmem:[%s15952_s1 + $0x860] sm:$0xff]  ;;  %v330_v49 = vld [vmem:[%s15952_s1 + $0x8d8] sm:$0xff] }
  0x76   :  { %7571 = vmatprep.subr.mxu1 %v296_v52  ;;  %7537 = vmatpush3.msra.mxu0 %v248_v53  ;;  %v347_v48 = vld [vmem:[%s15952_s1 + $0x960] sm:$0xff]  ;;  %v362_v50 = vld [vmem:[%s15952_s1 + $0x9d8] sm:$0xff] }
  0x77   :  { %7572 = vmatpush3.msra.mxu1 %v280_v54  ;;  %7538 = vmatprep.subr.mxu0 %v263_v55  ;;  %v314_v52 = vld [vmem:[%s15952_s1 + $0x858] sm:$0xff]  ;;  %v329_v54 = vld [vmem:[%s15952_s1 + $0x8d0] sm:$0xff] }
  0x78   :  { %7573 = vmatprep.subr.mxu1 %v295_v56  ;;  %7539 = vmatpush3.msra.mxu0 %v247_v57  ;;  %v346_v53 = vld [vmem:[%s15952_s1 + $0x958] sm:$0xff]  ;;  %v361_v55 = vld [vmem:[%s15952_s1 + $0x9d0] sm:$0xff] }
  0x79   :  { %7574 = vmatpush3.msra.mxu1 %v279_v58  ;;  %7540 = vmatprep.subr.mxu0 %v262_v59  ;;  %v313_v56 = vld [vmem:[%s15952_s1 + $0x850] sm:$0xff]  ;;  %v328_v58 = vld [vmem:[%s15952_s1 + $0x8c8] sm:$0xff] }
  0x7a   :  { %7575 = vmatprep.subr.mxu1 %v294_v60  ;;  %7541 = vmatpush3.msra.mxu0 %v246_v61  ;;  %v345_v57 = vld [vmem:[%s15952_s1 + $0x950] sm:$0xff]  ;;  %v360_v59 = vld [vmem:[%s15952_s1 + $0x9c8] sm:$0xff] }
  0x7b   :  { %7576 = vmatpush3.msra.mxu1 %v278_v62  ;;  %7542 = vmatprep.subr.mxu0 %v261_v63  ;;  %v312_v60 = vld [vmem:[%s15952_s1 + $0x848] sm:$0xff]  ;;  %v327_v62 = vld [vmem:[%s15952_s1 + $0x8c0] sm:$0xff] }
  0x7c   :  { %7577 = vmatprep.subr.mxu1 %v293_v0  ;;  %7543 = vmatpush3.msra.mxu0 %v245_v1  ;;  %v344_v61 = vld [vmem:[%s15952_s1 + $0x948] sm:$0xff]  ;;  %v359_v63 = vld [vmem:[%s15952_s1 + $0x9c0] sm:$0xff] }
  0x7d   :  { %7578 = vmatpush3.msra.mxu1 %v277_v2  ;;  %7544 = vmatprep.subr.mxu0 %v260_v3  ;;  %v311_v0 = vld [vmem:[%s15952_s1 + $0x840] sm:$0xff]  ;;  %v326_v2 = vld [vmem:[%s15952_s1 + $0x8b8] sm:$0xff] }
  0x7e   :  { %7579 = vmatprep.subr.mxu1 %v292_v4  ;;  %7545 = vmatpush3.msra.mxu0 %v244_v5  ;;  %v343_v1 = vld [vmem:[%s15952_s1 + $0x940] sm:$0xff]  ;;  %v358_v3 = vld [vmem:[%s15952_s1 + $0x9b8] sm:$0xff] }
  0x7f   :  { %7580 = vmatpush3.msra.mxu1 %v276_v6  ;;  %7546 = vmatprep.subr.mxu0 %v259_v8  ;;  %v310_v4 = vld [vmem:[%s15952_s1 + $0x838] sm:$0xff]  ;;  %v325_v6 = vld [vmem:[%s15952_s1 + $0x8b0] sm:$0xff] }
  0x80   :  { %7581 = vmatprep.subr.mxu1 %v291_v9  ;;  %7547 = vmatpush3.msra.mxu0 %v243_v10  ;;  %v342_v5 = vld [vmem:[%s15952_s1 + $0x938] sm:$0xff]  ;;  %v309_v8 = vld [vmem:[%s15952_s1 + $0x830] sm:$0xff]  ;;  %v324_v10 = vld [vmem:[%s15952_s1 + $0x8a8] sm:$0xff] }
  0x81   :  { %7582 = vmatpush3.msra.mxu1 %v275_v11  ;;  %7548 = vmatprep.subr.mxu0 %v258_v12  ;;  %v341_v9 = vld [vmem:[%s15952_s1 + $0x930] sm:$0xff]  ;;  %v356_v11 = vld [vmem:[%s15952_s1 + $0x9a8] sm:$0xff] }
  0x82   :  { %7583 = vmatprep.subr.mxu1 %v290_v13  ;;  %7549 = vmatpush3.msra.mxu0 %v242_v15  ;;  %v308_v12 = vld [vmem:[%s15952_s1 + $0x828] sm:$0xff]  ;;  %v323_v15 = vld [vmem:[%s15952_s1 + $0x8a0] sm:$0xff] }
  0x83   :  { %7584 = vmatpush3.msra.mxu1 %v274_v16  ;;  %7550 = vmatprep.subr.mxu0 %v257_v17  ;;  %v340_v13 = vld [vmem:[%s15952_s1 + $0x928] sm:$0xff]  ;;  %v355_v16 = vld [vmem:[%s15952_s1 + $0x9a0] sm:$0xff] }
  0x84   :  { %7585 = vmatprep.subr.mxu1 %v289_v18  ;;  %7551 = vmatpush3.msra.mxu0 %v241_v20  ;;  %v307_v17 = vld [vmem:[%s15952_s1 + $0x820] sm:$0xff]  ;;  %v354_v20 = vld [vmem:[%s15952_s1 + $0x998] sm:$0xff] }
  0x85   :  { %7586 = vmatpush3.msra.mxu1 %v273_v21  ;;  %7552 = vmatprep.subr.mxu0 %v256_v22  ;;  %v339_v18 = vld [vmem:[%s15952_s1 + $0x920] sm:$0xff]  ;;  %v2202_v21 = vcombine.high %v19_v14, %v19_v14  ;;  %v306_v22 = vld [vmem:[%s15952_s1 + $0x818] sm:$0xff] }
  0x86   :  { %7587 = vmatprep.subr.mxu1 %v288_v23  ;;  %7553 = vmatpush3.msra.mxu0 %v240_v25  ;;  %v338_v23 = vld [vmem:[%s15952_s1 + $0x918] sm:$0xff]  ;;  %v353_v25 = vld [vmem:[%s15952_s1 + $0x990] sm:$0xff] }
  0x87   :  { %7588 = vmatpush3.msra.mxu1 %v272_v26  ;;  %7554 = vmatprep.subr.mxu0 %v255_v27  ;;  %v2209_v26 = vrot.slane %v19_v14, %v9774_v51  ;;  %v305_v27 = vld [vmem:[%s15952_s1 + $0x810] sm:$0xff] }
  0x88   :  { %7589 = vmatprep.subr.mxu1 %v287_v28  ;;  %7555 = vmatpush3.msra.mxu0 %v239_v30  ;;  %v337_v28 = vld [vmem:[%s15952_s1 + $0x910] sm:$0xff]  ;;  %v352_v30 = vld [vmem:[%s15952_s1 + $0x988] sm:$0xff] }
  0x89   :  { %3290 = vmatprep.mubr.f32.mxu0 %v2200_v29  ;;  %7590 = vmatpush3.msra.mxu1 %v271_v31  ;;  %v320_v29 = vld [vmem:[%s15952_s1 + $0x888] sm:$0xff]  ;;  %v2216_v31 = vrot.slane %v2202_v21, %v9774_v51  ;;  %v421_v14 = vld [vmem:[%s15952_s1 + $0xbb0] sm:$0xff] }
  0x8a   :  { %3291 = vmatmul.mubr.f32.vlgmr.msra.gmra.mxu0 %v2192_v19  ;;  %3360 = vmatprep.mubr.f32.mxu1 %v2201_v32  ;;  %v322_v19 = vld [vmem:[%s15952_s1 + $0x898] sm:$0xff]  ;;  %v304_v32 = vld [vmem:[%s15952_s1 + $0x808] sm:$0xff] }
  0x8b   :  { %7594 = vmatprep.subr.mxu0 %v334_v33  ;;  %7629 = vmatprep.subr.mxu1 %v366_v34  ;;  %v336_v33 = vld [vmem:[%s15952_s1 + $0x908] sm:$0xff]  ;;  %v319_v34 = vld [vmem:[%s15952_s1 + $0x880] sm:$0xff] }
  0x8c   :  { %3361 = vmatmul.mubr.f32.vlgmr.msra.gmra.mxu1 %v2199_v24  ;;  %7595 = vmatpush3.msra.mxu0 %v318_v35  ;;  %v321_v24 = vld [vmem:[%s15952_s1 + $0x890] sm:$0xff]  ;;  %v351_v35 = vld [vmem:[%s15952_s1 + $0x980] sm:$0xff]  ;;  %v20_v21 = vld [vmem:[%s15951_s0 + $0x28] sm:$0xff] }
  0x8d   :  { %7630 = vmatpush3.msra.mxu1 %v350_v36  ;;  %7596 = vmatprep.subr.mxu0 %v333_v37  ;;  %v2217_v36 = vcombine.high %v2209_v26, %v2209_v26  ;;  %v303_v37 = vld [vmem:[%s15952_s1 + $0x800] sm:$0xff] }
  0x8e   :  { %7631 = vmatprep.subr.mxu1 %v365_v38  ;;  %7597 = vmatpush3.msra.mxu0 %v317_v39  ;;  %v335_v38 = vld [vmem:[%s15952_s1 + $0x900] sm:$0xff]  ;;  %v2218_v39 = vcombine.high %v2216_v31, %v2216_v31 }
  0x8f   :  { %7632 = vmatpush3.msra.mxu1 %v349_v40  ;;  %7598 = vmatprep.subr.mxu0 %v332_v41  ;;  %v398_v40 = vld [vmem:[%s15952_s1 + $0xaf8] sm:$0xff] }
  0x90   :  { %7633 = vmatprep.subr.mxu1 %v364_v42  ;;  %7599 = vmatpush3.msra.mxu0 %v316_v43  ;;  %v430_v41 = vld [vmem:[%s15952_s1 + $0xbf8] sm:$0xff] }
  0x91   :  { %7634 = vmatpush3.msra.mxu1 %v348_v44  ;;  %7600 = vmatprep.subr.mxu0 %v331_v45  ;;  %v382_v42 = vld [vmem:[%s15952_s1 + $0xa78] sm:$0xff]  ;;  %v397_v44 = vld [vmem:[%s15952_s1 + $0xaf0] sm:$0xff] }
  0x92   :  { %7635 = vmatprep.subr.mxu1 %v363_v46  ;;  %7601 = vmatpush3.msra.mxu0 %v315_v47  ;;  %v414_v43 = vld [vmem:[%s15952_s1 + $0xb78] sm:$0xff]  ;;  %v429_v45 = vld [vmem:[%s15952_s1 + $0xbf0] sm:$0xff] }
  0x93   :  { %7636 = vmatpush3.msra.mxu1 %v347_v48  ;;  %7602 = vmatprep.subr.mxu0 %v330_v49  ;;  %v381_v46 = vld [vmem:[%s15952_s1 + $0xa70] sm:$0xff]  ;;  %v396_v48 = vld [vmem:[%s15952_s1 + $0xae8] sm:$0xff] }
  0x94   :  { %7637 = vmatprep.subr.mxu1 %v362_v50  ;;  %7603 = vmatpush3.msra.mxu0 %v314_v52  ;;  %v413_v47 = vld [vmem:[%s15952_s1 + $0xb70] sm:$0xff]  ;;  %v428_v49 = vld [vmem:[%s15952_s1 + $0xbe8] sm:$0xff] }
  0x95   :  { %7638 = vmatpush3.msra.mxu1 %v346_v53  ;;  %7604 = vmatprep.subr.mxu0 %v329_v54  ;;  %v380_v50 = vld [vmem:[%s15952_s1 + $0xa68] sm:$0xff]  ;;  %v395_v53 = vld [vmem:[%s15952_s1 + $0xae0] sm:$0xff] }
  0x96   :  { %7639 = vmatprep.subr.mxu1 %v361_v55  ;;  %7605 = vmatpush3.msra.mxu0 %v313_v56  ;;  %v412_v52 = vld [vmem:[%s15952_s1 + $0xb68] sm:$0xff]  ;;  %v427_v54 = vld [vmem:[%s15952_s1 + $0xbe0] sm:$0xff] }
  0x97   :  { %7640 = vmatpush3.msra.mxu1 %v345_v57  ;;  %7606 = vmatprep.subr.mxu0 %v328_v58  ;;  %v379_v55 = vld [vmem:[%s15952_s1 + $0xa60] sm:$0xff]  ;;  %v394_v57 = vld [vmem:[%s15952_s1 + $0xad8] sm:$0xff] }
  0x98   :  { %7641 = vmatprep.subr.mxu1 %v360_v59  ;;  %7607 = vmatpush3.msra.mxu0 %v312_v60  ;;  %v411_v56 = vld [vmem:[%s15952_s1 + $0xb60] sm:$0xff]  ;;  %v426_v58 = vld [vmem:[%s15952_s1 + $0xbd8] sm:$0xff] }
  0x99   :  { %7642 = vmatpush3.msra.mxu1 %v344_v61  ;;  %7608 = vmatprep.subr.mxu0 %v327_v62  ;;  %v378_v59 = vld [vmem:[%s15952_s1 + $0xa58] sm:$0xff]  ;;  %v393_v61 = vld [vmem:[%s15952_s1 + $0xad0] sm:$0xff] }
  0x9a   :  { %7643 = vmatprep.subr.mxu1 %v359_v63  ;;  %7609 = vmatpush3.msra.mxu0 %v311_v0  ;;  %v410_v60 = vld [vmem:[%s15952_s1 + $0xb58] sm:$0xff]  ;;  %v425_v62 = vld [vmem:[%s15952_s1 + $0xbd0] sm:$0xff] }
  0x9b   :  { %7644 = vmatpush3.msra.mxu1 %v343_v1  ;;  %7610 = vmatprep.subr.mxu0 %v326_v2  ;;  %v377_v63 = vld [vmem:[%s15952_s1 + $0xa50] sm:$0xff]  ;;  %v392_v1 = vld [vmem:[%s15952_s1 + $0xac8] sm:$0xff] }
  0x9c   :  { %7645 = vmatprep.subr.mxu1 %v358_v3  ;;  %7611 = vmatpush3.msra.mxu0 %v310_v4  ;;  %v409_v0 = vld [vmem:[%s15952_s1 + $0xb50] sm:$0xff]  ;;  %v424_v2 = vld [vmem:[%s15952_s1 + $0xbc8] sm:$0xff] }
  0x9d   :  { %7646 = vmatpush3.msra.mxu1 %v342_v5  ;;  %7612 = vmatprep.subr.mxu0 %v325_v6  ;;  %v376_v3 = vld [vmem:[%s15952_s1 + $0xa48] sm:$0xff]  ;;  %v391_v5 = vld [vmem:[%s15952_s1 + $0xac0] sm:$0xff] }
  0x9e   :  { %7647 = vmatprep.subr.mxu1 %v357_v7  ;;  %7613 = vmatpush3.msra.mxu0 %v309_v8  ;;  %v408_v4 = vld [vmem:[%s15952_s1 + $0xb48] sm:$0xff]  ;;  %v423_v6 = vld [vmem:[%s15952_s1 + $0xbc0] sm:$0xff] }
  0x9f   :  { %7648 = vmatpush3.msra.mxu1 %v341_v9  ;;  %7614 = vmatprep.subr.mxu0 %v324_v10  ;;  %v375_v7 = vld [vmem:[%s15952_s1 + $0xa40] sm:$0xff]  ;;  %v390_v9 = vld [vmem:[%s15952_s1 + $0xab8] sm:$0xff] }
  0xa0   :  { %7649 = vmatprep.subr.mxu1 %v356_v11  ;;  %7615 = vmatpush3.msra.mxu0 %v308_v12  ;;  %v407_v8 = vld [vmem:[%s15952_s1 + $0xb40] sm:$0xff]  ;;  %v422_v10 = vld [vmem:[%s15952_s1 + $0xbb8] sm:$0xff] }
  0xa1   :  { %7650 = vmatpush3.msra.mxu1 %v340_v13  ;;  %7616 = vmatprep.subr.mxu0 %v323_v15  ;;  %v374_v11 = vld [vmem:[%s15952_s1 + $0xa38] sm:$0xff]  ;;  %v389_v13 = vld [vmem:[%s15952_s1 + $0xab0] sm:$0xff] }
  0xa2   :  { %7651 = vmatprep.subr.mxu1 %v355_v16  ;;  %7617 = vmatpush3.msra.mxu0 %v307_v17  ;;  %v406_v12 = vld [vmem:[%s15952_s1 + $0xb38] sm:$0xff]  ;;  %v373_v15 = vld [vmem:[%s15952_s1 + $0xa30] sm:$0xff]  ;;  %v388_v17 = vld [vmem:[%s15952_s1 + $0xaa8] sm:$0xff] }
  0xa3   :  { %7652 = vmatpush3.msra.mxu1 %v339_v18  ;;  %7618 = vmatprep.subr.mxu0 %v322_v19  ;;  %v405_v16 = vld [vmem:[%s15952_s1 + $0xb30] sm:$0xff]  ;;  %v420_v18 = vld [vmem:[%s15952_s1 + $0xba8] sm:$0xff] }
  0xa4   :  { %7653 = vmatprep.subr.mxu1 %v354_v20  ;;  %7619 = vmatpush3.msra.mxu0 %v306_v22  ;;  %v372_v19 = vld [vmem:[%s15952_s1 + $0xa28] sm:$0xff]  ;;  %v387_v22 = vld [vmem:[%s15952_s1 + $0xaa0] sm:$0xff] }
  0xa5   :  { %7654 = vmatpush3.msra.mxu1 %v338_v23  ;;  %7620 = vmatprep.subr.mxu0 %v321_v24  ;;  %v404_v20 = vld [vmem:[%s15952_s1 + $0xb28] sm:$0xff]  ;;  %v419_v23 = vld [vmem:[%s15952_s1 + $0xba0] sm:$0xff] }
  0xa6   :  { %7655 = vmatprep.subr.mxu1 %v353_v25  ;;  %7621 = vmatpush3.msra.mxu0 %v305_v27  ;;  %v371_v24 = vld [vmem:[%s15952_s1 + $0xa20] sm:$0xff]  ;;  %v418_v27 = vld [vmem:[%s15952_s1 + $0xb98] sm:$0xff] }
  0xa7   :  { %7656 = vmatpush3.msra.mxu1 %v337_v28  ;;  %7622 = vmatprep.subr.mxu0 %v320_v29  ;;  %v403_v25 = vld [vmem:[%s15952_s1 + $0xb20] sm:$0xff]  ;;  %v2219_v28 = vcombine.high %v20_v21, %v20_v21  ;;  %v370_v29 = vld [vmem:[%s15952_s1 + $0xa18] sm:$0xff] }
  0xa8   :  { %7657 = vmatprep.subr.mxu1 %v352_v30  ;;  %7623 = vmatpush3.msra.mxu0 %v304_v32  ;;  %v402_v30 = vld [vmem:[%s15952_s1 + $0xb18] sm:$0xff]  ;;  %v417_v32 = vld [vmem:[%s15952_s1 + $0xb90] sm:$0xff] }
  0xa9   :  { %7658 = vmatpush3.msra.mxu1 %v336_v33  ;;  %7624 = vmatprep.subr.mxu0 %v319_v34  ;;  %v2226_v33 = vrot.slane %v20_v21, %v9774_v51  ;;  %v369_v34 = vld [vmem:[%s15952_s1 + $0xa10] sm:$0xff] }
  0xaa   :  { %7659 = vmatprep.subr.mxu1 %v351_v35  ;;  %7625 = vmatpush3.msra.mxu0 %v303_v37  ;;  %v401_v35 = vld [vmem:[%s15952_s1 + $0xb10] sm:$0xff]  ;;  %v416_v37 = vld [vmem:[%s15952_s1 + $0xb88] sm:$0xff] }
  0xab   :  { %3430 = vmatprep.mubr.f32.mxu0 %v2217_v36  ;;  %7660 = vmatpush3.msra.mxu1 %v335_v38  ;;  %v384_v36 = vld [vmem:[%s15952_s1 + $0xa88] sm:$0xff]  ;;  %v2233_v38 = vrot.slane %v2219_v28, %v9774_v51  ;;  %v485_v21 = vld [vmem:[%s15952_s1 + $0xdb0] sm:$0xff] }
  0xac   :  { %3431 = vmatmul.mubr.f32.vlgmr.msra.gmra.mxu0 %v2209_v26  ;;  %3500 = vmatprep.mubr.f32.mxu1 %v2218_v39  ;;  %v386_v26 = vld [vmem:[%s15952_s1 + $0xa98] sm:$0xff]  ;;  %v368_v39 = vld [vmem:[%s15952_s1 + $0xa08] sm:$0xff]  ;;  %v21_v28 = vld [vmem:[%s15951_s0 + $0x30] sm:$0xff] }
  0xad   :  { %7664 = vmatprep.subr.mxu0 %v398_v40  ;;  %7699 = vmatprep.subr.mxu1 %v430_v41  ;;  %v400_v40 = vld [vmem:[%s15952_s1 + $0xb08] sm:$0xff]  ;;  %v383_v41 = vld [vmem:[%s15952_s1 + $0xa80] sm:$0xff] }
  0xae   :  { %3501 = vmatmul.mubr.f32.vlgmr.msra.gmra.mxu1 %v2216_v31  ;;  %7665 = vmatpush3.msra.mxu0 %v382_v42  ;;  %v385_v31 = vld [vmem:[%s15952_s1 + $0xa90] sm:$0xff]  ;;  %v415_v42 = vld [vmem:[%s15952_s1 + $0xb80] sm:$0xff] }
  0xaf   :  { %7700 = vmatpush3.msra.mxu1 %v414_v43  ;;  %7666 = vmatprep.subr.mxu0 %v397_v44  ;;  %v2234_v43 = vcombine.high %v2226_v33, %v2226_v33  ;;  %v367_v44 = vld [vmem:[%s15952_s1 + $0xa00] sm:$0xff] }
  0xb0   :  { %7701 = vmatprep.subr.mxu1 %v429_v45  ;;  %7667 = vmatpush3.msra.mxu0 %v381_v46  ;;  %v399_v45 = vld [vmem:[%s15952_s1 + $0xb00] sm:$0xff]  ;;  %v2235_v46 = vcombine.high %v2233_v38, %v2233_v38 }
  0xb1   :  { %7702 = vmatpush3.msra.mxu1 %v413_v47  ;;  %7668 = vmatprep.subr.mxu0 %v396_v48  ;;  %v462_v47 = vld [vmem:[%s15952_s1 + $0xcf8] sm:$0xff] }
  0xb2   :  { %7703 = vmatprep.subr.mxu1 %v428_v49  ;;  %7669 = vmatpush3.msra.mxu0 %v380_v50  ;;  %v494_v48 = vld [vmem:[%s15952_s1 + $0xdf8] sm:$0xff] }
  0xb3   :  { %7704 = vmatpush3.msra.mxu1 %v412_v52  ;;  %7670 = vmatprep.subr.mxu0 %v395_v53  ;;  %v446_v49 = vld [vmem:[%s15952_s1 + $0xc78] sm:$0xff]  ;;  %v461_v52 = vld [vmem:[%s15952_s1 + $0xcf0] sm:$0xff] }
  0xb4   :  { %7705 = vmatprep.subr.mxu1 %v427_v54  ;;  %7671 = vmatpush3.msra.mxu0 %v379_v55  ;;  %v478_v50 = vld [vmem:[%s15952_s1 + $0xd78] sm:$0xff]  ;;  %v493_v53 = vld [vmem:[%s15952_s1 + $0xdf0] sm:$0xff] }
  0xb5   :  { %7706 = vmatpush3.msra.mxu1 %v411_v56  ;;  %7672 = vmatprep.subr.mxu0 %v394_v57  ;;  %v445_v54 = vld [vmem:[%s15952_s1 + $0xc70] sm:$0xff]  ;;  %v460_v56 = vld [vmem:[%s15952_s1 + $0xce8] sm:$0xff] }
  0xb6   :  { %7707 = vmatprep.subr.mxu1 %v426_v58  ;;  %7673 = vmatpush3.msra.mxu0 %v378_v59  ;;  %v477_v55 = vld [vmem:[%s15952_s1 + $0xd70] sm:$0xff]  ;;  %v492_v57 = vld [vmem:[%s15952_s1 + $0xde8] sm:$0xff] }
  0xb7   :  { %7708 = vmatpush3.msra.mxu1 %v410_v60  ;;  %7674 = vmatprep.subr.mxu0 %v393_v61  ;;  %v444_v58 = vld [vmem:[%s15952_s1 + $0xc68] sm:$0xff]  ;;  %v459_v60 = vld [vmem:[%s15952_s1 + $0xce0] sm:$0xff] }
  0xb8   :  { %7709 = vmatprep.subr.mxu1 %v425_v62  ;;  %7675 = vmatpush3.msra.mxu0 %v377_v63  ;;  %v476_v59 = vld [vmem:[%s15952_s1 + $0xd68] sm:$0xff]  ;;  %v491_v61 = vld [vmem:[%s15952_s1 + $0xde0] sm:$0xff] }
  0xb9   :  { %7710 = vmatpush3.msra.mxu1 %v409_v0  ;;  %7676 = vmatprep.subr.mxu0 %v392_v1  ;;  %v443_v62 = vld [vmem:[%s15952_s1 + $0xc60] sm:$0xff]  ;;  %v458_v0 = vld [vmem:[%s15952_s1 + $0xcd8] sm:$0xff] }
  0xba   :  { %7711 = vmatprep.subr.mxu1 %v424_v2  ;;  %7677 = vmatpush3.msra.mxu0 %v376_v3  ;;  %v475_v63 = vld [vmem:[%s15952_s1 + $0xd60] sm:$0xff]  ;;  %v490_v1 = vld [vmem:[%s15952_s1 + $0xdd8] sm:$0xff] }
  0xbb   :  { %7712 = vmatpush3.msra.mxu1 %v408_v4  ;;  %7678 = vmatprep.subr.mxu0 %v391_v5  ;;  %v442_v2 = vld [vmem:[%s15952_s1 + $0xc58] sm:$0xff]  ;;  %v457_v4 = vld [vmem:[%s15952_s1 + $0xcd0] sm:$0xff] }
  0xbc   :  { %7713 = vmatprep.subr.mxu1 %v423_v6  ;;  %7679 = vmatpush3.msra.mxu0 %v375_v7  ;;  %v474_v3 = vld [vmem:[%s15952_s1 + $0xd58] sm:$0xff]  ;;  %v489_v5 = vld [vmem:[%s15952_s1 + $0xdd0] sm:$0xff] }
  0xbd   :  { %7714 = vmatpush3.msra.mxu1 %v407_v8  ;;  %7680 = vmatprep.subr.mxu0 %v390_v9  ;;  %v441_v6 = vld [vmem:[%s15952_s1 + $0xc50] sm:$0xff]  ;;  %v456_v8 = vld [vmem:[%s15952_s1 + $0xcc8] sm:$0xff] }
  0xbe   :  { %7715 = vmatprep.subr.mxu1 %v422_v10  ;;  %7681 = vmatpush3.msra.mxu0 %v374_v11  ;;  %v473_v7 = vld [vmem:[%s15952_s1 + $0xd50] sm:$0xff]  ;;  %v488_v9 = vld [vmem:[%s15952_s1 + $0xdc8] sm:$0xff] }
  0xbf   :  { %7716 = vmatpush3.msra.mxu1 %v406_v12  ;;  %7682 = vmatprep.subr.mxu0 %v389_v13  ;;  %v440_v10 = vld [vmem:[%s15952_s1 + $0xc48] sm:$0xff]  ;;  %v455_v12 = vld [vmem:[%s15952_s1 + $0xcc0] sm:$0xff] }
  0xc0   :  { %7717 = vmatprep.subr.mxu1 %v421_v14  ;;  %7683 = vmatpush3.msra.mxu0 %v373_v15  ;;  %v472_v11 = vld [vmem:[%s15952_s1 + $0xd48] sm:$0xff]  ;;  %v487_v13 = vld [vmem:[%s15952_s1 + $0xdc0] sm:$0xff] }
  0xc1   :  { %7718 = vmatpush3.msra.mxu1 %v405_v16  ;;  %7684 = vmatprep.subr.mxu0 %v388_v17  ;;  %v439_v14 = vld [vmem:[%s15952_s1 + $0xc40] sm:$0xff]  ;;  %v454_v16 = vld [vmem:[%s15952_s1 + $0xcb8] sm:$0xff] }
  0xc2   :  { %7719 = vmatprep.subr.mxu1 %v420_v18  ;;  %7685 = vmatpush3.msra.mxu0 %v372_v19  ;;  %v471_v15 = vld [vmem:[%s15952_s1 + $0xd40] sm:$0xff]  ;;  %v486_v17 = vld [vmem:[%s15952_s1 + $0xdb8] sm:$0xff] }
  0xc3   :  { %7720 = vmatpush3.msra.mxu1 %v404_v20  ;;  %7686 = vmatprep.subr.mxu0 %v387_v22  ;;  %v438_v18 = vld [vmem:[%s15952_s1 + $0xc38] sm:$0xff]  ;;  %v453_v20 = vld [vmem:[%s15952_s1 + $0xcb0] sm:$0xff] }
  0xc4   :  { %7721 = vmatprep.subr.mxu1 %v419_v23  ;;  %7687 = vmatpush3.msra.mxu0 %v371_v24  ;;  %v470_v19 = vld [vmem:[%s15952_s1 + $0xd38] sm:$0xff]  ;;  %v437_v22 = vld [vmem:[%s15952_s1 + $0xc30] sm:$0xff]  ;;  %v452_v24 = vld [vmem:[%s15952_s1 + $0xca8] sm:$0xff] }
  0xc5   :  { %7722 = vmatpush3.msra.mxu1 %v403_v25  ;;  %7688 = vmatprep.subr.mxu0 %v386_v26  ;;  %v469_v23 = vld [vmem:[%s15952_s1 + $0xd30] sm:$0xff]  ;;  %v484_v25 = vld [vmem:[%s15952_s1 + $0xda8] sm:$0xff] }
  0xc6   :  { %7723 = vmatprep.subr.mxu1 %v418_v27  ;;  %7689 = vmatpush3.msra.mxu0 %v370_v29  ;;  %v436_v26 = vld [vmem:[%s15952_s1 + $0xc28] sm:$0xff]  ;;  %v451_v29 = vld [vmem:[%s15952_s1 + $0xca0] sm:$0xff] }
  0xc7   :  { %7724 = vmatpush3.msra.mxu1 %v402_v30  ;;  %7690 = vmatprep.subr.mxu0 %v385_v31  ;;  %v468_v27 = vld [vmem:[%s15952_s1 + $0xd28] sm:$0xff]  ;;  %v483_v30 = vld [vmem:[%s15952_s1 + $0xda0] sm:$0xff] }
  0xc8   :  { %7725 = vmatprep.subr.mxu1 %v417_v32  ;;  %7691 = vmatpush3.msra.mxu0 %v369_v34  ;;  %v435_v31 = vld [vmem:[%s15952_s1 + $0xc20] sm:$0xff]  ;;  %v482_v34 = vld [vmem:[%s15952_s1 + $0xd98] sm:$0xff] }
  0xc9   :  { %7726 = vmatpush3.msra.mxu1 %v401_v35  ;;  %7692 = vmatprep.subr.mxu0 %v384_v36  ;;  %v467_v32 = vld [vmem:[%s15952_s1 + $0xd20] sm:$0xff]  ;;  %v2236_v35 = vcombine.high %v21_v28, %v21_v28  ;;  %v434_v36 = vld [vmem:[%s15952_s1 + $0xc18] sm:$0xff] }
  0xca   :  { %7727 = vmatprep.subr.mxu1 %v416_v37  ;;  %7693 = vmatpush3.msra.mxu0 %v368_v39  ;;  %v466_v37 = vld [vmem:[%s15952_s1 + $0xd18] sm:$0xff] }
  0xcb   :  { %7728 = vmatpush3.msra.mxu1 %v400_v40  ;;  %7694 = vmatprep.subr.mxu0 %v383_v41 }
  0xcc   :  { %7729 = vmatprep.subr.mxu1 %v415_v42  ;;  %7695 = vmatpush3.msra.mxu0 %v367_v44 }
  0xcd   :  { %3570 = vmatprep.mubr.f32.mxu0 %v2234_v43  ;;  %7730 = vmatpush3.msra.mxu1 %v399_v45 }
  0xce   :  { %3571 = vmatmul.mubr.f32.vlgmr.msra.gmra.mxu0 %v2226_v33  ;;  %3640 = vmatprep.mubr.f32.mxu1 %v2235_v46  ;;  %v450_v33 = vld [vmem:[%s15952_s1 + $0xc98] sm:$0xff] }
  0xcf   :  { %7734 = vmatprep.subr.mxu0 %v462_v47  ;;  %7769 = vmatprep.subr.mxu1 %v494_v48 }
  0xd0   :  { %3641 = vmatmul.mubr.f32.vlgmr.msra.gmra.mxu1 %v2233_v38  ;;  %7735 = vmatpush3.msra.mxu0 %v446_v49 }
  0xd1   :  { %7770 = vmatpush3.msra.mxu1 %v478_v50  ;;  %7736 = vmatprep.subr.mxu0 %v461_v52 }
  0xd2   :  { %7771 = vmatprep.subr.mxu1 %v493_v53  ;;  %7737 = vmatpush3.msra.mxu0 %v445_v54 }
  0xd3   :  { %7772 = vmatpush3.msra.mxu1 %v477_v55  ;;  %7738 = vmatprep.subr.mxu0 %v460_v56 }
  0xd4   :  { %7773 = vmatprep.subr.mxu1 %v492_v57  ;;  %7739 = vmatpush3.msra.mxu0 %v444_v58 }
  0xd5   :  { %7774 = vmatpush3.msra.mxu1 %v476_v59  ;;  %7740 = vmatprep.subr.mxu0 %v459_v60 }
  0xd6   :  { %7775 = vmatprep.subr.mxu1 %v491_v61  ;;  %7741 = vmatpush3.msra.mxu0 %v443_v62 }
  0xd7   :  { %7776 = vmatpush3.msra.mxu1 %v475_v63  ;;  %7742 = vmatprep.subr.mxu0 %v458_v0 }
  0xd8   :  { %7777 = vmatprep.subr.mxu1 %v490_v1  ;;  %7743 = vmatpush3.msra.mxu0 %v442_v2 }
  0xd9   :  { %7778 = vmatpush3.msra.mxu1 %v474_v3  ;;  %7744 = vmatprep.subr.mxu0 %v457_v4 }
  0xda   :  { %7779 = vmatprep.subr.mxu1 %v489_v5  ;;  %7745 = vmatpush3.msra.mxu0 %v441_v6 }
  0xdb   :  { %7780 = vmatpush3.msra.mxu1 %v473_v7  ;;  %7746 = vmatprep.subr.mxu0 %v456_v8 }
  0xdc   :  { %7781 = vmatprep.subr.mxu1 %v488_v9  ;;  %7747 = vmatpush3.msra.mxu0 %v440_v10 }
  0xdd   :  { %7782 = vmatpush3.msra.mxu1 %v472_v11  ;;  %7748 = vmatprep.subr.mxu0 %v455_v12 }
  0xde   :  { %7783 = vmatprep.subr.mxu1 %v487_v13  ;;  %7749 = vmatpush3.msra.mxu0 %v439_v14 }
  0xdf   :  { %7784 = vmatpush3.msra.mxu1 %v471_v15  ;;  %7750 = vmatprep.subr.mxu0 %v454_v16 }
  0xe0   :  { %7785 = vmatprep.subr.mxu1 %v486_v17  ;;  %7751 = vmatpush3.msra.mxu0 %v438_v18 }
  0xe1   :  { %7786 = vmatpush3.msra.mxu1 %v470_v19  ;;  %7752 = vmatprep.subr.mxu0 %v453_v20 }
  0xe2   :  { %7787 = vmatprep.subr.mxu1 %v485_v21  ;;  %7753 = vmatpush3.msra.mxu0 %v437_v22 }
  0xe3   :  { %7788 = vmatpush3.msra.mxu1 %v469_v23  ;;  %7754 = vmatprep.subr.mxu0 %v452_v24 }
  0xe4   :  { %7789 = vmatprep.subr.mxu1 %v484_v25  ;;  %7755 = vmatpush3.msra.mxu0 %v436_v26 }
  0xe5   :  { %7790 = vmatpush3.msra.mxu1 %v468_v27  ;;  %7756 = vmatprep.subr.mxu0 %v451_v29 }
  0xe6   :  { %7791 = vmatprep.subr.mxu1 %v483_v30 }
  0xe7   :  { %8 = vsyncpa [#allocation3], 0  ;;  %7757 = vmatpush3.msra.mxu0 %v435_v31  ;;  %7792 = vmatpush3.msra.mxu1 %v467_v32  ;;  %v449_v38 = vld [vmem:[%s15952_s1 + $0xc90] sm:$0xff]  ;;  %v2243_v40 = vrot.slane %v21_v28, %v9774_v51  ;;  %v448_v43 = vld [vmem:[%s15952_s1 + $0xc88] sm:$0xff]  ;;  %v2250_v45 = vrot.slane %v2236_v35, %v9774_v51  ;;  %vm7286_vm0 = vcmask 74752  }
  0xe8   :  { %v481_v39 = vld [vmem:[%s15952_s1 + $0xd90] sm:$0xff]  ;;  %7758 = vmatprep.subr.mxu0 %v450_v33  ;;  %7793 = vmatprep.subr.mxu1 %v482_v34  ;;  %v480_v44 = vld [vmem:[%s15952_s1 + $0xd88] sm:$0xff]  ;;  %v447_v48 = vld [vmem:[%s15952_s1 + $0xc80] sm:$0xff] }
  0xe9   :  { %v433_v41 = vld [vmem:[%s15952_s1 + $0xc10] sm:$0xff]  ;;  %7759 = vmatpush3.msra.mxu0 %v434_v36  ;;  %7794 = vmatpush3.msra.mxu1 %v466_v37  ;;  %v432_v46 = vld [vmem:[%s15952_s1 + $0xc08] sm:$0xff]  ;;  %v479_v49 = vld [vmem:[%s15952_s1 + $0xd80] sm:$0xff]  ;;  %v2251_v50 = vcombine.high %v2243_v40, %v2243_v40  ;;  %v2252_v54 = vcombine.high %v2250_v45, %v2250_v45 }
  0xea   :  { %v465_v42 = vld [vmem:[%s15952_s1 + $0xd10] sm:$0xff]  ;;  %7760 = vmatprep.subr.mxu0 %v449_v38  ;;  %7795 = vmatprep.subr.mxu1 %v481_v39  ;;  %v464_v47 = vld [vmem:[%s15952_s1 + $0xd08] sm:$0xff]  ;;  %v431_v52 = vld [vmem:[%s15952_s1 + $0xc00] sm:$0xff] }
  0xeb   :  { %7761 = vmatpush3.msra.mxu0 %v433_v41  ;;  %7796 = vmatpush3.msra.mxu1 %v465_v42  ;;  %v463_v53 = vld [vmem:[%s15952_s1 + $0xd00] sm:$0xff]  ;;  %v526_v55 = vld [vmem:[%s15952_s1 + $0xef8] sm:$0xff]  ;;  %v525_v59 = vld [vmem:[%s15952_s1 + $0xef0] sm:$0xff] }
  0xec   :  { %7762 = vmatprep.subr.mxu0 %v448_v43  ;;  %7797 = vmatprep.subr.mxu1 %v480_v44  ;;  %v558_v56 = vld [vmem:[%s15952_s1 + $0xff8] sm:$0xff]  ;;  %v557_v60 = vld [vmem:[%s15952_s1 + $0xff0] sm:$0xff]  ;;  %v524_v63 = vld [vmem:[%s15952_s1 + $0xee8] sm:$0xff] }
  0xed   :  { %7763 = vmatpush3.msra.mxu0 %v432_v46  ;;  %7798 = vmatpush3.msra.mxu1 %v464_v47  ;;  %v510_v57 = vld [vmem:[%s15952_s1 + $0xe78] sm:$0xff]  ;;  %v509_v61 = vld [vmem:[%s15952_s1 + $0xe70] sm:$0xff]  ;;  %v556_v0 = vld [vmem:[%s15952_s1 + $0xfe8] sm:$0xff] }
  0xee   :  { %7764 = vmatprep.subr.mxu0 %v447_v48  ;;  %7799 = vmatprep.subr.mxu1 %v479_v49  ;;  %v542_v58 = vld [vmem:[%s15952_s1 + $0xf78] sm:$0xff]  ;;  %v541_v62 = vld [vmem:[%s15952_s1 + $0xf70] sm:$0xff]  ;;  %v508_v1 = vld [vmem:[%s15952_s1 + $0xe68] sm:$0xff] }
  0xef   :  { %7765 = vmatpush3.msra.mxu0 %v431_v52  ;;  %3710 = vmatprep.mubr.f32.mxu0 %v2251_v50  ;;  %v540_v2 = vld [vmem:[%s15952_s1 + $0xf68] sm:$0xff]  ;;  %v523_v3 = vld [vmem:[%s15952_s1 + $0xee0] sm:$0xff]  ;;  %v522_v7 = vld [vmem:[%s15952_s1 + $0xed8] sm:$0xff] }
  0xf0   :  { %7800 = vmatpush3.msra.mxu1 %v463_v53  ;;  %3711 = vmatmul.mubr.f32.vlgmr.msra.gmra.mxu0 %v2243_v40  ;;  %v555_v4 = vld [vmem:[%s15952_s1 + $0xfe0] sm:$0xff]  ;;  %v554_v8 = vld [vmem:[%s15952_s1 + $0xfd8] sm:$0xff]  ;;  %v521_v11 = vld [vmem:[%s15952_s1 + $0xed0] sm:$0xff] }
  0xf1   :  { %3780 = vmatprep.mubr.f32.mxu1 %v2252_v54  ;;  %7804 = vmatprep.subr.mxu0 %v526_v55  ;;  %v507_v5 = vld [vmem:[%s15952_s1 + $0xe60] sm:$0xff]  ;;  %v506_v9 = vld [vmem:[%s15952_s1 + $0xe58] sm:$0xff]  ;;  %v553_v12 = vld [vmem:[%s15952_s1 + $0xfd0] sm:$0xff] }
  0xf2   :  { %7839 = vmatprep.subr.mxu1 %v558_v56  ;;  %3781 = vmatmul.mubr.f32.vlgmr.msra.gmra.mxu1 %v2250_v45  ;;  %v539_v6 = vld [vmem:[%s15952_s1 + $0xf60] sm:$0xff]  ;;  %v538_v10 = vld [vmem:[%s15952_s1 + $0xf58] sm:$0xff]  ;;  %v505_v13 = vld [vmem:[%s15952_s1 + $0xe50] sm:$0xff] }
  0xf3   :  { %7805 = vmatpush3.msra.mxu0 %v510_v57  ;;  %7840 = vmatpush3.msra.mxu1 %v542_v58  ;;  %v537_v14 = vld [vmem:[%s15952_s1 + $0xf50] sm:$0xff]  ;;  %v520_v15 = vld [vmem:[%s15952_s1 + $0xec8] sm:$0xff]  ;;  %v519_v19 = vld [vmem:[%s15952_s1 + $0xec0] sm:$0xff] }
  0xf4   :  { %7806 = vmatprep.subr.mxu0 %v525_v59  ;;  %7841 = vmatprep.subr.mxu1 %v557_v60  ;;  %v552_v16 = vld [vmem:[%s15952_s1 + $0xfc8] sm:$0xff]  ;;  %v551_v20 = vld [vmem:[%s15952_s1 + $0xfc0] sm:$0xff]  ;;  %v518_v23 = vld [vmem:[%s15952_s1 + $0xeb8] sm:$0xff] }
  0xf5   :  { %7807 = vmatpush3.msra.mxu0 %v509_v61  ;;  %7842 = vmatpush3.msra.mxu1 %v541_v62  ;;  %v504_v17 = vld [vmem:[%s15952_s1 + $0xe48] sm:$0xff]  ;;  %v503_v21 = vld [vmem:[%s15952_s1 + $0xe40] sm:$0xff]  ;;  %v550_v24 = vld [vmem:[%s15952_s1 + $0xfb8] sm:$0xff] }
  0xf6   :  { %7808 = vmatprep.subr.mxu0 %v524_v63  ;;  %7843 = vmatprep.subr.mxu1 %v556_v0  ;;  %v536_v18 = vld [vmem:[%s15952_s1 + $0xf48] sm:$0xff]  ;;  %v535_v22 = vld [vmem:[%s15952_s1 + $0xf40] sm:$0xff]  ;;  %v502_v25 = vld [vmem:[%s15952_s1 + $0xe38] sm:$0xff] }
  0xf7   :  { %7809 = vmatpush3.msra.mxu0 %v508_v1  ;;  %7844 = vmatpush3.msra.mxu1 %v540_v2  ;;  %v534_v26 = vld [vmem:[%s15952_s1 + $0xf38] sm:$0xff]  ;;  %v517_v27 = vld [vmem:[%s15952_s1 + $0xeb0] sm:$0xff]  ;;  %v516_v31 = vld [vmem:[%s15952_s1 + $0xea8] sm:$0xff] }
  0xf8   :  { %7810 = vmatprep.subr.mxu0 %v523_v3  ;;  %7845 = vmatprep.subr.mxu1 %v555_v4  ;;  %v549_v28 = vld [vmem:[%s15952_s1 + $0xfb0] sm:$0xff]  ;;  %v548_v32 = vld [vmem:[%s15952_s1 + $0xfa8] sm:$0xff]  ;;  %v22_v35 = vld [vmem:[%s15951_s0 + $0x38] sm:$0xff] }
  0xf9   :  { %7811 = vmatpush3.msra.mxu0 %v507_v5  ;;  %7846 = vmatpush3.msra.mxu1 %v539_v6  ;;  %v501_v29 = vld [vmem:[%s15952_s1 + $0xe30] sm:$0xff]  ;;  %v500_v33 = vld [vmem:[%s15952_s1 + $0xe28] sm:$0xff]  ;;  %v515_v36 = vld [vmem:[%s15952_s1 + $0xea0] sm:$0xff]  ;;  %v2253_v42 = vcombine.high %v22_v35, %v22_v35  ;;  %v2260_v47 = vrot.slane %v22_v35, %v9774_v51 }
  0xfa   :  { %7812 = vmatprep.subr.mxu0 %v522_v7  ;;  %7847 = vmatprep.subr.mxu1 %v554_v8  ;;  %v533_v30 = vld [vmem:[%s15952_s1 + $0xf30] sm:$0xff]  ;;  %v532_v34 = vld [vmem:[%s15952_s1 + $0xf28] sm:$0xff]  ;;  %v547_v37 = vld [vmem:[%s15952_s1 + $0xfa0] sm:$0xff] }
  0xfb   :  { %7813 = vmatpush3.msra.mxu0 %v506_v9  ;;  %7848 = vmatpush3.msra.mxu1 %v538_v10  ;;  %v499_v38 = vld [vmem:[%s15952_s1 + $0xe20] sm:$0xff]  ;;  %v514_v40 = vld [vmem:[%s15952_s1 + $0xe98] sm:$0xff]  ;;  %v513_v45 = vld [vmem:[%s15952_s1 + $0xe90] sm:$0xff]  ;;  %v2267_v53 = vrot.slane %v2253_v42, %v9774_v51  ;;  %v2268_v58 = vcombine.high %v2260_v47, %v2260_v47 }
  0xfc   :  { %7814 = vmatprep.subr.mxu0 %v521_v11  ;;  %7849 = vmatprep.subr.mxu1 %v553_v12  ;;  %v531_v39 = vld [vmem:[%s15952_s1 + $0xf20] sm:$0xff]  ;;  %v546_v41 = vld [vmem:[%s15952_s1 + $0xf98] sm:$0xff]  ;;  %v545_v46 = vld [vmem:[%s15952_s1 + $0xf90] sm:$0xff] }
  0xfd   :  { %7815 = vmatpush3.msra.mxu0 %v505_v13  ;;  %7850 = vmatpush3.msra.mxu1 %v537_v14  ;;  %v498_v43 = vld [vmem:[%s15952_s1 + $0xe18] sm:$0xff]  ;;  %v497_v48 = vld [vmem:[%s15952_s1 + $0xe10] sm:$0xff]  ;;  %v512_v50 = vld [vmem:[%s15952_s1 + $0xe88] sm:$0xff]  ;;  %v2269_v61 = vcombine.high %v2267_v53, %v2267_v53 }
  0xfe   :  { %7816 = vmatprep.subr.mxu0 %v520_v15  ;;  %7851 = vmatprep.subr.mxu1 %v552_v16  ;;  %v530_v44 = vld [vmem:[%s15952_s1 + $0xf18] sm:$0xff]  ;;  %v529_v49 = vld [vmem:[%s15952_s1 + $0xf10] sm:$0xff]  ;;  %v544_v52 = vld [vmem:[%s15952_s1 + $0xf88] sm:$0xff] }
  0xff   :  { %7817 = vmatpush3.msra.mxu0 %v504_v17  ;;  %7852 = vmatpush3.msra.mxu1 %v536_v18  ;;  %v496_v54 = vld [vmem:[%s15952_s1 + $0xe08] sm:$0xff]  ;;  %v511_v56 = vld [vmem:[%s15952_s1 + $0xe80] sm:$0xff]  ;;  %v590_v62 = vld [vmem:[%s15952_s1 + $0x10f8] sm:$0xff] }
 0x100   :  { %7818 = vmatprep.subr.mxu0 %v519_v19  ;;  %7853 = vmatprep.subr.mxu1 %v551_v20  ;;  %v528_v55 = vld [vmem:[%s15952_s1 + $0xf08] sm:$0xff]  ;;  %v543_v57 = vld [vmem:[%s15952_s1 + $0xf80] sm:$0xff]  ;;  %v622_v63 = vld [vmem:[%s15952_s1 + $0x11f8] sm:$0xff] }
 0x101   :  { %7819 = vmatpush3.msra.mxu0 %v503_v21  ;;  %7854 = vmatpush3.msra.mxu1 %v535_v22  ;;  %v495_v59 = vld [vmem:[%s15952_s1 + $0xe00] sm:$0xff]  ;;  %v574_v0 = vld [vmem:[%s15952_s1 + $0x1078] sm:$0xff]  ;;  %v589_v2 = vld [vmem:[%s15952_s1 + $0x10f0] sm:$0xff] }
 0x102   :  { %7820 = vmatprep.subr.mxu0 %v518_v23  ;;  %7855 = vmatprep.subr.mxu1 %v550_v24  ;;  %v527_v60 = vld [vmem:[%s15952_s1 + $0xf00] sm:$0xff]  ;;  %v606_v1 = vld [vmem:[%s15952_s1 + $0x1178] sm:$0xff]  ;;  %v621_v3 = vld [vmem:[%s15952_s1 + $0x11f0] sm:$0xff] }
 0x103   :  { %7821 = vmatpush3.msra.mxu0 %v502_v25  ;;  %7856 = vmatpush3.msra.mxu1 %v534_v26  ;;  %v573_v4 = vld [vmem:[%s15952_s1 + $0x1070] sm:$0xff]  ;;  %v588_v6 = vld [vmem:[%s15952_s1 + $0x10e8] sm:$0xff]  ;;  %v587_v10 = vld [vmem:[%s15952_s1 + $0x10e0] sm:$0xff] }
 0x104   :  { %7822 = vmatprep.subr.mxu0 %v517_v27  ;;  %7857 = vmatprep.subr.mxu1 %v549_v28  ;;  %v605_v5 = vld [vmem:[%s15952_s1 + $0x1170] sm:$0xff]  ;;  %v620_v7 = vld [vmem:[%s15952_s1 + $0x11e8] sm:$0xff]  ;;  %v619_v11 = vld [vmem:[%s15952_s1 + $0x11e0] sm:$0xff] }
 0x105   :  { %7823 = vmatpush3.msra.mxu0 %v501_v29  ;;  %7858 = vmatpush3.msra.mxu1 %v533_v30  ;;  %v572_v8 = vld [vmem:[%s15952_s1 + $0x1068] sm:$0xff]  ;;  %v571_v12 = vld [vmem:[%s15952_s1 + $0x1060] sm:$0xff]  ;;  %v586_v14 = vld [vmem:[%s15952_s1 + $0x10d8] sm:$0xff] }
 0x106   :  { %7824 = vmatprep.subr.mxu0 %v516_v31  ;;  %7859 = vmatprep.subr.mxu1 %v548_v32  ;;  %v604_v9 = vld [vmem:[%s15952_s1 + $0x1168] sm:$0xff]  ;;  %v603_v13 = vld [vmem:[%s15952_s1 + $0x1160] sm:$0xff]  ;;  %v618_v15 = vld [vmem:[%s15952_s1 + $0x11d8] sm:$0xff] }
 0x107   :  { %7825 = vmatpush3.msra.mxu0 %v500_v33  ;;  %7860 = vmatpush3.msra.mxu1 %v532_v34  ;;  %v570_v16 = vld [vmem:[%s15952_s1 + $0x1058] sm:$0xff]  ;;  %v585_v18 = vld [vmem:[%s15952_s1 + $0x10d0] sm:$0xff]  ;;  %v584_v22 = vld [vmem:[%s15952_s1 + $0x10c8] sm:$0xff] }
 0x108   :  { %7826 = vmatprep.subr.mxu0 %v515_v36  ;;  %7861 = vmatprep.subr.mxu1 %v547_v37  ;;  %v602_v17 = vld [vmem:[%s15952_s1 + $0x1158] sm:$0xff]  ;;  %v617_v19 = vld [vmem:[%s15952_s1 + $0x11d0] sm:$0xff]  ;;  %v616_v23 = vld [vmem:[%s15952_s1 + $0x11c8] sm:$0xff] }
 0x109   :  { %7827 = vmatpush3.msra.mxu0 %v499_v38  ;;  %7862 = vmatpush3.msra.mxu1 %v531_v39  ;;  %v569_v20 = vld [vmem:[%s15952_s1 + $0x1050] sm:$0xff]  ;;  %v568_v24 = vld [vmem:[%s15952_s1 + $0x1048] sm:$0xff]  ;;  %v583_v26 = vld [vmem:[%s15952_s1 + $0x10c0] sm:$0xff] }
 0x10a   :  { %7828 = vmatprep.subr.mxu0 %v514_v40  ;;  %7863 = vmatprep.subr.mxu1 %v546_v41  ;;  %v601_v21 = vld [vmem:[%s15952_s1 + $0x1150] sm:$0xff]  ;;  %v600_v25 = vld [vmem:[%s15952_s1 + $0x1148] sm:$0xff]  ;;  %v615_v27 = vld [vmem:[%s15952_s1 + $0x11c0] sm:$0xff] }
 0x10b   :  { %7829 = vmatpush3.msra.mxu0 %v498_v43  ;;  %7864 = vmatpush3.msra.mxu1 %v530_v44  ;;  %v567_v28 = vld [vmem:[%s15952_s1 + $0x1040] sm:$0xff]  ;;  %v582_v30 = vld [vmem:[%s15952_s1 + $0x10b8] sm:$0xff]  ;;  %v581_v34 = vld [vmem:[%s15952_s1 + $0x10b0] sm:$0xff] }
 0x10c   :  { %7830 = vmatprep.subr.mxu0 %v513_v45  ;;  %7865 = vmatprep.subr.mxu1 %v545_v46  ;;  %v599_v29 = vld [vmem:[%s15952_s1 + $0x1140] sm:$0xff]  ;;  %v614_v31 = vld [vmem:[%s15952_s1 + $0x11b8] sm:$0xff]  ;;  %v613_v35 = vld [vmem:[%s15952_s1 + $0x11b0] sm:$0xff] }
 0x10d   :  { %7831 = vmatpush3.msra.mxu0 %v497_v48  ;;  %7866 = vmatpush3.msra.mxu1 %v529_v49  ;;  %v566_v32 = vld [vmem:[%s15952_s1 + $0x1038] sm:$0xff]  ;;  %v565_v36 = vld [vmem:[%s15952_s1 + $0x1030] sm:$0xff]  ;;  %v580_v38 = vld [vmem:[%s15952_s1 + $0x10a8] sm:$0xff] }
 0x10e   :  { %7832 = vmatprep.subr.mxu0 %v512_v50  ;;  %7867 = vmatprep.subr.mxu1 %v544_v52  ;;  %v598_v33 = vld [vmem:[%s15952_s1 + $0x1138] sm:$0xff]  ;;  %v597_v37 = vld [vmem:[%s15952_s1 + $0x1130] sm:$0xff]  ;;  %v612_v39 = vld [vmem:[%s15952_s1 + $0x11a8] sm:$0xff] }
 0x10f   :  { %7833 = vmatpush3.msra.mxu0 %v496_v54  ;;  %7868 = vmatpush3.msra.mxu1 %v528_v55  ;;  %v564_v40 = vld [vmem:[%s15952_s1 + $0x1028] sm:$0xff]  ;;  %v23_v42 = vld [vmem:[%s15951_s0 + $0x40] sm:$0xff]  ;;  %v610_v48 = vld [vmem:[%s15952_s1 + $0x1198] sm:$0xff] }
 0x110   :  { %7834 = vmatprep.subr.mxu0 %v511_v56  ;;  %7869 = vmatprep.subr.mxu1 %v543_v57  ;;  %v596_v41 = vld [vmem:[%s15952_s1 + $0x1128] sm:$0xff]  ;;  %v579_v43 = vld [vmem:[%s15952_s1 + $0x10a0] sm:$0xff]  ;;  %v2270_v49 = vcombine.high %v23_v42, %v23_v42  ;;  %v562_v50 = vld [vmem:[%s15952_s1 + $0x1018] sm:$0xff]  ;;  %v2277_v55 = vrot.slane %v23_v42, %v9774_v51 }
 0x111   :  { %7835 = vmatpush3.msra.mxu0 %v495_v59  ;;  %3850 = vmatprep.mubr.f32.mxu0 %v2268_v58  ;;  %v611_v44 = vld [vmem:[%s15952_s1 + $0x11a0] sm:$0xff]  ;;  %v594_v52 = vld [vmem:[%s15952_s1 + $0x1118] sm:$0xff]  ;;  %v609_v54 = vld [vmem:[%s15952_s1 + $0x1190] sm:$0xff] }
 0x112   :  { %7870 = vmatpush3.msra.mxu1 %v527_v60  ;;  %3851 = vmatmul.mubr.f32.vlgmr.msra.gmra.mxu0 %v2260_v47  ;;  %v563_v45 = vld [vmem:[%s15952_s1 + $0x1020] sm:$0xff]  ;;  %v578_v47 = vld [vmem:[%s15952_s1 + $0x1098] sm:$0xff]  ;;  %v561_v56 = vld [vmem:[%s15952_s1 + $0x1010] sm:$0xff]  ;;  %v2284_v60 = vrot.slane %v2270_v49, %v9774_v51 }
 0x113   :  { %3920 = vmatprep.mubr.f32.mxu1 %v2269_v61  ;;  %7874 = vmatprep.subr.mxu0 %v590_v62  ;;  %v595_v46 = vld [vmem:[%s15952_s1 + $0x1120] sm:$0xff]  ;;  %v593_v57 = vld [vmem:[%s15952_s1 + $0x1110] sm:$0xff]  ;;  %v576_v58 = vld [vmem:[%s15952_s1 + $0x1088] sm:$0xff] }
 0x114   :  { %7909 = vmatprep.subr.mxu1 %v622_v63  ;;  %3921 = vmatmul.mubr.f32.vlgmr.msra.gmra.mxu1 %v2267_v53  ;;  %v577_v53 = vld [vmem:[%s15952_s1 + $0x1090] sm:$0xff]  ;;  %v608_v59 = vld [vmem:[%s15952_s1 + $0x1188] sm:$0xff]  ;;  %v575_v63 = vld [vmem:[%s15952_s1 + $0x1080] sm:$0xff] }
 0x115   :  { %7875 = vmatpush3.msra.mxu0 %v574_v0  ;;  %7910 = vmatpush3.msra.mxu1 %v606_v1  ;;  %v560_v61 = vld [vmem:[%s15952_s1 + $0x1008] sm:$0xff]  ;;  %v607_v0 = vld [vmem:[%s15952_s1 + $0x1180] sm:$0xff]  ;;  %v2285_v1 = vcombine.high %v2277_v55, %v2277_v55  ;;  %v677_v42 = vld [vmem:[%s15952_s1 + $0x13b0] sm:$0xff] }
 0x116   :  { %7876 = vmatprep.subr.mxu0 %v589_v2  ;;  %7911 = vmatprep.subr.mxu1 %v621_v3  ;;  %v592_v62 = vld [vmem:[%s15952_s1 + $0x1108] sm:$0xff]  ;;  %v559_v2 = vld [vmem:[%s15952_s1 + $0x1000] sm:$0xff] }
 0x117   :  { %7877 = vmatpush3.msra.mxu0 %v573_v4  ;;  %7912 = vmatpush3.msra.mxu1 %v605_v5  ;;  %v591_v3 = vld [vmem:[%s15952_s1 + $0x1100] sm:$0xff]  ;;  %v2286_v4 = vcombine.high %v2284_v60, %v2284_v60  ;;  %v654_v5 = vld [vmem:[%s15952_s1 + $0x12f8] sm:$0xff]  ;;  %v24_v49 = vld [vmem:[%s15951_s0 + $0x48] sm:$0xff] }
 0x118   :  { %7878 = vmatprep.subr.mxu0 %v588_v6  ;;  %7913 = vmatprep.subr.mxu1 %v620_v7  ;;  %v686_v6 = vld [vmem:[%s15952_s1 + $0x13f8] sm:$0xff] }
 0x119   :  { %7879 = vmatpush3.msra.mxu0 %v572_v8  ;;  %7914 = vmatpush3.msra.mxu1 %v604_v9  ;;  %v638_v7 = vld [vmem:[%s15952_s1 + $0x1278] sm:$0xff]  ;;  %v653_v9 = vld [vmem:[%s15952_s1 + $0x12f0] sm:$0xff] }
 0x11a   :  { %7880 = vmatprep.subr.mxu0 %v587_v10  ;;  %7915 = vmatprep.subr.mxu1 %v619_v11  ;;  %v670_v8 = vld [vmem:[%s15952_s1 + $0x1378] sm:$0xff]  ;;  %v685_v10 = vld [vmem:[%s15952_s1 + $0x13f0] sm:$0xff] }
 0x11b   :  { %7881 = vmatpush3.msra.mxu0 %v571_v12  ;;  %7916 = vmatpush3.msra.mxu1 %v603_v13  ;;  %v637_v11 = vld [vmem:[%s15952_s1 + $0x1270] sm:$0xff]  ;;  %v652_v13 = vld [vmem:[%s15952_s1 + $0x12e8] sm:$0xff] }
 0x11c   :  { %7882 = vmatprep.subr.mxu0 %v586_v14  ;;  %7917 = vmatprep.subr.mxu1 %v618_v15  ;;  %v669_v12 = vld [vmem:[%s15952_s1 + $0x1370] sm:$0xff]  ;;  %v684_v14 = vld [vmem:[%s15952_s1 + $0x13e8] sm:$0xff] }
 0x11d   :  { %7883 = vmatpush3.msra.mxu0 %v570_v16  ;;  %7918 = vmatpush3.msra.mxu1 %v602_v17  ;;  %v636_v15 = vld [vmem:[%s15952_s1 + $0x1268] sm:$0xff]  ;;  %v651_v17 = vld [vmem:[%s15952_s1 + $0x12e0] sm:$0xff] }
 0x11e   :  { %7884 = vmatprep.subr.mxu0 %v585_v18  ;;  %7919 = vmatprep.subr.mxu1 %v617_v19  ;;  %v668_v16 = vld [vmem:[%s15952_s1 + $0x1368] sm:$0xff]  ;;  %v683_v18 = vld [vmem:[%s15952_s1 + $0x13e0] sm:$0xff] }
 0x11f   :  { %7885 = vmatpush3.msra.mxu0 %v569_v20  ;;  %7920 = vmatpush3.msra.mxu1 %v601_v21  ;;  %v635_v19 = vld [vmem:[%s15952_s1 + $0x1260] sm:$0xff]  ;;  %v650_v21 = vld [vmem:[%s15952_s1 + $0x12d8] sm:$0xff] }
 0x120   :  { %7886 = vmatprep.subr.mxu0 %v584_v22  ;;  %7921 = vmatprep.subr.mxu1 %v616_v23  ;;  %v667_v20 = vld [vmem:[%s15952_s1 + $0x1360] sm:$0xff]  ;;  %v682_v22 = vld [vmem:[%s15952_s1 + $0x13d8] sm:$0xff] }
 0x121   :  { %7887 = vmatpush3.msra.mxu0 %v568_v24  ;;  %7922 = vmatpush3.msra.mxu1 %v600_v25  ;;  %v634_v23 = vld [vmem:[%s15952_s1 + $0x1258] sm:$0xff]  ;;  %v649_v25 = vld [vmem:[%s15952_s1 + $0x12d0] sm:$0xff] }
 0x122   :  { %7888 = vmatprep.subr.mxu0 %v583_v26  ;;  %7923 = vmatprep.subr.mxu1 %v615_v27  ;;  %v666_v24 = vld [vmem:[%s15952_s1 + $0x1358] sm:$0xff]  ;;  %v681_v26 = vld [vmem:[%s15952_s1 + $0x13d0] sm:$0xff] }
 0x123   :  { %7889 = vmatpush3.msra.mxu0 %v567_v28  ;;  %7924 = vmatpush3.msra.mxu1 %v599_v29  ;;  %v633_v27 = vld [vmem:[%s15952_s1 + $0x1250] sm:$0xff]  ;;  %v648_v29 = vld [vmem:[%s15952_s1 + $0x12c8] sm:$0xff] }
 0x124   :  { %7890 = vmatprep.subr.mxu0 %v582_v30  ;;  %7925 = vmatprep.subr.mxu1 %v614_v31  ;;  %v665_v28 = vld [vmem:[%s15952_s1 + $0x1350] sm:$0xff]  ;;  %v680_v30 = vld [vmem:[%s15952_s1 + $0x13c8] sm:$0xff] }
 0x125   :  { %7891 = vmatpush3.msra.mxu0 %v566_v32  ;;  %7926 = vmatpush3.msra.mxu1 %v598_v33  ;;  %v632_v31 = vld [vmem:[%s15952_s1 + $0x1248] sm:$0xff]  ;;  %v647_v33 = vld [vmem:[%s15952_s1 + $0x12c0] sm:$0xff] }
 0x126   :  { %7892 = vmatprep.subr.mxu0 %v581_v34  ;;  %7927 = vmatprep.subr.mxu1 %v613_v35  ;;  %v664_v32 = vld [vmem:[%s15952_s1 + $0x1348] sm:$0xff]  ;;  %v679_v34 = vld [vmem:[%s15952_s1 + $0x13c0] sm:$0xff] }
 0x127   :  { %7893 = vmatpush3.msra.mxu0 %v565_v36  ;;  %7928 = vmatpush3.msra.mxu1 %v597_v37  ;;  %v631_v35 = vld [vmem:[%s15952_s1 + $0x1240] sm:$0xff]  ;;  %v646_v37 = vld [vmem:[%s15952_s1 + $0x12b8] sm:$0xff] }
 0x128   :  { %7894 = vmatprep.subr.mxu0 %v580_v38  ;;  %7929 = vmatprep.subr.mxu1 %v612_v39  ;;  %v663_v36 = vld [vmem:[%s15952_s1 + $0x1340] sm:$0xff]  ;;  %v678_v38 = vld [vmem:[%s15952_s1 + $0x13b8] sm:$0xff] }
 0x129   :  { %7895 = vmatpush3.msra.mxu0 %v564_v40  ;;  %7930 = vmatpush3.msra.mxu1 %v596_v41  ;;  %v630_v39 = vld [vmem:[%s15952_s1 + $0x1238] sm:$0xff]  ;;  %v645_v41 = vld [vmem:[%s15952_s1 + $0x12b0] sm:$0xff] }
 0x12a   :  { %7896 = vmatprep.subr.mxu0 %v579_v43  ;;  %7931 = vmatprep.subr.mxu1 %v611_v44  ;;  %v662_v40 = vld [vmem:[%s15952_s1 + $0x1338] sm:$0xff]  ;;  %v629_v43 = vld [vmem:[%s15952_s1 + $0x1230] sm:$0xff] }
 0x12b   :  { %7897 = vmatpush3.msra.mxu0 %v563_v45  ;;  %7932 = vmatpush3.msra.mxu1 %v595_v46  ;;  %v661_v44 = vld [vmem:[%s15952_s1 + $0x1330] sm:$0xff]  ;;  %v644_v45 = vld [vmem:[%s15952_s1 + $0x12a8] sm:$0xff] }
 0x12c   :  { %7898 = vmatprep.subr.mxu0 %v578_v47  ;;  %7933 = vmatprep.subr.mxu1 %v610_v48  ;;  %v676_v46 = vld [vmem:[%s15952_s1 + $0x13a8] sm:$0xff] }
 0x12d   :  { %7899 = vmatpush3.msra.mxu0 %v562_v50  ;;  %7934 = vmatpush3.msra.mxu1 %v594_v52  ;;  %v628_v47 = vld [vmem:[%s15952_s1 + $0x1228] sm:$0xff]  ;;  %v643_v50 = vld [vmem:[%s15952_s1 + $0x12a0] sm:$0xff] }
 0x12e   :  { %7900 = vmatprep.subr.mxu0 %v577_v53  ;;  %7935 = vmatprep.subr.mxu1 %v609_v54  ;;  %v660_v48 = vld [vmem:[%s15952_s1 + $0x1328] sm:$0xff]  ;;  %v675_v52 = vld [vmem:[%s15952_s1 + $0x13a0] sm:$0xff] }
 0x12f   :  { %7901 = vmatpush3.msra.mxu0 %v561_v56  ;;  %7936 = vmatpush3.msra.mxu1 %v593_v57  ;;  %v627_v53 = vld [vmem:[%s15952_s1 + $0x1220] sm:$0xff]  ;;  %v674_v56 = vld [vmem:[%s15952_s1 + $0x1398] sm:$0xff]  ;;  %v2287_v57 = vcombine.high %v24_v49, %v24_v49 }
 0x130   :  { %7902 = vmatprep.subr.mxu0 %v576_v58  ;;  %7937 = vmatprep.subr.mxu1 %v608_v59  ;;  %v659_v54 = vld [vmem:[%s15952_s1 + $0x1320] sm:$0xff]  ;;  %v626_v58 = vld [vmem:[%s15952_s1 + $0x1218] sm:$0xff] }
 0x131   :  { %7903 = vmatpush3.msra.mxu0 %v560_v61  ;;  %7938 = vmatpush3.msra.mxu1 %v592_v62  ;;  %v658_v59 = vld [vmem:[%s15952_s1 + $0x1318] sm:$0xff]  ;;  %v673_v61 = vld [vmem:[%s15952_s1 + $0x1390] sm:$0xff]  ;;  %v2294_v62 = vrot.slane %v24_v49, %v9774_v51 }
 0x132   :  { %7904 = vmatprep.subr.mxu0 %v575_v63  ;;  %7939 = vmatprep.subr.mxu1 %v607_v0  ;;  %v625_v63 = vld [vmem:[%s15952_s1 + $0x1210] sm:$0xff] }
 0x133   :  { %7905 = vmatpush3.msra.mxu0 %v559_v2  ;;  %3990 = vmatprep.mubr.f32.mxu0 %v2285_v1  ;;  %v657_v0 = vld [vmem:[%s15952_s1 + $0x1310] sm:$0xff]  ;;  %v640_v1 = vld [vmem:[%s15952_s1 + $0x1288] sm:$0xff] }
 0x134   :  { %7940 = vmatpush3.msra.mxu1 %v591_v3  ;;  %3991 = vmatmul.mubr.f32.vlgmr.msra.gmra.mxu0 %v2277_v55  ;;  %v642_v55 = vld [vmem:[%s15952_s1 + $0x1298] sm:$0xff]  ;;  %v672_v2 = vld [vmem:[%s15952_s1 + $0x1388] sm:$0xff]  ;;  %v2301_v3 = vrot.slane %v2287_v57, %v9774_v51  ;;  %v741_v49 = vld [vmem:[%s15952_s1 + $0x15b0] sm:$0xff] }
 0x135   :  { %4060 = vmatprep.mubr.f32.mxu1 %v2286_v4  ;;  %7944 = vmatprep.subr.mxu0 %v654_v5  ;;  %v624_v4 = vld [vmem:[%s15952_s1 + $0x1208] sm:$0xff]  ;;  %v25_v57 = vld [vmem:[%s15951_s0 + $0x50] sm:$0xff] }
 0x136   :  { %7979 = vmatprep.subr.mxu1 %v686_v6  ;;  %4061 = vmatmul.mubr.f32.vlgmr.msra.gmra.mxu1 %v2284_v60  ;;  %v641_v60 = vld [vmem:[%s15952_s1 + $0x1290] sm:$0xff]  ;;  %v656_v5 = vld [vmem:[%s15952_s1 + $0x1308] sm:$0xff]  ;;  %v639_v6 = vld [vmem:[%s15952_s1 + $0x1280] sm:$0xff] }
 0x137   :  { %7945 = vmatpush3.msra.mxu0 %v638_v7  ;;  %7980 = vmatpush3.msra.mxu1 %v670_v8  ;;  %v671_v7 = vld [vmem:[%s15952_s1 + $0x1380] sm:$0xff]  ;;  %v2302_v8 = vcombine.high %v2294_v62, %v2294_v62 }
 0x138   :  { %7946 = vmatprep.subr.mxu0 %v653_v9  ;;  %7981 = vmatprep.subr.mxu1 %v685_v10  ;;  %v623_v9 = vld [vmem:[%s15952_s1 + $0x1200] sm:$0xff] }
 0x139   :  { %7947 = vmatpush3.msra.mxu0 %v637_v11  ;;  %7982 = vmatpush3.msra.mxu1 %v669_v12  ;;  %v655_v10 = vld [vmem:[%s15952_s1 + $0x1300] sm:$0xff]  ;;  %v2303_v11 = vcombine.high %v2301_v3, %v2301_v3  ;;  %v718_v12 = vld [vmem:[%s15952_s1 + $0x14f8] sm:$0xff] }
 0x13a   :  { %7948 = vmatprep.subr.mxu0 %v652_v13  ;;  %7983 = vmatprep.subr.mxu1 %v684_v14  ;;  %v750_v13 = vld [vmem:[%s15952_s1 + $0x15f8] sm:$0xff] }
 0x13b   :  { %7949 = vmatpush3.msra.mxu0 %v636_v15  ;;  %7984 = vmatpush3.msra.mxu1 %v668_v16  ;;  %v702_v14 = vld [vmem:[%s15952_s1 + $0x1478] sm:$0xff]  ;;  %v717_v16 = vld [vmem:[%s15952_s1 + $0x14f0] sm:$0xff] }
 0x13c   :  { %7950 = vmatprep.subr.mxu0 %v651_v17  ;;  %7985 = vmatprep.subr.mxu1 %v683_v18  ;;  %v734_v15 = vld [vmem:[%s15952_s1 + $0x1578] sm:$0xff]  ;;  %v749_v17 = vld [vmem:[%s15952_s1 + $0x15f0] sm:$0xff] }
 0x13d   :  { %7951 = vmatpush3.msra.mxu0 %v635_v19  ;;  %7986 = vmatpush3.msra.mxu1 %v667_v20  ;;  %v701_v18 = vld [vmem:[%s15952_s1 + $0x1470] sm:$0xff]  ;;  %v716_v20 = vld [vmem:[%s15952_s1 + $0x14e8] sm:$0xff] }
 0x13e   :  { %7952 = vmatprep.subr.mxu0 %v650_v21  ;;  %7987 = vmatprep.subr.mxu1 %v682_v22  ;;  %v733_v19 = vld [vmem:[%s15952_s1 + $0x1570] sm:$0xff]  ;;  %v748_v21 = vld [vmem:[%s15952_s1 + $0x15e8] sm:$0xff] }
 0x13f   :  { %7953 = vmatpush3.msra.mxu0 %v634_v23  ;;  %7988 = vmatpush3.msra.mxu1 %v666_v24  ;;  %v700_v22 = vld [vmem:[%s15952_s1 + $0x1468] sm:$0xff]  ;;  %v715_v24 = vld [vmem:[%s15952_s1 + $0x14e0] sm:$0xff] }
 0x140   :  { %7954 = vmatprep.subr.mxu0 %v649_v25  ;;  %7989 = vmatprep.subr.mxu1 %v681_v26  ;;  %v732_v23 = vld [vmem:[%s15952_s1 + $0x1568] sm:$0xff]  ;;  %v747_v25 = vld [vmem:[%s15952_s1 + $0x15e0] sm:$0xff] }
 0x141   :  { %7955 = vmatpush3.msra.mxu0 %v633_v27  ;;  %7990 = vmatpush3.msra.mxu1 %v665_v28  ;;  %v699_v26 = vld [vmem:[%s15952_s1 + $0x1460] sm:$0xff]  ;;  %v714_v28 = vld [vmem:[%s15952_s1 + $0x14d8] sm:$0xff] }
 0x142   :  { %7956 = vmatprep.subr.mxu0 %v648_v29  ;;  %7991 = vmatprep.subr.mxu1 %v680_v30  ;;  %v731_v27 = vld [vmem:[%s15952_s1 + $0x1560] sm:$0xff]  ;;  %v746_v29 = vld [vmem:[%s15952_s1 + $0x15d8] sm:$0xff] }
 0x143   :  { %7957 = vmatpush3.msra.mxu0 %v632_v31  ;;  %7992 = vmatpush3.msra.mxu1 %v664_v32  ;;  %v698_v30 = vld [vmem:[%s15952_s1 + $0x1458] sm:$0xff]  ;;  %v713_v32 = vld [vmem:[%s15952_s1 + $0x14d0] sm:$0xff] }
 0x144   :  { %7958 = vmatprep.subr.mxu0 %v647_v33  ;;  %7993 = vmatprep.subr.mxu1 %v679_v34  ;;  %v730_v31 = vld [vmem:[%s15952_s1 + $0x1558] sm:$0xff]  ;;  %v745_v33 = vld [vmem:[%s15952_s1 + $0x15d0] sm:$0xff] }
 0x145   :  { %7959 = vmatpush3.msra.mxu0 %v631_v35  ;;  %7994 = vmatpush3.msra.mxu1 %v663_v36  ;;  %v697_v34 = vld [vmem:[%s15952_s1 + $0x1450] sm:$0xff]  ;;  %v712_v36 = vld [vmem:[%s15952_s1 + $0x14c8] sm:$0xff] }
 0x146   :  { %7960 = vmatprep.subr.mxu0 %v646_v37  ;;  %7995 = vmatprep.subr.mxu1 %v678_v38  ;;  %v729_v35 = vld [vmem:[%s15952_s1 + $0x1550] sm:$0xff]  ;;  %v744_v37 = vld [vmem:[%s15952_s1 + $0x15c8] sm:$0xff] }
 0x147   :  { %7961 = vmatpush3.msra.mxu0 %v630_v39  ;;  %7996 = vmatpush3.msra.mxu1 %v662_v40  ;;  %v696_v38 = vld [vmem:[%s15952_s1 + $0x1448] sm:$0xff]  ;;  %v711_v40 = vld [vmem:[%s15952_s1 + $0x14c0] sm:$0xff] }
 0x148   :  { %7962 = vmatprep.subr.mxu0 %v645_v41  ;;  %7997 = vmatprep.subr.mxu1 %v677_v42  ;;  %v728_v39 = vld [vmem:[%s15952_s1 + $0x1548] sm:$0xff]  ;;  %v743_v41 = vld [vmem:[%s15952_s1 + $0x15c0] sm:$0xff] }
 0x149   :  { %7963 = vmatpush3.msra.mxu0 %v629_v43  ;;  %7998 = vmatpush3.msra.mxu1 %v661_v44  ;;  %v695_v42 = vld [vmem:[%s15952_s1 + $0x1440] sm:$0xff]  ;;  %v710_v44 = vld [vmem:[%s15952_s1 + $0x14b8] sm:$0xff] }
 0x14a   :  { %7964 = vmatprep.subr.mxu0 %v644_v45  ;;  %7999 = vmatprep.subr.mxu1 %v676_v46  ;;  %v727_v43 = vld [vmem:[%s15952_s1 + $0x1540] sm:$0xff]  ;;  %v742_v45 = vld [vmem:[%s15952_s1 + $0x15b8] sm:$0xff] }
 0x14b   :  { %7965 = vmatpush3.msra.mxu0 %v628_v47  ;;  %8000 = vmatpush3.msra.mxu1 %v660_v48  ;;  %v694_v46 = vld [vmem:[%s15952_s1 + $0x1438] sm:$0xff]  ;;  %v709_v48 = vld [vmem:[%s15952_s1 + $0x14b0] sm:$0xff] }
 0x14c   :  { %7966 = vmatprep.subr.mxu0 %v643_v50  ;;  %8001 = vmatprep.subr.mxu1 %v675_v52  ;;  %v726_v47 = vld [vmem:[%s15952_s1 + $0x1538] sm:$0xff]  ;;  %v693_v50 = vld [vmem:[%s15952_s1 + $0x1430] sm:$0xff] }
 0x14d   :  { %7967 = vmatpush3.msra.mxu0 %v627_v53  ;;  %8002 = vmatpush3.msra.mxu1 %v659_v54  ;;  %v725_v52 = vld [vmem:[%s15952_s1 + $0x1530] sm:$0xff]  ;;  %v708_v53 = vld [vmem:[%s15952_s1 + $0x14a8] sm:$0xff] }
 0x14e   :  { %7968 = vmatprep.subr.mxu0 %v642_v55  ;;  %8003 = vmatprep.subr.mxu1 %v674_v56  ;;  %v740_v54 = vld [vmem:[%s15952_s1 + $0x15a8] sm:$0xff] }
 0x14f   :  { %7969 = vmatpush3.msra.mxu0 %v626_v58  ;;  %8004 = vmatpush3.msra.mxu1 %v658_v59  ;;  %v692_v55 = vld [vmem:[%s15952_s1 + $0x1428] sm:$0xff]  ;;  %v707_v58 = vld [vmem:[%s15952_s1 + $0x14a0] sm:$0xff] }
 0x150   :  { %7970 = vmatprep.subr.mxu0 %v641_v60  ;;  %8005 = vmatprep.subr.mxu1 %v673_v61  ;;  %v724_v56 = vld [vmem:[%s15952_s1 + $0x1528] sm:$0xff]  ;;  %v739_v59 = vld [vmem:[%s15952_s1 + $0x15a0] sm:$0xff] }
 0x151   :  { %7971 = vmatpush3.msra.mxu0 %v625_v63  ;;  %8006 = vmatpush3.msra.mxu1 %v657_v0  ;;  %v691_v60 = vld [vmem:[%s15952_s1 + $0x1420] sm:$0xff]  ;;  %v738_v63 = vld [vmem:[%s15952_s1 + $0x1598] sm:$0xff]  ;;  %v2304_v0 = vcombine.high %v25_v57, %v25_v57 }
 0x152   :  { %7972 = vmatprep.subr.mxu0 %v640_v1  ;;  %8007 = vmatprep.subr.mxu1 %v672_v2  ;;  %v723_v61 = vld [vmem:[%s15952_s1 + $0x1520] sm:$0xff]  ;;  %v690_v1 = vld [vmem:[%s15952_s1 + $0x1418] sm:$0xff] }
 0x153   :  { %7973 = vmatpush3.msra.mxu0 %v624_v4  ;;  %8008 = vmatpush3.msra.mxu1 %v656_v5  ;;  %v722_v2 = vld [vmem:[%s15952_s1 + $0x1518] sm:$0xff]  ;;  %v737_v4 = vld [vmem:[%s15952_s1 + $0x1590] sm:$0xff]  ;;  %v2311_v5 = vrot.slane %v25_v57, %v9774_v51 }
 0x154   :  { %7974 = vmatprep.subr.mxu0 %v639_v6  ;;  %8009 = vmatprep.subr.mxu1 %v671_v7  ;;  %v689_v6 = vld [vmem:[%s15952_s1 + $0x1410] sm:$0xff] }
 0x155   :  { %7975 = vmatpush3.msra.mxu0 %v623_v9  ;;  %4130 = vmatprep.mubr.f32.mxu0 %v2302_v8  ;;  %v721_v7 = vld [vmem:[%s15952_s1 + $0x1510] sm:$0xff]  ;;  %v704_v8 = vld [vmem:[%s15952_s1 + $0x1488] sm:$0xff] }
 0x156   :  { %8010 = vmatpush3.msra.mxu1 %v655_v10  ;;  %4131 = vmatmul.mubr.f32.vlgmr.msra.gmra.mxu0 %v2294_v62  ;;  %v706_v62 = vld [vmem:[%s15952_s1 + $0x1498] sm:$0xff]  ;;  %v736_v9 = vld [vmem:[%s15952_s1 + $0x1588] sm:$0xff]  ;;  %v2318_v10 = vrot.slane %v2304_v0, %v9774_v51  ;;  %v805_v57 = vld [vmem:[%s15952_s1 + $0x17b0] sm:$0xff] }
 0x157   :  { %4200 = vmatprep.mubr.f32.mxu1 %v2303_v11  ;;  %8014 = vmatprep.subr.mxu0 %v718_v12  ;;  %v688_v11 = vld [vmem:[%s15952_s1 + $0x1408] sm:$0xff]  ;;  %v26_v0 = vld [vmem:[%s15951_s0 + $0x58] sm:$0xff] }
 0x158   :  { %8049 = vmatprep.subr.mxu1 %v750_v13  ;;  %4201 = vmatmul.mubr.f32.vlgmr.msra.gmra.mxu1 %v2301_v3  ;;  %v705_v3 = vld [vmem:[%s15952_s1 + $0x1490] sm:$0xff]  ;;  %v720_v12 = vld [vmem:[%s15952_s1 + $0x1508] sm:$0xff]  ;;  %v703_v13 = vld [vmem:[%s15952_s1 + $0x1480] sm:$0xff] }
 0x159   :  { %8015 = vmatpush3.msra.mxu0 %v702_v14  ;;  %8050 = vmatpush3.msra.mxu1 %v734_v15  ;;  %v735_v14 = vld [vmem:[%s15952_s1 + $0x1580] sm:$0xff]  ;;  %v2319_v15 = vcombine.high %v2311_v5, %v2311_v5 }
 0x15a   :  { %8016 = vmatprep.subr.mxu0 %v717_v16  ;;  %8051 = vmatprep.subr.mxu1 %v749_v17  ;;  %v687_v16 = vld [vmem:[%s15952_s1 + $0x1400] sm:$0xff] }
 0x15b   :  { %8017 = vmatpush3.msra.mxu0 %v701_v18  ;;  %8052 = vmatpush3.msra.mxu1 %v733_v19  ;;  %v719_v17 = vld [vmem:[%s15952_s1 + $0x1500] sm:$0xff]  ;;  %v2320_v18 = vcombine.high %v2318_v10, %v2318_v10  ;;  %v782_v19 = vld [vmem:[%s15952_s1 + $0x16f8] sm:$0xff] }
 0x15c   :  { %8018 = vmatprep.subr.mxu0 %v716_v20  ;;  %8053 = vmatprep.subr.mxu1 %v748_v21  ;;  %v814_v20 = vld [vmem:[%s15952_s1 + $0x17f8] sm:$0xff] }
 0x15d   :  { %8019 = vmatpush3.msra.mxu0 %v700_v22  ;;  %8054 = vmatpush3.msra.mxu1 %v732_v23  ;;  %v766_v21 = vld [vmem:[%s15952_s1 + $0x1678] sm:$0xff]  ;;  %v781_v23 = vld [vmem:[%s15952_s1 + $0x16f0] sm:$0xff] }
 0x15e   :  { %8020 = vmatprep.subr.mxu0 %v715_v24  ;;  %8055 = vmatprep.subr.mxu1 %v747_v25  ;;  %v798_v22 = vld [vmem:[%s15952_s1 + $0x1778] sm:$0xff]  ;;  %v813_v24 = vld [vmem:[%s15952_s1 + $0x17f0] sm:$0xff] }
 0x15f   :  { %8021 = vmatpush3.msra.mxu0 %v699_v26  ;;  %8056 = vmatpush3.msra.mxu1 %v731_v27  ;;  %v765_v25 = vld [vmem:[%s15952_s1 + $0x1670] sm:$0xff]  ;;  %v780_v27 = vld [vmem:[%s15952_s1 + $0x16e8] sm:$0xff] }
 0x160   :  { %8022 = vmatprep.subr.mxu0 %v714_v28  ;;  %8057 = vmatprep.subr.mxu1 %v746_v29  ;;  %v797_v26 = vld [vmem:[%s15952_s1 + $0x1770] sm:$0xff]  ;;  %v812_v28 = vld [vmem:[%s15952_s1 + $0x17e8] sm:$0xff] }
 0x161   :  { %8023 = vmatpush3.msra.mxu0 %v698_v30  ;;  %8058 = vmatpush3.msra.mxu1 %v730_v31  ;;  %v764_v29 = vld [vmem:[%s15952_s1 + $0x1668] sm:$0xff]  ;;  %v779_v31 = vld [vmem:[%s15952_s1 + $0x16e0] sm:$0xff] }
 0x162   :  { %8024 = vmatprep.subr.mxu0 %v713_v32  ;;  %8059 = vmatprep.subr.mxu1 %v745_v33  ;;  %v796_v30 = vld [vmem:[%s15952_s1 + $0x1768] sm:$0xff]  ;;  %v811_v32 = vld [vmem:[%s15952_s1 + $0x17e0] sm:$0xff] }
 0x163   :  { %8025 = vmatpush3.msra.mxu0 %v697_v34  ;;  %8060 = vmatpush3.msra.mxu1 %v729_v35  ;;  %v763_v33 = vld [vmem:[%s15952_s1 + $0x1660] sm:$0xff]  ;;  %v778_v35 = vld [vmem:[%s15952_s1 + $0x16d8] sm:$0xff] }
 0x164   :  { %8026 = vmatprep.subr.mxu0 %v712_v36  ;;  %8061 = vmatprep.subr.mxu1 %v744_v37  ;;  %v795_v34 = vld [vmem:[%s15952_s1 + $0x1760] sm:$0xff]  ;;  %v810_v36 = vld [vmem:[%s15952_s1 + $0x17d8] sm:$0xff] }
 0x165   :  { %8027 = vmatpush3.msra.mxu0 %v696_v38  ;;  %8062 = vmatpush3.msra.mxu1 %v728_v39  ;;  %v762_v37 = vld [vmem:[%s15952_s1 + $0x1658] sm:$0xff]  ;;  %v777_v39 = vld [vmem:[%s15952_s1 + $0x16d0] sm:$0xff] }
 0x166   :  { %8028 = vmatprep.subr.mxu0 %v711_v40  ;;  %8063 = vmatprep.subr.mxu1 %v743_v41  ;;  %v794_v38 = vld [vmem:[%s15952_s1 + $0x1758] sm:$0xff]  ;;  %v809_v40 = vld [vmem:[%s15952_s1 + $0x17d0] sm:$0xff] }
 0x167   :  { %8029 = vmatpush3.msra.mxu0 %v695_v42  ;;  %8064 = vmatpush3.msra.mxu1 %v727_v43  ;;  %v761_v41 = vld [vmem:[%s15952_s1 + $0x1650] sm:$0xff]  ;;  %v776_v43 = vld [vmem:[%s15952_s1 + $0x16c8] sm:$0xff] }
 0x168   :  { %8030 = vmatprep.subr.mxu0 %v710_v44  ;;  %8065 = vmatprep.subr.mxu1 %v742_v45  ;;  %v793_v42 = vld [vmem:[%s15952_s1 + $0x1750] sm:$0xff]  ;;  %v808_v44 = vld [vmem:[%s15952_s1 + $0x17c8] sm:$0xff] }
 0x169   :  { %8031 = vmatpush3.msra.mxu0 %v694_v46  ;;  %8066 = vmatpush3.msra.mxu1 %v726_v47  ;;  %v760_v45 = vld [vmem:[%s15952_s1 + $0x1648] sm:$0xff]  ;;  %v775_v47 = vld [vmem:[%s15952_s1 + $0x16c0] sm:$0xff] }
 0x16a   :  { %8032 = vmatprep.subr.mxu0 %v709_v48  ;;  %8067 = vmatprep.subr.mxu1 %v741_v49  ;;  %v792_v46 = vld [vmem:[%s15952_s1 + $0x1748] sm:$0xff]  ;;  %v807_v48 = vld [vmem:[%s15952_s1 + $0x17c0] sm:$0xff] }
 0x16b   :  { %8033 = vmatpush3.msra.mxu0 %v693_v50  ;;  %8068 = vmatpush3.msra.mxu1 %v725_v52  ;;  %v759_v49 = vld [vmem:[%s15952_s1 + $0x1640] sm:$0xff]  ;;  %v774_v52 = vld [vmem:[%s15952_s1 + $0x16b8] sm:$0xff] }
 0x16c   :  { %8034 = vmatprep.subr.mxu0 %v708_v53  ;;  %8069 = vmatprep.subr.mxu1 %v740_v54  ;;  %v791_v50 = vld [vmem:[%s15952_s1 + $0x1740] sm:$0xff]  ;;  %v806_v53 = vld [vmem:[%s15952_s1 + $0x17b8] sm:$0xff] }
 0x16d   :  { %8035 = vmatpush3.msra.mxu0 %v692_v55  ;;  %8070 = vmatpush3.msra.mxu1 %v724_v56  ;;  %v758_v54 = vld [vmem:[%s15952_s1 + $0x1638] sm:$0xff]  ;;  %v773_v56 = vld [vmem:[%s15952_s1 + $0x16b0] sm:$0xff] }
 0x16e   :  { %8036 = vmatprep.subr.mxu0 %v707_v58  ;;  %8071 = vmatprep.subr.mxu1 %v739_v59  ;;  %v790_v55 = vld [vmem:[%s15952_s1 + $0x1738] sm:$0xff]  ;;  %v757_v58 = vld [vmem:[%s15952_s1 + $0x1630] sm:$0xff] }
 0x16f   :  { %8037 = vmatpush3.msra.mxu0 %v691_v60  ;;  %8072 = vmatpush3.msra.mxu1 %v723_v61  ;;  %v789_v59 = vld [vmem:[%s15952_s1 + $0x1730] sm:$0xff]  ;;  %v772_v60 = vld [vmem:[%s15952_s1 + $0x16a8] sm:$0xff] }
 0x170   :  { %8038 = vmatprep.subr.mxu0 %v706_v62  ;;  %8073 = vmatprep.subr.mxu1 %v738_v63  ;;  %v804_v61 = vld [vmem:[%s15952_s1 + $0x17a8] sm:$0xff] }
 0x171   :  { %8039 = vmatpush3.msra.mxu0 %v690_v1  ;;  %8074 = vmatpush3.msra.mxu1 %v722_v2  ;;  %v756_v62 = vld [vmem:[%s15952_s1 + $0x1628] sm:$0xff]  ;;  %v771_v1 = vld [vmem:[%s15952_s1 + $0x16a0] sm:$0xff] }
 0x172   :  { %8040 = vmatprep.subr.mxu0 %v705_v3  ;;  %8075 = vmatprep.subr.mxu1 %v737_v4  ;;  %v788_v63 = vld [vmem:[%s15952_s1 + $0x1728] sm:$0xff]  ;;  %v803_v2 = vld [vmem:[%s15952_s1 + $0x17a0] sm:$0xff] }
 0x173   :  { %8041 = vmatpush3.msra.mxu0 %v689_v6  ;;  %8076 = vmatpush3.msra.mxu1 %v721_v7  ;;  %v755_v3 = vld [vmem:[%s15952_s1 + $0x1620] sm:$0xff]  ;;  %v802_v6 = vld [vmem:[%s15952_s1 + $0x1798] sm:$0xff]  ;;  %v2321_v7 = vcombine.high %v26_v0, %v26_v0 }
 0x174   :  { %8042 = vmatprep.subr.mxu0 %v704_v8  ;;  %8077 = vmatprep.subr.mxu1 %v736_v9  ;;  %v787_v4 = vld [vmem:[%s15952_s1 + $0x1720] sm:$0xff]  ;;  %v754_v8 = vld [vmem:[%s15952_s1 + $0x1618] sm:$0xff] }
 0x175   :  { %8043 = vmatpush3.msra.mxu0 %v688_v11  ;;  %8078 = vmatpush3.msra.mxu1 %v720_v12  ;;  %v786_v9 = vld [vmem:[%s15952_s1 + $0x1718] sm:$0xff]  ;;  %v801_v11 = vld [vmem:[%s15952_s1 + $0x1790] sm:$0xff]  ;;  %v2328_v12 = vrot.slane %v26_v0, %v9774_v51 }
 0x176   :  { %8044 = vmatprep.subr.mxu0 %v703_v13  ;;  %8079 = vmatprep.subr.mxu1 %v735_v14  ;;  %v753_v13 = vld [vmem:[%s15952_s1 + $0x1610] sm:$0xff] }
 0x177   :  { %8045 = vmatpush3.msra.mxu0 %v687_v16  ;;  %4270 = vmatprep.mubr.f32.mxu0 %v2319_v15  ;;  %v785_v14 = vld [vmem:[%s15952_s1 + $0x1710] sm:$0xff]  ;;  %v768_v15 = vld [vmem:[%s15952_s1 + $0x1688] sm:$0xff] }
 0x178   :  { %8080 = vmatpush3.msra.mxu1 %v719_v17  ;;  %4271 = vmatmul.mubr.f32.vlgmr.msra.gmra.mxu0 %v2311_v5  ;;  %v770_v5 = vld [vmem:[%s15952_s1 + $0x1698] sm:$0xff]  ;;  %v800_v16 = vld [vmem:[%s15952_s1 + $0x1788] sm:$0xff]  ;;  %v2335_v17 = vrot.slane %v2321_v7, %v9774_v51  ;;  %v869_v0 = vld [vmem:[%s15952_s1 + $0x19b0] sm:$0xff] }
 0x179   :  { %4340 = vmatprep.mubr.f32.mxu1 %v2320_v18  ;;  %8084 = vmatprep.subr.mxu0 %v782_v19  ;;  %v752_v18 = vld [vmem:[%s15952_s1 + $0x1608] sm:$0xff]  ;;  %v27_v7 = vld [vmem:[%s15951_s0 + $0x60] sm:$0xff] }
 0x17a   :  { %8119 = vmatprep.subr.mxu1 %v814_v20  ;;  %4341 = vmatmul.mubr.f32.vlgmr.msra.gmra.mxu1 %v2318_v10  ;;  %v769_v10 = vld [vmem:[%s15952_s1 + $0x1690] sm:$0xff]  ;;  %v784_v19 = vld [vmem:[%s15952_s1 + $0x1708] sm:$0xff]  ;;  %v767_v20 = vld [vmem:[%s15952_s1 + $0x1680] sm:$0xff] }
 0x17b   :  { %8085 = vmatpush3.msra.mxu0 %v766_v21  ;;  %8120 = vmatpush3.msra.mxu1 %v798_v22  ;;  %v799_v21 = vld [vmem:[%s15952_s1 + $0x1780] sm:$0xff]  ;;  %v2336_v22 = vcombine.high %v2328_v12, %v2328_v12 }
 0x17c   :  { %8086 = vmatprep.subr.mxu0 %v781_v23  ;;  %8121 = vmatprep.subr.mxu1 %v813_v24  ;;  %v751_v23 = vld [vmem:[%s15952_s1 + $0x1600] sm:$0xff] }
 0x17d   :  { %8087 = vmatpush3.msra.mxu0 %v765_v25  ;;  %8122 = vmatpush3.msra.mxu1 %v797_v26  ;;  %v783_v24 = vld [vmem:[%s15952_s1 + $0x1700] sm:$0xff]  ;;  %v2337_v25 = vcombine.high %v2335_v17, %v2335_v17  ;;  %v846_v26 = vld [vmem:[%s15952_s1 + $0x18f8] sm:$0xff] }
 0x17e   :  { %8088 = vmatprep.subr.mxu0 %v780_v27  ;;  %8123 = vmatprep.subr.mxu1 %v812_v28  ;;  %v878_v27 = vld [vmem:[%s15952_s1 + $0x19f8] sm:$0xff] }
 0x17f   :  { %8089 = vmatpush3.msra.mxu0 %v764_v29  ;;  %8124 = vmatpush3.msra.mxu1 %v796_v30  ;;  %v830_v28 = vld [vmem:[%s15952_s1 + $0x1878] sm:$0xff]  ;;  %v845_v30 = vld [vmem:[%s15952_s1 + $0x18f0] sm:$0xff] }
 0x180   :  { %8090 = vmatprep.subr.mxu0 %v779_v31  ;;  %8125 = vmatprep.subr.mxu1 %v811_v32  ;;  %v862_v29 = vld [vmem:[%s15952_s1 + $0x1978] sm:$0xff]  ;;  %v877_v31 = vld [vmem:[%s15952_s1 + $0x19f0] sm:$0xff] }
 0x181   :  { %8091 = vmatpush3.msra.mxu0 %v763_v33  ;;  %8126 = vmatpush3.msra.mxu1 %v795_v34  ;;  %v829_v32 = vld [vmem:[%s15952_s1 + $0x1870] sm:$0xff]  ;;  %v844_v34 = vld [vmem:[%s15952_s1 + $0x18e8] sm:$0xff] }
 0x182   :  { %8092 = vmatprep.subr.mxu0 %v778_v35  ;;  %8127 = vmatprep.subr.mxu1 %v810_v36  ;;  %v861_v33 = vld [vmem:[%s15952_s1 + $0x1970] sm:$0xff]  ;;  %v876_v35 = vld [vmem:[%s15952_s1 + $0x19e8] sm:$0xff] }
 0x183   :  { %8093 = vmatpush3.msra.mxu0 %v762_v37  ;;  %8128 = vmatpush3.msra.mxu1 %v794_v38  ;;  %v828_v36 = vld [vmem:[%s15952_s1 + $0x1868] sm:$0xff]  ;;  %v843_v38 = vld [vmem:[%s15952_s1 + $0x18e0] sm:$0xff] }
 0x184   :  { %8094 = vmatprep.subr.mxu0 %v777_v39  ;;  %8129 = vmatprep.subr.mxu1 %v809_v40  ;;  %v860_v37 = vld [vmem:[%s15952_s1 + $0x1968] sm:$0xff]  ;;  %v875_v39 = vld [vmem:[%s15952_s1 + $0x19e0] sm:$0xff] }
 0x185   :  { %8095 = vmatpush3.msra.mxu0 %v761_v41  ;;  %8130 = vmatpush3.msra.mxu1 %v793_v42  ;;  %v827_v40 = vld [vmem:[%s15952_s1 + $0x1860] sm:$0xff]  ;;  %v842_v42 = vld [vmem:[%s15952_s1 + $0x18d8] sm:$0xff] }
 0x186   :  { %8096 = vmatprep.subr.mxu0 %v776_v43  ;;  %8131 = vmatprep.subr.mxu1 %v808_v44  ;;  %v859_v41 = vld [vmem:[%s15952_s1 + $0x1960] sm:$0xff]  ;;  %v874_v43 = vld [vmem:[%s15952_s1 + $0x19d8] sm:$0xff] }
 0x187   :  { %8097 = vmatpush3.msra.mxu0 %v760_v45  ;;  %8132 = vmatpush3.msra.mxu1 %v792_v46  ;;  %v826_v44 = vld [vmem:[%s15952_s1 + $0x1858] sm:$0xff]  ;;  %v841_v46 = vld [vmem:[%s15952_s1 + $0x18d0] sm:$0xff] }
 0x188   :  { %8098 = vmatprep.subr.mxu0 %v775_v47  ;;  %8133 = vmatprep.subr.mxu1 %v807_v48  ;;  %v858_v45 = vld [vmem:[%s15952_s1 + $0x1958] sm:$0xff]  ;;  %v873_v47 = vld [vmem:[%s15952_s1 + $0x19d0] sm:$0xff] }
 0x189   :  { %8099 = vmatpush3.msra.mxu0 %v759_v49  ;;  %8134 = vmatpush3.msra.mxu1 %v791_v50  ;;  %v825_v48 = vld [vmem:[%s15952_s1 + $0x1850] sm:$0xff]  ;;  %v840_v50 = vld [vmem:[%s15952_s1 + $0x18c8] sm:$0xff] }
 0x18a   :  { %8100 = vmatprep.subr.mxu0 %v774_v52  ;;  %8135 = vmatprep.subr.mxu1 %v806_v53  ;;  %v857_v49 = vld [vmem:[%s15952_s1 + $0x1950] sm:$0xff]  ;;  %v872_v52 = vld [vmem:[%s15952_s1 + $0x19c8] sm:$0xff] }
 0x18b   :  { %8101 = vmatpush3.msra.mxu0 %v758_v54  ;;  %8136 = vmatpush3.msra.mxu1 %v790_v55  ;;  %v824_v53 = vld [vmem:[%s15952_s1 + $0x1848] sm:$0xff]  ;;  %v839_v55 = vld [vmem:[%s15952_s1 + $0x18c0] sm:$0xff] }
 0x18c   :  { %8102 = vmatprep.subr.mxu0 %v773_v56  ;;  %8137 = vmatprep.subr.mxu1 %v805_v57  ;;  %v856_v54 = vld [vmem:[%s15952_s1 + $0x1948] sm:$0xff]  ;;  %v871_v56 = vld [vmem:[%s15952_s1 + $0x19c0] sm:$0xff] }
 0x18d   :  { %8103 = vmatpush3.msra.mxu0 %v757_v58  ;;  %8138 = vmatpush3.msra.mxu1 %v789_v59  ;;  %v823_v57 = vld [vmem:[%s15952_s1 + $0x1840] sm:$0xff]  ;;  %v838_v59 = vld [vmem:[%s15952_s1 + $0x18b8] sm:$0xff] }
 0x18e   :  { %8104 = vmatprep.subr.mxu0 %v772_v60  ;;  %8139 = vmatprep.subr.mxu1 %v804_v61  ;;  %v855_v58 = vld [vmem:[%s15952_s1 + $0x1940] sm:$0xff]  ;;  %v870_v60 = vld [vmem:[%s15952_s1 + $0x19b8] sm:$0xff] }
 0x18f   :  { %8105 = vmatpush3.msra.mxu0 %v756_v62  ;;  %8140 = vmatpush3.msra.mxu1 %v788_v63  ;;  %v822_v61 = vld [vmem:[%s15952_s1 + $0x1838] sm:$0xff]  ;;  %v837_v63 = vld [vmem:[%s15952_s1 + $0x18b0] sm:$0xff] }
 0x190   :  { %8106 = vmatprep.subr.mxu0 %v771_v1  ;;  %8141 = vmatprep.subr.mxu1 %v803_v2  ;;  %v854_v62 = vld [vmem:[%s15952_s1 + $0x1938] sm:$0xff]  ;;  %v821_v1 = vld [vmem:[%s15952_s1 + $0x1830] sm:$0xff] }
 0x191   :  { %8107 = vmatpush3.msra.mxu0 %v755_v3  ;;  %8142 = vmatpush3.msra.mxu1 %v787_v4  ;;  %v853_v2 = vld [vmem:[%s15952_s1 + $0x1930] sm:$0xff]  ;;  %v836_v3 = vld [vmem:[%s15952_s1 + $0x18a8] sm:$0xff] }
 0x192   :  { %8108 = vmatprep.subr.mxu0 %v770_v5  ;;  %8143 = vmatprep.subr.mxu1 %v802_v6  ;;  %v868_v4 = vld [vmem:[%s15952_s1 + $0x19a8] sm:$0xff] }
 0x193   :  { %8109 = vmatpush3.msra.mxu0 %v754_v8  ;;  %8144 = vmatpush3.msra.mxu1 %v786_v9  ;;  %v820_v5 = vld [vmem:[%s15952_s1 + $0x1828] sm:$0xff]  ;;  %v835_v8 = vld [vmem:[%s15952_s1 + $0x18a0] sm:$0xff] }
 0x194   :  { %8110 = vmatprep.subr.mxu0 %v769_v10  ;;  %8145 = vmatprep.subr.mxu1 %v801_v11  ;;  %v852_v6 = vld [vmem:[%s15952_s1 + $0x1928] sm:$0xff]  ;;  %v867_v9 = vld [vmem:[%s15952_s1 + $0x19a0] sm:$0xff] }
 0x195   :  { %8111 = vmatpush3.msra.mxu0 %v753_v13  ;;  %8146 = vmatpush3.msra.mxu1 %v785_v14  ;;  %v819_v10 = vld [vmem:[%s15952_s1 + $0x1820] sm:$0xff]  ;;  %v866_v13 = vld [vmem:[%s15952_s1 + $0x1998] sm:$0xff]  ;;  %v2338_v14 = vcombine.high %v27_v7, %v27_v7 }
 0x196   :  { %8112 = vmatprep.subr.mxu0 %v768_v15  ;;  %8147 = vmatprep.subr.mxu1 %v800_v16  ;;  %v851_v11 = vld [vmem:[%s15952_s1 + $0x1920] sm:$0xff]  ;;  %v818_v15 = vld [vmem:[%s15952_s1 + $0x1818] sm:$0xff] }
 0x197   :  { %8113 = vmatpush3.msra.mxu0 %v752_v18  ;;  %8148 = vmatpush3.msra.mxu1 %v784_v19  ;;  %v850_v16 = vld [vmem:[%s15952_s1 + $0x1918] sm:$0xff]  ;;  %v865_v18 = vld [vmem:[%s15952_s1 + $0x1990] sm:$0xff]  ;;  %v2345_v19 = vrot.slane %v27_v7, %v9774_v51 }
 0x198   :  { %8114 = vmatprep.subr.mxu0 %v767_v20  ;;  %8149 = vmatprep.subr.mxu1 %v799_v21  ;;  %v817_v20 = vld [vmem:[%s15952_s1 + $0x1810] sm:$0xff] }
 0x199   :  { %8115 = vmatpush3.msra.mxu0 %v751_v23  ;;  %4410 = vmatprep.mubr.f32.mxu0 %v2336_v22  ;;  %v849_v21 = vld [vmem:[%s15952_s1 + $0x1910] sm:$0xff]  ;;  %v832_v22 = vld [vmem:[%s15952_s1 + $0x1888] sm:$0xff] }
 0x19a   :  { %8150 = vmatpush3.msra.mxu1 %v783_v24  ;;  %4411 = vmatmul.mubr.f32.vlgmr.msra.gmra.mxu0 %v2328_v12  ;;  %v834_v12 = vld [vmem:[%s15952_s1 + $0x1898] sm:$0xff]  ;;  %v864_v23 = vld [vmem:[%s15952_s1 + $0x1988] sm:$0xff]  ;;  %v2352_v24 = vrot.slane %v2338_v14, %v9774_v51  ;;  %v933_v7 = vld [vmem:[%s15952_s1 + $0x1bb0] sm:$0xff] }
 0x19b   :  { %4480 = vmatprep.mubr.f32.mxu1 %v2337_v25  ;;  %8154 = vmatprep.subr.mxu0 %v846_v26  ;;  %v816_v25 = vld [vmem:[%s15952_s1 + $0x1808] sm:$0xff] }
 0x19c   :  { %8189 = vmatprep.subr.mxu1 %v878_v27  ;;  %4481 = vmatmul.mubr.f32.vlgmr.msra.gmra.mxu1 %v2335_v17  ;;  %v833_v17 = vld [vmem:[%s15952_s1 + $0x1890] sm:$0xff]  ;;  %v848_v26 = vld [vmem:[%s15952_s1 + $0x1908] sm:$0xff]  ;;  %v831_v27 = vld [vmem:[%s15952_s1 + $0x1880] sm:$0xff] }
 0x19d   :  { %8155 = vmatpush3.msra.mxu0 %v830_v28  ;;  %8190 = vmatpush3.msra.mxu1 %v862_v29  ;;  %v863_v28 = vld [vmem:[%s15952_s1 + $0x1980] sm:$0xff]  ;;  %v2353_v29 = vcombine.high %v2345_v19, %v2345_v19  ;;  %v28_v14 = vld [vmem:[%s15951_s0 + $0x68] sm:$0xff] }
 0x19e   :  { %8156 = vmatprep.subr.mxu0 %v845_v30  ;;  %8191 = vmatprep.subr.mxu1 %v877_v31  ;;  %v815_v30 = vld [vmem:[%s15952_s1 + $0x1800] sm:$0xff] }
 0x19f   :  { %8157 = vmatpush3.msra.mxu0 %v829_v32  ;;  %8192 = vmatpush3.msra.mxu1 %v861_v33  ;;  %v847_v31 = vld [vmem:[%s15952_s1 + $0x1900] sm:$0xff]  ;;  %v2354_v32 = vcombine.high %v2352_v24, %v2352_v24  ;;  %v910_v33 = vld [vmem:[%s15952_s1 + $0x1af8] sm:$0xff] }
 0x1a0   :  { %8158 = vmatprep.subr.mxu0 %v844_v34  ;;  %8193 = vmatprep.subr.mxu1 %v876_v35  ;;  %v942_v34 = vld [vmem:[%s15952_s1 + $0x1bf8] sm:$0xff] }
 0x1a1   :  { %8159 = vmatpush3.msra.mxu0 %v828_v36  ;;  %8194 = vmatpush3.msra.mxu1 %v860_v37  ;;  %v894_v35 = vld [vmem:[%s15952_s1 + $0x1a78] sm:$0xff]  ;;  %v909_v37 = vld [vmem:[%s15952_s1 + $0x1af0] sm:$0xff] }
 0x1a2   :  { %8160 = vmatprep.subr.mxu0 %v843_v38  ;;  %8195 = vmatprep.subr.mxu1 %v875_v39  ;;  %v926_v36 = vld [vmem:[%s15952_s1 + $0x1b78] sm:$0xff]  ;;  %v941_v38 = vld [vmem:[%s15952_s1 + $0x1bf0] sm:$0xff] }
 0x1a3   :  { %8161 = vmatpush3.msra.mxu0 %v827_v40  ;;  %8196 = vmatpush3.msra.mxu1 %v859_v41  ;;  %v893_v39 = vld [vmem:[%s15952_s1 + $0x1a70] sm:$0xff]  ;;  %v908_v41 = vld [vmem:[%s15952_s1 + $0x1ae8] sm:$0xff] }
 0x1a4   :  { %8162 = vmatprep.subr.mxu0 %v842_v42  ;;  %8197 = vmatprep.subr.mxu1 %v874_v43  ;;  %v925_v40 = vld [vmem:[%s15952_s1 + $0x1b70] sm:$0xff]  ;;  %v940_v42 = vld [vmem:[%s15952_s1 + $0x1be8] sm:$0xff] }
 0x1a5   :  { %8163 = vmatpush3.msra.mxu0 %v826_v44  ;;  %8198 = vmatpush3.msra.mxu1 %v858_v45  ;;  %v892_v43 = vld [vmem:[%s15952_s1 + $0x1a68] sm:$0xff]  ;;  %v907_v45 = vld [vmem:[%s15952_s1 + $0x1ae0] sm:$0xff] }
 0x1a6   :  { %8164 = vmatprep.subr.mxu0 %v841_v46  ;;  %8199 = vmatprep.subr.mxu1 %v873_v47  ;;  %v924_v44 = vld [vmem:[%s15952_s1 + $0x1b68] sm:$0xff]  ;;  %v939_v46 = vld [vmem:[%s15952_s1 + $0x1be0] sm:$0xff] }
 0x1a7   :  { %8165 = vmatpush3.msra.mxu0 %v825_v48  ;;  %8200 = vmatpush3.msra.mxu1 %v857_v49  ;;  %v891_v47 = vld [vmem:[%s15952_s1 + $0x1a60] sm:$0xff]  ;;  %v906_v49 = vld [vmem:[%s15952_s1 + $0x1ad8] sm:$0xff] }
 0x1a8   :  { %8166 = vmatprep.subr.mxu0 %v840_v50  ;;  %8201 = vmatprep.subr.mxu1 %v872_v52  ;;  %v923_v48 = vld [vmem:[%s15952_s1 + $0x1b60] sm:$0xff]  ;;  %v938_v50 = vld [vmem:[%s15952_s1 + $0x1bd8] sm:$0xff] }
 0x1a9   :  { %8167 = vmatpush3.msra.mxu0 %v824_v53  ;;  %8202 = vmatpush3.msra.mxu1 %v856_v54  ;;  %v890_v52 = vld [vmem:[%s15952_s1 + $0x1a58] sm:$0xff]  ;;  %v905_v54 = vld [vmem:[%s15952_s1 + $0x1ad0] sm:$0xff] }
 0x1aa   :  { %8168 = vmatprep.subr.mxu0 %v839_v55  ;;  %8203 = vmatprep.subr.mxu1 %v871_v56  ;;  %v922_v53 = vld [vmem:[%s15952_s1 + $0x1b58] sm:$0xff]  ;;  %v937_v55 = vld [vmem:[%s15952_s1 + $0x1bd0] sm:$0xff] }
 0x1ab   :  { %8169 = vmatpush3.msra.mxu0 %v823_v57  ;;  %8204 = vmatpush3.msra.mxu1 %v855_v58  ;;  %v889_v56 = vld [vmem:[%s15952_s1 + $0x1a50] sm:$0xff]  ;;  %v904_v58 = vld [vmem:[%s15952_s1 + $0x1ac8] sm:$0xff] }
 0x1ac   :  { %8170 = vmatprep.subr.mxu0 %v838_v59  ;;  %8205 = vmatprep.subr.mxu1 %v870_v60  ;;  %v921_v57 = vld [vmem:[%s15952_s1 + $0x1b50] sm:$0xff]  ;;  %v936_v59 = vld [vmem:[%s15952_s1 + $0x1bc8] sm:$0xff] }
 0x1ad   :  { %8171 = vmatpush3.msra.mxu0 %v822_v61  ;;  %8206 = vmatpush3.msra.mxu1 %v854_v62  ;;  %v888_v60 = vld [vmem:[%s15952_s1 + $0x1a48] sm:$0xff]  ;;  %v903_v62 = vld [vmem:[%s15952_s1 + $0x1ac0] sm:$0xff] }
 0x1ae   :  { %8172 = vmatprep.subr.mxu0 %v837_v63  ;;  %8207 = vmatprep.subr.mxu1 %v869_v0  ;;  %v920_v61 = vld [vmem:[%s15952_s1 + $0x1b48] sm:$0xff]  ;;  %v935_v63 = vld [vmem:[%s15952_s1 + $0x1bc0] sm:$0xff] }
 0x1af   :  { %8173 = vmatpush3.msra.mxu0 %v821_v1  ;;  %8208 = vmatpush3.msra.mxu1 %v853_v2  ;;  %v887_v0 = vld [vmem:[%s15952_s1 + $0x1a40] sm:$0xff]  ;;  %v902_v2 = vld [vmem:[%s15952_s1 + $0x1ab8] sm:$0xff] }
 0x1b0   :  { %8174 = vmatprep.subr.mxu0 %v836_v3  ;;  %8209 = vmatprep.subr.mxu1 %v868_v4  ;;  %v919_v1 = vld [vmem:[%s15952_s1 + $0x1b40] sm:$0xff]  ;;  %v934_v3 = vld [vmem:[%s15952_s1 + $0x1bb8] sm:$0xff] }
 0x1b1   :  { %8175 = vmatpush3.msra.mxu0 %v820_v5  ;;  %8210 = vmatpush3.msra.mxu1 %v852_v6  ;;  %v886_v4 = vld [vmem:[%s15952_s1 + $0x1a38] sm:$0xff]  ;;  %v901_v6 = vld [vmem:[%s15952_s1 + $0x1ab0] sm:$0xff] }
 0x1b2   :  { %8176 = vmatprep.subr.mxu0 %v835_v8  ;;  %8211 = vmatprep.subr.mxu1 %v867_v9  ;;  %v918_v5 = vld [vmem:[%s15952_s1 + $0x1b38] sm:$0xff]  ;;  %v885_v8 = vld [vmem:[%s15952_s1 + $0x1a30] sm:$0xff] }
 0x1b3   :  { %8177 = vmatpush3.msra.mxu0 %v819_v10  ;;  %8212 = vmatpush3.msra.mxu1 %v851_v11  ;;  %v917_v9 = vld [vmem:[%s15952_s1 + $0x1b30] sm:$0xff]  ;;  %v900_v10 = vld [vmem:[%s15952_s1 + $0x1aa8] sm:$0xff] }
 0x1b4   :  { %8178 = vmatprep.subr.mxu0 %v834_v12  ;;  %8213 = vmatprep.subr.mxu1 %v866_v13  ;;  %v932_v11 = vld [vmem:[%s15952_s1 + $0x1ba8] sm:$0xff] }
 0x1b5   :  { %8179 = vmatpush3.msra.mxu0 %v818_v15  ;;  %8214 = vmatpush3.msra.mxu1 %v850_v16  ;;  %v884_v12 = vld [vmem:[%s15952_s1 + $0x1a28] sm:$0xff]  ;;  %v899_v15 = vld [vmem:[%s15952_s1 + $0x1aa0] sm:$0xff] }
 0x1b6   :  { %8180 = vmatprep.subr.mxu0 %v833_v17  ;;  %8215 = vmatprep.subr.mxu1 %v865_v18  ;;  %v916_v13 = vld [vmem:[%s15952_s1 + $0x1b28] sm:$0xff]  ;;  %v931_v16 = vld [vmem:[%s15952_s1 + $0x1ba0] sm:$0xff] }
 0x1b7   :  { %8181 = vmatpush3.msra.mxu0 %v817_v20  ;;  %8216 = vmatpush3.msra.mxu1 %v849_v21  ;;  %v883_v17 = vld [vmem:[%s15952_s1 + $0x1a20] sm:$0xff]  ;;  %v930_v20 = vld [vmem:[%s15952_s1 + $0x1b98] sm:$0xff]  ;;  %v2355_v21 = vcombine.high %v28_v14, %v28_v14 }
 0x1b8   :  { %8182 = vmatprep.subr.mxu0 %v832_v22  ;;  %8217 = vmatprep.subr.mxu1 %v864_v23  ;;  %v915_v18 = vld [vmem:[%s15952_s1 + $0x1b20] sm:$0xff]  ;;  %v882_v22 = vld [vmem:[%s15952_s1 + $0x1a18] sm:$0xff] }
 0x1b9   :  { %8183 = vmatpush3.msra.mxu0 %v816_v25  ;;  %8218 = vmatpush3.msra.mxu1 %v848_v26  ;;  %v914_v23 = vld [vmem:[%s15952_s1 + $0x1b18] sm:$0xff]  ;;  %v929_v25 = vld [vmem:[%s15952_s1 + $0x1b90] sm:$0xff]  ;;  %v2362_v26 = vrot.slane %v28_v14, %v9774_v51 }
 0x1ba   :  { %8184 = vmatprep.subr.mxu0 %v831_v27  ;;  %8219 = vmatprep.subr.mxu1 %v863_v28  ;;  %v881_v27 = vld [vmem:[%s15952_s1 + $0x1a10] sm:$0xff] }
 0x1bb   :  { %8185 = vmatpush3.msra.mxu0 %v815_v30  ;;  %4550 = vmatprep.mubr.f32.mxu0 %v2353_v29  ;;  %v913_v28 = vld [vmem:[%s15952_s1 + $0x1b10] sm:$0xff]  ;;  %v896_v29 = vld [vmem:[%s15952_s1 + $0x1a88] sm:$0xff] }
 0x1bc   :  { %8220 = vmatpush3.msra.mxu1 %v847_v31  ;;  %4551 = vmatmul.mubr.f32.vlgmr.msra.gmra.mxu0 %v2345_v19  ;;  %v898_v19 = vld [vmem:[%s15952_s1 + $0x1a98] sm:$0xff]  ;;  %v928_v30 = vld [vmem:[%s15952_s1 + $0x1b88] sm:$0xff]  ;;  %v2369_v31 = vrot.slane %v2355_v21, %v9774_v51  ;;  %v997_v14 = vld [vmem:[%s15952_s1 + $0x1db0] sm:$0xff] }
 0x1bd   :  { %4620 = vmatprep.mubr.f32.mxu1 %v2354_v32  ;;  %8224 = vmatprep.subr.mxu0 %v910_v33  ;;  %v880_v32 = vld [vmem:[%s15952_s1 + $0x1a08] sm:$0xff]  ;;  %v29_v21 = vld [vmem:[%s15951_s0 + $0x70] sm:$0xff] }
 0x1be   :  { %8259 = vmatprep.subr.mxu1 %v942_v34  ;;  %4621 = vmatmul.mubr.f32.vlgmr.msra.gmra.mxu1 %v2352_v24  ;;  %v897_v24 = vld [vmem:[%s15952_s1 + $0x1a90] sm:$0xff]  ;;  %v912_v33 = vld [vmem:[%s15952_s1 + $0x1b08] sm:$0xff]  ;;  %v895_v34 = vld [vmem:[%s15952_s1 + $0x1a80] sm:$0xff] }
 0x1bf   :  { %8225 = vmatpush3.msra.mxu0 %v894_v35  ;;  %8260 = vmatpush3.msra.mxu1 %v926_v36  ;;  %v927_v35 = vld [vmem:[%s15952_s1 + $0x1b80] sm:$0xff]  ;;  %v2370_v36 = vcombine.high %v2362_v26, %v2362_v26 }
 0x1c0   :  { %8226 = vmatprep.subr.mxu0 %v909_v37  ;;  %8261 = vmatprep.subr.mxu1 %v941_v38  ;;  %v879_v37 = vld [vmem:[%s15952_s1 + $0x1a00] sm:$0xff] }
 0x1c1   :  { %8227 = vmatpush3.msra.mxu0 %v893_v39  ;;  %8262 = vmatpush3.msra.mxu1 %v925_v40  ;;  %v911_v38 = vld [vmem:[%s15952_s1 + $0x1b00] sm:$0xff]  ;;  %v2371_v39 = vcombine.high %v2369_v31, %v2369_v31  ;;  %v974_v40 = vld [vmem:[%s15952_s1 + $0x1cf8] sm:$0xff] }
 0x1c2   :  { %8228 = vmatprep.subr.mxu0 %v908_v41  ;;  %8263 = vmatprep.subr.mxu1 %v940_v42  ;;  %v1006_v41 = vld [vmem:[%s15952_s1 + $0x1df8] sm:$0xff] }
 0x1c3   :  { %8229 = vmatpush3.msra.mxu0 %v892_v43  ;;  %8264 = vmatpush3.msra.mxu1 %v924_v44  ;;  %v958_v42 = vld [vmem:[%s15952_s1 + $0x1c78] sm:$0xff]  ;;  %v973_v44 = vld [vmem:[%s15952_s1 + $0x1cf0] sm:$0xff] }
 0x1c4   :  { %8230 = vmatprep.subr.mxu0 %v907_v45  ;;  %8265 = vmatprep.subr.mxu1 %v939_v46  ;;  %v990_v43 = vld [vmem:[%s15952_s1 + $0x1d78] sm:$0xff]  ;;  %v1005_v45 = vld [vmem:[%s15952_s1 + $0x1df0] sm:$0xff] }
 0x1c5   :  { %8231 = vmatpush3.msra.mxu0 %v891_v47  ;;  %8266 = vmatpush3.msra.mxu1 %v923_v48  ;;  %v957_v46 = vld [vmem:[%s15952_s1 + $0x1c70] sm:$0xff]  ;;  %v972_v48 = vld [vmem:[%s15952_s1 + $0x1ce8] sm:$0xff] }
 0x1c6   :  { %8232 = vmatprep.subr.mxu0 %v906_v49  ;;  %8267 = vmatprep.subr.mxu1 %v938_v50  ;;  %v989_v47 = vld [vmem:[%s15952_s1 + $0x1d70] sm:$0xff]  ;;  %v1004_v49 = vld [vmem:[%s15952_s1 + $0x1de8] sm:$0xff] }
 0x1c7   :  { %8233 = vmatpush3.msra.mxu0 %v890_v52  ;;  %8268 = vmatpush3.msra.mxu1 %v922_v53  ;;  %v956_v50 = vld [vmem:[%s15952_s1 + $0x1c68] sm:$0xff]  ;;  %v971_v53 = vld [vmem:[%s15952_s1 + $0x1ce0] sm:$0xff] }
 0x1c8   :  { %8234 = vmatprep.subr.mxu0 %v905_v54  ;;  %8269 = vmatprep.subr.mxu1 %v937_v55  ;;  %v988_v52 = vld [vmem:[%s15952_s1 + $0x1d68] sm:$0xff]  ;;  %v1003_v54 = vld [vmem:[%s15952_s1 + $0x1de0] sm:$0xff] }
 0x1c9   :  { %8235 = vmatpush3.msra.mxu0 %v889_v56  ;;  %8270 = vmatpush3.msra.mxu1 %v921_v57  ;;  %v955_v55 = vld [vmem:[%s15952_s1 + $0x1c60] sm:$0xff]  ;;  %v970_v57 = vld [vmem:[%s15952_s1 + $0x1cd8] sm:$0xff] }
 0x1ca   :  { %8236 = vmatprep.subr.mxu0 %v904_v58  ;;  %8271 = vmatprep.subr.mxu1 %v936_v59  ;;  %v987_v56 = vld [vmem:[%s15952_s1 + $0x1d60] sm:$0xff]  ;;  %v1002_v58 = vld [vmem:[%s15952_s1 + $0x1dd8] sm:$0xff] }
 0x1cb   :  { %8237 = vmatpush3.msra.mxu0 %v888_v60  ;;  %8272 = vmatpush3.msra.mxu1 %v920_v61  ;;  %v954_v59 = vld [vmem:[%s15952_s1 + $0x1c58] sm:$0xff]  ;;  %v969_v61 = vld [vmem:[%s15952_s1 + $0x1cd0] sm:$0xff] }
 0x1cc   :  { %8238 = vmatprep.subr.mxu0 %v903_v62  ;;  %8273 = vmatprep.subr.mxu1 %v935_v63  ;;  %v986_v60 = vld [vmem:[%s15952_s1 + $0x1d58] sm:$0xff]  ;;  %v1001_v62 = vld [vmem:[%s15952_s1 + $0x1dd0] sm:$0xff] }
 0x1cd   :  { %8239 = vmatpush3.msra.mxu0 %v887_v0  ;;  %8274 = vmatpush3.msra.mxu1 %v919_v1  ;;  %v953_v63 = vld [vmem:[%s15952_s1 + $0x1c50] sm:$0xff]  ;;  %v968_v1 = vld [vmem:[%s15952_s1 + $0x1cc8] sm:$0xff] }
 0x1ce   :  { %8240 = vmatprep.subr.mxu0 %v902_v2  ;;  %8275 = vmatprep.subr.mxu1 %v934_v3  ;;  %v985_v0 = vld [vmem:[%s15952_s1 + $0x1d50] sm:$0xff]  ;;  %v1000_v2 = vld [vmem:[%s15952_s1 + $0x1dc8] sm:$0xff] }
 0x1cf   :  { %8241 = vmatpush3.msra.mxu0 %v886_v4  ;;  %8276 = vmatpush3.msra.mxu1 %v918_v5  ;;  %v952_v3 = vld [vmem:[%s15952_s1 + $0x1c48] sm:$0xff]  ;;  %v967_v5 = vld [vmem:[%s15952_s1 + $0x1cc0] sm:$0xff] }
 0x1d0   :  { %8242 = vmatprep.subr.mxu0 %v901_v6  ;;  %8277 = vmatprep.subr.mxu1 %v933_v7  ;;  %v984_v4 = vld [vmem:[%s15952_s1 + $0x1d48] sm:$0xff]  ;;  %v999_v6 = vld [vmem:[%s15952_s1 + $0x1dc0] sm:$0xff] }
 0x1d1   :  { %8243 = vmatpush3.msra.mxu0 %v885_v8  ;;  %8278 = vmatpush3.msra.mxu1 %v917_v9  ;;  %v951_v7 = vld [vmem:[%s15952_s1 + $0x1c40] sm:$0xff]  ;;  %v966_v9 = vld [vmem:[%s15952_s1 + $0x1cb8] sm:$0xff] }
 0x1d2   :  { %8244 = vmatprep.subr.mxu0 %v900_v10  ;;  %8279 = vmatprep.subr.mxu1 %v932_v11  ;;  %v983_v8 = vld [vmem:[%s15952_s1 + $0x1d40] sm:$0xff]  ;;  %v998_v10 = vld [vmem:[%s15952_s1 + $0x1db8] sm:$0xff] }
 0x1d3   :  { %8245 = vmatpush3.msra.mxu0 %v884_v12  ;;  %8280 = vmatpush3.msra.mxu1 %v916_v13  ;;  %v950_v11 = vld [vmem:[%s15952_s1 + $0x1c38] sm:$0xff]  ;;  %v965_v13 = vld [vmem:[%s15952_s1 + $0x1cb0] sm:$0xff] }
 0x1d4   :  { %8246 = vmatprep.subr.mxu0 %v899_v15  ;;  %8281 = vmatprep.subr.mxu1 %v931_v16  ;;  %v982_v12 = vld [vmem:[%s15952_s1 + $0x1d38] sm:$0xff]  ;;  %v949_v15 = vld [vmem:[%s15952_s1 + $0x1c30] sm:$0xff] }
 0x1d5   :  { %8247 = vmatpush3.msra.mxu0 %v883_v17  ;;  %8282 = vmatpush3.msra.mxu1 %v915_v18  ;;  %v981_v16 = vld [vmem:[%s15952_s1 + $0x1d30] sm:$0xff]  ;;  %v964_v17 = vld [vmem:[%s15952_s1 + $0x1ca8] sm:$0xff] }
 0x1d6   :  { %8248 = vmatprep.subr.mxu0 %v898_v19  ;;  %8283 = vmatprep.subr.mxu1 %v930_v20  ;;  %v996_v18 = vld [vmem:[%s15952_s1 + $0x1da8] sm:$0xff] }
 0x1d7   :  { %8249 = vmatpush3.msra.mxu0 %v882_v22  ;;  %8284 = vmatpush3.msra.mxu1 %v914_v23  ;;  %v948_v19 = vld [vmem:[%s15952_s1 + $0x1c28] sm:$0xff]  ;;  %v963_v22 = vld [vmem:[%s15952_s1 + $0x1ca0] sm:$0xff] }
 0x1d8   :  { %8250 = vmatprep.subr.mxu0 %v897_v24  ;;  %8285 = vmatprep.subr.mxu1 %v929_v25  ;;  %v980_v20 = vld [vmem:[%s15952_s1 + $0x1d28] sm:$0xff]  ;;  %v995_v23 = vld [vmem:[%s15952_s1 + $0x1da0] sm:$0xff] }
 0x1d9   :  { %8251 = vmatpush3.msra.mxu0 %v881_v27  ;;  %8286 = vmatpush3.msra.mxu1 %v913_v28  ;;  %v947_v24 = vld [vmem:[%s15952_s1 + $0x1c20] sm:$0xff]  ;;  %v994_v27 = vld [vmem:[%s15952_s1 + $0x1d98] sm:$0xff]  ;;  %v2372_v28 = vcombine.high %v29_v21, %v29_v21 }
 0x1da   :  { %8252 = vmatprep.subr.mxu0 %v896_v29  ;;  %8287 = vmatprep.subr.mxu1 %v928_v30  ;;  %v979_v25 = vld [vmem:[%s15952_s1 + $0x1d20] sm:$0xff]  ;;  %v946_v29 = vld [vmem:[%s15952_s1 + $0x1c18] sm:$0xff] }
 0x1db   :  { %8253 = vmatpush3.msra.mxu0 %v880_v32  ;;  %8288 = vmatpush3.msra.mxu1 %v912_v33  ;;  %v978_v30 = vld [vmem:[%s15952_s1 + $0x1d18] sm:$0xff]  ;;  %v993_v32 = vld [vmem:[%s15952_s1 + $0x1d90] sm:$0xff]  ;;  %v2379_v33 = vrot.slane %v29_v21, %v9774_v51 }
 0x1dc   :  { %8254 = vmatprep.subr.mxu0 %v895_v34  ;;  %8289 = vmatprep.subr.mxu1 %v927_v35  ;;  %v945_v34 = vld [vmem:[%s15952_s1 + $0x1c10] sm:$0xff] }
 0x1dd   :  { %8255 = vmatpush3.msra.mxu0 %v879_v37  ;;  %4690 = vmatprep.mubr.f32.mxu0 %v2370_v36  ;;  %v977_v35 = vld [vmem:[%s15952_s1 + $0x1d10] sm:$0xff]  ;;  %v960_v36 = vld [vmem:[%s15952_s1 + $0x1c88] sm:$0xff] }
 0x1de   :  { %8290 = vmatpush3.msra.mxu1 %v911_v38  ;;  %4691 = vmatmul.mubr.f32.vlgmr.msra.gmra.mxu0 %v2362_v26  ;;  %v962_v26 = vld [vmem:[%s15952_s1 + $0x1c98] sm:$0xff]  ;;  %v992_v37 = vld [vmem:[%s15952_s1 + $0x1d88] sm:$0xff]  ;;  %v2386_v38 = vrot.slane %v2372_v28, %v9774_v51  ;;  %v1061_v21 = vld [vmem:[%s15952_s1 + $0x1fb0] sm:$0xff] }
 0x1df   :  { %4760 = vmatprep.mubr.f32.mxu1 %v2371_v39  ;;  %8294 = vmatprep.subr.mxu0 %v974_v40  ;;  %v944_v39 = vld [vmem:[%s15952_s1 + $0x1c08] sm:$0xff]  ;;  %v30_v28 = vld [vmem:[%s15951_s0 + $0x78] sm:$0xff] }
 0x1e0   :  { %8329 = vmatprep.subr.mxu1 %v1006_v41  ;;  %4761 = vmatmul.mubr.f32.vlgmr.msra.gmra.mxu1 %v2369_v31  ;;  %v961_v31 = vld [vmem:[%s15952_s1 + $0x1c90] sm:$0xff]  ;;  %v976_v40 = vld [vmem:[%s15952_s1 + $0x1d08] sm:$0xff]  ;;  %v959_v41 = vld [vmem:[%s15952_s1 + $0x1c80] sm:$0xff] }
 0x1e1   :  { %8295 = vmatpush3.msra.mxu0 %v958_v42  ;;  %8330 = vmatpush3.msra.mxu1 %v990_v43  ;;  %v991_v42 = vld [vmem:[%s15952_s1 + $0x1d80] sm:$0xff]  ;;  %v2387_v43 = vcombine.high %v2379_v33, %v2379_v33 }
 0x1e2   :  { %8296 = vmatprep.subr.mxu0 %v973_v44  ;;  %8331 = vmatprep.subr.mxu1 %v1005_v45  ;;  %v943_v44 = vld [vmem:[%s15952_s1 + $0x1c00] sm:$0xff] }
 0x1e3   :  { %8297 = vmatpush3.msra.mxu0 %v957_v46  ;;  %8332 = vmatpush3.msra.mxu1 %v989_v47  ;;  %v975_v45 = vld [vmem:[%s15952_s1 + $0x1d00] sm:$0xff]  ;;  %v2388_v46 = vcombine.high %v2386_v38, %v2386_v38  ;;  %v1038_v47 = vld [vmem:[%s15952_s1 + $0x1ef8] sm:$0xff] }
 0x1e4   :  { %8298 = vmatprep.subr.mxu0 %v972_v48  ;;  %8333 = vmatprep.subr.mxu1 %v1004_v49  ;;  %v1070_v48 = vld [vmem:[%s15952_s1 + $0x1ff8] sm:$0xff] }
 0x1e5   :  { %8299 = vmatpush3.msra.mxu0 %v956_v50  ;;  %8334 = vmatpush3.msra.mxu1 %v988_v52  ;;  %v1022_v49 = vld [vmem:[%s15952_s1 + $0x1e78] sm:$0xff]  ;;  %v1037_v52 = vld [vmem:[%s15952_s1 + $0x1ef0] sm:$0xff] }
 0x1e6   :  { %8300 = vmatprep.subr.mxu0 %v971_v53  ;;  %8335 = vmatprep.subr.mxu1 %v1003_v54  ;;  %v1054_v50 = vld [vmem:[%s15952_s1 + $0x1f78] sm:$0xff]  ;;  %v1069_v53 = vld [vmem:[%s15952_s1 + $0x1ff0] sm:$0xff] }
 0x1e7   :  { %8301 = vmatpush3.msra.mxu0 %v955_v55  ;;  %8336 = vmatpush3.msra.mxu1 %v987_v56  ;;  %v1021_v54 = vld [vmem:[%s15952_s1 + $0x1e70] sm:$0xff]  ;;  %v1036_v56 = vld [vmem:[%s15952_s1 + $0x1ee8] sm:$0xff] }
 0x1e8   :  { %8302 = vmatprep.subr.mxu0 %v970_v57  ;;  %8337 = vmatprep.subr.mxu1 %v1002_v58  ;;  %v1053_v55 = vld [vmem:[%s15952_s1 + $0x1f70] sm:$0xff]  ;;  %v1068_v57 = vld [vmem:[%s15952_s1 + $0x1fe8] sm:$0xff] }
 0x1e9   :  { %8303 = vmatpush3.msra.mxu0 %v954_v59  ;;  %8338 = vmatpush3.msra.mxu1 %v986_v60  ;;  %v1020_v58 = vld [vmem:[%s15952_s1 + $0x1e68] sm:$0xff]  ;;  %v1035_v60 = vld [vmem:[%s15952_s1 + $0x1ee0] sm:$0xff] }
 0x1ea   :  { %8304 = vmatprep.subr.mxu0 %v969_v61  ;;  %8339 = vmatprep.subr.mxu1 %v1001_v62  ;;  %v1052_v59 = vld [vmem:[%s15952_s1 + $0x1f68] sm:$0xff]  ;;  %v1067_v61 = vld [vmem:[%s15952_s1 + $0x1fe0] sm:$0xff] }
 0x1eb   :  { %8305 = vmatpush3.msra.mxu0 %v953_v63  ;;  %8340 = vmatpush3.msra.mxu1 %v985_v0  ;;  %v1019_v62 = vld [vmem:[%s15952_s1 + $0x1e60] sm:$0xff]  ;;  %v1034_v0 = vld [vmem:[%s15952_s1 + $0x1ed8] sm:$0xff] }
 0x1ec   :  { %8306 = vmatprep.subr.mxu0 %v968_v1  ;;  %8341 = vmatprep.subr.mxu1 %v1000_v2  ;;  %v1051_v63 = vld [vmem:[%s15952_s1 + $0x1f60] sm:$0xff]  ;;  %v1066_v1 = vld [vmem:[%s15952_s1 + $0x1fd8] sm:$0xff] }
 0x1ed   :  { %8307 = vmatpush3.msra.mxu0 %v952_v3  ;;  %8342 = vmatpush3.msra.mxu1 %v984_v4  ;;  %v1018_v2 = vld [vmem:[%s15952_s1 + $0x1e58] sm:$0xff]  ;;  %v1033_v4 = vld [vmem:[%s15952_s1 + $0x1ed0] sm:$0xff] }
 0x1ee   :  { %8308 = vmatprep.subr.mxu0 %v967_v5  ;;  %8343 = vmatprep.subr.mxu1 %v999_v6  ;;  %v1050_v3 = vld [vmem:[%s15952_s1 + $0x1f58] sm:$0xff]  ;;  %v1065_v5 = vld [vmem:[%s15952_s1 + $0x1fd0] sm:$0xff] }
 0x1ef   :  { %8309 = vmatpush3.msra.mxu0 %v951_v7  ;;  %8344 = vmatpush3.msra.mxu1 %v983_v8  ;;  %v1017_v6 = vld [vmem:[%s15952_s1 + $0x1e50] sm:$0xff]  ;;  %v1032_v8 = vld [vmem:[%s15952_s1 + $0x1ec8] sm:$0xff] }
 0x1f0   :  { %8310 = vmatprep.subr.mxu0 %v966_v9  ;;  %8345 = vmatprep.subr.mxu1 %v998_v10  ;;  %v1049_v7 = vld [vmem:[%s15952_s1 + $0x1f50] sm:$0xff]  ;;  %v1064_v9 = vld [vmem:[%s15952_s1 + $0x1fc8] sm:$0xff] }
 0x1f1   :  { %8311 = vmatpush3.msra.mxu0 %v950_v11  ;;  %8346 = vmatpush3.msra.mxu1 %v982_v12  ;;  %v1016_v10 = vld [vmem:[%s15952_s1 + $0x1e48] sm:$0xff]  ;;  %v1031_v12 = vld [vmem:[%s15952_s1 + $0x1ec0] sm:$0xff] }
 0x1f2   :  { %8312 = vmatprep.subr.mxu0 %v965_v13  ;;  %8347 = vmatprep.subr.mxu1 %v997_v14  ;;  %v1048_v11 = vld [vmem:[%s15952_s1 + $0x1f48] sm:$0xff]  ;;  %v1063_v13 = vld [vmem:[%s15952_s1 + $0x1fc0] sm:$0xff] }
 0x1f3   :  { %8313 = vmatpush3.msra.mxu0 %v949_v15  ;;  %8348 = vmatpush3.msra.mxu1 %v981_v16  ;;  %v1015_v14 = vld [vmem:[%s15952_s1 + $0x1e40] sm:$0xff]  ;;  %v1030_v16 = vld [vmem:[%s15952_s1 + $0x1eb8] sm:$0xff] }
 0x1f4   :  { %8314 = vmatprep.subr.mxu0 %v964_v17  ;;  %8349 = vmatprep.subr.mxu1 %v996_v18  ;;  %v1047_v15 = vld [vmem:[%s15952_s1 + $0x1f40] sm:$0xff]  ;;  %v1062_v17 = vld [vmem:[%s15952_s1 + $0x1fb8] sm:$0xff] }
 0x1f5   :  { %8315 = vmatpush3.msra.mxu0 %v948_v19  ;;  %8350 = vmatpush3.msra.mxu1 %v980_v20  ;;  %v1014_v18 = vld [vmem:[%s15952_s1 + $0x1e38] sm:$0xff]  ;;  %v1029_v20 = vld [vmem:[%s15952_s1 + $0x1eb0] sm:$0xff] }
 0x1f6   :  { %8316 = vmatprep.subr.mxu0 %v963_v22  ;;  %8351 = vmatprep.subr.mxu1 %v995_v23  ;;  %v1046_v19 = vld [vmem:[%s15952_s1 + $0x1f38] sm:$0xff]  ;;  %v1013_v22 = vld [vmem:[%s15952_s1 + $0x1e30] sm:$0xff] }
 0x1f7   :  { %8317 = vmatpush3.msra.mxu0 %v947_v24  ;;  %8352 = vmatpush3.msra.mxu1 %v979_v25  ;;  %v1045_v23 = vld [vmem:[%s15952_s1 + $0x1f30] sm:$0xff]  ;;  %v1028_v24 = vld [vmem:[%s15952_s1 + $0x1ea8] sm:$0xff] }
 0x1f8   :  { %8318 = vmatprep.subr.mxu0 %v962_v26  ;;  %8353 = vmatprep.subr.mxu1 %v994_v27  ;;  %v1060_v25 = vld [vmem:[%s15952_s1 + $0x1fa8] sm:$0xff] }
 0x1f9   :  { %8319 = vmatpush3.msra.mxu0 %v946_v29  ;;  %8354 = vmatpush3.msra.mxu1 %v978_v30  ;;  %v1012_v26 = vld [vmem:[%s15952_s1 + $0x1e28] sm:$0xff]  ;;  %v1027_v29 = vld [vmem:[%s15952_s1 + $0x1ea0] sm:$0xff] }
 0x1fa   :  { %8320 = vmatprep.subr.mxu0 %v961_v31  ;;  %8355 = vmatprep.subr.mxu1 %v993_v32  ;;  %v1044_v27 = vld [vmem:[%s15952_s1 + $0x1f28] sm:$0xff]  ;;  %v1059_v30 = vld [vmem:[%s15952_s1 + $0x1fa0] sm:$0xff] }
 0x1fb   :  { %8321 = vmatpush3.msra.mxu0 %v945_v34  ;;  %8356 = vmatpush3.msra.mxu1 %v977_v35  ;;  %v1011_v31 = vld [vmem:[%s15952_s1 + $0x1e20] sm:$0xff]  ;;  %v1058_v34 = vld [vmem:[%s15952_s1 + $0x1f98] sm:$0xff]  ;;  %v2389_v35 = vcombine.high %v30_v28, %v30_v28 }
 0x1fc   :  { %8322 = vmatprep.subr.mxu0 %v960_v36  ;;  %8357 = vmatprep.subr.mxu1 %v992_v37  ;;  %v1043_v32 = vld [vmem:[%s15952_s1 + $0x1f20] sm:$0xff]  ;;  %v1010_v36 = vld [vmem:[%s15952_s1 + $0x1e18] sm:$0xff] }
 0x1fd   :  { %8323 = vmatpush3.msra.mxu0 %v944_v39  ;;  %8358 = vmatpush3.msra.mxu1 %v976_v40  ;;  %v1042_v37 = vld [vmem:[%s15952_s1 + $0x1f18] sm:$0xff]  ;;  %v1057_v39 = vld [vmem:[%s15952_s1 + $0x1f90] sm:$0xff]  ;;  %v2396_v40 = vrot.slane %v30_v28, %v9774_v51 }
 0x1fe   :  { %8324 = vmatprep.subr.mxu0 %v959_v41  ;;  %8359 = vmatprep.subr.mxu1 %v991_v42  ;;  %v1009_v41 = vld [vmem:[%s15952_s1 + $0x1e10] sm:$0xff] }
 0x1ff   :  { %8325 = vmatpush3.msra.mxu0 %v943_v44  ;;  %4830 = vmatprep.mubr.f32.mxu0 %v2387_v43  ;;  %v1041_v42 = vld [vmem:[%s15952_s1 + $0x1f10] sm:$0xff]  ;;  %v1024_v43 = vld [vmem:[%s15952_s1 + $0x1e88] sm:$0xff] }
 0x200   :  { %8360 = vmatpush3.msra.mxu1 %v975_v45  ;;  %4831 = vmatmul.mubr.f32.vlgmr.msra.gmra.mxu0 %v2379_v33  ;;  %v1026_v33 = vld [vmem:[%s15952_s1 + $0x1e98] sm:$0xff]  ;;  %v1056_v44 = vld [vmem:[%s15952_s1 + $0x1f88] sm:$0xff]  ;;  %v2403_v45 = vrot.slane %v2389_v35, %v9774_v51  ;;  %v1125_v28 = vld [vmem:[%s15952_s1 + $0x21b0] sm:$0xff] }
 0x201   :  { %4900 = vmatprep.mubr.f32.mxu1 %v2388_v46  ;;  %8364 = vmatprep.subr.mxu0 %v1038_v47  ;;  %v1008_v46 = vld [vmem:[%s15952_s1 + $0x1e08] sm:$0xff]  ;;  %v31_v35 = vld [vmem:[%s15951_s0 + $0x80] sm:$0xff] }
 0x202   :  { %8399 = vmatprep.subr.mxu1 %v1070_v48  ;;  %4901 = vmatmul.mubr.f32.vlgmr.msra.gmra.mxu1 %v2386_v38  ;;  %v1025_v38 = vld [vmem:[%s15952_s1 + $0x1e90] sm:$0xff]  ;;  %v1040_v47 = vld [vmem:[%s15952_s1 + $0x1f08] sm:$0xff]  ;;  %v1023_v48 = vld [vmem:[%s15952_s1 + $0x1e80] sm:$0xff] }
 0x203   :  { %8365 = vmatpush3.msra.mxu0 %v1022_v49  ;;  %8400 = vmatpush3.msra.mxu1 %v1054_v50  ;;  %v1055_v49 = vld [vmem:[%s15952_s1 + $0x1f80] sm:$0xff]  ;;  %v2404_v50 = vcombine.high %v2396_v40, %v2396_v40 }
 0x204   :  { %8366 = vmatprep.subr.mxu0 %v1037_v52  ;;  %8401 = vmatprep.subr.mxu1 %v1069_v53  ;;  %v1007_v52 = vld [vmem:[%s15952_s1 + $0x1e00] sm:$0xff] }
 0x205   :  { %8367 = vmatpush3.msra.mxu0 %v1021_v54  ;;  %8402 = vmatpush3.msra.mxu1 %v1053_v55  ;;  %v1039_v53 = vld [vmem:[%s15952_s1 + $0x1f00] sm:$0xff]  ;;  %v2405_v54 = vcombine.high %v2403_v45, %v2403_v45  ;;  %v1102_v55 = vld [vmem:[%s15952_s1 + $0x20f8] sm:$0xff] }
 0x206   :  { %8368 = vmatprep.subr.mxu0 %v1036_v56  ;;  %8403 = vmatprep.subr.mxu1 %v1068_v57  ;;  %v1134_v56 = vld [vmem:[%s15952_s1 + $0x21f8] sm:$0xff] }
 0x207   :  { %8369 = vmatpush3.msra.mxu0 %v1020_v58  ;;  %8404 = vmatpush3.msra.mxu1 %v1052_v59  ;;  %v1086_v57 = vld [vmem:[%s15952_s1 + $0x2078] sm:$0xff]  ;;  %v1101_v59 = vld [vmem:[%s15952_s1 + $0x20f0] sm:$0xff] }
 0x208   :  { %8370 = vmatprep.subr.mxu0 %v1035_v60  ;;  %8405 = vmatprep.subr.mxu1 %v1067_v61  ;;  %v1118_v58 = vld [vmem:[%s15952_s1 + $0x2178] sm:$0xff]  ;;  %v1133_v60 = vld [vmem:[%s15952_s1 + $0x21f0] sm:$0xff] }
 0x209   :  { %8371 = vmatpush3.msra.mxu0 %v1019_v62  ;;  %8406 = vmatpush3.msra.mxu1 %v1051_v63  ;;  %v1085_v61 = vld [vmem:[%s15952_s1 + $0x2070] sm:$0xff]  ;;  %v1100_v63 = vld [vmem:[%s15952_s1 + $0x20e8] sm:$0xff] }
 0x20a   :  { %8372 = vmatprep.subr.mxu0 %v1034_v0  ;;  %8407 = vmatprep.subr.mxu1 %v1066_v1  ;;  %v1117_v62 = vld [vmem:[%s15952_s1 + $0x2170] sm:$0xff]  ;;  %v1132_v0 = vld [vmem:[%s15952_s1 + $0x21e8] sm:$0xff] }
 0x20b   :  { %8373 = vmatpush3.msra.mxu0 %v1018_v2  ;;  %8408 = vmatpush3.msra.mxu1 %v1050_v3  ;;  %v1084_v1 = vld [vmem:[%s15952_s1 + $0x2068] sm:$0xff]  ;;  %v1099_v3 = vld [vmem:[%s15952_s1 + $0x20e0] sm:$0xff] }
 0x20c   :  { %8374 = vmatprep.subr.mxu0 %v1033_v4  ;;  %8409 = vmatprep.subr.mxu1 %v1065_v5  ;;  %v1116_v2 = vld [vmem:[%s15952_s1 + $0x2168] sm:$0xff]  ;;  %v1131_v4 = vld [vmem:[%s15952_s1 + $0x21e0] sm:$0xff] }
 0x20d   :  { %8375 = vmatpush3.msra.mxu0 %v1017_v6  ;;  %8410 = vmatpush3.msra.mxu1 %v1049_v7  ;;  %v1083_v5 = vld [vmem:[%s15952_s1 + $0x2060] sm:$0xff]  ;;  %v1098_v7 = vld [vmem:[%s15952_s1 + $0x20d8] sm:$0xff] }
 0x20e   :  { %8376 = vmatprep.subr.mxu0 %v1032_v8  ;;  %8411 = vmatprep.subr.mxu1 %v1064_v9  ;;  %v1115_v6 = vld [vmem:[%s15952_s1 + $0x2160] sm:$0xff]  ;;  %v1130_v8 = vld [vmem:[%s15952_s1 + $0x21d8] sm:$0xff] }
 0x20f   :  { %8377 = vmatpush3.msra.mxu0 %v1016_v10  ;;  %8412 = vmatpush3.msra.mxu1 %v1048_v11  ;;  %v1082_v9 = vld [vmem:[%s15952_s1 + $0x2058] sm:$0xff]  ;;  %v1097_v11 = vld [vmem:[%s15952_s1 + $0x20d0] sm:$0xff] }
 0x210   :  { %8378 = vmatprep.subr.mxu0 %v1031_v12  ;;  %8413 = vmatprep.subr.mxu1 %v1063_v13  ;;  %v1114_v10 = vld [vmem:[%s15952_s1 + $0x2158] sm:$0xff]  ;;  %v1129_v12 = vld [vmem:[%s15952_s1 + $0x21d0] sm:$0xff] }
 0x211   :  { %8379 = vmatpush3.msra.mxu0 %v1015_v14  ;;  %8414 = vmatpush3.msra.mxu1 %v1047_v15  ;;  %v1081_v13 = vld [vmem:[%s15952_s1 + $0x2050] sm:$0xff]  ;;  %v1096_v15 = vld [vmem:[%s15952_s1 + $0x20c8] sm:$0xff] }
 0x212   :  { %8380 = vmatprep.subr.mxu0 %v1030_v16  ;;  %8415 = vmatprep.subr.mxu1 %v1062_v17  ;;  %v1113_v14 = vld [vmem:[%s15952_s1 + $0x2150] sm:$0xff]  ;;  %v1128_v16 = vld [vmem:[%s15952_s1 + $0x21c8] sm:$0xff] }
 0x213   :  { %8381 = vmatpush3.msra.mxu0 %v1014_v18  ;;  %8416 = vmatpush3.msra.mxu1 %v1046_v19  ;;  %v1080_v17 = vld [vmem:[%s15952_s1 + $0x2048] sm:$0xff]  ;;  %v1095_v19 = vld [vmem:[%s15952_s1 + $0x20c0] sm:$0xff] }
 0x214   :  { %8382 = vmatprep.subr.mxu0 %v1029_v20  ;;  %8417 = vmatprep.subr.mxu1 %v1061_v21  ;;  %v1112_v18 = vld [vmem:[%s15952_s1 + $0x2148] sm:$0xff]  ;;  %v1127_v20 = vld [vmem:[%s15952_s1 + $0x21c0] sm:$0xff] }
 0x215   :  { %8383 = vmatpush3.msra.mxu0 %v1013_v22  ;;  %8418 = vmatpush3.msra.mxu1 %v1045_v23  ;;  %v1079_v21 = vld [vmem:[%s15952_s1 + $0x2040] sm:$0xff]  ;;  %v1094_v23 = vld [vmem:[%s15952_s1 + $0x20b8] sm:$0xff] }
 0x216   :  { %8384 = vmatprep.subr.mxu0 %v1028_v24  ;;  %8419 = vmatprep.subr.mxu1 %v1060_v25  ;;  %v1111_v22 = vld [vmem:[%s15952_s1 + $0x2140] sm:$0xff]  ;;  %v1126_v24 = vld [vmem:[%s15952_s1 + $0x21b8] sm:$0xff] }
 0x217   :  { %8385 = vmatpush3.msra.mxu0 %v1012_v26  ;;  %8420 = vmatpush3.msra.mxu1 %v1044_v27  ;;  %v1078_v25 = vld [vmem:[%s15952_s1 + $0x2038] sm:$0xff]  ;;  %v1093_v27 = vld [vmem:[%s15952_s1 + $0x20b0] sm:$0xff] }
 0x218   :  { %8386 = vmatprep.subr.mxu0 %v1027_v29  ;;  %8421 = vmatprep.subr.mxu1 %v1059_v30  ;;  %v1110_v26 = vld [vmem:[%s15952_s1 + $0x2138] sm:$0xff]  ;;  %v1077_v29 = vld [vmem:[%s15952_s1 + $0x2030] sm:$0xff] }
 0x219   :  { %8387 = vmatpush3.msra.mxu0 %v1011_v31  ;;  %8422 = vmatpush3.msra.mxu1 %v1043_v32  ;;  %v1109_v30 = vld [vmem:[%s15952_s1 + $0x2130] sm:$0xff]  ;;  %v1092_v31 = vld [vmem:[%s15952_s1 + $0x20a8] sm:$0xff] }
 0x21a   :  { %8388 = vmatprep.subr.mxu0 %v1026_v33  ;;  %8423 = vmatprep.subr.mxu1 %v1058_v34  ;;  %v1124_v32 = vld [vmem:[%s15952_s1 + $0x21a8] sm:$0xff] }
 0x21b   :  { %8389 = vmatpush3.msra.mxu0 %v1010_v36  ;;  %8424 = vmatpush3.msra.mxu1 %v1042_v37  ;;  %v1076_v33 = vld [vmem:[%s15952_s1 + $0x2028] sm:$0xff]  ;;  %v1091_v36 = vld [vmem:[%s15952_s1 + $0x20a0] sm:$0xff] }
 0x21c   :  { %8390 = vmatprep.subr.mxu0 %v1025_v38  ;;  %8425 = vmatprep.subr.mxu1 %v1057_v39  ;;  %v1108_v34 = vld [vmem:[%s15952_s1 + $0x2128] sm:$0xff]  ;;  %v1123_v37 = vld [vmem:[%s15952_s1 + $0x21a0] sm:$0xff] }
 0x21d   :  { %8391 = vmatpush3.msra.mxu0 %v1009_v41  ;;  %8426 = vmatpush3.msra.mxu1 %v1041_v42  ;;  %v1075_v38 = vld [vmem:[%s15952_s1 + $0x2020] sm:$0xff]  ;;  %v1122_v41 = vld [vmem:[%s15952_s1 + $0x2198] sm:$0xff]  ;;  %v2406_v42 = vcombine.high %v31_v35, %v31_v35 }
 0x21e   :  { %8392 = vmatprep.subr.mxu0 %v1024_v43  ;;  %8427 = vmatprep.subr.mxu1 %v1056_v44  ;;  %v1107_v39 = vld [vmem:[%s15952_s1 + $0x2120] sm:$0xff]  ;;  %v1074_v43 = vld [vmem:[%s15952_s1 + $0x2018] sm:$0xff] }
 0x21f   :  { %8393 = vmatpush3.msra.mxu0 %v1008_v46  ;;  %8428 = vmatpush3.msra.mxu1 %v1040_v47  ;;  %v1106_v44 = vld [vmem:[%s15952_s1 + $0x2118] sm:$0xff]  ;;  %v1121_v46 = vld [vmem:[%s15952_s1 + $0x2190] sm:$0xff]  ;;  %v2413_v47 = vrot.slane %v31_v35, %v9774_v51 }
 0x220   :  { %8394 = vmatprep.subr.mxu0 %v1023_v48  ;;  %8429 = vmatprep.subr.mxu1 %v1055_v49  ;;  %v1073_v48 = vld [vmem:[%s15952_s1 + $0x2010] sm:$0xff] }
 0x221   :  { %8395 = vmatpush3.msra.mxu0 %v1007_v52  ;;  %4970 = vmatprep.mubr.f32.mxu0 %v2404_v50  ;;  %v1105_v49 = vld [vmem:[%s15952_s1 + $0x2110] sm:$0xff]  ;;  %v1088_v50 = vld [vmem:[%s15952_s1 + $0x2088] sm:$0xff] }
 0x222   :  { %8430 = vmatpush3.msra.mxu1 %v1039_v53  ;;  %4971 = vmatmul.mubr.f32.vlgmr.msra.gmra.mxu0 %v2396_v40  ;;  %v1090_v40 = vld [vmem:[%s15952_s1 + $0x2098] sm:$0xff]  ;;  %v1120_v52 = vld [vmem:[%s15952_s1 + $0x2188] sm:$0xff]  ;;  %v2420_v53 = vrot.slane %v2406_v42, %v9774_v51  ;;  %v1189_v35 = vld [vmem:[%s15952_s1 + $0x23b0] sm:$0xff] }
 0x223   :  { %5040 = vmatprep.mubr.f32.mxu1 %v2405_v54  ;;  %8434 = vmatprep.subr.mxu0 %v1102_v55  ;;  %v1072_v54 = vld [vmem:[%s15952_s1 + $0x2008] sm:$0xff] }
 0x224   :  { %8469 = vmatprep.subr.mxu1 %v1134_v56  ;;  %5041 = vmatmul.mubr.f32.vlgmr.msra.gmra.mxu1 %v2403_v45  ;;  %v1089_v45 = vld [vmem:[%s15952_s1 + $0x2090] sm:$0xff]  ;;  %v1104_v55 = vld [vmem:[%s15952_s1 + $0x2108] sm:$0xff]  ;;  %v1087_v56 = vld [vmem:[%s15952_s1 + $0x2080] sm:$0xff] }
 0x225   :  { %8435 = vmatpush3.msra.mxu0 %v1086_v57  ;;  %8470 = vmatpush3.msra.mxu1 %v1118_v58  ;;  %v1119_v57 = vld [vmem:[%s15952_s1 + $0x2180] sm:$0xff]  ;;  %v2421_v58 = vcombine.high %v2413_v47, %v2413_v47  ;;  %v32_v42 = vld [vmem:[%s15951_s0 + $0x88] sm:$0xff] }
 0x226   :  { %8436 = vmatprep.subr.mxu0 %v1101_v59  ;;  %8471 = vmatprep.subr.mxu1 %v1133_v60  ;;  %v1071_v59 = vld [vmem:[%s15952_s1 + $0x2000] sm:$0xff] }
 0x227   :  { %8437 = vmatpush3.msra.mxu0 %v1085_v61  ;;  %8472 = vmatpush3.msra.mxu1 %v1117_v62  ;;  %v1103_v60 = vld [vmem:[%s15952_s1 + $0x2100] sm:$0xff]  ;;  %v2422_v61 = vcombine.high %v2420_v53, %v2420_v53  ;;  %v1166_v62 = vld [vmem:[%s15952_s1 + $0x22f8] sm:$0xff] }
 0x228   :  { %8438 = vmatprep.subr.mxu0 %v1100_v63  ;;  %8473 = vmatprep.subr.mxu1 %v1132_v0  ;;  %v1198_v63 = vld [vmem:[%s15952_s1 + $0x23f8] sm:$0xff] }
 0x229   :  { %8439 = vmatpush3.msra.mxu0 %v1084_v1  ;;  %8474 = vmatpush3.msra.mxu1 %v1116_v2  ;;  %v1150_v0 = vld [vmem:[%s15952_s1 + $0x2278] sm:$0xff]  ;;  %v1165_v2 = vld [vmem:[%s15952_s1 + $0x22f0] sm:$0xff] }
 0x22a   :  { %8440 = vmatprep.subr.mxu0 %v1099_v3  ;;  %8475 = vmatprep.subr.mxu1 %v1131_v4  ;;  %v1182_v1 = vld [vmem:[%s15952_s1 + $0x2378] sm:$0xff]  ;;  %v1197_v3 = vld [vmem:[%s15952_s1 + $0x23f0] sm:$0xff] }
 0x22b   :  { %8441 = vmatpush3.msra.mxu0 %v1083_v5  ;;  %8476 = vmatpush3.msra.mxu1 %v1115_v6  ;;  %v1149_v4 = vld [vmem:[%s15952_s1 + $0x2270] sm:$0xff]  ;;  %v1164_v6 = vld [vmem:[%s15952_s1 + $0x22e8] sm:$0xff] }
 0x22c   :  { %8442 = vmatprep.subr.mxu0 %v1098_v7  ;;  %8477 = vmatprep.subr.mxu1 %v1130_v8  ;;  %v1181_v5 = vld [vmem:[%s15952_s1 + $0x2370] sm:$0xff]  ;;  %v1196_v7 = vld [vmem:[%s15952_s1 + $0x23e8] sm:$0xff] }
 0x22d   :  { %8443 = vmatpush3.msra.mxu0 %v1082_v9  ;;  %8478 = vmatpush3.msra.mxu1 %v1114_v10  ;;  %v1148_v8 = vld [vmem:[%s15952_s1 + $0x2268] sm:$0xff]  ;;  %v1163_v10 = vld [vmem:[%s15952_s1 + $0x22e0] sm:$0xff] }
 0x22e   :  { %8444 = vmatprep.subr.mxu0 %v1097_v11  ;;  %8479 = vmatprep.subr.mxu1 %v1129_v12  ;;  %v1180_v9 = vld [vmem:[%s15952_s1 + $0x2368] sm:$0xff]  ;;  %v1195_v11 = vld [vmem:[%s15952_s1 + $0x23e0] sm:$0xff] }
 0x22f   :  { %8445 = vmatpush3.msra.mxu0 %v1081_v13  ;;  %8480 = vmatpush3.msra.mxu1 %v1113_v14  ;;  %v1147_v12 = vld [vmem:[%s15952_s1 + $0x2260] sm:$0xff]  ;;  %v1162_v14 = vld [vmem:[%s15952_s1 + $0x22d8] sm:$0xff] }
 0x230   :  { %8446 = vmatprep.subr.mxu0 %v1096_v15  ;;  %8481 = vmatprep.subr.mxu1 %v1128_v16  ;;  %v1179_v13 = vld [vmem:[%s15952_s1 + $0x2360] sm:$0xff]  ;;  %v1194_v15 = vld [vmem:[%s15952_s1 + $0x23d8] sm:$0xff] }
 0x231   :  { %8447 = vmatpush3.msra.mxu0 %v1080_v17  ;;  %8482 = vmatpush3.msra.mxu1 %v1112_v18  ;;  %v1146_v16 = vld [vmem:[%s15952_s1 + $0x2258] sm:$0xff]  ;;  %v1161_v18 = vld [vmem:[%s15952_s1 + $0x22d0] sm:$0xff] }
 0x232   :  { %8448 = vmatprep.subr.mxu0 %v1095_v19  ;;  %8483 = vmatprep.subr.mxu1 %v1127_v20  ;;  %v1178_v17 = vld [vmem:[%s15952_s1 + $0x2358] sm:$0xff]  ;;  %v1193_v19 = vld [vmem:[%s15952_s1 + $0x23d0] sm:$0xff] }
 0x233   :  { %8449 = vmatpush3.msra.mxu0 %v1079_v21  ;;  %8484 = vmatpush3.msra.mxu1 %v1111_v22  ;;  %v1145_v20 = vld [vmem:[%s15952_s1 + $0x2250] sm:$0xff]  ;;  %v1160_v22 = vld [vmem:[%s15952_s1 + $0x22c8] sm:$0xff] }
 0x234   :  { %8450 = vmatprep.subr.mxu0 %v1094_v23  ;;  %8485 = vmatprep.subr.mxu1 %v1126_v24  ;;  %v1177_v21 = vld [vmem:[%s15952_s1 + $0x2350] sm:$0xff]  ;;  %v1192_v23 = vld [vmem:[%s15952_s1 + $0x23c8] sm:$0xff] }
 0x235   :  { %8451 = vmatpush3.msra.mxu0 %v1078_v25  ;;  %8486 = vmatpush3.msra.mxu1 %v1110_v26  ;;  %v1144_v24 = vld [vmem:[%s15952_s1 + $0x2248] sm:$0xff]  ;;  %v1159_v26 = vld [vmem:[%s15952_s1 + $0x22c0] sm:$0xff] }
 0x236   :  { %8452 = vmatprep.subr.mxu0 %v1093_v27  ;;  %8487 = vmatprep.subr.mxu1 %v1125_v28  ;;  %v1176_v25 = vld [vmem:[%s15952_s1 + $0x2348] sm:$0xff]  ;;  %v1191_v27 = vld [vmem:[%s15952_s1 + $0x23c0] sm:$0xff] }
 0x237   :  { %8453 = vmatpush3.msra.mxu0 %v1077_v29  ;;  %8488 = vmatpush3.msra.mxu1 %v1109_v30  ;;  %v1143_v28 = vld [vmem:[%s15952_s1 + $0x2240] sm:$0xff]  ;;  %v1158_v30 = vld [vmem:[%s15952_s1 + $0x22b8] sm:$0xff] }
 0x238   :  { %8454 = vmatprep.subr.mxu0 %v1092_v31  ;;  %8489 = vmatprep.subr.mxu1 %v1124_v32  ;;  %v1175_v29 = vld [vmem:[%s15952_s1 + $0x2340] sm:$0xff]  ;;  %v1190_v31 = vld [vmem:[%s15952_s1 + $0x23b8] sm:$0xff] }
 0x239   :  { %8455 = vmatpush3.msra.mxu0 %v1076_v33  ;;  %8490 = vmatpush3.msra.mxu1 %v1108_v34  ;;  %v1142_v32 = vld [vmem:[%s15952_s1 + $0x2238] sm:$0xff]  ;;  %v1157_v34 = vld [vmem:[%s15952_s1 + $0x22b0] sm:$0xff] }
 0x23a   :  { %8456 = vmatprep.subr.mxu0 %v1091_v36  ;;  %8491 = vmatprep.subr.mxu1 %v1123_v37  ;;  %v1174_v33 = vld [vmem:[%s15952_s1 + $0x2338] sm:$0xff]  ;;  %v1141_v36 = vld [vmem:[%s15952_s1 + $0x2230] sm:$0xff] }
 0x23b   :  { %8457 = vmatpush3.msra.mxu0 %v1075_v38  ;;  %8492 = vmatpush3.msra.mxu1 %v1107_v39  ;;  %v1173_v37 = vld [vmem:[%s15952_s1 + $0x2330] sm:$0xff]  ;;  %v1156_v38 = vld [vmem:[%s15952_s1 + $0x22a8] sm:$0xff] }
 0x23c   :  { %8458 = vmatprep.subr.mxu0 %v1090_v40  ;;  %8493 = vmatprep.subr.mxu1 %v1122_v41  ;;  %v1188_v39 = vld [vmem:[%s15952_s1 + $0x23a8] sm:$0xff] }
 0x23d   :  { %8459 = vmatpush3.msra.mxu0 %v1074_v43  ;;  %8494 = vmatpush3.msra.mxu1 %v1106_v44  ;;  %v1140_v40 = vld [vmem:[%s15952_s1 + $0x2228] sm:$0xff]  ;;  %v1155_v43 = vld [vmem:[%s15952_s1 + $0x22a0] sm:$0xff] }
 0x23e   :  { %8460 = vmatprep.subr.mxu0 %v1089_v45  ;;  %8495 = vmatprep.subr.mxu1 %v1121_v46  ;;  %v1172_v41 = vld [vmem:[%s15952_s1 + $0x2328] sm:$0xff]  ;;  %v1187_v44 = vld [vmem:[%s15952_s1 + $0x23a0] sm:$0xff] }
 0x23f   :  { %8461 = vmatpush3.msra.mxu0 %v1073_v48  ;;  %8496 = vmatpush3.msra.mxu1 %v1105_v49  ;;  %v1139_v45 = vld [vmem:[%s15952_s1 + $0x2220] sm:$0xff]  ;;  %v1186_v48 = vld [vmem:[%s15952_s1 + $0x2398] sm:$0xff]  ;;  %v2423_v49 = vcombine.high %v32_v42, %v32_v42 }
 0x240   :  { %8462 = vmatprep.subr.mxu0 %v1088_v50  ;;  %8497 = vmatprep.subr.mxu1 %v1120_v52  ;;  %v1171_v46 = vld [vmem:[%s15952_s1 + $0x2320] sm:$0xff]  ;;  %v1138_v50 = vld [vmem:[%s15952_s1 + $0x2218] sm:$0xff] }
 0x241   :  { %8463 = vmatpush3.msra.mxu0 %v1072_v54  ;;  %8498 = vmatpush3.msra.mxu1 %v1104_v55  ;;  %v1170_v52 = vld [vmem:[%s15952_s1 + $0x2318] sm:$0xff]  ;;  %v1185_v54 = vld [vmem:[%s15952_s1 + $0x2390] sm:$0xff]  ;;  %v2430_v55 = vrot.slane %v32_v42, %v9774_v51 }
 0x242   :  { %8464 = vmatprep.subr.mxu0 %v1087_v56  ;;  %8499 = vmatprep.subr.mxu1 %v1119_v57  ;;  %v1137_v56 = vld [vmem:[%s15952_s1 + $0x2210] sm:$0xff] }
 0x243   :  { %8465 = vmatpush3.msra.mxu0 %v1071_v59  ;;  %5110 = vmatprep.mubr.f32.mxu0 %v2421_v58  ;;  %v1169_v57 = vld [vmem:[%s15952_s1 + $0x2310] sm:$0xff]  ;;  %v1152_v58 = vld [vmem:[%s15952_s1 + $0x2288] sm:$0xff] }
 0x244   :  { %8500 = vmatpush3.msra.mxu1 %v1103_v60  ;;  %5111 = vmatmul.mubr.f32.vlgmr.msra.gmra.mxu0 %v2413_v47  ;;  %v1154_v47 = vld [vmem:[%s15952_s1 + $0x2298] sm:$0xff]  ;;  %v1184_v59 = vld [vmem:[%s15952_s1 + $0x2388] sm:$0xff]  ;;  %v2437_v60 = vrot.slane %v2423_v49, %v9774_v51  ;;  %v1253_v42 = vld [vmem:[%s15952_s1 + $0x25b0] sm:$0xff] }
 0x245   :  { %5180 = vmatprep.mubr.f32.mxu1 %v2422_v61  ;;  %8504 = vmatprep.subr.mxu0 %v1166_v62  ;;  %v1136_v61 = vld [vmem:[%s15952_s1 + $0x2208] sm:$0xff]  ;;  %v33_v49 = vld [vmem:[%s15951_s0 + $0x90] sm:$0xff] }
 0x246   :  { %8539 = vmatprep.subr.mxu1 %v1198_v63  ;;  %5181 = vmatmul.mubr.f32.vlgmr.msra.gmra.mxu1 %v2420_v53  ;;  %v1153_v53 = vld [vmem:[%s15952_s1 + $0x2290] sm:$0xff]  ;;  %v1168_v62 = vld [vmem:[%s15952_s1 + $0x2308] sm:$0xff]  ;;  %v1151_v63 = vld [vmem:[%s15952_s1 + $0x2280] sm:$0xff] }
 0x247   :  { %8505 = vmatpush3.msra.mxu0 %v1150_v0  ;;  %8540 = vmatpush3.msra.mxu1 %v1182_v1  ;;  %v1183_v0 = vld [vmem:[%s15952_s1 + $0x2380] sm:$0xff]  ;;  %v2438_v1 = vcombine.high %v2430_v55, %v2430_v55 }
 0x248   :  { %8506 = vmatprep.subr.mxu0 %v1165_v2  ;;  %8541 = vmatprep.subr.mxu1 %v1197_v3  ;;  %v1135_v2 = vld [vmem:[%s15952_s1 + $0x2200] sm:$0xff] }
 0x249   :  { %8507 = vmatpush3.msra.mxu0 %v1149_v4  ;;  %8542 = vmatpush3.msra.mxu1 %v1181_v5  ;;  %v1167_v3 = vld [vmem:[%s15952_s1 + $0x2300] sm:$0xff]  ;;  %v2439_v4 = vcombine.high %v2437_v60, %v2437_v60  ;;  %v1230_v5 = vld [vmem:[%s15952_s1 + $0x24f8] sm:$0xff] }
 0x24a   :  { %8508 = vmatprep.subr.mxu0 %v1164_v6  ;;  %8543 = vmatprep.subr.mxu1 %v1196_v7  ;;  %v1262_v6 = vld [vmem:[%s15952_s1 + $0x25f8] sm:$0xff] }
 0x24b   :  { %8509 = vmatpush3.msra.mxu0 %v1148_v8  ;;  %8544 = vmatpush3.msra.mxu1 %v1180_v9  ;;  %v1214_v7 = vld [vmem:[%s15952_s1 + $0x2478] sm:$0xff]  ;;  %v1229_v9 = vld [vmem:[%s15952_s1 + $0x24f0] sm:$0xff] }
 0x24c   :  { %8510 = vmatprep.subr.mxu0 %v1163_v10  ;;  %8545 = vmatprep.subr.mxu1 %v1195_v11  ;;  %v1246_v8 = vld [vmem:[%s15952_s1 + $0x2578] sm:$0xff]  ;;  %v1261_v10 = vld [vmem:[%s15952_s1 + $0x25f0] sm:$0xff] }
 0x24d   :  { %8511 = vmatpush3.msra.mxu0 %v1147_v12  ;;  %8546 = vmatpush3.msra.mxu1 %v1179_v13  ;;  %v1213_v11 = vld [vmem:[%s15952_s1 + $0x2470] sm:$0xff]  ;;  %v1228_v13 = vld [vmem:[%s15952_s1 + $0x24e8] sm:$0xff] }
 0x24e   :  { %8512 = vmatprep.subr.mxu0 %v1162_v14  ;;  %8547 = vmatprep.subr.mxu1 %v1194_v15  ;;  %v1245_v12 = vld [vmem:[%s15952_s1 + $0x2570] sm:$0xff]  ;;  %v1260_v14 = vld [vmem:[%s15952_s1 + $0x25e8] sm:$0xff] }
 0x24f   :  { %8513 = vmatpush3.msra.mxu0 %v1146_v16  ;;  %8548 = vmatpush3.msra.mxu1 %v1178_v17  ;;  %v1212_v15 = vld [vmem:[%s15952_s1 + $0x2468] sm:$0xff]  ;;  %v1227_v17 = vld [vmem:[%s15952_s1 + $0x24e0] sm:$0xff] }
 0x250   :  { %8514 = vmatprep.subr.mxu0 %v1161_v18  ;;  %8549 = vmatprep.subr.mxu1 %v1193_v19  ;;  %v1244_v16 = vld [vmem:[%s15952_s1 + $0x2568] sm:$0xff]  ;;  %v1259_v18 = vld [vmem:[%s15952_s1 + $0x25e0] sm:$0xff] }
 0x251   :  { %8515 = vmatpush3.msra.mxu0 %v1145_v20  ;;  %8550 = vmatpush3.msra.mxu1 %v1177_v21  ;;  %v1211_v19 = vld [vmem:[%s15952_s1 + $0x2460] sm:$0xff]  ;;  %v1226_v21 = vld [vmem:[%s15952_s1 + $0x24d8] sm:$0xff] }
 0x252   :  { %8516 = vmatprep.subr.mxu0 %v1160_v22  ;;  %8551 = vmatprep.subr.mxu1 %v1192_v23  ;;  %v1243_v20 = vld [vmem:[%s15952_s1 + $0x2560] sm:$0xff]  ;;  %v1258_v22 = vld [vmem:[%s15952_s1 + $0x25d8] sm:$0xff] }
 0x253   :  { %8517 = vmatpush3.msra.mxu0 %v1144_v24  ;;  %8552 = vmatpush3.msra.mxu1 %v1176_v25  ;;  %v1210_v23 = vld [vmem:[%s15952_s1 + $0x2458] sm:$0xff]  ;;  %v1225_v25 = vld [vmem:[%s15952_s1 + $0x24d0] sm:$0xff] }
 0x254   :  { %8518 = vmatprep.subr.mxu0 %v1159_v26  ;;  %8553 = vmatprep.subr.mxu1 %v1191_v27  ;;  %v1242_v24 = vld [vmem:[%s15952_s1 + $0x2558] sm:$0xff]  ;;  %v1257_v26 = vld [vmem:[%s15952_s1 + $0x25d0] sm:$0xff] }
 0x255   :  { %8519 = vmatpush3.msra.mxu0 %v1143_v28  ;;  %8554 = vmatpush3.msra.mxu1 %v1175_v29  ;;  %v1209_v27 = vld [vmem:[%s15952_s1 + $0x2450] sm:$0xff]  ;;  %v1224_v29 = vld [vmem:[%s15952_s1 + $0x24c8] sm:$0xff] }
 0x256   :  { %8520 = vmatprep.subr.mxu0 %v1158_v30  ;;  %8555 = vmatprep.subr.mxu1 %v1190_v31  ;;  %v1241_v28 = vld [vmem:[%s15952_s1 + $0x2550] sm:$0xff]  ;;  %v1256_v30 = vld [vmem:[%s15952_s1 + $0x25c8] sm:$0xff] }
 0x257   :  { %8521 = vmatpush3.msra.mxu0 %v1142_v32  ;;  %8556 = vmatpush3.msra.mxu1 %v1174_v33  ;;  %v1208_v31 = vld [vmem:[%s15952_s1 + $0x2448] sm:$0xff]  ;;  %v1223_v33 = vld [vmem:[%s15952_s1 + $0x24c0] sm:$0xff] }
 0x258   :  { %8522 = vmatprep.subr.mxu0 %v1157_v34  ;;  %8557 = vmatprep.subr.mxu1 %v1189_v35  ;;  %v1240_v32 = vld [vmem:[%s15952_s1 + $0x2548] sm:$0xff]  ;;  %v1255_v34 = vld [vmem:[%s15952_s1 + $0x25c0] sm:$0xff] }
 0x259   :  { %8523 = vmatpush3.msra.mxu0 %v1141_v36  ;;  %8558 = vmatpush3.msra.mxu1 %v1173_v37  ;;  %v1207_v35 = vld [vmem:[%s15952_s1 + $0x2440] sm:$0xff]  ;;  %v1222_v37 = vld [vmem:[%s15952_s1 + $0x24b8] sm:$0xff] }
 0x25a   :  { %8524 = vmatprep.subr.mxu0 %v1156_v38  ;;  %8559 = vmatprep.subr.mxu1 %v1188_v39  ;;  %v1239_v36 = vld [vmem:[%s15952_s1 + $0x2540] sm:$0xff]  ;;  %v1254_v38 = vld [vmem:[%s15952_s1 + $0x25b8] sm:$0xff] }
 0x25b   :  { %8525 = vmatpush3.msra.mxu0 %v1140_v40  ;;  %8560 = vmatpush3.msra.mxu1 %v1172_v41  ;;  %v1206_v39 = vld [vmem:[%s15952_s1 + $0x2438] sm:$0xff]  ;;  %v1221_v41 = vld [vmem:[%s15952_s1 + $0x24b0] sm:$0xff] }
 0x25c   :  { %8526 = vmatprep.subr.mxu0 %v1155_v43  ;;  %8561 = vmatprep.subr.mxu1 %v1187_v44  ;;  %v1238_v40 = vld [vmem:[%s15952_s1 + $0x2538] sm:$0xff]  ;;  %v1205_v43 = vld [vmem:[%s15952_s1 + $0x2430] sm:$0xff] }
 0x25d   :  { %8527 = vmatpush3.msra.mxu0 %v1139_v45  ;;  %8562 = vmatpush3.msra.mxu1 %v1171_v46  ;;  %v1237_v44 = vld [vmem:[%s15952_s1 + $0x2530] sm:$0xff]  ;;  %v1220_v45 = vld [vmem:[%s15952_s1 + $0x24a8] sm:$0xff] }
 0x25e   :  { %8528 = vmatprep.subr.mxu0 %v1154_v47  ;;  %8563 = vmatprep.subr.mxu1 %v1186_v48  ;;  %v1252_v46 = vld [vmem:[%s15952_s1 + $0x25a8] sm:$0xff] }
 0x25f   :  { %8529 = vmatpush3.msra.mxu0 %v1138_v50  ;;  %8564 = vmatpush3.msra.mxu1 %v1170_v52  ;;  %v1204_v47 = vld [vmem:[%s15952_s1 + $0x2428] sm:$0xff]  ;;  %v1219_v50 = vld [vmem:[%s15952_s1 + $0x24a0] sm:$0xff] }
 0x260   :  { %8530 = vmatprep.subr.mxu0 %v1153_v53  ;;  %8565 = vmatprep.subr.mxu1 %v1185_v54  ;;  %v1236_v48 = vld [vmem:[%s15952_s1 + $0x2528] sm:$0xff]  ;;  %v1251_v52 = vld [vmem:[%s15952_s1 + $0x25a0] sm:$0xff] }
 0x261   :  { %8531 = vmatpush3.msra.mxu0 %v1137_v56  ;;  %8566 = vmatpush3.msra.mxu1 %v1169_v57  ;;  %v1203_v53 = vld [vmem:[%s15952_s1 + $0x2420] sm:$0xff]  ;;  %v1250_v56 = vld [vmem:[%s15952_s1 + $0x2598] sm:$0xff]  ;;  %v2440_v57 = vcombine.high %v33_v49, %v33_v49 }
 0x262   :  { %8532 = vmatprep.subr.mxu0 %v1152_v58  ;;  %8567 = vmatprep.subr.mxu1 %v1184_v59  ;;  %v1235_v54 = vld [vmem:[%s15952_s1 + $0x2520] sm:$0xff]  ;;  %v1202_v58 = vld [vmem:[%s15952_s1 + $0x2418] sm:$0xff] }
 0x263   :  { %8533 = vmatpush3.msra.mxu0 %v1136_v61  ;;  %8568 = vmatpush3.msra.mxu1 %v1168_v62  ;;  %v1234_v59 = vld [vmem:[%s15952_s1 + $0x2518] sm:$0xff]  ;;  %v1249_v61 = vld [vmem:[%s15952_s1 + $0x2590] sm:$0xff]  ;;  %v2447_v62 = vrot.slane %v33_v49, %v9774_v51 }
 0x264   :  { %8534 = vmatprep.subr.mxu0 %v1151_v63  ;;  %8569 = vmatprep.subr.mxu1 %v1183_v0  ;;  %v1201_v63 = vld [vmem:[%s15952_s1 + $0x2410] sm:$0xff] }
 0x265   :  { %8535 = vmatpush3.msra.mxu0 %v1135_v2  ;;  %5250 = vmatprep.mubr.f32.mxu0 %v2438_v1  ;;  %v1233_v0 = vld [vmem:[%s15952_s1 + $0x2510] sm:$0xff]  ;;  %v1216_v1 = vld [vmem:[%s15952_s1 + $0x2488] sm:$0xff] }
 0x266   :  { %8570 = vmatpush3.msra.mxu1 %v1167_v3  ;;  %5251 = vmatmul.mubr.f32.vlgmr.msra.gmra.mxu0 %v2430_v55  ;;  %v1218_v55 = vld [vmem:[%s15952_s1 + $0x2498] sm:$0xff]  ;;  %v1248_v2 = vld [vmem:[%s15952_s1 + $0x2588] sm:$0xff]  ;;  %v2454_v3 = vrot.slane %v2440_v57, %v9774_v51  ;;  %v1317_v49 = vld [vmem:[%s15952_s1 + $0x27b0] sm:$0xff] }
 0x267   :  { %5320 = vmatprep.mubr.f32.mxu1 %v2439_v4  ;;  %8574 = vmatprep.subr.mxu0 %v1230_v5  ;;  %v1200_v4 = vld [vmem:[%s15952_s1 + $0x2408] sm:$0xff]  ;;  %v34_v57 = vld [vmem:[%s15951_s0 + $0x98] sm:$0xff] }
 0x268   :  { %8609 = vmatprep.subr.mxu1 %v1262_v6  ;;  %5321 = vmatmul.mubr.f32.vlgmr.msra.gmra.mxu1 %v2437_v60  ;;  %v1217_v60 = vld [vmem:[%s15952_s1 + $0x2490] sm:$0xff]  ;;  %v1232_v5 = vld [vmem:[%s15952_s1 + $0x2508] sm:$0xff]  ;;  %v1215_v6 = vld [vmem:[%s15952_s1 + $0x2480] sm:$0xff] }
 0x269   :  { %8575 = vmatpush3.msra.mxu0 %v1214_v7  ;;  %8610 = vmatpush3.msra.mxu1 %v1246_v8  ;;  %v1247_v7 = vld [vmem:[%s15952_s1 + $0x2580] sm:$0xff]  ;;  %v2455_v8 = vcombine.high %v2447_v62, %v2447_v62 }
 0x26a   :  { %8576 = vmatprep.subr.mxu0 %v1229_v9  ;;  %8611 = vmatprep.subr.mxu1 %v1261_v10  ;;  %v1199_v9 = vld [vmem:[%s15952_s1 + $0x2400] sm:$0xff] }
 0x26b   :  { %8577 = vmatpush3.msra.mxu0 %v1213_v11  ;;  %8612 = vmatpush3.msra.mxu1 %v1245_v12  ;;  %v1231_v10 = vld [vmem:[%s15952_s1 + $0x2500] sm:$0xff]  ;;  %v2456_v11 = vcombine.high %v2454_v3, %v2454_v3  ;;  %v1294_v12 = vld [vmem:[%s15952_s1 + $0x26f8] sm:$0xff] }
 0x26c   :  { %8578 = vmatprep.subr.mxu0 %v1228_v13  ;;  %8613 = vmatprep.subr.mxu1 %v1260_v14  ;;  %v1326_v13 = vld [vmem:[%s15952_s1 + $0x27f8] sm:$0xff] }
 0x26d   :  { %8579 = vmatpush3.msra.mxu0 %v1212_v15  ;;  %8614 = vmatpush3.msra.mxu1 %v1244_v16  ;;  %v1278_v14 = vld [vmem:[%s15952_s1 + $0x2678] sm:$0xff]  ;;  %v1293_v16 = vld [vmem:[%s15952_s1 + $0x26f0] sm:$0xff] }
 0x26e   :  { %8580 = vmatprep.subr.mxu0 %v1227_v17  ;;  %8615 = vmatprep.subr.mxu1 %v1259_v18  ;;  %v1310_v15 = vld [vmem:[%s15952_s1 + $0x2778] sm:$0xff]  ;;  %v1325_v17 = vld [vmem:[%s15952_s1 + $0x27f0] sm:$0xff] }
 0x26f   :  { %8581 = vmatpush3.msra.mxu0 %v1211_v19  ;;  %8616 = vmatpush3.msra.mxu1 %v1243_v20  ;;  %v1277_v18 = vld [vmem:[%s15952_s1 + $0x2670] sm:$0xff]  ;;  %v1292_v20 = vld [vmem:[%s15952_s1 + $0x26e8] sm:$0xff] }
 0x270   :  { %8582 = vmatprep.subr.mxu0 %v1226_v21  ;;  %8617 = vmatprep.subr.mxu1 %v1258_v22  ;;  %v1309_v19 = vld [vmem:[%s15952_s1 + $0x2770] sm:$0xff]  ;;  %v1324_v21 = vld [vmem:[%s15952_s1 + $0x27e8] sm:$0xff] }
 0x271   :  { %8583 = vmatpush3.msra.mxu0 %v1210_v23  ;;  %8618 = vmatpush3.msra.mxu1 %v1242_v24  ;;  %v1276_v22 = vld [vmem:[%s15952_s1 + $0x2668] sm:$0xff]  ;;  %v1291_v24 = vld [vmem:[%s15952_s1 + $0x26e0] sm:$0xff] }
 0x272   :  { %8584 = vmatprep.subr.mxu0 %v1225_v25  ;;  %8619 = vmatprep.subr.mxu1 %v1257_v26  ;;  %v1308_v23 = vld [vmem:[%s15952_s1 + $0x2768] sm:$0xff]  ;;  %v1323_v25 = vld [vmem:[%s15952_s1 + $0x27e0] sm:$0xff] }
 0x273   :  { %8585 = vmatpush3.msra.mxu0 %v1209_v27  ;;  %8620 = vmatpush3.msra.mxu1 %v1241_v28  ;;  %v1275_v26 = vld [vmem:[%s15952_s1 + $0x2660] sm:$0xff]  ;;  %v1290_v28 = vld [vmem:[%s15952_s1 + $0x26d8] sm:$0xff] }
 0x274   :  { %8586 = vmatprep.subr.mxu0 %v1224_v29  ;;  %8621 = vmatprep.subr.mxu1 %v1256_v30  ;;  %v1307_v27 = vld [vmem:[%s15952_s1 + $0x2760] sm:$0xff]  ;;  %v1322_v29 = vld [vmem:[%s15952_s1 + $0x27d8] sm:$0xff] }
 0x275   :  { %8587 = vmatpush3.msra.mxu0 %v1208_v31  ;;  %8622 = vmatpush3.msra.mxu1 %v1240_v32  ;;  %v1274_v30 = vld [vmem:[%s15952_s1 + $0x2658] sm:$0xff]  ;;  %v1289_v32 = vld [vmem:[%s15952_s1 + $0x26d0] sm:$0xff] }
 0x276   :  { %8588 = vmatprep.subr.mxu0 %v1223_v33  ;;  %8623 = vmatprep.subr.mxu1 %v1255_v34  ;;  %v1306_v31 = vld [vmem:[%s15952_s1 + $0x2758] sm:$0xff]  ;;  %v1321_v33 = vld [vmem:[%s15952_s1 + $0x27d0] sm:$0xff] }
 0x277   :  { %8589 = vmatpush3.msra.mxu0 %v1207_v35  ;;  %8624 = vmatpush3.msra.mxu1 %v1239_v36  ;;  %v1273_v34 = vld [vmem:[%s15952_s1 + $0x2650] sm:$0xff]  ;;  %v1288_v36 = vld [vmem:[%s15952_s1 + $0x26c8] sm:$0xff] }
 0x278   :  { %8590 = vmatprep.subr.mxu0 %v1222_v37  ;;  %8625 = vmatprep.subr.mxu1 %v1254_v38  ;;  %v1305_v35 = vld [vmem:[%s15952_s1 + $0x2750] sm:$0xff]  ;;  %v1320_v37 = vld [vmem:[%s15952_s1 + $0x27c8] sm:$0xff] }
 0x279   :  { %8591 = vmatpush3.msra.mxu0 %v1206_v39  ;;  %8626 = vmatpush3.msra.mxu1 %v1238_v40  ;;  %v1272_v38 = vld [vmem:[%s15952_s1 + $0x2648] sm:$0xff]  ;;  %v1287_v40 = vld [vmem:[%s15952_s1 + $0x26c0] sm:$0xff] }
 0x27a   :  { %8592 = vmatprep.subr.mxu0 %v1221_v41  ;;  %8627 = vmatprep.subr.mxu1 %v1253_v42  ;;  %v1304_v39 = vld [vmem:[%s15952_s1 + $0x2748] sm:$0xff]  ;;  %v1319_v41 = vld [vmem:[%s15952_s1 + $0x27c0] sm:$0xff] }
 0x27b   :  { %8593 = vmatpush3.msra.mxu0 %v1205_v43  ;;  %8628 = vmatpush3.msra.mxu1 %v1237_v44  ;;  %v1271_v42 = vld [vmem:[%s15952_s1 + $0x2640] sm:$0xff]  ;;  %v1286_v44 = vld [vmem:[%s15952_s1 + $0x26b8] sm:$0xff] }
 0x27c   :  { %8594 = vmatprep.subr.mxu0 %v1220_v45  ;;  %8629 = vmatprep.subr.mxu1 %v1252_v46  ;;  %v1303_v43 = vld [vmem:[%s15952_s1 + $0x2740] sm:$0xff]  ;;  %v1318_v45 = vld [vmem:[%s15952_s1 + $0x27b8] sm:$0xff] }
 0x27d   :  { %8595 = vmatpush3.msra.mxu0 %v1204_v47  ;;  %8630 = vmatpush3.msra.mxu1 %v1236_v48  ;;  %v1270_v46 = vld [vmem:[%s15952_s1 + $0x2638] sm:$0xff]  ;;  %v1285_v48 = vld [vmem:[%s15952_s1 + $0x26b0] sm:$0xff] }
 0x27e   :  { %8596 = vmatprep.subr.mxu0 %v1219_v50  ;;  %8631 = vmatprep.subr.mxu1 %v1251_v52  ;;  %v1302_v47 = vld [vmem:[%s15952_s1 + $0x2738] sm:$0xff]  ;;  %v1269_v50 = vld [vmem:[%s15952_s1 + $0x2630] sm:$0xff] }
 0x27f   :  { %8597 = vmatpush3.msra.mxu0 %v1203_v53  ;;  %8632 = vmatpush3.msra.mxu1 %v1235_v54  ;;  %v1301_v52 = vld [vmem:[%s15952_s1 + $0x2730] sm:$0xff]  ;;  %v1284_v53 = vld [vmem:[%s15952_s1 + $0x26a8] sm:$0xff] }
 0x280   :  { %8598 = vmatprep.subr.mxu0 %v1218_v55  ;;  %8633 = vmatprep.subr.mxu1 %v1250_v56  ;;  %v1316_v54 = vld [vmem:[%s15952_s1 + $0x27a8] sm:$0xff] }
 0x281   :  { %8599 = vmatpush3.msra.mxu0 %v1202_v58  ;;  %8634 = vmatpush3.msra.mxu1 %v1234_v59  ;;  %v1268_v55 = vld [vmem:[%s15952_s1 + $0x2628] sm:$0xff]  ;;  %v1283_v58 = vld [vmem:[%s15952_s1 + $0x26a0] sm:$0xff] }
 0x282   :  { %8600 = vmatprep.subr.mxu0 %v1217_v60  ;;  %8635 = vmatprep.subr.mxu1 %v1249_v61  ;;  %v1300_v56 = vld [vmem:[%s15952_s1 + $0x2728] sm:$0xff]  ;;  %v1315_v59 = vld [vmem:[%s15952_s1 + $0x27a0] sm:$0xff] }
 0x283   :  { %8601 = vmatpush3.msra.mxu0 %v1201_v63  ;;  %8636 = vmatpush3.msra.mxu1 %v1233_v0  ;;  %v1267_v60 = vld [vmem:[%s15952_s1 + $0x2620] sm:$0xff]  ;;  %v1314_v63 = vld [vmem:[%s15952_s1 + $0x2798] sm:$0xff]  ;;  %v2457_v0 = vcombine.high %v34_v57, %v34_v57 }
 0x284   :  { %8602 = vmatprep.subr.mxu0 %v1216_v1  ;;  %8637 = vmatprep.subr.mxu1 %v1248_v2  ;;  %v1299_v61 = vld [vmem:[%s15952_s1 + $0x2720] sm:$0xff]  ;;  %v1266_v1 = vld [vmem:[%s15952_s1 + $0x2618] sm:$0xff] }
 0x285   :  { %8603 = vmatpush3.msra.mxu0 %v1200_v4  ;;  %8638 = vmatpush3.msra.mxu1 %v1232_v5  ;;  %v1298_v2 = vld [vmem:[%s15952_s1 + $0x2718] sm:$0xff]  ;;  %v1313_v4 = vld [vmem:[%s15952_s1 + $0x2790] sm:$0xff]  ;;  %v2464_v5 = vrot.slane %v34_v57, %v9774_v51 }
 0x286   :  { %8604 = vmatprep.subr.mxu0 %v1215_v6  ;;  %8639 = vmatprep.subr.mxu1 %v1247_v7  ;;  %v1265_v6 = vld [vmem:[%s15952_s1 + $0x2610] sm:$0xff] }
 0x287   :  { %8605 = vmatpush3.msra.mxu0 %v1199_v9  ;;  %5390 = vmatprep.mubr.f32.mxu0 %v2455_v8  ;;  %v1297_v7 = vld [vmem:[%s15952_s1 + $0x2710] sm:$0xff]  ;;  %v1280_v8 = vld [vmem:[%s15952_s1 + $0x2688] sm:$0xff] }
 0x288   :  { %8640 = vmatpush3.msra.mxu1 %v1231_v10  ;;  %5391 = vmatmul.mubr.f32.vlgmr.msra.gmra.mxu0 %v2447_v62  ;;  %v1282_v62 = vld [vmem:[%s15952_s1 + $0x2698] sm:$0xff]  ;;  %v1312_v9 = vld [vmem:[%s15952_s1 + $0x2788] sm:$0xff]  ;;  %v2471_v10 = vrot.slane %v2457_v0, %v9774_v51  ;;  %v1381_v57 = vld [vmem:[%s15952_s1 + $0x29b0] sm:$0xff] }
 0x289   :  { %5460 = vmatprep.mubr.f32.mxu1 %v2456_v11  ;;  %8644 = vmatprep.subr.mxu0 %v1294_v12  ;;  %v1264_v11 = vld [vmem:[%s15952_s1 + $0x2608] sm:$0xff]  ;;  %v35_v0 = vld [vmem:[%s15951_s0 + $0xa0] sm:$0xff] }
 0x28a   :  { %8679 = vmatprep.subr.mxu1 %v1326_v13  ;;  %5461 = vmatmul.mubr.f32.vlgmr.msra.gmra.mxu1 %v2454_v3  ;;  %v1281_v3 = vld [vmem:[%s15952_s1 + $0x2690] sm:$0xff]  ;;  %v1296_v12 = vld [vmem:[%s15952_s1 + $0x2708] sm:$0xff]  ;;  %v1279_v13 = vld [vmem:[%s15952_s1 + $0x2680] sm:$0xff] }
 0x28b   :  { %8645 = vmatpush3.msra.mxu0 %v1278_v14  ;;  %8680 = vmatpush3.msra.mxu1 %v1310_v15  ;;  %v1311_v14 = vld [vmem:[%s15952_s1 + $0x2780] sm:$0xff]  ;;  %v2472_v15 = vcombine.high %v2464_v5, %v2464_v5 }
 0x28c   :  { %8646 = vmatprep.subr.mxu0 %v1293_v16  ;;  %8681 = vmatprep.subr.mxu1 %v1325_v17  ;;  %v1263_v16 = vld [vmem:[%s15952_s1 + $0x2600] sm:$0xff] }
 0x28d   :  { %8647 = vmatpush3.msra.mxu0 %v1277_v18  ;;  %8682 = vmatpush3.msra.mxu1 %v1309_v19  ;;  %v1295_v17 = vld [vmem:[%s15952_s1 + $0x2700] sm:$0xff]  ;;  %v2473_v18 = vcombine.high %v2471_v10, %v2471_v10  ;;  %v1358_v19 = vld [vmem:[%s15952_s1 + $0x28f8] sm:$0xff] }
 0x28e   :  { %8648 = vmatprep.subr.mxu0 %v1292_v20  ;;  %8683 = vmatprep.subr.mxu1 %v1324_v21  ;;  %v1390_v20 = vld [vmem:[%s15952_s1 + $0x29f8] sm:$0xff] }
 0x28f   :  { %8649 = vmatpush3.msra.mxu0 %v1276_v22  ;;  %8684 = vmatpush3.msra.mxu1 %v1308_v23  ;;  %v1342_v21 = vld [vmem:[%s15952_s1 + $0x2878] sm:$0xff]  ;;  %v1357_v23 = vld [vmem:[%s15952_s1 + $0x28f0] sm:$0xff] }
 0x290   :  { %8650 = vmatprep.subr.mxu0 %v1291_v24  ;;  %8685 = vmatprep.subr.mxu1 %v1323_v25  ;;  %v1374_v22 = vld [vmem:[%s15952_s1 + $0x2978] sm:$0xff]  ;;  %v1389_v24 = vld [vmem:[%s15952_s1 + $0x29f0] sm:$0xff] }
 0x291   :  { %8651 = vmatpush3.msra.mxu0 %v1275_v26  ;;  %8686 = vmatpush3.msra.mxu1 %v1307_v27  ;;  %v1341_v25 = vld [vmem:[%s15952_s1 + $0x2870] sm:$0xff]  ;;  %v1356_v27 = vld [vmem:[%s15952_s1 + $0x28e8] sm:$0xff] }
 0x292   :  { %8652 = vmatprep.subr.mxu0 %v1290_v28  ;;  %8687 = vmatprep.subr.mxu1 %v1322_v29  ;;  %v1373_v26 = vld [vmem:[%s15952_s1 + $0x2970] sm:$0xff]  ;;  %v1388_v28 = vld [vmem:[%s15952_s1 + $0x29e8] sm:$0xff] }
 0x293   :  { %8653 = vmatpush3.msra.mxu0 %v1274_v30  ;;  %8688 = vmatpush3.msra.mxu1 %v1306_v31  ;;  %v1340_v29 = vld [vmem:[%s15952_s1 + $0x2868] sm:$0xff]  ;;  %v1355_v31 = vld [vmem:[%s15952_s1 + $0x28e0] sm:$0xff] }
 0x294   :  { %8654 = vmatprep.subr.mxu0 %v1289_v32  ;;  %8689 = vmatprep.subr.mxu1 %v1321_v33  ;;  %v1372_v30 = vld [vmem:[%s15952_s1 + $0x2968] sm:$0xff]  ;;  %v1387_v32 = vld [vmem:[%s15952_s1 + $0x29e0] sm:$0xff] }
 0x295   :  { %8655 = vmatpush3.msra.mxu0 %v1273_v34  ;;  %8690 = vmatpush3.msra.mxu1 %v1305_v35  ;;  %v1339_v33 = vld [vmem:[%s15952_s1 + $0x2860] sm:$0xff]  ;;  %v1354_v35 = vld [vmem:[%s15952_s1 + $0x28d8] sm:$0xff] }
 0x296   :  { %8656 = vmatprep.subr.mxu0 %v1288_v36  ;;  %8691 = vmatprep.subr.mxu1 %v1320_v37  ;;  %v1371_v34 = vld [vmem:[%s15952_s1 + $0x2960] sm:$0xff]  ;;  %v1386_v36 = vld [vmem:[%s15952_s1 + $0x29d8] sm:$0xff] }
 0x297   :  { %8657 = vmatpush3.msra.mxu0 %v1272_v38  ;;  %8692 = vmatpush3.msra.mxu1 %v1304_v39  ;;  %v1338_v37 = vld [vmem:[%s15952_s1 + $0x2858] sm:$0xff]  ;;  %v1353_v39 = vld [vmem:[%s15952_s1 + $0x28d0] sm:$0xff] }
 0x298   :  { %8658 = vmatprep.subr.mxu0 %v1287_v40  ;;  %8693 = vmatprep.subr.mxu1 %v1319_v41  ;;  %v1370_v38 = vld [vmem:[%s15952_s1 + $0x2958] sm:$0xff]  ;;  %v1385_v40 = vld [vmem:[%s15952_s1 + $0x29d0] sm:$0xff] }
 0x299   :  { %8659 = vmatpush3.msra.mxu0 %v1271_v42  ;;  %8694 = vmatpush3.msra.mxu1 %v1303_v43  ;;  %v1337_v41 = vld [vmem:[%s15952_s1 + $0x2850] sm:$0xff]  ;;  %v1352_v43 = vld [vmem:[%s15952_s1 + $0x28c8] sm:$0xff] }
 0x29a   :  { %8660 = vmatprep.subr.mxu0 %v1286_v44  ;;  %8695 = vmatprep.subr.mxu1 %v1318_v45  ;;  %v1369_v42 = vld [vmem:[%s15952_s1 + $0x2950] sm:$0xff]  ;;  %v1384_v44 = vld [vmem:[%s15952_s1 + $0x29c8] sm:$0xff] }
 0x29b   :  { %8661 = vmatpush3.msra.mxu0 %v1270_v46  ;;  %8696 = vmatpush3.msra.mxu1 %v1302_v47  ;;  %v1336_v45 = vld [vmem:[%s15952_s1 + $0x2848] sm:$0xff]  ;;  %v1351_v47 = vld [vmem:[%s15952_s1 + $0x28c0] sm:$0xff] }
 0x29c   :  { %8662 = vmatprep.subr.mxu0 %v1285_v48  ;;  %8697 = vmatprep.subr.mxu1 %v1317_v49  ;;  %v1368_v46 = vld [vmem:[%s15952_s1 + $0x2948] sm:$0xff]  ;;  %v1383_v48 = vld [vmem:[%s15952_s1 + $0x29c0] sm:$0xff] }
 0x29d   :  { %8663 = vmatpush3.msra.mxu0 %v1269_v50  ;;  %8698 = vmatpush3.msra.mxu1 %v1301_v52  ;;  %v1335_v49 = vld [vmem:[%s15952_s1 + $0x2840] sm:$0xff]  ;;  %v1350_v52 = vld [vmem:[%s15952_s1 + $0x28b8] sm:$0xff] }
 0x29e   :  { %8664 = vmatprep.subr.mxu0 %v1284_v53  ;;  %8699 = vmatprep.subr.mxu1 %v1316_v54  ;;  %v1367_v50 = vld [vmem:[%s15952_s1 + $0x2940] sm:$0xff]  ;;  %v1382_v53 = vld [vmem:[%s15952_s1 + $0x29b8] sm:$0xff] }
 0x29f   :  { %8665 = vmatpush3.msra.mxu0 %v1268_v55  ;;  %8700 = vmatpush3.msra.mxu1 %v1300_v56  ;;  %v1334_v54 = vld [vmem:[%s15952_s1 + $0x2838] sm:$0xff]  ;;  %v1349_v56 = vld [vmem:[%s15952_s1 + $0x28b0] sm:$0xff] }
 0x2a0   :  { %8666 = vmatprep.subr.mxu0 %v1283_v58  ;;  %8701 = vmatprep.subr.mxu1 %v1315_v59  ;;  %v1366_v55 = vld [vmem:[%s15952_s1 + $0x2938] sm:$0xff]  ;;  %v1333_v58 = vld [vmem:[%s15952_s1 + $0x2830] sm:$0xff] }
 0x2a1   :  { %8667 = vmatpush3.msra.mxu0 %v1267_v60  ;;  %8702 = vmatpush3.msra.mxu1 %v1299_v61  ;;  %v1365_v59 = vld [vmem:[%s15952_s1 + $0x2930] sm:$0xff]  ;;  %v1348_v60 = vld [vmem:[%s15952_s1 + $0x28a8] sm:$0xff] }
 0x2a2   :  { %8668 = vmatprep.subr.mxu0 %v1282_v62  ;;  %8703 = vmatprep.subr.mxu1 %v1314_v63  ;;  %v1380_v61 = vld [vmem:[%s15952_s1 + $0x29a8] sm:$0xff] }
 0x2a3   :  { %8669 = vmatpush3.msra.mxu0 %v1266_v1  ;;  %8704 = vmatpush3.msra.mxu1 %v1298_v2  ;;  %v1332_v62 = vld [vmem:[%s15952_s1 + $0x2828] sm:$0xff]  ;;  %v1347_v1 = vld [vmem:[%s15952_s1 + $0x28a0] sm:$0xff] }
 0x2a4   :  { %8670 = vmatprep.subr.mxu0 %v1281_v3  ;;  %8705 = vmatprep.subr.mxu1 %v1313_v4  ;;  %v1364_v63 = vld [vmem:[%s15952_s1 + $0x2928] sm:$0xff]  ;;  %v1379_v2 = vld [vmem:[%s15952_s1 + $0x29a0] sm:$0xff] }
 0x2a5   :  { %8671 = vmatpush3.msra.mxu0 %v1265_v6  ;;  %8706 = vmatpush3.msra.mxu1 %v1297_v7  ;;  %v1331_v3 = vld [vmem:[%s15952_s1 + $0x2820] sm:$0xff]  ;;  %v1378_v6 = vld [vmem:[%s15952_s1 + $0x2998] sm:$0xff]  ;;  %v2474_v7 = vcombine.high %v35_v0, %v35_v0 }
 0x2a6   :  { %8672 = vmatprep.subr.mxu0 %v1280_v8  ;;  %8707 = vmatprep.subr.mxu1 %v1312_v9  ;;  %v1363_v4 = vld [vmem:[%s15952_s1 + $0x2920] sm:$0xff]  ;;  %v1330_v8 = vld [vmem:[%s15952_s1 + $0x2818] sm:$0xff] }
 0x2a7   :  { %8673 = vmatpush3.msra.mxu0 %v1264_v11  ;;  %8708 = vmatpush3.msra.mxu1 %v1296_v12  ;;  %v1362_v9 = vld [vmem:[%s15952_s1 + $0x2918] sm:$0xff]  ;;  %v1377_v11 = vld [vmem:[%s15952_s1 + $0x2990] sm:$0xff]  ;;  %v2481_v12 = vrot.slane %v35_v0, %v9774_v51 }
 0x2a8   :  { %8674 = vmatprep.subr.mxu0 %v1279_v13  ;;  %8709 = vmatprep.subr.mxu1 %v1311_v14  ;;  %v1329_v13 = vld [vmem:[%s15952_s1 + $0x2810] sm:$0xff] }
 0x2a9   :  { %8675 = vmatpush3.msra.mxu0 %v1263_v16  ;;  %5530 = vmatprep.mubr.f32.mxu0 %v2472_v15  ;;  %v1361_v14 = vld [vmem:[%s15952_s1 + $0x2910] sm:$0xff]  ;;  %v1344_v15 = vld [vmem:[%s15952_s1 + $0x2888] sm:$0xff] }
 0x2aa   :  { %8710 = vmatpush3.msra.mxu1 %v1295_v17  ;;  %5531 = vmatmul.mubr.f32.vlgmr.msra.gmra.mxu0 %v2464_v5  ;;  %v1346_v5 = vld [vmem:[%s15952_s1 + $0x2898] sm:$0xff]  ;;  %v1376_v16 = vld [vmem:[%s15952_s1 + $0x2988] sm:$0xff]  ;;  %v2488_v17 = vrot.slane %v2474_v7, %v9774_v51  ;;  %v1445_v0 = vld [vmem:[%s15952_s1 + $0x2bb0] sm:$0xff] }
 0x2ab   :  { %5600 = vmatprep.mubr.f32.mxu1 %v2473_v18  ;;  %8714 = vmatprep.subr.mxu0 %v1358_v19  ;;  %v1328_v18 = vld [vmem:[%s15952_s1 + $0x2808] sm:$0xff] }
 0x2ac   :  { %8749 = vmatprep.subr.mxu1 %v1390_v20  ;;  %5601 = vmatmul.mubr.f32.vlgmr.msra.gmra.mxu1 %v2471_v10  ;;  %v1345_v10 = vld [vmem:[%s15952_s1 + $0x2890] sm:$0xff]  ;;  %v1360_v19 = vld [vmem:[%s15952_s1 + $0x2908] sm:$0xff]  ;;  %v1343_v20 = vld [vmem:[%s15952_s1 + $0x2880] sm:$0xff] }
 0x2ad   :  { %8715 = vmatpush3.msra.mxu0 %v1342_v21  ;;  %8750 = vmatpush3.msra.mxu1 %v1374_v22  ;;  %v1375_v21 = vld [vmem:[%s15952_s1 + $0x2980] sm:$0xff]  ;;  %v2489_v22 = vcombine.high %v2481_v12, %v2481_v12  ;;  %v36_v7 = vld [vmem:[%s15951_s0 + $0xa8] sm:$0xff] }
 0x2ae   :  { %8716 = vmatprep.subr.mxu0 %v1357_v23  ;;  %8751 = vmatprep.subr.mxu1 %v1389_v24  ;;  %v1327_v23 = vld [vmem:[%s15952_s1 + $0x2800] sm:$0xff] }
 0x2af   :  { %8717 = vmatpush3.msra.mxu0 %v1341_v25  ;;  %8752 = vmatpush3.msra.mxu1 %v1373_v26  ;;  %v1359_v24 = vld [vmem:[%s15952_s1 + $0x2900] sm:$0xff]  ;;  %v2490_v25 = vcombine.high %v2488_v17, %v2488_v17  ;;  %v1422_v26 = vld [vmem:[%s15952_s1 + $0x2af8] sm:$0xff] }
 0x2b0   :  { %8718 = vmatprep.subr.mxu0 %v1356_v27  ;;  %8753 = vmatprep.subr.mxu1 %v1388_v28  ;;  %v1454_v27 = vld [vmem:[%s15952_s1 + $0x2bf8] sm:$0xff] }
 0x2b1   :  { %8719 = vmatpush3.msra.mxu0 %v1340_v29  ;;  %8754 = vmatpush3.msra.mxu1 %v1372_v30  ;;  %v1406_v28 = vld [vmem:[%s15952_s1 + $0x2a78] sm:$0xff]  ;;  %v1421_v30 = vld [vmem:[%s15952_s1 + $0x2af0] sm:$0xff] }
 0x2b2   :  { %8720 = vmatprep.subr.mxu0 %v1355_v31  ;;  %8755 = vmatprep.subr.mxu1 %v1387_v32  ;;  %v1438_v29 = vld [vmem:[%s15952_s1 + $0x2b78] sm:$0xff]  ;;  %v1453_v31 = vld [vmem:[%s15952_s1 + $0x2bf0] sm:$0xff] }
 0x2b3   :  { %8721 = vmatpush3.msra.mxu0 %v1339_v33  ;;  %8756 = vmatpush3.msra.mxu1 %v1371_v34  ;;  %v1405_v32 = vld [vmem:[%s15952_s1 + $0x2a70] sm:$0xff]  ;;  %v1420_v34 = vld [vmem:[%s15952_s1 + $0x2ae8] sm:$0xff] }
 0x2b4   :  { %8722 = vmatprep.subr.mxu0 %v1354_v35  ;;  %8757 = vmatprep.subr.mxu1 %v1386_v36  ;;  %v1437_v33 = vld [vmem:[%s15952_s1 + $0x2b70] sm:$0xff]  ;;  %v1452_v35 = vld [vmem:[%s15952_s1 + $0x2be8] sm:$0xff] }
 0x2b5   :  { %8723 = vmatpush3.msra.mxu0 %v1338_v37  ;;  %8758 = vmatpush3.msra.mxu1 %v1370_v38  ;;  %v1404_v36 = vld [vmem:[%s15952_s1 + $0x2a68] sm:$0xff]  ;;  %v1419_v38 = vld [vmem:[%s15952_s1 + $0x2ae0] sm:$0xff] }
 0x2b6   :  { %8724 = vmatprep.subr.mxu0 %v1353_v39  ;;  %8759 = vmatprep.subr.mxu1 %v1385_v40  ;;  %v1436_v37 = vld [vmem:[%s15952_s1 + $0x2b68] sm:$0xff]  ;;  %v1451_v39 = vld [vmem:[%s15952_s1 + $0x2be0] sm:$0xff] }
 0x2b7   :  { %8725 = vmatpush3.msra.mxu0 %v1337_v41  ;;  %8760 = vmatpush3.msra.mxu1 %v1369_v42  ;;  %v1403_v40 = vld [vmem:[%s15952_s1 + $0x2a60] sm:$0xff]  ;;  %v1418_v42 = vld [vmem:[%s15952_s1 + $0x2ad8] sm:$0xff] }
 0x2b8   :  { %8726 = vmatprep.subr.mxu0 %v1352_v43  ;;  %8761 = vmatprep.subr.mxu1 %v1384_v44  ;;  %v1435_v41 = vld [vmem:[%s15952_s1 + $0x2b60] sm:$0xff]  ;;  %v1450_v43 = vld [vmem:[%s15952_s1 + $0x2bd8] sm:$0xff] }
 0x2b9   :  { %8727 = vmatpush3.msra.mxu0 %v1336_v45  ;;  %8762 = vmatpush3.msra.mxu1 %v1368_v46  ;;  %v1402_v44 = vld [vmem:[%s15952_s1 + $0x2a58] sm:$0xff]  ;;  %v1417_v46 = vld [vmem:[%s15952_s1 + $0x2ad0] sm:$0xff] }
 0x2ba   :  { %8728 = vmatprep.subr.mxu0 %v1351_v47  ;;  %8763 = vmatprep.subr.mxu1 %v1383_v48  ;;  %v1434_v45 = vld [vmem:[%s15952_s1 + $0x2b58] sm:$0xff]  ;;  %v1449_v47 = vld [vmem:[%s15952_s1 + $0x2bd0] sm:$0xff] }
 0x2bb   :  { %8729 = vmatpush3.msra.mxu0 %v1335_v49  ;;  %8764 = vmatpush3.msra.mxu1 %v1367_v50  ;;  %v1401_v48 = vld [vmem:[%s15952_s1 + $0x2a50] sm:$0xff]  ;;  %v1416_v50 = vld [vmem:[%s15952_s1 + $0x2ac8] sm:$0xff] }
 0x2bc   :  { %8730 = vmatprep.subr.mxu0 %v1350_v52  ;;  %8765 = vmatprep.subr.mxu1 %v1382_v53  ;;  %v1433_v49 = vld [vmem:[%s15952_s1 + $0x2b50] sm:$0xff]  ;;  %v1448_v52 = vld [vmem:[%s15952_s1 + $0x2bc8] sm:$0xff] }
 0x2bd   :  { %8731 = vmatpush3.msra.mxu0 %v1334_v54  ;;  %8766 = vmatpush3.msra.mxu1 %v1366_v55  ;;  %v1400_v53 = vld [vmem:[%s15952_s1 + $0x2a48] sm:$0xff]  ;;  %v1415_v55 = vld [vmem:[%s15952_s1 + $0x2ac0] sm:$0xff] }
 0x2be   :  { %8732 = vmatprep.subr.mxu0 %v1349_v56  ;;  %8767 = vmatprep.subr.mxu1 %v1381_v57  ;;  %v1432_v54 = vld [vmem:[%s15952_s1 + $0x2b48] sm:$0xff]  ;;  %v1447_v56 = vld [vmem:[%s15952_s1 + $0x2bc0] sm:$0xff] }
 0x2bf   :  { %8733 = vmatpush3.msra.mxu0 %v1333_v58  ;;  %8768 = vmatpush3.msra.mxu1 %v1365_v59  ;;  %v1399_v57 = vld [vmem:[%s15952_s1 + $0x2a40] sm:$0xff]  ;;  %v1414_v59 = vld [vmem:[%s15952_s1 + $0x2ab8] sm:$0xff] }
 0x2c0   :  { %8734 = vmatprep.subr.mxu0 %v1348_v60  ;;  %8769 = vmatprep.subr.mxu1 %v1380_v61  ;;  %v1431_v58 = vld [vmem:[%s15952_s1 + $0x2b40] sm:$0xff]  ;;  %v1446_v60 = vld [vmem:[%s15952_s1 + $0x2bb8] sm:$0xff] }
 0x2c1   :  { %8735 = vmatpush3.msra.mxu0 %v1332_v62  ;;  %8770 = vmatpush3.msra.mxu1 %v1364_v63  ;;  %v1398_v61 = vld [vmem:[%s15952_s1 + $0x2a38] sm:$0xff]  ;;  %v1413_v63 = vld [vmem:[%s15952_s1 + $0x2ab0] sm:$0xff] }
 0x2c2   :  { %8736 = vmatprep.subr.mxu0 %v1347_v1  ;;  %8771 = vmatprep.subr.mxu1 %v1379_v2  ;;  %v1430_v62 = vld [vmem:[%s15952_s1 + $0x2b38] sm:$0xff]  ;;  %v1397_v1 = vld [vmem:[%s15952_s1 + $0x2a30] sm:$0xff] }
 0x2c3   :  { %8737 = vmatpush3.msra.mxu0 %v1331_v3  ;;  %8772 = vmatpush3.msra.mxu1 %v1363_v4  ;;  %v1429_v2 = vld [vmem:[%s15952_s1 + $0x2b30] sm:$0xff]  ;;  %v1412_v3 = vld [vmem:[%s15952_s1 + $0x2aa8] sm:$0xff] }
 0x2c4   :  { %8738 = vmatprep.subr.mxu0 %v1346_v5  ;;  %8773 = vmatprep.subr.mxu1 %v1378_v6  ;;  %v1444_v4 = vld [vmem:[%s15952_s1 + $0x2ba8] sm:$0xff] }
 0x2c5   :  { %8739 = vmatpush3.msra.mxu0 %v1330_v8  ;;  %8774 = vmatpush3.msra.mxu1 %v1362_v9  ;;  %v1396_v5 = vld [vmem:[%s15952_s1 + $0x2a28] sm:$0xff]  ;;  %v1411_v8 = vld [vmem:[%s15952_s1 + $0x2aa0] sm:$0xff] }
 0x2c6   :  { %8740 = vmatprep.subr.mxu0 %v1345_v10  ;;  %8775 = vmatprep.subr.mxu1 %v1377_v11  ;;  %v1428_v6 = vld [vmem:[%s15952_s1 + $0x2b28] sm:$0xff]  ;;  %v1443_v9 = vld [vmem:[%s15952_s1 + $0x2ba0] sm:$0xff] }
 0x2c7   :  { %8741 = vmatpush3.msra.mxu0 %v1329_v13  ;;  %8776 = vmatpush3.msra.mxu1 %v1361_v14  ;;  %v1395_v10 = vld [vmem:[%s15952_s1 + $0x2a20] sm:$0xff]  ;;  %v1442_v13 = vld [vmem:[%s15952_s1 + $0x2b98] sm:$0xff]  ;;  %v2491_v14 = vcombine.high %v36_v7, %v36_v7 }
 0x2c8   :  { %8742 = vmatprep.subr.mxu0 %v1344_v15  ;;  %8777 = vmatprep.subr.mxu1 %v1376_v16  ;;  %v1427_v11 = vld [vmem:[%s15952_s1 + $0x2b20] sm:$0xff]  ;;  %v1394_v15 = vld [vmem:[%s15952_s1 + $0x2a18] sm:$0xff] }
 0x2c9   :  { %8743 = vmatpush3.msra.mxu0 %v1328_v18  ;;  %8778 = vmatpush3.msra.mxu1 %v1360_v19  ;;  %v1426_v16 = vld [vmem:[%s15952_s1 + $0x2b18] sm:$0xff]  ;;  %v1441_v18 = vld [vmem:[%s15952_s1 + $0x2b90] sm:$0xff]  ;;  %v2498_v19 = vrot.slane %v36_v7, %v9774_v51 }
 0x2ca   :  { %8744 = vmatprep.subr.mxu0 %v1343_v20  ;;  %8779 = vmatprep.subr.mxu1 %v1375_v21  ;;  %v1393_v20 = vld [vmem:[%s15952_s1 + $0x2a10] sm:$0xff] }
 0x2cb   :  { %8745 = vmatpush3.msra.mxu0 %v1327_v23  ;;  %5670 = vmatprep.mubr.f32.mxu0 %v2489_v22  ;;  %v1425_v21 = vld [vmem:[%s15952_s1 + $0x2b10] sm:$0xff]  ;;  %v1408_v22 = vld [vmem:[%s15952_s1 + $0x2a88] sm:$0xff] }
 0x2cc   :  { %8780 = vmatpush3.msra.mxu1 %v1359_v24  ;;  %5671 = vmatmul.mubr.f32.vlgmr.msra.gmra.mxu0 %v2481_v12  ;;  %v1410_v12 = vld [vmem:[%s15952_s1 + $0x2a98] sm:$0xff]  ;;  %v1440_v23 = vld [vmem:[%s15952_s1 + $0x2b88] sm:$0xff]  ;;  %v2505_v24 = vrot.slane %v2491_v14, %v9774_v51  ;;  %v1509_v7 = vld [vmem:[%s15952_s1 + $0x2db0] sm:$0xff] }
 0x2cd   :  { %5740 = vmatprep.mubr.f32.mxu1 %v2490_v25  ;;  %8784 = vmatprep.subr.mxu0 %v1422_v26  ;;  %v1392_v25 = vld [vmem:[%s15952_s1 + $0x2a08] sm:$0xff]  ;;  %v37_v14 = vld [vmem:[%s15951_s0 + $0xb0] sm:$0xff] }
 0x2ce   :  { %8819 = vmatprep.subr.mxu1 %v1454_v27  ;;  %5741 = vmatmul.mubr.f32.vlgmr.msra.gmra.mxu1 %v2488_v17  ;;  %v1409_v17 = vld [vmem:[%s15952_s1 + $0x2a90] sm:$0xff]  ;;  %v1424_v26 = vld [vmem:[%s15952_s1 + $0x2b08] sm:$0xff]  ;;  %v1407_v27 = vld [vmem:[%s15952_s1 + $0x2a80] sm:$0xff] }
 0x2cf   :  { %8785 = vmatpush3.msra.mxu0 %v1406_v28  ;;  %8820 = vmatpush3.msra.mxu1 %v1438_v29  ;;  %v1439_v28 = vld [vmem:[%s15952_s1 + $0x2b80] sm:$0xff]  ;;  %v2506_v29 = vcombine.high %v2498_v19, %v2498_v19 }
 0x2d0   :  { %8786 = vmatprep.subr.mxu0 %v1421_v30  ;;  %8821 = vmatprep.subr.mxu1 %v1453_v31  ;;  %v1391_v30 = vld [vmem:[%s15952_s1 + $0x2a00] sm:$0xff] }
 0x2d1   :  { %8787 = vmatpush3.msra.mxu0 %v1405_v32  ;;  %8822 = vmatpush3.msra.mxu1 %v1437_v33  ;;  %v1423_v31 = vld [vmem:[%s15952_s1 + $0x2b00] sm:$0xff]  ;;  %v2507_v32 = vcombine.high %v2505_v24, %v2505_v24  ;;  %v1486_v33 = vld [vmem:[%s15952_s1 + $0x2cf8] sm:$0xff] }
 0x2d2   :  { %8788 = vmatprep.subr.mxu0 %v1420_v34  ;;  %8823 = vmatprep.subr.mxu1 %v1452_v35  ;;  %v1518_v34 = vld [vmem:[%s15952_s1 + $0x2df8] sm:$0xff] }
 0x2d3   :  { %8789 = vmatpush3.msra.mxu0 %v1404_v36  ;;  %8824 = vmatpush3.msra.mxu1 %v1436_v37  ;;  %v1470_v35 = vld [vmem:[%s15952_s1 + $0x2c78] sm:$0xff]  ;;  %v1485_v37 = vld [vmem:[%s15952_s1 + $0x2cf0] sm:$0xff] }
 0x2d4   :  { %8790 = vmatprep.subr.mxu0 %v1419_v38  ;;  %8825 = vmatprep.subr.mxu1 %v1451_v39  ;;  %v1502_v36 = vld [vmem:[%s15952_s1 + $0x2d78] sm:$0xff]  ;;  %v1517_v38 = vld [vmem:[%s15952_s1 + $0x2df0] sm:$0xff] }
 0x2d5   :  { %8791 = vmatpush3.msra.mxu0 %v1403_v40  ;;  %8826 = vmatpush3.msra.mxu1 %v1435_v41  ;;  %v1469_v39 = vld [vmem:[%s15952_s1 + $0x2c70] sm:$0xff]  ;;  %v1484_v41 = vld [vmem:[%s15952_s1 + $0x2ce8] sm:$0xff] }
 0x2d6   :  { %8792 = vmatprep.subr.mxu0 %v1418_v42  ;;  %8827 = vmatprep.subr.mxu1 %v1450_v43  ;;  %v1501_v40 = vld [vmem:[%s15952_s1 + $0x2d70] sm:$0xff]  ;;  %v1516_v42 = vld [vmem:[%s15952_s1 + $0x2de8] sm:$0xff] }
 0x2d7   :  { %8793 = vmatpush3.msra.mxu0 %v1402_v44  ;;  %8828 = vmatpush3.msra.mxu1 %v1434_v45  ;;  %v1468_v43 = vld [vmem:[%s15952_s1 + $0x2c68] sm:$0xff]  ;;  %v1483_v45 = vld [vmem:[%s15952_s1 + $0x2ce0] sm:$0xff] }
 0x2d8   :  { %8794 = vmatprep.subr.mxu0 %v1417_v46  ;;  %8829 = vmatprep.subr.mxu1 %v1449_v47  ;;  %v1500_v44 = vld [vmem:[%s15952_s1 + $0x2d68] sm:$0xff]  ;;  %v1515_v46 = vld [vmem:[%s15952_s1 + $0x2de0] sm:$0xff] }
 0x2d9   :  { %8795 = vmatpush3.msra.mxu0 %v1401_v48  ;;  %8830 = vmatpush3.msra.mxu1 %v1433_v49  ;;  %v1467_v47 = vld [vmem:[%s15952_s1 + $0x2c60] sm:$0xff]  ;;  %v1482_v49 = vld [vmem:[%s15952_s1 + $0x2cd8] sm:$0xff] }
 0x2da   :  { %8796 = vmatprep.subr.mxu0 %v1416_v50  ;;  %8831 = vmatprep.subr.mxu1 %v1448_v52  ;;  %v1499_v48 = vld [vmem:[%s15952_s1 + $0x2d60] sm:$0xff]  ;;  %v1514_v50 = vld [vmem:[%s15952_s1 + $0x2dd8] sm:$0xff] }
 0x2db   :  { %8797 = vmatpush3.msra.mxu0 %v1400_v53  ;;  %8832 = vmatpush3.msra.mxu1 %v1432_v54  ;;  %v1466_v52 = vld [vmem:[%s15952_s1 + $0x2c58] sm:$0xff]  ;;  %v1481_v54 = vld [vmem:[%s15952_s1 + $0x2cd0] sm:$0xff] }
 0x2dc   :  { %8798 = vmatprep.subr.mxu0 %v1415_v55  ;;  %8833 = vmatprep.subr.mxu1 %v1447_v56  ;;  %v1498_v53 = vld [vmem:[%s15952_s1 + $0x2d58] sm:$0xff]  ;;  %v1513_v55 = vld [vmem:[%s15952_s1 + $0x2dd0] sm:$0xff] }
 0x2dd   :  { %8799 = vmatpush3.msra.mxu0 %v1399_v57  ;;  %8834 = vmatpush3.msra.mxu1 %v1431_v58  ;;  %v1465_v56 = vld [vmem:[%s15952_s1 + $0x2c50] sm:$0xff]  ;;  %v1480_v58 = vld [vmem:[%s15952_s1 + $0x2cc8] sm:$0xff] }
 0x2de   :  { %8800 = vmatprep.subr.mxu0 %v1414_v59  ;;  %8835 = vmatprep.subr.mxu1 %v1446_v60  ;;  %v1497_v57 = vld [vmem:[%s15952_s1 + $0x2d50] sm:$0xff]  ;;  %v1512_v59 = vld [vmem:[%s15952_s1 + $0x2dc8] sm:$0xff] }
 0x2df   :  { %8801 = vmatpush3.msra.mxu0 %v1398_v61  ;;  %8836 = vmatpush3.msra.mxu1 %v1430_v62  ;;  %v1464_v60 = vld [vmem:[%s15952_s1 + $0x2c48] sm:$0xff]  ;;  %v1479_v62 = vld [vmem:[%s15952_s1 + $0x2cc0] sm:$0xff] }
 0x2e0   :  { %8802 = vmatprep.subr.mxu0 %v1413_v63  ;;  %8837 = vmatprep.subr.mxu1 %v1445_v0  ;;  %v1496_v61 = vld [vmem:[%s15952_s1 + $0x2d48] sm:$0xff]  ;;  %v1511_v63 = vld [vmem:[%s15952_s1 + $0x2dc0] sm:$0xff] }
 0x2e1   :  { %8803 = vmatpush3.msra.mxu0 %v1397_v1  ;;  %8838 = vmatpush3.msra.mxu1 %v1429_v2  ;;  %v1463_v0 = vld [vmem:[%s15952_s1 + $0x2c40] sm:$0xff]  ;;  %v1478_v2 = vld [vmem:[%s15952_s1 + $0x2cb8] sm:$0xff] }
 0x2e2   :  { %8804 = vmatprep.subr.mxu0 %v1412_v3  ;;  %8839 = vmatprep.subr.mxu1 %v1444_v4  ;;  %v1495_v1 = vld [vmem:[%s15952_s1 + $0x2d40] sm:$0xff]  ;;  %v1510_v3 = vld [vmem:[%s15952_s1 + $0x2db8] sm:$0xff] }
 0x2e3   :  { %8805 = vmatpush3.msra.mxu0 %v1396_v5  ;;  %8840 = vmatpush3.msra.mxu1 %v1428_v6  ;;  %v1462_v4 = vld [vmem:[%s15952_s1 + $0x2c38] sm:$0xff]  ;;  %v1477_v6 = vld [vmem:[%s15952_s1 + $0x2cb0] sm:$0xff] }
 0x2e4   :  { %8806 = vmatprep.subr.mxu0 %v1411_v8  ;;  %8841 = vmatprep.subr.mxu1 %v1443_v9  ;;  %v1494_v5 = vld [vmem:[%s15952_s1 + $0x2d38] sm:$0xff]  ;;  %v1461_v8 = vld [vmem:[%s15952_s1 + $0x2c30] sm:$0xff] }
 0x2e5   :  { %8807 = vmatpush3.msra.mxu0 %v1395_v10  ;;  %8842 = vmatpush3.msra.mxu1 %v1427_v11  ;;  %v1493_v9 = vld [vmem:[%s15952_s1 + $0x2d30] sm:$0xff]  ;;  %v1476_v10 = vld [vmem:[%s15952_s1 + $0x2ca8] sm:$0xff] }
 0x2e6   :  { %8808 = vmatprep.subr.mxu0 %v1410_v12  ;;  %8843 = vmatprep.subr.mxu1 %v1442_v13  ;;  %v1508_v11 = vld [vmem:[%s15952_s1 + $0x2da8] sm:$0xff] }
 0x2e7   :  { %8809 = vmatpush3.msra.mxu0 %v1394_v15  ;;  %8844 = vmatpush3.msra.mxu1 %v1426_v16  ;;  %v1460_v12 = vld [vmem:[%s15952_s1 + $0x2c28] sm:$0xff]  ;;  %v1475_v15 = vld [vmem:[%s15952_s1 + $0x2ca0] sm:$0xff] }
 0x2e8   :  { %8810 = vmatprep.subr.mxu0 %v1409_v17  ;;  %8845 = vmatprep.subr.mxu1 %v1441_v18  ;;  %v1492_v13 = vld [vmem:[%s15952_s1 + $0x2d28] sm:$0xff]  ;;  %v1507_v16 = vld [vmem:[%s15952_s1 + $0x2da0] sm:$0xff] }
 0x2e9   :  { %8811 = vmatpush3.msra.mxu0 %v1393_v20  ;;  %8846 = vmatpush3.msra.mxu1 %v1425_v21  ;;  %v1459_v17 = vld [vmem:[%s15952_s1 + $0x2c20] sm:$0xff]  ;;  %v1506_v20 = vld [vmem:[%s15952_s1 + $0x2d98] sm:$0xff]  ;;  %v2508_v21 = vcombine.high %v37_v14, %v37_v14 }
 0x2ea   :  { %8812 = vmatprep.subr.mxu0 %v1408_v22  ;;  %8847 = vmatprep.subr.mxu1 %v1440_v23  ;;  %v1491_v18 = vld [vmem:[%s15952_s1 + $0x2d20] sm:$0xff]  ;;  %v1458_v22 = vld [vmem:[%s15952_s1 + $0x2c18] sm:$0xff] }
 0x2eb   :  { %8813 = vmatpush3.msra.mxu0 %v1392_v25  ;;  %8848 = vmatpush3.msra.mxu1 %v1424_v26  ;;  %v1490_v23 = vld [vmem:[%s15952_s1 + $0x2d18] sm:$0xff]  ;;  %v1505_v25 = vld [vmem:[%s15952_s1 + $0x2d90] sm:$0xff]  ;;  %v2515_v26 = vrot.slane %v37_v14, %v9774_v51 }
 0x2ec   :  { %8814 = vmatprep.subr.mxu0 %v1407_v27  ;;  %8849 = vmatprep.subr.mxu1 %v1439_v28  ;;  %v1457_v27 = vld [vmem:[%s15952_s1 + $0x2c10] sm:$0xff] }
 0x2ed   :  { %8815 = vmatpush3.msra.mxu0 %v1391_v30  ;;  %5810 = vmatprep.mubr.f32.mxu0 %v2506_v29  ;;  %v1489_v28 = vld [vmem:[%s15952_s1 + $0x2d10] sm:$0xff]  ;;  %v1472_v29 = vld [vmem:[%s15952_s1 + $0x2c88] sm:$0xff] }
 0x2ee   :  { %8850 = vmatpush3.msra.mxu1 %v1423_v31  ;;  %5811 = vmatmul.mubr.f32.vlgmr.msra.gmra.mxu0 %v2498_v19  ;;  %v1474_v19 = vld [vmem:[%s15952_s1 + $0x2c98] sm:$0xff]  ;;  %v1504_v30 = vld [vmem:[%s15952_s1 + $0x2d88] sm:$0xff]  ;;  %v2522_v31 = vrot.slane %v2508_v21, %v9774_v51  ;;  %v1573_v14 = vld [vmem:[%s15952_s1 + $0x2fb0] sm:$0xff] }
 0x2ef   :  { %5880 = vmatprep.mubr.f32.mxu1 %v2507_v32  ;;  %8854 = vmatprep.subr.mxu0 %v1486_v33  ;;  %v1456_v32 = vld [vmem:[%s15952_s1 + $0x2c08] sm:$0xff]  ;;  %v38_v21 = vld [vmem:[%s15951_s0 + $0xb8] sm:$0xff] }
 0x2f0   :  { %8889 = vmatprep.subr.mxu1 %v1518_v34  ;;  %5881 = vmatmul.mubr.f32.vlgmr.msra.gmra.mxu1 %v2505_v24  ;;  %v1473_v24 = vld [vmem:[%s15952_s1 + $0x2c90] sm:$0xff]  ;;  %v1488_v33 = vld [vmem:[%s15952_s1 + $0x2d08] sm:$0xff]  ;;  %v1471_v34 = vld [vmem:[%s15952_s1 + $0x2c80] sm:$0xff] }
 0x2f1   :  { %8855 = vmatpush3.msra.mxu0 %v1470_v35  ;;  %8890 = vmatpush3.msra.mxu1 %v1502_v36  ;;  %v1503_v35 = vld [vmem:[%s15952_s1 + $0x2d80] sm:$0xff]  ;;  %v2523_v36 = vcombine.high %v2515_v26, %v2515_v26 }
 0x2f2   :  { %8856 = vmatprep.subr.mxu0 %v1485_v37  ;;  %8891 = vmatprep.subr.mxu1 %v1517_v38  ;;  %v1455_v37 = vld [vmem:[%s15952_s1 + $0x2c00] sm:$0xff] }
 0x2f3   :  { %8857 = vmatpush3.msra.mxu0 %v1469_v39  ;;  %8892 = vmatpush3.msra.mxu1 %v1501_v40  ;;  %v1487_v38 = vld [vmem:[%s15952_s1 + $0x2d00] sm:$0xff]  ;;  %v2524_v39 = vcombine.high %v2522_v31, %v2522_v31  ;;  %v1550_v40 = vld [vmem:[%s15952_s1 + $0x2ef8] sm:$0xff] }
 0x2f4   :  { %8858 = vmatprep.subr.mxu0 %v1484_v41  ;;  %8893 = vmatprep.subr.mxu1 %v1516_v42  ;;  %v1582_v41 = vld [vmem:[%s15952_s1 + $0x2ff8] sm:$0xff] }
 0x2f5   :  { %8859 = vmatpush3.msra.mxu0 %v1468_v43  ;;  %8894 = vmatpush3.msra.mxu1 %v1500_v44  ;;  %v1534_v42 = vld [vmem:[%s15952_s1 + $0x2e78] sm:$0xff]  ;;  %v1549_v44 = vld [vmem:[%s15952_s1 + $0x2ef0] sm:$0xff] }
 0x2f6   :  { %8860 = vmatprep.subr.mxu0 %v1483_v45  ;;  %8895 = vmatprep.subr.mxu1 %v1515_v46  ;;  %v1566_v43 = vld [vmem:[%s15952_s1 + $0x2f78] sm:$0xff]  ;;  %v1581_v45 = vld [vmem:[%s15952_s1 + $0x2ff0] sm:$0xff] }
 0x2f7   :  { %8861 = vmatpush3.msra.mxu0 %v1467_v47  ;;  %8896 = vmatpush3.msra.mxu1 %v1499_v48  ;;  %v1533_v46 = vld [vmem:[%s15952_s1 + $0x2e70] sm:$0xff]  ;;  %v1548_v48 = vld [vmem:[%s15952_s1 + $0x2ee8] sm:$0xff] }
 0x2f8   :  { %8862 = vmatprep.subr.mxu0 %v1482_v49  ;;  %8897 = vmatprep.subr.mxu1 %v1514_v50  ;;  %v1565_v47 = vld [vmem:[%s15952_s1 + $0x2f70] sm:$0xff]  ;;  %v1580_v49 = vld [vmem:[%s15952_s1 + $0x2fe8] sm:$0xff] }
 0x2f9   :  { %8863 = vmatpush3.msra.mxu0 %v1466_v52  ;;  %8898 = vmatpush3.msra.mxu1 %v1498_v53  ;;  %v1532_v50 = vld [vmem:[%s15952_s1 + $0x2e68] sm:$0xff]  ;;  %v1547_v53 = vld [vmem:[%s15952_s1 + $0x2ee0] sm:$0xff] }
 0x2fa   :  { %8864 = vmatprep.subr.mxu0 %v1481_v54  ;;  %8899 = vmatprep.subr.mxu1 %v1513_v55  ;;  %v1564_v52 = vld [vmem:[%s15952_s1 + $0x2f68] sm:$0xff]  ;;  %v1579_v54 = vld [vmem:[%s15952_s1 + $0x2fe0] sm:$0xff] }
 0x2fb   :  { %8865 = vmatpush3.msra.mxu0 %v1465_v56  ;;  %8900 = vmatpush3.msra.mxu1 %v1497_v57  ;;  %v1531_v55 = vld [vmem:[%s15952_s1 + $0x2e60] sm:$0xff]  ;;  %v1546_v57 = vld [vmem:[%s15952_s1 + $0x2ed8] sm:$0xff] }
 0x2fc   :  { %8866 = vmatprep.subr.mxu0 %v1480_v58  ;;  %8901 = vmatprep.subr.mxu1 %v1512_v59  ;;  %v1563_v56 = vld [vmem:[%s15952_s1 + $0x2f60] sm:$0xff]  ;;  %v1578_v58 = vld [vmem:[%s15952_s1 + $0x2fd8] sm:$0xff] }
 0x2fd   :  { %8867 = vmatpush3.msra.mxu0 %v1464_v60  ;;  %8902 = vmatpush3.msra.mxu1 %v1496_v61  ;;  %v1530_v59 = vld [vmem:[%s15952_s1 + $0x2e58] sm:$0xff]  ;;  %v1545_v61 = vld [vmem:[%s15952_s1 + $0x2ed0] sm:$0xff] }
 0x2fe   :  { %8868 = vmatprep.subr.mxu0 %v1479_v62  ;;  %8903 = vmatprep.subr.mxu1 %v1511_v63  ;;  %v1562_v60 = vld [vmem:[%s15952_s1 + $0x2f58] sm:$0xff]  ;;  %v1577_v62 = vld [vmem:[%s15952_s1 + $0x2fd0] sm:$0xff] }
 0x2ff   :  { %8869 = vmatpush3.msra.mxu0 %v1463_v0  ;;  %8904 = vmatpush3.msra.mxu1 %v1495_v1  ;;  %v1529_v63 = vld [vmem:[%s15952_s1 + $0x2e50] sm:$0xff]  ;;  %v1544_v1 = vld [vmem:[%s15952_s1 + $0x2ec8] sm:$0xff] }
 0x300   :  { %8870 = vmatprep.subr.mxu0 %v1478_v2  ;;  %8905 = vmatprep.subr.mxu1 %v1510_v3  ;;  %v1561_v0 = vld [vmem:[%s15952_s1 + $0x2f50] sm:$0xff]  ;;  %v1576_v2 = vld [vmem:[%s15952_s1 + $0x2fc8] sm:$0xff] }
 0x301   :  { %8871 = vmatpush3.msra.mxu0 %v1462_v4  ;;  %8906 = vmatpush3.msra.mxu1 %v1494_v5  ;;  %v1528_v3 = vld [vmem:[%s15952_s1 + $0x2e48] sm:$0xff]  ;;  %v1543_v5 = vld [vmem:[%s15952_s1 + $0x2ec0] sm:$0xff] }
 0x302   :  { %8872 = vmatprep.subr.mxu0 %v1477_v6  ;;  %8907 = vmatprep.subr.mxu1 %v1509_v7  ;;  %v1560_v4 = vld [vmem:[%s15952_s1 + $0x2f48] sm:$0xff]  ;;  %v1575_v6 = vld [vmem:[%s15952_s1 + $0x2fc0] sm:$0xff] }
 0x303   :  { %8873 = vmatpush3.msra.mxu0 %v1461_v8  ;;  %8908 = vmatpush3.msra.mxu1 %v1493_v9  ;;  %v1527_v7 = vld [vmem:[%s15952_s1 + $0x2e40] sm:$0xff]  ;;  %v1542_v9 = vld [vmem:[%s15952_s1 + $0x2eb8] sm:$0xff] }
 0x304   :  { %8874 = vmatprep.subr.mxu0 %v1476_v10  ;;  %8909 = vmatprep.subr.mxu1 %v1508_v11  ;;  %v1559_v8 = vld [vmem:[%s15952_s1 + $0x2f40] sm:$0xff]  ;;  %v1574_v10 = vld [vmem:[%s15952_s1 + $0x2fb8] sm:$0xff] }
 0x305   :  { %8875 = vmatpush3.msra.mxu0 %v1460_v12  ;;  %8910 = vmatpush3.msra.mxu1 %v1492_v13  ;;  %v1526_v11 = vld [vmem:[%s15952_s1 + $0x2e38] sm:$0xff]  ;;  %v1541_v13 = vld [vmem:[%s15952_s1 + $0x2eb0] sm:$0xff] }
 0x306   :  { %8876 = vmatprep.subr.mxu0 %v1475_v15  ;;  %8911 = vmatprep.subr.mxu1 %v1507_v16  ;;  %v1558_v12 = vld [vmem:[%s15952_s1 + $0x2f38] sm:$0xff]  ;;  %v1525_v15 = vld [vmem:[%s15952_s1 + $0x2e30] sm:$0xff] }
 0x307   :  { %8877 = vmatpush3.msra.mxu0 %v1459_v17  ;;  %8912 = vmatpush3.msra.mxu1 %v1491_v18  ;;  %v1557_v16 = vld [vmem:[%s15952_s1 + $0x2f30] sm:$0xff]  ;;  %v1540_v17 = vld [vmem:[%s15952_s1 + $0x2ea8] sm:$0xff] }
 0x308   :  { %8878 = vmatprep.subr.mxu0 %v1474_v19  ;;  %8913 = vmatprep.subr.mxu1 %v1506_v20  ;;  %v1572_v18 = vld [vmem:[%s15952_s1 + $0x2fa8] sm:$0xff] }
 0x309   :  { %8879 = vmatpush3.msra.mxu0 %v1458_v22  ;;  %8914 = vmatpush3.msra.mxu1 %v1490_v23  ;;  %v1524_v19 = vld [vmem:[%s15952_s1 + $0x2e28] sm:$0xff]  ;;  %v1539_v22 = vld [vmem:[%s15952_s1 + $0x2ea0] sm:$0xff] }
 0x30a   :  { %8880 = vmatprep.subr.mxu0 %v1473_v24  ;;  %8915 = vmatprep.subr.mxu1 %v1505_v25  ;;  %v1556_v20 = vld [vmem:[%s15952_s1 + $0x2f28] sm:$0xff]  ;;  %v1571_v23 = vld [vmem:[%s15952_s1 + $0x2fa0] sm:$0xff] }
 0x30b   :  { %8881 = vmatpush3.msra.mxu0 %v1457_v27  ;;  %8916 = vmatpush3.msra.mxu1 %v1489_v28  ;;  %v1523_v24 = vld [vmem:[%s15952_s1 + $0x2e20] sm:$0xff]  ;;  %v1570_v27 = vld [vmem:[%s15952_s1 + $0x2f98] sm:$0xff]  ;;  %v2525_v28 = vcombine.high %v38_v21, %v38_v21 }
 0x30c   :  { %8882 = vmatprep.subr.mxu0 %v1472_v29  ;;  %8917 = vmatprep.subr.mxu1 %v1504_v30  ;;  %v1555_v25 = vld [vmem:[%s15952_s1 + $0x2f20] sm:$0xff]  ;;  %v1522_v29 = vld [vmem:[%s15952_s1 + $0x2e18] sm:$0xff] }
 0x30d   :  { %8883 = vmatpush3.msra.mxu0 %v1456_v32  ;;  %8918 = vmatpush3.msra.mxu1 %v1488_v33  ;;  %v1554_v30 = vld [vmem:[%s15952_s1 + $0x2f18] sm:$0xff]  ;;  %v1569_v32 = vld [vmem:[%s15952_s1 + $0x2f90] sm:$0xff]  ;;  %v2532_v33 = vrot.slane %v38_v21, %v9774_v51 }
 0x30e   :  { %8884 = vmatprep.subr.mxu0 %v1471_v34  ;;  %8919 = vmatprep.subr.mxu1 %v1503_v35  ;;  %v1521_v34 = vld [vmem:[%s15952_s1 + $0x2e10] sm:$0xff] }
 0x30f   :  { %8885 = vmatpush3.msra.mxu0 %v1455_v37  ;;  %5950 = vmatprep.mubr.f32.mxu0 %v2523_v36  ;;  %v1553_v35 = vld [vmem:[%s15952_s1 + $0x2f10] sm:$0xff]  ;;  %v1536_v36 = vld [vmem:[%s15952_s1 + $0x2e88] sm:$0xff] }
 0x310   :  { %8920 = vmatpush3.msra.mxu1 %v1487_v38  ;;  %5951 = vmatmul.mubr.f32.vlgmr.msra.gmra.mxu0 %v2515_v26  ;;  %v1538_v26 = vld [vmem:[%s15952_s1 + $0x2e98] sm:$0xff]  ;;  %v1568_v37 = vld [vmem:[%s15952_s1 + $0x2f88] sm:$0xff]  ;;  %v2539_v38 = vrot.slane %v2525_v28, %v9774_v51  ;;  %v1637_v21 = vld [vmem:[%s15952_s1 + $0x31b0] sm:$0xff] }
 0x311   :  { %6020 = vmatprep.mubr.f32.mxu1 %v2524_v39  ;;  %8924 = vmatprep.subr.mxu0 %v1550_v40  ;;  %v1520_v39 = vld [vmem:[%s15952_s1 + $0x2e08] sm:$0xff]  ;;  %v39_v28 = vld [vmem:[%s15951_s0 + $0xc0] sm:$0xff] }
 0x312   :  { %8959 = vmatprep.subr.mxu1 %v1582_v41  ;;  %6021 = vmatmul.mubr.f32.vlgmr.msra.gmra.mxu1 %v2522_v31  ;;  %v1537_v31 = vld [vmem:[%s15952_s1 + $0x2e90] sm:$0xff]  ;;  %v1552_v40 = vld [vmem:[%s15952_s1 + $0x2f08] sm:$0xff]  ;;  %v1535_v41 = vld [vmem:[%s15952_s1 + $0x2e80] sm:$0xff] }
 0x313   :  { %8925 = vmatpush3.msra.mxu0 %v1534_v42  ;;  %8960 = vmatpush3.msra.mxu1 %v1566_v43  ;;  %v1567_v42 = vld [vmem:[%s15952_s1 + $0x2f80] sm:$0xff]  ;;  %v2540_v43 = vcombine.high %v2532_v33, %v2532_v33 }
 0x314   :  { %8926 = vmatprep.subr.mxu0 %v1549_v44  ;;  %8961 = vmatprep.subr.mxu1 %v1581_v45  ;;  %v1519_v44 = vld [vmem:[%s15952_s1 + $0x2e00] sm:$0xff] }
 0x315   :  { %8927 = vmatpush3.msra.mxu0 %v1533_v46  ;;  %8962 = vmatpush3.msra.mxu1 %v1565_v47  ;;  %v1551_v45 = vld [vmem:[%s15952_s1 + $0x2f00] sm:$0xff]  ;;  %v2541_v46 = vcombine.high %v2539_v38, %v2539_v38  ;;  %v1614_v47 = vld [vmem:[%s15952_s1 + $0x30f8] sm:$0xff] }
 0x316   :  { %8928 = vmatprep.subr.mxu0 %v1548_v48  ;;  %8963 = vmatprep.subr.mxu1 %v1580_v49  ;;  %v1646_v48 = vld [vmem:[%s15952_s1 + $0x31f8] sm:$0xff] }
 0x317   :  { %8929 = vmatpush3.msra.mxu0 %v1532_v50  ;;  %8964 = vmatpush3.msra.mxu1 %v1564_v52  ;;  %v1598_v49 = vld [vmem:[%s15952_s1 + $0x3078] sm:$0xff]  ;;  %v1613_v52 = vld [vmem:[%s15952_s1 + $0x30f0] sm:$0xff] }
 0x318   :  { %8930 = vmatprep.subr.mxu0 %v1547_v53  ;;  %8965 = vmatprep.subr.mxu1 %v1579_v54  ;;  %v1630_v50 = vld [vmem:[%s15952_s1 + $0x3178] sm:$0xff]  ;;  %v1645_v53 = vld [vmem:[%s15952_s1 + $0x31f0] sm:$0xff] }
 0x319   :  { %8931 = vmatpush3.msra.mxu0 %v1531_v55  ;;  %8966 = vmatpush3.msra.mxu1 %v1563_v56  ;;  %v1597_v54 = vld [vmem:[%s15952_s1 + $0x3070] sm:$0xff]  ;;  %v1612_v56 = vld [vmem:[%s15952_s1 + $0x30e8] sm:$0xff] }
 0x31a   :  { %8932 = vmatprep.subr.mxu0 %v1546_v57  ;;  %8967 = vmatprep.subr.mxu1 %v1578_v58  ;;  %v1629_v55 = vld [vmem:[%s15952_s1 + $0x3170] sm:$0xff]  ;;  %v1644_v57 = vld [vmem:[%s15952_s1 + $0x31e8] sm:$0xff] }
 0x31b   :  { %8933 = vmatpush3.msra.mxu0 %v1530_v59  ;;  %8968 = vmatpush3.msra.mxu1 %v1562_v60  ;;  %v1596_v58 = vld [vmem:[%s15952_s1 + $0x3068] sm:$0xff]  ;;  %v1611_v60 = vld [vmem:[%s15952_s1 + $0x30e0] sm:$0xff] }
 0x31c   :  { %8934 = vmatprep.subr.mxu0 %v1545_v61  ;;  %8969 = vmatprep.subr.mxu1 %v1577_v62  ;;  %v1628_v59 = vld [vmem:[%s15952_s1 + $0x3168] sm:$0xff]  ;;  %v1643_v61 = vld [vmem:[%s15952_s1 + $0x31e0] sm:$0xff] }
 0x31d   :  { %8935 = vmatpush3.msra.mxu0 %v1529_v63  ;;  %8970 = vmatpush3.msra.mxu1 %v1561_v0  ;;  %v1595_v62 = vld [vmem:[%s15952_s1 + $0x3060] sm:$0xff]  ;;  %v1610_v0 = vld [vmem:[%s15952_s1 + $0x30d8] sm:$0xff] }
 0x31e   :  { %8936 = vmatprep.subr.mxu0 %v1544_v1  ;;  %8971 = vmatprep.subr.mxu1 %v1576_v2  ;;  %v1627_v63 = vld [vmem:[%s15952_s1 + $0x3160] sm:$0xff]  ;;  %v1642_v1 = vld [vmem:[%s15952_s1 + $0x31d8] sm:$0xff] }
 0x31f   :  { %8937 = vmatpush3.msra.mxu0 %v1528_v3  ;;  %8972 = vmatpush3.msra.mxu1 %v1560_v4  ;;  %v1594_v2 = vld [vmem:[%s15952_s1 + $0x3058] sm:$0xff]  ;;  %v1609_v4 = vld [vmem:[%s15952_s1 + $0x30d0] sm:$0xff] }
 0x320   :  { %8938 = vmatprep.subr.mxu0 %v1543_v5  ;;  %8973 = vmatprep.subr.mxu1 %v1575_v6  ;;  %v1626_v3 = vld [vmem:[%s15952_s1 + $0x3158] sm:$0xff]  ;;  %v1641_v5 = vld [vmem:[%s15952_s1 + $0x31d0] sm:$0xff] }
 0x321   :  { %8939 = vmatpush3.msra.mxu0 %v1527_v7  ;;  %8974 = vmatpush3.msra.mxu1 %v1559_v8  ;;  %v1593_v6 = vld [vmem:[%s15952_s1 + $0x3050] sm:$0xff]  ;;  %v1608_v8 = vld [vmem:[%s15952_s1 + $0x30c8] sm:$0xff] }
 0x322   :  { %8940 = vmatprep.subr.mxu0 %v1542_v9  ;;  %8975 = vmatprep.subr.mxu1 %v1574_v10  ;;  %v1625_v7 = vld [vmem:[%s15952_s1 + $0x3150] sm:$0xff]  ;;  %v1640_v9 = vld [vmem:[%s15952_s1 + $0x31c8] sm:$0xff] }
 0x323   :  { %8941 = vmatpush3.msra.mxu0 %v1526_v11  ;;  %8976 = vmatpush3.msra.mxu1 %v1558_v12  ;;  %v1592_v10 = vld [vmem:[%s15952_s1 + $0x3048] sm:$0xff]  ;;  %v1607_v12 = vld [vmem:[%s15952_s1 + $0x30c0] sm:$0xff] }
 0x324   :  { %8942 = vmatprep.subr.mxu0 %v1541_v13  ;;  %8977 = vmatprep.subr.mxu1 %v1573_v14  ;;  %v1624_v11 = vld [vmem:[%s15952_s1 + $0x3148] sm:$0xff]  ;;  %v1639_v13 = vld [vmem:[%s15952_s1 + $0x31c0] sm:$0xff] }
 0x325   :  { %8943 = vmatpush3.msra.mxu0 %v1525_v15  ;;  %8978 = vmatpush3.msra.mxu1 %v1557_v16  ;;  %v1591_v14 = vld [vmem:[%s15952_s1 + $0x3040] sm:$0xff]  ;;  %v1606_v16 = vld [vmem:[%s15952_s1 + $0x30b8] sm:$0xff] }
 0x326   :  { %8944 = vmatprep.subr.mxu0 %v1540_v17  ;;  %8979 = vmatprep.subr.mxu1 %v1572_v18  ;;  %v1623_v15 = vld [vmem:[%s15952_s1 + $0x3140] sm:$0xff]  ;;  %v1638_v17 = vld [vmem:[%s15952_s1 + $0x31b8] sm:$0xff] }
 0x327   :  { %8945 = vmatpush3.msra.mxu0 %v1524_v19  ;;  %8980 = vmatpush3.msra.mxu1 %v1556_v20  ;;  %v1590_v18 = vld [vmem:[%s15952_s1 + $0x3038] sm:$0xff]  ;;  %v1605_v20 = vld [vmem:[%s15952_s1 + $0x30b0] sm:$0xff] }
 0x328   :  { %8946 = vmatprep.subr.mxu0 %v1539_v22  ;;  %8981 = vmatprep.subr.mxu1 %v1571_v23  ;;  %v1622_v19 = vld [vmem:[%s15952_s1 + $0x3138] sm:$0xff]  ;;  %v1589_v22 = vld [vmem:[%s15952_s1 + $0x3030] sm:$0xff] }
 0x329   :  { %8947 = vmatpush3.msra.mxu0 %v1523_v24  ;;  %8982 = vmatpush3.msra.mxu1 %v1555_v25  ;;  %v1621_v23 = vld [vmem:[%s15952_s1 + $0x3130] sm:$0xff]  ;;  %v1604_v24 = vld [vmem:[%s15952_s1 + $0x30a8] sm:$0xff] }
 0x32a   :  { %8948 = vmatprep.subr.mxu0 %v1538_v26  ;;  %8983 = vmatprep.subr.mxu1 %v1570_v27  ;;  %v1636_v25 = vld [vmem:[%s15952_s1 + $0x31a8] sm:$0xff] }
 0x32b   :  { %8949 = vmatpush3.msra.mxu0 %v1522_v29  ;;  %8984 = vmatpush3.msra.mxu1 %v1554_v30  ;;  %v1588_v26 = vld [vmem:[%s15952_s1 + $0x3028] sm:$0xff]  ;;  %v1603_v29 = vld [vmem:[%s15952_s1 + $0x30a0] sm:$0xff] }
 0x32c   :  { %8950 = vmatprep.subr.mxu0 %v1537_v31  ;;  %8985 = vmatprep.subr.mxu1 %v1569_v32  ;;  %v1620_v27 = vld [vmem:[%s15952_s1 + $0x3128] sm:$0xff]  ;;  %v1635_v30 = vld [vmem:[%s15952_s1 + $0x31a0] sm:$0xff] }
 0x32d   :  { %8951 = vmatpush3.msra.mxu0 %v1521_v34  ;;  %8986 = vmatpush3.msra.mxu1 %v1553_v35  ;;  %v1587_v31 = vld [vmem:[%s15952_s1 + $0x3020] sm:$0xff]  ;;  %v1634_v34 = vld [vmem:[%s15952_s1 + $0x3198] sm:$0xff]  ;;  %v2542_v35 = vcombine.high %v39_v28, %v39_v28 }
 0x32e   :  { %8952 = vmatprep.subr.mxu0 %v1536_v36  ;;  %8987 = vmatprep.subr.mxu1 %v1568_v37  ;;  %v1619_v32 = vld [vmem:[%s15952_s1 + $0x3120] sm:$0xff]  ;;  %v1586_v36 = vld [vmem:[%s15952_s1 + $0x3018] sm:$0xff] }
 0x32f   :  { %8953 = vmatpush3.msra.mxu0 %v1520_v39  ;;  %8988 = vmatpush3.msra.mxu1 %v1552_v40  ;;  %v1618_v37 = vld [vmem:[%s15952_s1 + $0x3118] sm:$0xff]  ;;  %v1633_v39 = vld [vmem:[%s15952_s1 + $0x3190] sm:$0xff]  ;;  %v2549_v40 = vrot.slane %v39_v28, %v9774_v51 }
 0x330   :  { %8954 = vmatprep.subr.mxu0 %v1535_v41  ;;  %8989 = vmatprep.subr.mxu1 %v1567_v42  ;;  %v1585_v41 = vld [vmem:[%s15952_s1 + $0x3010] sm:$0xff] }
 0x331   :  { %8955 = vmatpush3.msra.mxu0 %v1519_v44  ;;  %6090 = vmatprep.mubr.f32.mxu0 %v2540_v43  ;;  %v1617_v42 = vld [vmem:[%s15952_s1 + $0x3110] sm:$0xff]  ;;  %v1600_v43 = vld [vmem:[%s15952_s1 + $0x3088] sm:$0xff] }
 0x332   :  { %8990 = vmatpush3.msra.mxu1 %v1551_v45  ;;  %6091 = vmatmul.mubr.f32.vlgmr.msra.gmra.mxu0 %v2532_v33  ;;  %v1602_v33 = vld [vmem:[%s15952_s1 + $0x3098] sm:$0xff]  ;;  %v1632_v44 = vld [vmem:[%s15952_s1 + $0x3188] sm:$0xff]  ;;  %v2556_v45 = vrot.slane %v2542_v35, %v9774_v51  ;;  %v1701_v28 = vld [vmem:[%s15952_s1 + $0x33b0] sm:$0xff] }
 0x333   :  { %6160 = vmatprep.mubr.f32.mxu1 %v2541_v46  ;;  %8994 = vmatprep.subr.mxu0 %v1614_v47  ;;  %v1584_v46 = vld [vmem:[%s15952_s1 + $0x3008] sm:$0xff] }
 0x334   :  { %9029 = vmatprep.subr.mxu1 %v1646_v48  ;;  %6161 = vmatmul.mubr.f32.vlgmr.msra.gmra.mxu1 %v2539_v38  ;;  %v1601_v38 = vld [vmem:[%s15952_s1 + $0x3090] sm:$0xff]  ;;  %v1616_v47 = vld [vmem:[%s15952_s1 + $0x3108] sm:$0xff]  ;;  %v1599_v48 = vld [vmem:[%s15952_s1 + $0x3080] sm:$0xff] }
 0x335   :  { %8995 = vmatpush3.msra.mxu0 %v1598_v49  ;;  %9030 = vmatpush3.msra.mxu1 %v1630_v50  ;;  %v1631_v49 = vld [vmem:[%s15952_s1 + $0x3180] sm:$0xff]  ;;  %v2557_v50 = vcombine.high %v2549_v40, %v2549_v40  ;;  %v40_v35 = vld [vmem:[%s15951_s0 + $0xc8] sm:$0xff] }
 0x336   :  { %8996 = vmatprep.subr.mxu0 %v1613_v52  ;;  %9031 = vmatprep.subr.mxu1 %v1645_v53  ;;  %v1583_v52 = vld [vmem:[%s15952_s1 + $0x3000] sm:$0xff] }
 0x337   :  { %8997 = vmatpush3.msra.mxu0 %v1597_v54  ;;  %9032 = vmatpush3.msra.mxu1 %v1629_v55  ;;  %v1615_v53 = vld [vmem:[%s15952_s1 + $0x3100] sm:$0xff]  ;;  %v2558_v54 = vcombine.high %v2556_v45, %v2556_v45  ;;  %v1678_v55 = vld [vmem:[%s15952_s1 + $0x32f8] sm:$0xff] }
 0x338   :  { %8998 = vmatprep.subr.mxu0 %v1612_v56  ;;  %9033 = vmatprep.subr.mxu1 %v1644_v57  ;;  %v1710_v56 = vld [vmem:[%s15952_s1 + $0x33f8] sm:$0xff] }
 0x339   :  { %8999 = vmatpush3.msra.mxu0 %v1596_v58  ;;  %9034 = vmatpush3.msra.mxu1 %v1628_v59  ;;  %v1662_v57 = vld [vmem:[%s15952_s1 + $0x3278] sm:$0xff]  ;;  %v1677_v59 = vld [vmem:[%s15952_s1 + $0x32f0] sm:$0xff] }
 0x33a   :  { %9000 = vmatprep.subr.mxu0 %v1611_v60  ;;  %9035 = vmatprep.subr.mxu1 %v1643_v61  ;;  %v1694_v58 = vld [vmem:[%s15952_s1 + $0x3378] sm:$0xff]  ;;  %v1709_v60 = vld [vmem:[%s15952_s1 + $0x33f0] sm:$0xff] }
 0x33b   :  { %9001 = vmatpush3.msra.mxu0 %v1595_v62  ;;  %9036 = vmatpush3.msra.mxu1 %v1627_v63  ;;  %v1661_v61 = vld [vmem:[%s15952_s1 + $0x3270] sm:$0xff]  ;;  %v1676_v63 = vld [vmem:[%s15952_s1 + $0x32e8] sm:$0xff] }
 0x33c   :  { %9002 = vmatprep.subr.mxu0 %v1610_v0  ;;  %9037 = vmatprep.subr.mxu1 %v1642_v1  ;;  %v1693_v62 = vld [vmem:[%s15952_s1 + $0x3370] sm:$0xff]  ;;  %v1708_v0 = vld [vmem:[%s15952_s1 + $0x33e8] sm:$0xff] }
 0x33d   :  { %9003 = vmatpush3.msra.mxu0 %v1594_v2  ;;  %9038 = vmatpush3.msra.mxu1 %v1626_v3  ;;  %v1660_v1 = vld [vmem:[%s15952_s1 + $0x3268] sm:$0xff]  ;;  %v1675_v3 = vld [vmem:[%s15952_s1 + $0x32e0] sm:$0xff] }
 0x33e   :  { %9004 = vmatprep.subr.mxu0 %v1609_v4  ;;  %9039 = vmatprep.subr.mxu1 %v1641_v5  ;;  %v1692_v2 = vld [vmem:[%s15952_s1 + $0x3368] sm:$0xff]  ;;  %v1707_v4 = vld [vmem:[%s15952_s1 + $0x33e0] sm:$0xff] }
 0x33f   :  { %9005 = vmatpush3.msra.mxu0 %v1593_v6  ;;  %9040 = vmatpush3.msra.mxu1 %v1625_v7  ;;  %v1659_v5 = vld [vmem:[%s15952_s1 + $0x3260] sm:$0xff]  ;;  %v1674_v7 = vld [vmem:[%s15952_s1 + $0x32d8] sm:$0xff] }
 0x340   :  { %9006 = vmatprep.subr.mxu0 %v1608_v8  ;;  %9041 = vmatprep.subr.mxu1 %v1640_v9  ;;  %v1691_v6 = vld [vmem:[%s15952_s1 + $0x3360] sm:$0xff]  ;;  %v1706_v8 = vld [vmem:[%s15952_s1 + $0x33d8] sm:$0xff] }
 0x341   :  { %9007 = vmatpush3.msra.mxu0 %v1592_v10  ;;  %9042 = vmatpush3.msra.mxu1 %v1624_v11  ;;  %v1658_v9 = vld [vmem:[%s15952_s1 + $0x3258] sm:$0xff]  ;;  %v1673_v11 = vld [vmem:[%s15952_s1 + $0x32d0] sm:$0xff] }
 0x342   :  { %9008 = vmatprep.subr.mxu0 %v1607_v12  ;;  %9043 = vmatprep.subr.mxu1 %v1639_v13  ;;  %v1690_v10 = vld [vmem:[%s15952_s1 + $0x3358] sm:$0xff]  ;;  %v1705_v12 = vld [vmem:[%s15952_s1 + $0x33d0] sm:$0xff] }
 0x343   :  { %9009 = vmatpush3.msra.mxu0 %v1591_v14  ;;  %9044 = vmatpush3.msra.mxu1 %v1623_v15  ;;  %v1657_v13 = vld [vmem:[%s15952_s1 + $0x3250] sm:$0xff]  ;;  %v1672_v15 = vld [vmem:[%s15952_s1 + $0x32c8] sm:$0xff] }
 0x344   :  { %9010 = vmatprep.subr.mxu0 %v1606_v16  ;;  %9045 = vmatprep.subr.mxu1 %v1638_v17  ;;  %v1689_v14 = vld [vmem:[%s15952_s1 + $0x3350] sm:$0xff]  ;;  %v1704_v16 = vld [vmem:[%s15952_s1 + $0x33c8] sm:$0xff] }
 0x345   :  { %9011 = vmatpush3.msra.mxu0 %v1590_v18  ;;  %9046 = vmatpush3.msra.mxu1 %v1622_v19  ;;  %v1656_v17 = vld [vmem:[%s15952_s1 + $0x3248] sm:$0xff]  ;;  %v1671_v19 = vld [vmem:[%s15952_s1 + $0x32c0] sm:$0xff] }
 0x346   :  { %9012 = vmatprep.subr.mxu0 %v1605_v20  ;;  %9047 = vmatprep.subr.mxu1 %v1637_v21  ;;  %v1688_v18 = vld [vmem:[%s15952_s1 + $0x3348] sm:$0xff]  ;;  %v1703_v20 = vld [vmem:[%s15952_s1 + $0x33c0] sm:$0xff] }
 0x347   :  { %9013 = vmatpush3.msra.mxu0 %v1589_v22  ;;  %9048 = vmatpush3.msra.mxu1 %v1621_v23  ;;  %v1655_v21 = vld [vmem:[%s15952_s1 + $0x3240] sm:$0xff]  ;;  %v1670_v23 = vld [vmem:[%s15952_s1 + $0x32b8] sm:$0xff] }
 0x348   :  { %9014 = vmatprep.subr.mxu0 %v1604_v24  ;;  %9049 = vmatprep.subr.mxu1 %v1636_v25  ;;  %v1687_v22 = vld [vmem:[%s15952_s1 + $0x3340] sm:$0xff]  ;;  %v1702_v24 = vld [vmem:[%s15952_s1 + $0x33b8] sm:$0xff] }
 0x349   :  { %9015 = vmatpush3.msra.mxu0 %v1588_v26  ;;  %9050 = vmatpush3.msra.mxu1 %v1620_v27  ;;  %v1654_v25 = vld [vmem:[%s15952_s1 + $0x3238] sm:$0xff]  ;;  %v1669_v27 = vld [vmem:[%s15952_s1 + $0x32b0] sm:$0xff] }
 0x34a   :  { %9016 = vmatprep.subr.mxu0 %v1603_v29  ;;  %9051 = vmatprep.subr.mxu1 %v1635_v30  ;;  %v1686_v26 = vld [vmem:[%s15952_s1 + $0x3338] sm:$0xff]  ;;  %v1653_v29 = vld [vmem:[%s15952_s1 + $0x3230] sm:$0xff] }
 0x34b   :  { %9017 = vmatpush3.msra.mxu0 %v1587_v31  ;;  %9052 = vmatpush3.msra.mxu1 %v1619_v32  ;;  %v1685_v30 = vld [vmem:[%s15952_s1 + $0x3330] sm:$0xff]  ;;  %v1668_v31 = vld [vmem:[%s15952_s1 + $0x32a8] sm:$0xff] }
 0x34c   :  { %9018 = vmatprep.subr.mxu0 %v1602_v33  ;;  %9053 = vmatprep.subr.mxu1 %v1634_v34  ;;  %v1700_v32 = vld [vmem:[%s15952_s1 + $0x33a8] sm:$0xff] }
 0x34d   :  { %9019 = vmatpush3.msra.mxu0 %v1586_v36  ;;  %9054 = vmatpush3.msra.mxu1 %v1618_v37  ;;  %v1652_v33 = vld [vmem:[%s15952_s1 + $0x3228] sm:$0xff]  ;;  %v1667_v36 = vld [vmem:[%s15952_s1 + $0x32a0] sm:$0xff] }
 0x34e   :  { %9020 = vmatprep.subr.mxu0 %v1601_v38  ;;  %9055 = vmatprep.subr.mxu1 %v1633_v39  ;;  %v1684_v34 = vld [vmem:[%s15952_s1 + $0x3328] sm:$0xff]  ;;  %v1699_v37 = vld [vmem:[%s15952_s1 + $0x33a0] sm:$0xff] }
 0x34f   :  { %9021 = vmatpush3.msra.mxu0 %v1585_v41  ;;  %9056 = vmatpush3.msra.mxu1 %v1617_v42  ;;  %v1651_v38 = vld [vmem:[%s15952_s1 + $0x3220] sm:$0xff]  ;;  %v1698_v41 = vld [vmem:[%s15952_s1 + $0x3398] sm:$0xff]  ;;  %v2559_v42 = vcombine.high %v40_v35, %v40_v35 }
 0x350   :  { %9022 = vmatprep.subr.mxu0 %v1600_v43  ;;  %9057 = vmatprep.subr.mxu1 %v1632_v44  ;;  %v1683_v39 = vld [vmem:[%s15952_s1 + $0x3320] sm:$0xff]  ;;  %v1650_v43 = vld [vmem:[%s15952_s1 + $0x3218] sm:$0xff] }
 0x351   :  { %9023 = vmatpush3.msra.mxu0 %v1584_v46  ;;  %9058 = vmatpush3.msra.mxu1 %v1616_v47  ;;  %v1682_v44 = vld [vmem:[%s15952_s1 + $0x3318] sm:$0xff]  ;;  %v1697_v46 = vld [vmem:[%s15952_s1 + $0x3390] sm:$0xff]  ;;  %v2566_v47 = vrot.slane %v40_v35, %v9774_v51 }
 0x352   :  { %9024 = vmatprep.subr.mxu0 %v1599_v48  ;;  %9059 = vmatprep.subr.mxu1 %v1631_v49  ;;  %v1649_v48 = vld [vmem:[%s15952_s1 + $0x3210] sm:$0xff] }
 0x353   :  { %9025 = vmatpush3.msra.mxu0 %v1583_v52  ;;  %6230 = vmatprep.mubr.f32.mxu0 %v2557_v50  ;;  %v1681_v49 = vld [vmem:[%s15952_s1 + $0x3310] sm:$0xff]  ;;  %v1664_v50 = vld [vmem:[%s15952_s1 + $0x3288] sm:$0xff] }
 0x354   :  { %9060 = vmatpush3.msra.mxu1 %v1615_v53  ;;  %6231 = vmatmul.mubr.f32.vlgmr.msra.gmra.mxu0 %v2549_v40  ;;  %v1666_v40 = vld [vmem:[%s15952_s1 + $0x3298] sm:$0xff]  ;;  %v1696_v52 = vld [vmem:[%s15952_s1 + $0x3388] sm:$0xff]  ;;  %v2573_v53 = vrot.slane %v2559_v42, %v9774_v51  ;;  %v1765_v35 = vld [vmem:[%s15952_s1 + $0x35b0] sm:$0xff] }
 0x355   :  { %6300 = vmatprep.mubr.f32.mxu1 %v2558_v54  ;;  %9064 = vmatprep.subr.mxu0 %v1678_v55  ;;  %v1648_v54 = vld [vmem:[%s15952_s1 + $0x3208] sm:$0xff]  ;;  %v41_v42 = vld [vmem:[%s15951_s0 + $0xd0] sm:$0xff] }
 0x356   :  { %9099 = vmatprep.subr.mxu1 %v1710_v56  ;;  %6301 = vmatmul.mubr.f32.vlgmr.msra.gmra.mxu1 %v2556_v45  ;;  %v1665_v45 = vld [vmem:[%s15952_s1 + $0x3290] sm:$0xff]  ;;  %v1680_v55 = vld [vmem:[%s15952_s1 + $0x3308] sm:$0xff]  ;;  %v1663_v56 = vld [vmem:[%s15952_s1 + $0x3280] sm:$0xff] }
 0x357   :  { %9065 = vmatpush3.msra.mxu0 %v1662_v57  ;;  %9100 = vmatpush3.msra.mxu1 %v1694_v58  ;;  %v1695_v57 = vld [vmem:[%s15952_s1 + $0x3380] sm:$0xff]  ;;  %v2574_v58 = vcombine.high %v2566_v47, %v2566_v47 }
 0x358   :  { %9066 = vmatprep.subr.mxu0 %v1677_v59  ;;  %9101 = vmatprep.subr.mxu1 %v1709_v60  ;;  %v1647_v59 = vld [vmem:[%s15952_s1 + $0x3200] sm:$0xff] }
 0x359   :  { %9067 = vmatpush3.msra.mxu0 %v1661_v61  ;;  %9102 = vmatpush3.msra.mxu1 %v1693_v62  ;;  %v1679_v60 = vld [vmem:[%s15952_s1 + $0x3300] sm:$0xff]  ;;  %v2575_v61 = vcombine.high %v2573_v53, %v2573_v53  ;;  %v1742_v62 = vld [vmem:[%s15952_s1 + $0x34f8] sm:$0xff] }
 0x35a   :  { %9068 = vmatprep.subr.mxu0 %v1676_v63  ;;  %9103 = vmatprep.subr.mxu1 %v1708_v0  ;;  %v1774_v63 = vld [vmem:[%s15952_s1 + $0x35f8] sm:$0xff] }
 0x35b   :  { %9069 = vmatpush3.msra.mxu0 %v1660_v1  ;;  %9104 = vmatpush3.msra.mxu1 %v1692_v2  ;;  %v1726_v0 = vld [vmem:[%s15952_s1 + $0x3478] sm:$0xff]  ;;  %v1741_v2 = vld [vmem:[%s15952_s1 + $0x34f0] sm:$0xff] }
 0x35c   :  { %9070 = vmatprep.subr.mxu0 %v1675_v3  ;;  %9105 = vmatprep.subr.mxu1 %v1707_v4  ;;  %v1758_v1 = vld [vmem:[%s15952_s1 + $0x3578] sm:$0xff]  ;;  %v1773_v3 = vld [vmem:[%s15952_s1 + $0x35f0] sm:$0xff] }
 0x35d   :  { %9071 = vmatpush3.msra.mxu0 %v1659_v5  ;;  %9106 = vmatpush3.msra.mxu1 %v1691_v6  ;;  %v1725_v4 = vld [vmem:[%s15952_s1 + $0x3470] sm:$0xff]  ;;  %v1740_v6 = vld [vmem:[%s15952_s1 + $0x34e8] sm:$0xff] }
 0x35e   :  { %9072 = vmatprep.subr.mxu0 %v1674_v7  ;;  %9107 = vmatprep.subr.mxu1 %v1706_v8  ;;  %v1757_v5 = vld [vmem:[%s15952_s1 + $0x3570] sm:$0xff]  ;;  %v1772_v7 = vld [vmem:[%s15952_s1 + $0x35e8] sm:$0xff] }
 0x35f   :  { %9073 = vmatpush3.msra.mxu0 %v1658_v9  ;;  %9108 = vmatpush3.msra.mxu1 %v1690_v10  ;;  %v1724_v8 = vld [vmem:[%s15952_s1 + $0x3468] sm:$0xff]  ;;  %v1739_v10 = vld [vmem:[%s15952_s1 + $0x34e0] sm:$0xff] }
 0x360   :  { %9074 = vmatprep.subr.mxu0 %v1673_v11  ;;  %9109 = vmatprep.subr.mxu1 %v1705_v12  ;;  %v1756_v9 = vld [vmem:[%s15952_s1 + $0x3568] sm:$0xff]  ;;  %v1771_v11 = vld [vmem:[%s15952_s1 + $0x35e0] sm:$0xff] }
 0x361   :  { %9075 = vmatpush3.msra.mxu0 %v1657_v13  ;;  %9110 = vmatpush3.msra.mxu1 %v1689_v14  ;;  %v1723_v12 = vld [vmem:[%s15952_s1 + $0x3460] sm:$0xff]  ;;  %v1738_v14 = vld [vmem:[%s15952_s1 + $0x34d8] sm:$0xff] }
 0x362   :  { %9076 = vmatprep.subr.mxu0 %v1672_v15  ;;  %9111 = vmatprep.subr.mxu1 %v1704_v16  ;;  %v1755_v13 = vld [vmem:[%s15952_s1 + $0x3560] sm:$0xff]  ;;  %v1770_v15 = vld [vmem:[%s15952_s1 + $0x35d8] sm:$0xff] }
 0x363   :  { %9077 = vmatpush3.msra.mxu0 %v1656_v17  ;;  %9112 = vmatpush3.msra.mxu1 %v1688_v18  ;;  %v1722_v16 = vld [vmem:[%s15952_s1 + $0x3458] sm:$0xff]  ;;  %v1737_v18 = vld [vmem:[%s15952_s1 + $0x34d0] sm:$0xff] }
 0x364   :  { %9078 = vmatprep.subr.mxu0 %v1671_v19  ;;  %9113 = vmatprep.subr.mxu1 %v1703_v20  ;;  %v1754_v17 = vld [vmem:[%s15952_s1 + $0x3558] sm:$0xff]  ;;  %v1769_v19 = vld [vmem:[%s15952_s1 + $0x35d0] sm:$0xff] }
 0x365   :  { %9079 = vmatpush3.msra.mxu0 %v1655_v21  ;;  %9114 = vmatpush3.msra.mxu1 %v1687_v22  ;;  %v1721_v20 = vld [vmem:[%s15952_s1 + $0x3450] sm:$0xff]  ;;  %v1736_v22 = vld [vmem:[%s15952_s1 + $0x34c8] sm:$0xff] }
 0x366   :  { %9080 = vmatprep.subr.mxu0 %v1670_v23  ;;  %9115 = vmatprep.subr.mxu1 %v1702_v24  ;;  %v1753_v21 = vld [vmem:[%s15952_s1 + $0x3550] sm:$0xff]  ;;  %v1768_v23 = vld [vmem:[%s15952_s1 + $0x35c8] sm:$0xff] }
 0x367   :  { %9081 = vmatpush3.msra.mxu0 %v1654_v25  ;;  %9116 = vmatpush3.msra.mxu1 %v1686_v26  ;;  %v1720_v24 = vld [vmem:[%s15952_s1 + $0x3448] sm:$0xff]  ;;  %v1735_v26 = vld [vmem:[%s15952_s1 + $0x34c0] sm:$0xff] }
 0x368   :  { %9082 = vmatprep.subr.mxu0 %v1669_v27  ;;  %9117 = vmatprep.subr.mxu1 %v1701_v28  ;;  %v1752_v25 = vld [vmem:[%s15952_s1 + $0x3548] sm:$0xff]  ;;  %v1767_v27 = vld [vmem:[%s15952_s1 + $0x35c0] sm:$0xff] }
 0x369   :  { %9083 = vmatpush3.msra.mxu0 %v1653_v29  ;;  %9118 = vmatpush3.msra.mxu1 %v1685_v30  ;;  %v1719_v28 = vld [vmem:[%s15952_s1 + $0x3440] sm:$0xff]  ;;  %v1734_v30 = vld [vmem:[%s15952_s1 + $0x34b8] sm:$0xff] }
 0x36a   :  { %9084 = vmatprep.subr.mxu0 %v1668_v31  ;;  %9119 = vmatprep.subr.mxu1 %v1700_v32  ;;  %v1751_v29 = vld [vmem:[%s15952_s1 + $0x3540] sm:$0xff]  ;;  %v1766_v31 = vld [vmem:[%s15952_s1 + $0x35b8] sm:$0xff] }
 0x36b   :  { %9085 = vmatpush3.msra.mxu0 %v1652_v33  ;;  %9120 = vmatpush3.msra.mxu1 %v1684_v34  ;;  %v1718_v32 = vld [vmem:[%s15952_s1 + $0x3438] sm:$0xff]  ;;  %v1733_v34 = vld [vmem:[%s15952_s1 + $0x34b0] sm:$0xff] }
 0x36c   :  { %9086 = vmatprep.subr.mxu0 %v1667_v36  ;;  %9121 = vmatprep.subr.mxu1 %v1699_v37  ;;  %v1750_v33 = vld [vmem:[%s15952_s1 + $0x3538] sm:$0xff]  ;;  %v1717_v36 = vld [vmem:[%s15952_s1 + $0x3430] sm:$0xff] }
 0x36d   :  { %9087 = vmatpush3.msra.mxu0 %v1651_v38  ;;  %9122 = vmatpush3.msra.mxu1 %v1683_v39  ;;  %v1749_v37 = vld [vmem:[%s15952_s1 + $0x3530] sm:$0xff]  ;;  %v1732_v38 = vld [vmem:[%s15952_s1 + $0x34a8] sm:$0xff] }
 0x36e   :  { %9088 = vmatprep.subr.mxu0 %v1666_v40  ;;  %9123 = vmatprep.subr.mxu1 %v1698_v41  ;;  %v1764_v39 = vld [vmem:[%s15952_s1 + $0x35a8] sm:$0xff] }
 0x36f   :  { %9089 = vmatpush3.msra.mxu0 %v1650_v43  ;;  %9124 = vmatpush3.msra.mxu1 %v1682_v44  ;;  %v1716_v40 = vld [vmem:[%s15952_s1 + $0x3428] sm:$0xff]  ;;  %v1731_v43 = vld [vmem:[%s15952_s1 + $0x34a0] sm:$0xff] }
 0x370   :  { %9090 = vmatprep.subr.mxu0 %v1665_v45  ;;  %9125 = vmatprep.subr.mxu1 %v1697_v46  ;;  %v1748_v41 = vld [vmem:[%s15952_s1 + $0x3528] sm:$0xff]  ;;  %v1763_v44 = vld [vmem:[%s15952_s1 + $0x35a0] sm:$0xff] }
 0x371   :  { %9091 = vmatpush3.msra.mxu0 %v1649_v48  ;;  %9126 = vmatpush3.msra.mxu1 %v1681_v49  ;;  %v1715_v45 = vld [vmem:[%s15952_s1 + $0x3420] sm:$0xff]  ;;  %v1762_v48 = vld [vmem:[%s15952_s1 + $0x3598] sm:$0xff]  ;;  %v2576_v49 = vcombine.high %v41_v42, %v41_v42 }
 0x372   :  { %9092 = vmatprep.subr.mxu0 %v1664_v50  ;;  %9127 = vmatprep.subr.mxu1 %v1696_v52  ;;  %v1747_v46 = vld [vmem:[%s15952_s1 + $0x3520] sm:$0xff]  ;;  %v1714_v50 = vld [vmem:[%s15952_s1 + $0x3418] sm:$0xff] }
 0x373   :  { %9093 = vmatpush3.msra.mxu0 %v1648_v54  ;;  %9128 = vmatpush3.msra.mxu1 %v1680_v55  ;;  %v1746_v52 = vld [vmem:[%s15952_s1 + $0x3518] sm:$0xff]  ;;  %v1761_v54 = vld [vmem:[%s15952_s1 + $0x3590] sm:$0xff]  ;;  %v2583_v55 = vrot.slane %v41_v42, %v9774_v51 }
 0x374   :  { %9094 = vmatprep.subr.mxu0 %v1663_v56  ;;  %9129 = vmatprep.subr.mxu1 %v1695_v57  ;;  %v1713_v56 = vld [vmem:[%s15952_s1 + $0x3410] sm:$0xff] }
 0x375   :  { %9095 = vmatpush3.msra.mxu0 %v1647_v59  ;;  %6370 = vmatprep.mubr.f32.mxu0 %v2574_v58  ;;  %v1745_v57 = vld [vmem:[%s15952_s1 + $0x3510] sm:$0xff]  ;;  %v1728_v58 = vld [vmem:[%s15952_s1 + $0x3488] sm:$0xff] }
 0x376   :  { %9130 = vmatpush3.msra.mxu1 %v1679_v60  ;;  %6371 = vmatmul.mubr.f32.vlgmr.msra.gmra.mxu0 %v2566_v47  ;;  %v1730_v47 = vld [vmem:[%s15952_s1 + $0x3498] sm:$0xff]  ;;  %v1760_v59 = vld [vmem:[%s15952_s1 + $0x3588] sm:$0xff]  ;;  %v2590_v60 = vrot.slane %v2576_v49, %v9774_v51  ;;  %v1829_v42 = vld [vmem:[%s15952_s1 + $0x37b0] sm:$0xff] }
 0x377   :  { %6440 = vmatprep.mubr.f32.mxu1 %v2575_v61  ;;  %9134 = vmatprep.subr.mxu0 %v1742_v62  ;;  %v1712_v61 = vld [vmem:[%s15952_s1 + $0x3408] sm:$0xff]  ;;  %v42_v49 = vld [vmem:[%s15951_s0 + $0xd8] sm:$0xff] }
 0x378   :  { %9169 = vmatprep.subr.mxu1 %v1774_v63  ;;  %6441 = vmatmul.mubr.f32.vlgmr.msra.gmra.mxu1 %v2573_v53  ;;  %v1729_v53 = vld [vmem:[%s15952_s1 + $0x3490] sm:$0xff]  ;;  %v1744_v62 = vld [vmem:[%s15952_s1 + $0x3508] sm:$0xff]  ;;  %v1727_v63 = vld [vmem:[%s15952_s1 + $0x3480] sm:$0xff] }
 0x379   :  { %9135 = vmatpush3.msra.mxu0 %v1726_v0  ;;  %9170 = vmatpush3.msra.mxu1 %v1758_v1  ;;  %v1759_v0 = vld [vmem:[%s15952_s1 + $0x3580] sm:$0xff]  ;;  %v2591_v1 = vcombine.high %v2583_v55, %v2583_v55 }
 0x37a   :  { %9136 = vmatprep.subr.mxu0 %v1741_v2  ;;  %9171 = vmatprep.subr.mxu1 %v1773_v3  ;;  %v1711_v2 = vld [vmem:[%s15952_s1 + $0x3400] sm:$0xff] }
 0x37b   :  { %9137 = vmatpush3.msra.mxu0 %v1725_v4  ;;  %9172 = vmatpush3.msra.mxu1 %v1757_v5  ;;  %v1743_v3 = vld [vmem:[%s15952_s1 + $0x3500] sm:$0xff]  ;;  %v2592_v4 = vcombine.high %v2590_v60, %v2590_v60  ;;  %v1806_v5 = vld [vmem:[%s15952_s1 + $0x36f8] sm:$0xff] }
 0x37c   :  { %9138 = vmatprep.subr.mxu0 %v1740_v6  ;;  %9173 = vmatprep.subr.mxu1 %v1772_v7  ;;  %v1838_v6 = vld [vmem:[%s15952_s1 + $0x37f8] sm:$0xff] }
 0x37d   :  { %9139 = vmatpush3.msra.mxu0 %v1724_v8  ;;  %9174 = vmatpush3.msra.mxu1 %v1756_v9  ;;  %v1790_v7 = vld [vmem:[%s15952_s1 + $0x3678] sm:$0xff]  ;;  %v1805_v9 = vld [vmem:[%s15952_s1 + $0x36f0] sm:$0xff] }
 0x37e   :  { %9140 = vmatprep.subr.mxu0 %v1739_v10  ;;  %9175 = vmatprep.subr.mxu1 %v1771_v11  ;;  %v1822_v8 = vld [vmem:[%s15952_s1 + $0x3778] sm:$0xff]  ;;  %v1837_v10 = vld [vmem:[%s15952_s1 + $0x37f0] sm:$0xff] }
 0x37f   :  { %9141 = vmatpush3.msra.mxu0 %v1723_v12  ;;  %9176 = vmatpush3.msra.mxu1 %v1755_v13  ;;  %v1789_v11 = vld [vmem:[%s15952_s1 + $0x3670] sm:$0xff]  ;;  %v1804_v13 = vld [vmem:[%s15952_s1 + $0x36e8] sm:$0xff] }
 0x380   :  { %9142 = vmatprep.subr.mxu0 %v1738_v14  ;;  %9177 = vmatprep.subr.mxu1 %v1770_v15  ;;  %v1821_v12 = vld [vmem:[%s15952_s1 + $0x3770] sm:$0xff]  ;;  %v1836_v14 = vld [vmem:[%s15952_s1 + $0x37e8] sm:$0xff] }
 0x381   :  { %9143 = vmatpush3.msra.mxu0 %v1722_v16  ;;  %9178 = vmatpush3.msra.mxu1 %v1754_v17  ;;  %v1788_v15 = vld [vmem:[%s15952_s1 + $0x3668] sm:$0xff]  ;;  %v1803_v17 = vld [vmem:[%s15952_s1 + $0x36e0] sm:$0xff] }
 0x382   :  { %9144 = vmatprep.subr.mxu0 %v1737_v18  ;;  %9179 = vmatprep.subr.mxu1 %v1769_v19  ;;  %v1820_v16 = vld [vmem:[%s15952_s1 + $0x3768] sm:$0xff]  ;;  %v1835_v18 = vld [vmem:[%s15952_s1 + $0x37e0] sm:$0xff] }
 0x383   :  { %9145 = vmatpush3.msra.mxu0 %v1721_v20  ;;  %9180 = vmatpush3.msra.mxu1 %v1753_v21  ;;  %v1787_v19 = vld [vmem:[%s15952_s1 + $0x3660] sm:$0xff]  ;;  %v1802_v21 = vld [vmem:[%s15952_s1 + $0x36d8] sm:$0xff] }
 0x384   :  { %9146 = vmatprep.subr.mxu0 %v1736_v22  ;;  %9181 = vmatprep.subr.mxu1 %v1768_v23  ;;  %v1819_v20 = vld [vmem:[%s15952_s1 + $0x3760] sm:$0xff]  ;;  %v1834_v22 = vld [vmem:[%s15952_s1 + $0x37d8] sm:$0xff] }
 0x385   :  { %9147 = vmatpush3.msra.mxu0 %v1720_v24  ;;  %9182 = vmatpush3.msra.mxu1 %v1752_v25  ;;  %v1786_v23 = vld [vmem:[%s15952_s1 + $0x3658] sm:$0xff]  ;;  %v1801_v25 = vld [vmem:[%s15952_s1 + $0x36d0] sm:$0xff] }
 0x386   :  { %9148 = vmatprep.subr.mxu0 %v1735_v26  ;;  %9183 = vmatprep.subr.mxu1 %v1767_v27  ;;  %v1818_v24 = vld [vmem:[%s15952_s1 + $0x3758] sm:$0xff]  ;;  %v1833_v26 = vld [vmem:[%s15952_s1 + $0x37d0] sm:$0xff] }
 0x387   :  { %9149 = vmatpush3.msra.mxu0 %v1719_v28  ;;  %9184 = vmatpush3.msra.mxu1 %v1751_v29  ;;  %v1785_v27 = vld [vmem:[%s15952_s1 + $0x3650] sm:$0xff]  ;;  %v1800_v29 = vld [vmem:[%s15952_s1 + $0x36c8] sm:$0xff] }
 0x388   :  { %9150 = vmatprep.subr.mxu0 %v1734_v30  ;;  %9185 = vmatprep.subr.mxu1 %v1766_v31  ;;  %v1817_v28 = vld [vmem:[%s15952_s1 + $0x3750] sm:$0xff]  ;;  %v1832_v30 = vld [vmem:[%s15952_s1 + $0x37c8] sm:$0xff] }
 0x389   :  { %9151 = vmatpush3.msra.mxu0 %v1718_v32  ;;  %9186 = vmatpush3.msra.mxu1 %v1750_v33  ;;  %v1784_v31 = vld [vmem:[%s15952_s1 + $0x3648] sm:$0xff]  ;;  %v1799_v33 = vld [vmem:[%s15952_s1 + $0x36c0] sm:$0xff] }
 0x38a   :  { %9152 = vmatprep.subr.mxu0 %v1733_v34  ;;  %9187 = vmatprep.subr.mxu1 %v1765_v35  ;;  %v1816_v32 = vld [vmem:[%s15952_s1 + $0x3748] sm:$0xff]  ;;  %v1831_v34 = vld [vmem:[%s15952_s1 + $0x37c0] sm:$0xff] }
 0x38b   :  { %9153 = vmatpush3.msra.mxu0 %v1717_v36  ;;  %9188 = vmatpush3.msra.mxu1 %v1749_v37  ;;  %v1783_v35 = vld [vmem:[%s15952_s1 + $0x3640] sm:$0xff]  ;;  %v1798_v37 = vld [vmem:[%s15952_s1 + $0x36b8] sm:$0xff] }
 0x38c   :  { %9154 = vmatprep.subr.mxu0 %v1732_v38  ;;  %9189 = vmatprep.subr.mxu1 %v1764_v39  ;;  %v1815_v36 = vld [vmem:[%s15952_s1 + $0x3740] sm:$0xff]  ;;  %v1830_v38 = vld [vmem:[%s15952_s1 + $0x37b8] sm:$0xff] }
 0x38d   :  { %9155 = vmatpush3.msra.mxu0 %v1716_v40  ;;  %9190 = vmatpush3.msra.mxu1 %v1748_v41  ;;  %v1782_v39 = vld [vmem:[%s15952_s1 + $0x3638] sm:$0xff]  ;;  %v1797_v41 = vld [vmem:[%s15952_s1 + $0x36b0] sm:$0xff] }
 0x38e   :  { %9156 = vmatprep.subr.mxu0 %v1731_v43  ;;  %9191 = vmatprep.subr.mxu1 %v1763_v44  ;;  %v1814_v40 = vld [vmem:[%s15952_s1 + $0x3738] sm:$0xff]  ;;  %v1781_v43 = vld [vmem:[%s15952_s1 + $0x3630] sm:$0xff] }
 0x38f   :  { %9157 = vmatpush3.msra.mxu0 %v1715_v45  ;;  %9192 = vmatpush3.msra.mxu1 %v1747_v46  ;;  %v1813_v44 = vld [vmem:[%s15952_s1 + $0x3730] sm:$0xff]  ;;  %v1796_v45 = vld [vmem:[%s15952_s1 + $0x36a8] sm:$0xff] }
 0x390   :  { %9158 = vmatprep.subr.mxu0 %v1730_v47  ;;  %9193 = vmatprep.subr.mxu1 %v1762_v48  ;;  %v1828_v46 = vld [vmem:[%s15952_s1 + $0x37a8] sm:$0xff] }
 0x391   :  { %9159 = vmatpush3.msra.mxu0 %v1714_v50  ;;  %9194 = vmatpush3.msra.mxu1 %v1746_v52  ;;  %v1780_v47 = vld [vmem:[%s15952_s1 + $0x3628] sm:$0xff]  ;;  %v1795_v50 = vld [vmem:[%s15952_s1 + $0x36a0] sm:$0xff] }
 0x392   :  { %9160 = vmatprep.subr.mxu0 %v1729_v53  ;;  %9195 = vmatprep.subr.mxu1 %v1761_v54  ;;  %v1812_v48 = vld [vmem:[%s15952_s1 + $0x3728] sm:$0xff]  ;;  %v1827_v52 = vld [vmem:[%s15952_s1 + $0x37a0] sm:$0xff] }
 0x393   :  { %9161 = vmatpush3.msra.mxu0 %v1713_v56  ;;  %9196 = vmatpush3.msra.mxu1 %v1745_v57  ;;  %v1779_v53 = vld [vmem:[%s15952_s1 + $0x3620] sm:$0xff]  ;;  %v1826_v56 = vld [vmem:[%s15952_s1 + $0x3798] sm:$0xff]  ;;  %v2593_v57 = vcombine.high %v42_v49, %v42_v49 }
 0x394   :  { %9162 = vmatprep.subr.mxu0 %v1728_v58  ;;  %9197 = vmatprep.subr.mxu1 %v1760_v59  ;;  %v1811_v54 = vld [vmem:[%s15952_s1 + $0x3720] sm:$0xff]  ;;  %v1778_v58 = vld [vmem:[%s15952_s1 + $0x3618] sm:$0xff] }
 0x395   :  { %9163 = vmatpush3.msra.mxu0 %v1712_v61  ;;  %9198 = vmatpush3.msra.mxu1 %v1744_v62  ;;  %v1810_v59 = vld [vmem:[%s15952_s1 + $0x3718] sm:$0xff]  ;;  %v1825_v61 = vld [vmem:[%s15952_s1 + $0x3790] sm:$0xff]  ;;  %v2600_v62 = vrot.slane %v42_v49, %v9774_v51 }
 0x396   :  { %9164 = vmatprep.subr.mxu0 %v1727_v63  ;;  %9199 = vmatprep.subr.mxu1 %v1759_v0  ;;  %v1777_v63 = vld [vmem:[%s15952_s1 + $0x3610] sm:$0xff] }
 0x397   :  { %9165 = vmatpush3.msra.mxu0 %v1711_v2  ;;  %6510 = vmatprep.mubr.f32.mxu0 %v2591_v1  ;;  %v1809_v0 = vld [vmem:[%s15952_s1 + $0x3710] sm:$0xff]  ;;  %v1792_v1 = vld [vmem:[%s15952_s1 + $0x3688] sm:$0xff] }
 0x398   :  { %9200 = vmatpush3.msra.mxu1 %v1743_v3  ;;  %6511 = vmatmul.mubr.f32.vlgmr.msra.gmra.mxu0 %v2583_v55  ;;  %v1794_v55 = vld [vmem:[%s15952_s1 + $0x3698] sm:$0xff]  ;;  %v1824_v2 = vld [vmem:[%s15952_s1 + $0x3788] sm:$0xff]  ;;  %v2607_v3 = vrot.slane %v2593_v57, %v9774_v51  ;;  %v1893_v49 = vld [vmem:[%s15952_s1 + $0x39b0] sm:$0xff] }
 0x399   :  { %6580 = vmatprep.mubr.f32.mxu1 %v2592_v4  ;;  %9204 = vmatprep.subr.mxu0 %v1806_v5  ;;  %v1776_v4 = vld [vmem:[%s15952_s1 + $0x3608] sm:$0xff]  ;;  %v43_v57 = vld [vmem:[%s15951_s0 + $0xe0] sm:$0xff] }
 0x39a   :  { %9239 = vmatprep.subr.mxu1 %v1838_v6  ;;  %6581 = vmatmul.mubr.f32.vlgmr.msra.gmra.mxu1 %v2590_v60  ;;  %v1793_v60 = vld [vmem:[%s15952_s1 + $0x3690] sm:$0xff]  ;;  %v1808_v5 = vld [vmem:[%s15952_s1 + $0x3708] sm:$0xff]  ;;  %v1791_v6 = vld [vmem:[%s15952_s1 + $0x3680] sm:$0xff] }
 0x39b   :  { %9205 = vmatpush3.msra.mxu0 %v1790_v7  ;;  %9240 = vmatpush3.msra.mxu1 %v1822_v8  ;;  %v1823_v7 = vld [vmem:[%s15952_s1 + $0x3780] sm:$0xff]  ;;  %v2608_v8 = vcombine.high %v2600_v62, %v2600_v62 }
 0x39c   :  { %9206 = vmatprep.subr.mxu0 %v1805_v9  ;;  %9241 = vmatprep.subr.mxu1 %v1837_v10  ;;  %v1775_v9 = vld [vmem:[%s15952_s1 + $0x3600] sm:$0xff] }
 0x39d   :  { %9207 = vmatpush3.msra.mxu0 %v1789_v11  ;;  %9242 = vmatpush3.msra.mxu1 %v1821_v12  ;;  %v1807_v10 = vld [vmem:[%s15952_s1 + $0x3700] sm:$0xff]  ;;  %v2609_v11 = vcombine.high %v2607_v3, %v2607_v3  ;;  %v1870_v12 = vld [vmem:[%s15952_s1 + $0x38f8] sm:$0xff] }
 0x39e   :  { %9208 = vmatprep.subr.mxu0 %v1804_v13  ;;  %9243 = vmatprep.subr.mxu1 %v1836_v14  ;;  %v1902_v13 = vld [vmem:[%s15952_s1 + $0x39f8] sm:$0xff] }
 0x39f   :  { %9209 = vmatpush3.msra.mxu0 %v1788_v15  ;;  %9244 = vmatpush3.msra.mxu1 %v1820_v16  ;;  %v1854_v14 = vld [vmem:[%s15952_s1 + $0x3878] sm:$0xff]  ;;  %v1869_v16 = vld [vmem:[%s15952_s1 + $0x38f0] sm:$0xff] }
 0x3a0   :  { %9210 = vmatprep.subr.mxu0 %v1803_v17  ;;  %9245 = vmatprep.subr.mxu1 %v1835_v18  ;;  %v1886_v15 = vld [vmem:[%s15952_s1 + $0x3978] sm:$0xff]  ;;  %v1901_v17 = vld [vmem:[%s15952_s1 + $0x39f0] sm:$0xff] }
 0x3a1   :  { %9211 = vmatpush3.msra.mxu0 %v1787_v19  ;;  %9246 = vmatpush3.msra.mxu1 %v1819_v20  ;;  %v1853_v18 = vld [vmem:[%s15952_s1 + $0x3870] sm:$0xff]  ;;  %v1868_v20 = vld [vmem:[%s15952_s1 + $0x38e8] sm:$0xff] }
 0x3a2   :  { %9212 = vmatprep.subr.mxu0 %v1802_v21  ;;  %9247 = vmatprep.subr.mxu1 %v1834_v22  ;;  %v1885_v19 = vld [vmem:[%s15952_s1 + $0x3970] sm:$0xff]  ;;  %v1900_v21 = vld [vmem:[%s15952_s1 + $0x39e8] sm:$0xff] }
 0x3a3   :  { %9213 = vmatpush3.msra.mxu0 %v1786_v23  ;;  %9248 = vmatpush3.msra.mxu1 %v1818_v24  ;;  %v1852_v22 = vld [vmem:[%s15952_s1 + $0x3868] sm:$0xff]  ;;  %v1867_v24 = vld [vmem:[%s15952_s1 + $0x38e0] sm:$0xff] }
 0x3a4   :  { %9214 = vmatprep.subr.mxu0 %v1801_v25  ;;  %9249 = vmatprep.subr.mxu1 %v1833_v26  ;;  %v1884_v23 = vld [vmem:[%s15952_s1 + $0x3968] sm:$0xff]  ;;  %v1899_v25 = vld [vmem:[%s15952_s1 + $0x39e0] sm:$0xff] }
 0x3a5   :  { %9215 = vmatpush3.msra.mxu0 %v1785_v27  ;;  %9250 = vmatpush3.msra.mxu1 %v1817_v28  ;;  %v1851_v26 = vld [vmem:[%s15952_s1 + $0x3860] sm:$0xff]  ;;  %v1866_v28 = vld [vmem:[%s15952_s1 + $0x38d8] sm:$0xff] }
 0x3a6   :  { %9216 = vmatprep.subr.mxu0 %v1800_v29  ;;  %9251 = vmatprep.subr.mxu1 %v1832_v30  ;;  %v1883_v27 = vld [vmem:[%s15952_s1 + $0x3960] sm:$0xff]  ;;  %v1898_v29 = vld [vmem:[%s15952_s1 + $0x39d8] sm:$0xff] }
 0x3a7   :  { %9217 = vmatpush3.msra.mxu0 %v1784_v31  ;;  %9252 = vmatpush3.msra.mxu1 %v1816_v32  ;;  %v1850_v30 = vld [vmem:[%s15952_s1 + $0x3858] sm:$0xff]  ;;  %v1865_v32 = vld [vmem:[%s15952_s1 + $0x38d0] sm:$0xff] }
 0x3a8   :  { %9218 = vmatprep.subr.mxu0 %v1799_v33  ;;  %9253 = vmatprep.subr.mxu1 %v1831_v34  ;;  %v1882_v31 = vld [vmem:[%s15952_s1 + $0x3958] sm:$0xff]  ;;  %v1897_v33 = vld [vmem:[%s15952_s1 + $0x39d0] sm:$0xff] }
 0x3a9   :  { %9219 = vmatpush3.msra.mxu0 %v1783_v35  ;;  %9254 = vmatpush3.msra.mxu1 %v1815_v36  ;;  %v1849_v34 = vld [vmem:[%s15952_s1 + $0x3850] sm:$0xff]  ;;  %v1864_v36 = vld [vmem:[%s15952_s1 + $0x38c8] sm:$0xff] }
 0x3aa   :  { %9220 = vmatprep.subr.mxu0 %v1798_v37  ;;  %9255 = vmatprep.subr.mxu1 %v1830_v38  ;;  %v1881_v35 = vld [vmem:[%s15952_s1 + $0x3950] sm:$0xff]  ;;  %v1896_v37 = vld [vmem:[%s15952_s1 + $0x39c8] sm:$0xff] }
 0x3ab   :  { %9221 = vmatpush3.msra.mxu0 %v1782_v39  ;;  %9256 = vmatpush3.msra.mxu1 %v1814_v40  ;;  %v1848_v38 = vld [vmem:[%s15952_s1 + $0x3848] sm:$0xff]  ;;  %v1863_v40 = vld [vmem:[%s15952_s1 + $0x38c0] sm:$0xff] }
 0x3ac   :  { %9222 = vmatprep.subr.mxu0 %v1797_v41  ;;  %9257 = vmatprep.subr.mxu1 %v1829_v42  ;;  %v1880_v39 = vld [vmem:[%s15952_s1 + $0x3948] sm:$0xff]  ;;  %v1895_v41 = vld [vmem:[%s15952_s1 + $0x39c0] sm:$0xff] }
 0x3ad   :  { %9223 = vmatpush3.msra.mxu0 %v1781_v43  ;;  %9258 = vmatpush3.msra.mxu1 %v1813_v44  ;;  %v1847_v42 = vld [vmem:[%s15952_s1 + $0x3840] sm:$0xff]  ;;  %v1862_v44 = vld [vmem:[%s15952_s1 + $0x38b8] sm:$0xff] }
 0x3ae   :  { %9224 = vmatprep.subr.mxu0 %v1796_v45  ;;  %9259 = vmatprep.subr.mxu1 %v1828_v46  ;;  %v1879_v43 = vld [vmem:[%s15952_s1 + $0x3940] sm:$0xff]  ;;  %v1894_v45 = vld [vmem:[%s15952_s1 + $0x39b8] sm:$0xff] }
 0x3af   :  { %9225 = vmatpush3.msra.mxu0 %v1780_v47  ;;  %9260 = vmatpush3.msra.mxu1 %v1812_v48  ;;  %v1846_v46 = vld [vmem:[%s15952_s1 + $0x3838] sm:$0xff]  ;;  %v1861_v48 = vld [vmem:[%s15952_s1 + $0x38b0] sm:$0xff] }
 0x3b0   :  { %9226 = vmatprep.subr.mxu0 %v1795_v50  ;;  %9261 = vmatprep.subr.mxu1 %v1827_v52  ;;  %v1878_v47 = vld [vmem:[%s15952_s1 + $0x3938] sm:$0xff]  ;;  %v1845_v50 = vld [vmem:[%s15952_s1 + $0x3830] sm:$0xff] }
 0x3b1   :  { %9227 = vmatpush3.msra.mxu0 %v1779_v53  ;;  %9262 = vmatpush3.msra.mxu1 %v1811_v54  ;;  %v1877_v52 = vld [vmem:[%s15952_s1 + $0x3930] sm:$0xff]  ;;  %v1860_v53 = vld [vmem:[%s15952_s1 + $0x38a8] sm:$0xff] }
 0x3b2   :  { %9228 = vmatprep.subr.mxu0 %v1794_v55  ;;  %9263 = vmatprep.subr.mxu1 %v1826_v56  ;;  %v1892_v54 = vld [vmem:[%s15952_s1 + $0x39a8] sm:$0xff] }
 0x3b3   :  { %9229 = vmatpush3.msra.mxu0 %v1778_v58  ;;  %9264 = vmatpush3.msra.mxu1 %v1810_v59  ;;  %v1844_v55 = vld [vmem:[%s15952_s1 + $0x3828] sm:$0xff]  ;;  %v1859_v58 = vld [vmem:[%s15952_s1 + $0x38a0] sm:$0xff] }
 0x3b4   :  { %9230 = vmatprep.subr.mxu0 %v1793_v60  ;;  %9265 = vmatprep.subr.mxu1 %v1825_v61  ;;  %v1876_v56 = vld [vmem:[%s15952_s1 + $0x3928] sm:$0xff]  ;;  %v1891_v59 = vld [vmem:[%s15952_s1 + $0x39a0] sm:$0xff] }
 0x3b5   :  { %9231 = vmatpush3.msra.mxu0 %v1777_v63  ;;  %9266 = vmatpush3.msra.mxu1 %v1809_v0  ;;  %v1843_v60 = vld [vmem:[%s15952_s1 + $0x3820] sm:$0xff]  ;;  %v1890_v63 = vld [vmem:[%s15952_s1 + $0x3998] sm:$0xff]  ;;  %v2610_v0 = vcombine.high %v43_v57, %v43_v57 }
 0x3b6   :  { %9232 = vmatprep.subr.mxu0 %v1792_v1  ;;  %9267 = vmatprep.subr.mxu1 %v1824_v2  ;;  %v1875_v61 = vld [vmem:[%s15952_s1 + $0x3920] sm:$0xff]  ;;  %v1842_v1 = vld [vmem:[%s15952_s1 + $0x3818] sm:$0xff] }
 0x3b7   :  { %9233 = vmatpush3.msra.mxu0 %v1776_v4  ;;  %9268 = vmatpush3.msra.mxu1 %v1808_v5  ;;  %v1874_v2 = vld [vmem:[%s15952_s1 + $0x3918] sm:$0xff]  ;;  %v1889_v4 = vld [vmem:[%s15952_s1 + $0x3990] sm:$0xff]  ;;  %v2617_v5 = vrot.slane %v43_v57, %v9774_v51 }
 0x3b8   :  { %9234 = vmatprep.subr.mxu0 %v1791_v6  ;;  %9269 = vmatprep.subr.mxu1 %v1823_v7  ;;  %v1841_v6 = vld [vmem:[%s15952_s1 + $0x3810] sm:$0xff] }
 0x3b9   :  { %9235 = vmatpush3.msra.mxu0 %v1775_v9  ;;  %6650 = vmatprep.mubr.f32.mxu0 %v2608_v8  ;;  %v1873_v7 = vld [vmem:[%s15952_s1 + $0x3910] sm:$0xff]  ;;  %v1856_v8 = vld [vmem:[%s15952_s1 + $0x3888] sm:$0xff] }
 0x3ba   :  { %9270 = vmatpush3.msra.mxu1 %v1807_v10  ;;  %6651 = vmatmul.mubr.f32.vlgmr.msra.gmra.mxu0 %v2600_v62  ;;  %v1858_v62 = vld [vmem:[%s15952_s1 + $0x3898] sm:$0xff]  ;;  %v1888_v9 = vld [vmem:[%s15952_s1 + $0x3988] sm:$0xff]  ;;  %v2624_v10 = vrot.slane %v2610_v0, %v9774_v51  ;;  %v1957_v57 = vld [vmem:[%s15952_s1 + $0x3bb0] sm:$0xff] }
 0x3bb   :  { %6720 = vmatprep.mubr.f32.mxu1 %v2609_v11  ;;  %9274 = vmatprep.subr.mxu0 %v1870_v12  ;;  %v1840_v11 = vld [vmem:[%s15952_s1 + $0x3808] sm:$0xff] }
 0x3bc   :  { %9309 = vmatprep.subr.mxu1 %v1902_v13  ;;  %6721 = vmatmul.mubr.f32.vlgmr.msra.gmra.mxu1 %v2607_v3  ;;  %v1857_v3 = vld [vmem:[%s15952_s1 + $0x3890] sm:$0xff]  ;;  %v1872_v12 = vld [vmem:[%s15952_s1 + $0x3908] sm:$0xff]  ;;  %v1855_v13 = vld [vmem:[%s15952_s1 + $0x3880] sm:$0xff] }
 0x3bd   :  { %9275 = vmatpush3.msra.mxu0 %v1854_v14  ;;  %9310 = vmatpush3.msra.mxu1 %v1886_v15  ;;  %v1887_v14 = vld [vmem:[%s15952_s1 + $0x3980] sm:$0xff]  ;;  %v2625_v15 = vcombine.high %v2617_v5, %v2617_v5  ;;  %v44_v0 = vld [vmem:[%s15951_s0 + $0xe8] sm:$0xff] }
 0x3be   :  { %9276 = vmatprep.subr.mxu0 %v1869_v16  ;;  %9311 = vmatprep.subr.mxu1 %v1901_v17  ;;  %v1839_v16 = vld [vmem:[%s15952_s1 + $0x3800] sm:$0xff] }
 0x3bf   :  { %9277 = vmatpush3.msra.mxu0 %v1853_v18  ;;  %9312 = vmatpush3.msra.mxu1 %v1885_v19  ;;  %v1871_v17 = vld [vmem:[%s15952_s1 + $0x3900] sm:$0xff]  ;;  %v2626_v18 = vcombine.high %v2624_v10, %v2624_v10  ;;  %v1934_v19 = vld [vmem:[%s15952_s1 + $0x3af8] sm:$0xff] }
 0x3c0   :  { %9278 = vmatprep.subr.mxu0 %v1868_v20  ;;  %9313 = vmatprep.subr.mxu1 %v1900_v21  ;;  %v1966_v20 = vld [vmem:[%s15952_s1 + $0x3bf8] sm:$0xff] }
 0x3c1   :  { %9279 = vmatpush3.msra.mxu0 %v1852_v22  ;;  %9314 = vmatpush3.msra.mxu1 %v1884_v23  ;;  %v1918_v21 = vld [vmem:[%s15952_s1 + $0x3a78] sm:$0xff]  ;;  %v1933_v23 = vld [vmem:[%s15952_s1 + $0x3af0] sm:$0xff] }
 0x3c2   :  { %9280 = vmatprep.subr.mxu0 %v1867_v24  ;;  %9315 = vmatprep.subr.mxu1 %v1899_v25  ;;  %v1950_v22 = vld [vmem:[%s15952_s1 + $0x3b78] sm:$0xff]  ;;  %v1965_v24 = vld [vmem:[%s15952_s1 + $0x3bf0] sm:$0xff] }
 0x3c3   :  { %9281 = vmatpush3.msra.mxu0 %v1851_v26  ;;  %9316 = vmatpush3.msra.mxu1 %v1883_v27  ;;  %v1917_v25 = vld [vmem:[%s15952_s1 + $0x3a70] sm:$0xff]  ;;  %v1932_v27 = vld [vmem:[%s15952_s1 + $0x3ae8] sm:$0xff] }
 0x3c4   :  { %9282 = vmatprep.subr.mxu0 %v1866_v28  ;;  %9317 = vmatprep.subr.mxu1 %v1898_v29  ;;  %v1949_v26 = vld [vmem:[%s15952_s1 + $0x3b70] sm:$0xff]  ;;  %v1964_v28 = vld [vmem:[%s15952_s1 + $0x3be8] sm:$0xff] }
 0x3c5   :  { %9283 = vmatpush3.msra.mxu0 %v1850_v30  ;;  %9318 = vmatpush3.msra.mxu1 %v1882_v31  ;;  %v1916_v29 = vld [vmem:[%s15952_s1 + $0x3a68] sm:$0xff]  ;;  %v1931_v31 = vld [vmem:[%s15952_s1 + $0x3ae0] sm:$0xff] }
 0x3c6   :  { %9284 = vmatprep.subr.mxu0 %v1865_v32  ;;  %9319 = vmatprep.subr.mxu1 %v1897_v33  ;;  %v1948_v30 = vld [vmem:[%s15952_s1 + $0x3b68] sm:$0xff]  ;;  %v1963_v32 = vld [vmem:[%s15952_s1 + $0x3be0] sm:$0xff] }
 0x3c7   :  { %9285 = vmatpush3.msra.mxu0 %v1849_v34  ;;  %9320 = vmatpush3.msra.mxu1 %v1881_v35  ;;  %v1915_v33 = vld [vmem:[%s15952_s1 + $0x3a60] sm:$0xff]  ;;  %v1930_v35 = vld [vmem:[%s15952_s1 + $0x3ad8] sm:$0xff] }
 0x3c8   :  { %9286 = vmatprep.subr.mxu0 %v1864_v36  ;;  %9321 = vmatprep.subr.mxu1 %v1896_v37  ;;  %v1947_v34 = vld [vmem:[%s15952_s1 + $0x3b60] sm:$0xff]  ;;  %v1962_v36 = vld [vmem:[%s15952_s1 + $0x3bd8] sm:$0xff] }
 0x3c9   :  { %9287 = vmatpush3.msra.mxu0 %v1848_v38  ;;  %9322 = vmatpush3.msra.mxu1 %v1880_v39  ;;  %v1914_v37 = vld [vmem:[%s15952_s1 + $0x3a58] sm:$0xff]  ;;  %v1929_v39 = vld [vmem:[%s15952_s1 + $0x3ad0] sm:$0xff] }
 0x3ca   :  { %9288 = vmatprep.subr.mxu0 %v1863_v40  ;;  %9323 = vmatprep.subr.mxu1 %v1895_v41  ;;  %v1946_v38 = vld [vmem:[%s15952_s1 + $0x3b58] sm:$0xff]  ;;  %v1961_v40 = vld [vmem:[%s15952_s1 + $0x3bd0] sm:$0xff] }
 0x3cb   :  { %9289 = vmatpush3.msra.mxu0 %v1847_v42  ;;  %9324 = vmatpush3.msra.mxu1 %v1879_v43  ;;  %v1913_v41 = vld [vmem:[%s15952_s1 + $0x3a50] sm:$0xff]  ;;  %v1928_v43 = vld [vmem:[%s15952_s1 + $0x3ac8] sm:$0xff] }
 0x3cc   :  { %9290 = vmatprep.subr.mxu0 %v1862_v44  ;;  %9325 = vmatprep.subr.mxu1 %v1894_v45  ;;  %v1945_v42 = vld [vmem:[%s15952_s1 + $0x3b50] sm:$0xff]  ;;  %v1960_v44 = vld [vmem:[%s15952_s1 + $0x3bc8] sm:$0xff] }
 0x3cd   :  { %9291 = vmatpush3.msra.mxu0 %v1846_v46  ;;  %9326 = vmatpush3.msra.mxu1 %v1878_v47  ;;  %v1912_v45 = vld [vmem:[%s15952_s1 + $0x3a48] sm:$0xff]  ;;  %v1927_v47 = vld [vmem:[%s15952_s1 + $0x3ac0] sm:$0xff] }
 0x3ce   :  { %9292 = vmatprep.subr.mxu0 %v1861_v48  ;;  %9327 = vmatprep.subr.mxu1 %v1893_v49  ;;  %v1944_v46 = vld [vmem:[%s15952_s1 + $0x3b48] sm:$0xff]  ;;  %v1959_v48 = vld [vmem:[%s15952_s1 + $0x3bc0] sm:$0xff] }
 0x3cf   :  { %9293 = vmatpush3.msra.mxu0 %v1845_v50  ;;  %9328 = vmatpush3.msra.mxu1 %v1877_v52  ;;  %v1911_v49 = vld [vmem:[%s15952_s1 + $0x3a40] sm:$0xff]  ;;  %v1926_v52 = vld [vmem:[%s15952_s1 + $0x3ab8] sm:$0xff] }
 0x3d0   :  { %9294 = vmatprep.subr.mxu0 %v1860_v53  ;;  %9329 = vmatprep.subr.mxu1 %v1892_v54  ;;  %v1943_v50 = vld [vmem:[%s15952_s1 + $0x3b40] sm:$0xff]  ;;  %v1958_v53 = vld [vmem:[%s15952_s1 + $0x3bb8] sm:$0xff] }
 0x3d1   :  { %9295 = vmatpush3.msra.mxu0 %v1844_v55  ;;  %9330 = vmatpush3.msra.mxu1 %v1876_v56  ;;  %v1910_v54 = vld [vmem:[%s15952_s1 + $0x3a38] sm:$0xff]  ;;  %v1925_v56 = vld [vmem:[%s15952_s1 + $0x3ab0] sm:$0xff] }
 0x3d2   :  { %9296 = vmatprep.subr.mxu0 %v1859_v58  ;;  %9331 = vmatprep.subr.mxu1 %v1891_v59  ;;  %v1942_v55 = vld [vmem:[%s15952_s1 + $0x3b38] sm:$0xff]  ;;  %v1909_v58 = vld [vmem:[%s15952_s1 + $0x3a30] sm:$0xff] }
 0x3d3   :  { %9297 = vmatpush3.msra.mxu0 %v1843_v60  ;;  %9332 = vmatpush3.msra.mxu1 %v1875_v61  ;;  %v1941_v59 = vld [vmem:[%s15952_s1 + $0x3b30] sm:$0xff]  ;;  %v1924_v60 = vld [vmem:[%s15952_s1 + $0x3aa8] sm:$0xff] }
 0x3d4   :  { %9298 = vmatprep.subr.mxu0 %v1858_v62  ;;  %9333 = vmatprep.subr.mxu1 %v1890_v63  ;;  %v1956_v61 = vld [vmem:[%s15952_s1 + $0x3ba8] sm:$0xff] }
 0x3d5   :  { %9299 = vmatpush3.msra.mxu0 %v1842_v1  ;;  %9334 = vmatpush3.msra.mxu1 %v1874_v2  ;;  %v1908_v62 = vld [vmem:[%s15952_s1 + $0x3a28] sm:$0xff]  ;;  %v1923_v1 = vld [vmem:[%s15952_s1 + $0x3aa0] sm:$0xff] }
 0x3d6   :  { %9300 = vmatprep.subr.mxu0 %v1857_v3  ;;  %9335 = vmatprep.subr.mxu1 %v1889_v4  ;;  %v1940_v63 = vld [vmem:[%s15952_s1 + $0x3b28] sm:$0xff]  ;;  %v1955_v2 = vld [vmem:[%s15952_s1 + $0x3ba0] sm:$0xff] }
 0x3d7   :  { %9301 = vmatpush3.msra.mxu0 %v1841_v6  ;;  %9336 = vmatpush3.msra.mxu1 %v1873_v7  ;;  %v1907_v3 = vld [vmem:[%s15952_s1 + $0x3a20] sm:$0xff]  ;;  %v1954_v6 = vld [vmem:[%s15952_s1 + $0x3b98] sm:$0xff]  ;;  %v2627_v7 = vcombine.high %v44_v0, %v44_v0 }
 0x3d8   :  { %9302 = vmatprep.subr.mxu0 %v1856_v8  ;;  %9337 = vmatprep.subr.mxu1 %v1888_v9  ;;  %v1939_v4 = vld [vmem:[%s15952_s1 + $0x3b20] sm:$0xff]  ;;  %v1906_v8 = vld [vmem:[%s15952_s1 + $0x3a18] sm:$0xff] }
 0x3d9   :  { %9303 = vmatpush3.msra.mxu0 %v1840_v11  ;;  %9338 = vmatpush3.msra.mxu1 %v1872_v12  ;;  %v1938_v9 = vld [vmem:[%s15952_s1 + $0x3b18] sm:$0xff]  ;;  %v1953_v11 = vld [vmem:[%s15952_s1 + $0x3b90] sm:$0xff]  ;;  %v2634_v12 = vrot.slane %v44_v0, %v9774_v51 }
 0x3da   :  { %9304 = vmatprep.subr.mxu0 %v1855_v13  ;;  %9339 = vmatprep.subr.mxu1 %v1887_v14  ;;  %v1905_v13 = vld [vmem:[%s15952_s1 + $0x3a10] sm:$0xff] }
 0x3db   :  { %9305 = vmatpush3.msra.mxu0 %v1839_v16  ;;  %6790 = vmatprep.mubr.f32.mxu0 %v2625_v15  ;;  %v1937_v14 = vld [vmem:[%s15952_s1 + $0x3b10] sm:$0xff]  ;;  %v1920_v15 = vld [vmem:[%s15952_s1 + $0x3a88] sm:$0xff] }
 0x3dc   :  { %9340 = vmatpush3.msra.mxu1 %v1871_v17  ;;  %6791 = vmatmul.mubr.f32.vlgmr.msra.gmra.mxu0 %v2617_v5  ;;  %v1922_v5 = vld [vmem:[%s15952_s1 + $0x3a98] sm:$0xff]  ;;  %v1952_v16 = vld [vmem:[%s15952_s1 + $0x3b88] sm:$0xff]  ;;  %v2641_v17 = vrot.slane %v2627_v7, %v9774_v51  ;;  %v2021_v0 = vld [vmem:[%s15952_s1 + $0x3db0] sm:$0xff] }
 0x3dd   :  { %6860 = vmatprep.mubr.f32.mxu1 %v2626_v18  ;;  %9344 = vmatprep.subr.mxu0 %v1934_v19  ;;  %v1904_v18 = vld [vmem:[%s15952_s1 + $0x3a08] sm:$0xff]  ;;  %v45_v7 = vld [vmem:[%s15951_s0 + $0xf0] sm:$0xff] }
 0x3de   :  { %9379 = vmatprep.subr.mxu1 %v1966_v20  ;;  %6861 = vmatmul.mubr.f32.vlgmr.msra.gmra.mxu1 %v2624_v10  ;;  %v1921_v10 = vld [vmem:[%s15952_s1 + $0x3a90] sm:$0xff]  ;;  %v1936_v19 = vld [vmem:[%s15952_s1 + $0x3b08] sm:$0xff]  ;;  %v1919_v20 = vld [vmem:[%s15952_s1 + $0x3a80] sm:$0xff] }
 0x3df   :  { %9345 = vmatpush3.msra.mxu0 %v1918_v21  ;;  %9380 = vmatpush3.msra.mxu1 %v1950_v22  ;;  %v1951_v21 = vld [vmem:[%s15952_s1 + $0x3b80] sm:$0xff]  ;;  %v2642_v22 = vcombine.high %v2634_v12, %v2634_v12 }
 0x3e0   :  { %9346 = vmatprep.subr.mxu0 %v1933_v23  ;;  %9381 = vmatprep.subr.mxu1 %v1965_v24  ;;  %v1903_v23 = vld [vmem:[%s15952_s1 + $0x3a00] sm:$0xff] }
 0x3e1   :  { %9347 = vmatpush3.msra.mxu0 %v1917_v25  ;;  %9382 = vmatpush3.msra.mxu1 %v1949_v26  ;;  %v1935_v24 = vld [vmem:[%s15952_s1 + $0x3b00] sm:$0xff]  ;;  %v2643_v25 = vcombine.high %v2641_v17, %v2641_v17  ;;  %v1998_v26 = vld [vmem:[%s15952_s1 + $0x3cf8] sm:$0xff] }
 0x3e2   :  { %9348 = vmatprep.subr.mxu0 %v1932_v27  ;;  %9383 = vmatprep.subr.mxu1 %v1964_v28  ;;  %v2030_v27 = vld [vmem:[%s15952_s1 + $0x3df8] sm:$0xff] }
 0x3e3   :  { %9349 = vmatpush3.msra.mxu0 %v1916_v29  ;;  %9384 = vmatpush3.msra.mxu1 %v1948_v30  ;;  %v1982_v28 = vld [vmem:[%s15952_s1 + $0x3c78] sm:$0xff]  ;;  %v1997_v30 = vld [vmem:[%s15952_s1 + $0x3cf0] sm:$0xff] }
 0x3e4   :  { %9350 = vmatprep.subr.mxu0 %v1931_v31  ;;  %9385 = vmatprep.subr.mxu1 %v1963_v32  ;;  %v2014_v29 = vld [vmem:[%s15952_s1 + $0x3d78] sm:$0xff]  ;;  %v2029_v31 = vld [vmem:[%s15952_s1 + $0x3df0] sm:$0xff] }
 0x3e5   :  { %9351 = vmatpush3.msra.mxu0 %v1915_v33  ;;  %9386 = vmatpush3.msra.mxu1 %v1947_v34  ;;  %v1981_v32 = vld [vmem:[%s15952_s1 + $0x3c70] sm:$0xff]  ;;  %v1996_v34 = vld [vmem:[%s15952_s1 + $0x3ce8] sm:$0xff] }
 0x3e6   :  { %9352 = vmatprep.subr.mxu0 %v1930_v35  ;;  %9387 = vmatprep.subr.mxu1 %v1962_v36  ;;  %v2013_v33 = vld [vmem:[%s15952_s1 + $0x3d70] sm:$0xff]  ;;  %v2028_v35 = vld [vmem:[%s15952_s1 + $0x3de8] sm:$0xff] }
 0x3e7   :  { %9353 = vmatpush3.msra.mxu0 %v1914_v37  ;;  %9388 = vmatpush3.msra.mxu1 %v1946_v38  ;;  %v1980_v36 = vld [vmem:[%s15952_s1 + $0x3c68] sm:$0xff]  ;;  %v1995_v38 = vld [vmem:[%s15952_s1 + $0x3ce0] sm:$0xff] }
 0x3e8   :  { %9354 = vmatprep.subr.mxu0 %v1929_v39  ;;  %9389 = vmatprep.subr.mxu1 %v1961_v40  ;;  %v2012_v37 = vld [vmem:[%s15952_s1 + $0x3d68] sm:$0xff]  ;;  %v2027_v39 = vld [vmem:[%s15952_s1 + $0x3de0] sm:$0xff] }
 0x3e9   :  { %9355 = vmatpush3.msra.mxu0 %v1913_v41  ;;  %9390 = vmatpush3.msra.mxu1 %v1945_v42  ;;  %v1979_v40 = vld [vmem:[%s15952_s1 + $0x3c60] sm:$0xff]  ;;  %v1994_v42 = vld [vmem:[%s15952_s1 + $0x3cd8] sm:$0xff] }
 0x3ea   :  { %9356 = vmatprep.subr.mxu0 %v1928_v43  ;;  %9391 = vmatprep.subr.mxu1 %v1960_v44  ;;  %v2011_v41 = vld [vmem:[%s15952_s1 + $0x3d60] sm:$0xff]  ;;  %v2026_v43 = vld [vmem:[%s15952_s1 + $0x3dd8] sm:$0xff] }
 0x3eb   :  { %9357 = vmatpush3.msra.mxu0 %v1912_v45  ;;  %9392 = vmatpush3.msra.mxu1 %v1944_v46  ;;  %v1978_v44 = vld [vmem:[%s15952_s1 + $0x3c58] sm:$0xff]  ;;  %v1993_v46 = vld [vmem:[%s15952_s1 + $0x3cd0] sm:$0xff] }
 0x3ec   :  { %9358 = vmatprep.subr.mxu0 %v1927_v47  ;;  %9393 = vmatprep.subr.mxu1 %v1959_v48  ;;  %v2010_v45 = vld [vmem:[%s15952_s1 + $0x3d58] sm:$0xff]  ;;  %v2025_v47 = vld [vmem:[%s15952_s1 + $0x3dd0] sm:$0xff] }
 0x3ed   :  { %9359 = vmatpush3.msra.mxu0 %v1911_v49  ;;  %9394 = vmatpush3.msra.mxu1 %v1943_v50  ;;  %v1977_v48 = vld [vmem:[%s15952_s1 + $0x3c50] sm:$0xff]  ;;  %v1992_v50 = vld [vmem:[%s15952_s1 + $0x3cc8] sm:$0xff] }
 0x3ee   :  { %9360 = vmatprep.subr.mxu0 %v1926_v52  ;;  %9395 = vmatprep.subr.mxu1 %v1958_v53  ;;  %v2009_v49 = vld [vmem:[%s15952_s1 + $0x3d50] sm:$0xff]  ;;  %v2024_v52 = vld [vmem:[%s15952_s1 + $0x3dc8] sm:$0xff] }
 0x3ef   :  { %9361 = vmatpush3.msra.mxu0 %v1910_v54  ;;  %9396 = vmatpush3.msra.mxu1 %v1942_v55  ;;  %v1976_v53 = vld [vmem:[%s15952_s1 + $0x3c48] sm:$0xff]  ;;  %v1991_v55 = vld [vmem:[%s15952_s1 + $0x3cc0] sm:$0xff] }
 0x3f0   :  { %9362 = vmatprep.subr.mxu0 %v1925_v56  ;;  %9397 = vmatprep.subr.mxu1 %v1957_v57  ;;  %v2008_v54 = vld [vmem:[%s15952_s1 + $0x3d48] sm:$0xff]  ;;  %v2023_v56 = vld [vmem:[%s15952_s1 + $0x3dc0] sm:$0xff] }
 0x3f1   :  { %9363 = vmatpush3.msra.mxu0 %v1909_v58  ;;  %9398 = vmatpush3.msra.mxu1 %v1941_v59  ;;  %v1975_v57 = vld [vmem:[%s15952_s1 + $0x3c40] sm:$0xff]  ;;  %v1990_v59 = vld [vmem:[%s15952_s1 + $0x3cb8] sm:$0xff] }
 0x3f2   :  { %9364 = vmatprep.subr.mxu0 %v1924_v60  ;;  %9399 = vmatprep.subr.mxu1 %v1956_v61  ;;  %v2007_v58 = vld [vmem:[%s15952_s1 + $0x3d40] sm:$0xff]  ;;  %v2022_v60 = vld [vmem:[%s15952_s1 + $0x3db8] sm:$0xff] }
 0x3f3   :  { %9365 = vmatpush3.msra.mxu0 %v1908_v62  ;;  %9400 = vmatpush3.msra.mxu1 %v1940_v63  ;;  %v1974_v61 = vld [vmem:[%s15952_s1 + $0x3c38] sm:$0xff]  ;;  %v1989_v63 = vld [vmem:[%s15952_s1 + $0x3cb0] sm:$0xff] }
 0x3f4   :  { %9366 = vmatprep.subr.mxu0 %v1923_v1  ;;  %9401 = vmatprep.subr.mxu1 %v1955_v2  ;;  %v2006_v62 = vld [vmem:[%s15952_s1 + $0x3d38] sm:$0xff]  ;;  %v1973_v1 = vld [vmem:[%s15952_s1 + $0x3c30] sm:$0xff] }
 0x3f5   :  { %9367 = vmatpush3.msra.mxu0 %v1907_v3  ;;  %9402 = vmatpush3.msra.mxu1 %v1939_v4  ;;  %v2005_v2 = vld [vmem:[%s15952_s1 + $0x3d30] sm:$0xff]  ;;  %v1988_v3 = vld [vmem:[%s15952_s1 + $0x3ca8] sm:$0xff] }
 0x3f6   :  { %9368 = vmatprep.subr.mxu0 %v1922_v5  ;;  %9403 = vmatprep.subr.mxu1 %v1954_v6  ;;  %v2020_v4 = vld [vmem:[%s15952_s1 + $0x3da8] sm:$0xff] }
 0x3f7   :  { %9369 = vmatpush3.msra.mxu0 %v1906_v8  ;;  %9404 = vmatpush3.msra.mxu1 %v1938_v9  ;;  %v1972_v5 = vld [vmem:[%s15952_s1 + $0x3c28] sm:$0xff]  ;;  %v1987_v8 = vld [vmem:[%s15952_s1 + $0x3ca0] sm:$0xff] }
 0x3f8   :  { %9370 = vmatprep.subr.mxu0 %v1921_v10  ;;  %9405 = vmatprep.subr.mxu1 %v1953_v11  ;;  %v2004_v6 = vld [vmem:[%s15952_s1 + $0x3d28] sm:$0xff]  ;;  %v2019_v9 = vld [vmem:[%s15952_s1 + $0x3da0] sm:$0xff] }
 0x3f9   :  { %9371 = vmatpush3.msra.mxu0 %v1905_v13  ;;  %9406 = vmatpush3.msra.mxu1 %v1937_v14  ;;  %v1971_v10 = vld [vmem:[%s15952_s1 + $0x3c20] sm:$0xff]  ;;  %v2018_v13 = vld [vmem:[%s15952_s1 + $0x3d98] sm:$0xff]  ;;  %v2644_v14 = vcombine.high %v45_v7, %v45_v7 }
 0x3fa   :  { %9372 = vmatprep.subr.mxu0 %v1920_v15  ;;  %9407 = vmatprep.subr.mxu1 %v1952_v16  ;;  %v2003_v11 = vld [vmem:[%s15952_s1 + $0x3d20] sm:$0xff]  ;;  %v1970_v15 = vld [vmem:[%s15952_s1 + $0x3c18] sm:$0xff] }
 0x3fb   :  { %9373 = vmatpush3.msra.mxu0 %v1904_v18  ;;  %9408 = vmatpush3.msra.mxu1 %v1936_v19  ;;  %v2002_v16 = vld [vmem:[%s15952_s1 + $0x3d18] sm:$0xff]  ;;  %v2017_v18 = vld [vmem:[%s15952_s1 + $0x3d90] sm:$0xff]  ;;  %v2651_v19 = vrot.slane %v45_v7, %v9774_v51 }
 0x3fc   :  { %9374 = vmatprep.subr.mxu0 %v1919_v20  ;;  %9409 = vmatprep.subr.mxu1 %v1951_v21  ;;  %v1969_v20 = vld [vmem:[%s15952_s1 + $0x3c10] sm:$0xff] }
 0x3fd   :  { %9375 = vmatpush3.msra.mxu0 %v1903_v23  ;;  %6930 = vmatprep.mubr.f32.mxu0 %v2642_v22  ;;  %v2001_v21 = vld [vmem:[%s15952_s1 + $0x3d10] sm:$0xff]  ;;  %v1984_v22 = vld [vmem:[%s15952_s1 + $0x3c88] sm:$0xff] }
 0x3fe   :  { %9410 = vmatpush3.msra.mxu1 %v1935_v24  ;;  %6931 = vmatmul.mubr.f32.vlgmr.msra.gmra.mxu0 %v2634_v12  ;;  %v1986_v12 = vld [vmem:[%s15952_s1 + $0x3c98] sm:$0xff]  ;;  %v2016_v23 = vld [vmem:[%s15952_s1 + $0x3d88] sm:$0xff]  ;;  %v2658_v24 = vrot.slane %v2644_v14, %v9774_v51  ;;  %v2085_v7 = vld [vmem:[%s15952_s1 + $0x3fb0] sm:$0xff] }
 0x3ff   :  { %7000 = vmatprep.mubr.f32.mxu1 %v2643_v25  ;;  %9414 = vmatprep.subr.mxu0 %v1998_v26  ;;  %v1968_v25 = vld [vmem:[%s15952_s1 + $0x3c08] sm:$0xff] }
 0x400   :  { %9449 = vmatprep.subr.mxu1 %v2030_v27  ;;  %7001 = vmatmul.mubr.f32.vlgmr.msra.gmra.mxu1 %v2641_v17  ;;  %v1985_v17 = vld [vmem:[%s15952_s1 + $0x3c90] sm:$0xff]  ;;  %v2000_v26 = vld [vmem:[%s15952_s1 + $0x3d08] sm:$0xff]  ;;  %v1983_v27 = vld [vmem:[%s15952_s1 + $0x3c80] sm:$0xff] }
 0x401   :  { %9415 = vmatpush3.msra.mxu0 %v1982_v28  ;;  %9450 = vmatpush3.msra.mxu1 %v2014_v29  ;;  %v2015_v28 = vld [vmem:[%s15952_s1 + $0x3d80] sm:$0xff]  ;;  %v2659_v29 = vcombine.high %v2651_v19, %v2651_v19  ;;  %v2068_v14 = vld [vmem:[%s15952_s1 + $0x3f28] sm:$0xff] }
 0x402   :  { %9416 = vmatprep.subr.mxu0 %v1997_v30  ;;  %9451 = vmatprep.subr.mxu1 %v2029_v31  ;;  %v1967_v30 = vld [vmem:[%s15952_s1 + $0x3c00] sm:$0xff] }
 0x403   :  { %9417 = vmatpush3.msra.mxu0 %v1981_v32  ;;  %9452 = vmatpush3.msra.mxu1 %v2013_v33  ;;  %v1999_v31 = vld [vmem:[%s15952_s1 + $0x3d00] sm:$0xff]  ;;  %v2660_v32 = vcombine.high %v2658_v24, %v2658_v24  ;;  %v2062_v33 = vld [vmem:[%s15952_s1 + $0x3ef8] sm:$0xff] }
 0x404   :  { %9418 = vmatprep.subr.mxu0 %v1996_v34  ;;  %9453 = vmatprep.subr.mxu1 %v2028_v35  ;;  %v2094_v34 = vld [vmem:[%s15952_s1 + $0x3ff8] sm:$0xff] }
 0x405   :  { %9419 = vmatpush3.msra.mxu0 %v1980_v36  ;;  %9454 = vmatpush3.msra.mxu1 %v2012_v37  ;;  %v2046_v35 = vld [vmem:[%s15952_s1 + $0x3e78] sm:$0xff]  ;;  %v2061_v37 = vld [vmem:[%s15952_s1 + $0x3ef0] sm:$0xff] }
 0x406   :  { %9420 = vmatprep.subr.mxu0 %v1995_v38  ;;  %9455 = vmatprep.subr.mxu1 %v2027_v39  ;;  %v2078_v36 = vld [vmem:[%s15952_s1 + $0x3f78] sm:$0xff]  ;;  %v2093_v38 = vld [vmem:[%s15952_s1 + $0x3ff0] sm:$0xff] }
 0x407   :  { %9421 = vmatpush3.msra.mxu0 %v1979_v40  ;;  %9456 = vmatpush3.msra.mxu1 %v2011_v41  ;;  %v2045_v39 = vld [vmem:[%s15952_s1 + $0x3e70] sm:$0xff]  ;;  %v2060_v41 = vld [vmem:[%s15952_s1 + $0x3ee8] sm:$0xff] }
 0x408   :  { %9422 = vmatprep.subr.mxu0 %v1994_v42  ;;  %9457 = vmatprep.subr.mxu1 %v2026_v43  ;;  %v2077_v40 = vld [vmem:[%s15952_s1 + $0x3f70] sm:$0xff]  ;;  %v2092_v42 = vld [vmem:[%s15952_s1 + $0x3fe8] sm:$0xff] }
 0x409   :  { %9423 = vmatpush3.msra.mxu0 %v1978_v44  ;;  %9458 = vmatpush3.msra.mxu1 %v2010_v45  ;;  %v2044_v43 = vld [vmem:[%s15952_s1 + $0x3e68] sm:$0xff]  ;;  %v2059_v45 = vld [vmem:[%s15952_s1 + $0x3ee0] sm:$0xff] }
 0x40a   :  { %9424 = vmatprep.subr.mxu0 %v1993_v46  ;;  %9459 = vmatprep.subr.mxu1 %v2025_v47  ;;  %v2076_v44 = vld [vmem:[%s15952_s1 + $0x3f68] sm:$0xff]  ;;  %v2091_v46 = vld [vmem:[%s15952_s1 + $0x3fe0] sm:$0xff] }
 0x40b   :  { %9425 = vmatpush3.msra.mxu0 %v1977_v48  ;;  %9460 = vmatpush3.msra.mxu1 %v2009_v49  ;;  %v2043_v47 = vld [vmem:[%s15952_s1 + $0x3e60] sm:$0xff]  ;;  %v2058_v49 = vld [vmem:[%s15952_s1 + $0x3ed8] sm:$0xff] }
 0x40c   :  { %9426 = vmatprep.subr.mxu0 %v1992_v50  ;;  %9461 = vmatprep.subr.mxu1 %v2024_v52  ;;  %v2075_v48 = vld [vmem:[%s15952_s1 + $0x3f60] sm:$0xff]  ;;  %v2090_v50 = vld [vmem:[%s15952_s1 + $0x3fd8] sm:$0xff] }
 0x40d   :  { %9427 = vmatpush3.msra.mxu0 %v1976_v53  ;;  %9462 = vmatpush3.msra.mxu1 %v2008_v54  ;;  %v2042_v52 = vld [vmem:[%s15952_s1 + $0x3e58] sm:$0xff]  ;;  %v2057_v54 = vld [vmem:[%s15952_s1 + $0x3ed0] sm:$0xff] }
 0x40e   :  { %9428 = vmatprep.subr.mxu0 %v1991_v55  ;;  %9463 = vmatprep.subr.mxu1 %v2023_v56  ;;  %v2074_v53 = vld [vmem:[%s15952_s1 + $0x3f58] sm:$0xff]  ;;  %v2089_v55 = vld [vmem:[%s15952_s1 + $0x3fd0] sm:$0xff] }
 0x40f   :  { %9429 = vmatpush3.msra.mxu0 %v1975_v57  ;;  %9464 = vmatpush3.msra.mxu1 %v2007_v58  ;;  %v2041_v56 = vld [vmem:[%s15952_s1 + $0x3e50] sm:$0xff]  ;;  %v2056_v58 = vld [vmem:[%s15952_s1 + $0x3ec8] sm:$0xff] }
 0x410   :  { %9430 = vmatprep.subr.mxu0 %v1990_v59  ;;  %9465 = vmatprep.subr.mxu1 %v2022_v60  ;;  %v2073_v57 = vld [vmem:[%s15952_s1 + $0x3f50] sm:$0xff]  ;;  %v2088_v59 = vld [vmem:[%s15952_s1 + $0x3fc8] sm:$0xff] }
 0x411   :  { %9431 = vmatpush3.msra.mxu0 %v1974_v61  ;;  %9466 = vmatpush3.msra.mxu1 %v2006_v62  ;;  %v2040_v60 = vld [vmem:[%s15952_s1 + $0x3e48] sm:$0xff]  ;;  %v2055_v62 = vld [vmem:[%s15952_s1 + $0x3ec0] sm:$0xff] }
 0x412   :  { %9432 = vmatprep.subr.mxu0 %v1989_v63  ;;  %9467 = vmatprep.subr.mxu1 %v2021_v0  ;;  %v2072_v61 = vld [vmem:[%s15952_s1 + $0x3f48] sm:$0xff]  ;;  %v2087_v63 = vld [vmem:[%s15952_s1 + $0x3fc0] sm:$0xff] }
 0x413   :  { %9433 = vmatpush3.msra.mxu0 %v1973_v1  ;;  %9468 = vmatpush3.msra.mxu1 %v2005_v2  ;;  %v2039_v0 = vld [vmem:[%s15952_s1 + $0x3e40] sm:$0xff]  ;;  %v2054_v2 = vld [vmem:[%s15952_s1 + $0x3eb8] sm:$0xff] }
 0x414   :  { %9434 = vmatprep.subr.mxu0 %v1988_v3  ;;  %9469 = vmatprep.subr.mxu1 %v2020_v4  ;;  %v2071_v1 = vld [vmem:[%s15952_s1 + $0x3f40] sm:$0xff]  ;;  %v2086_v3 = vld [vmem:[%s15952_s1 + $0x3fb8] sm:$0xff] }
 0x415   :  { %9435 = vmatpush3.msra.mxu0 %v1972_v5  ;;  %9470 = vmatpush3.msra.mxu1 %v2004_v6  ;;  %v2038_v4 = vld [vmem:[%s15952_s1 + $0x3e38] sm:$0xff]  ;;  %v2053_v6 = vld [vmem:[%s15952_s1 + $0x3eb0] sm:$0xff] }
 0x416   :  { %9436 = vmatprep.subr.mxu0 %v1987_v8  ;;  %9471 = vmatprep.subr.mxu1 %v2019_v9  ;;  %v2070_v5 = vld [vmem:[%s15952_s1 + $0x3f38] sm:$0xff]  ;;  %v2037_v8 = vld [vmem:[%s15952_s1 + $0x3e30] sm:$0xff] }
 0x417   :  { %9437 = vmatpush3.msra.mxu0 %v1971_v10  ;;  %9472 = vmatpush3.msra.mxu1 %v2003_v11  ;;  %v2069_v9 = vld [vmem:[%s15952_s1 + $0x3f30] sm:$0xff]  ;;  %v2052_v10 = vld [vmem:[%s15952_s1 + $0x3ea8] sm:$0xff] }
 0x418   :  { %9438 = vmatprep.subr.mxu0 %v1986_v12  ;;  %9473 = vmatprep.subr.mxu1 %v2018_v13  ;;  %v2084_v11 = vld [vmem:[%s15952_s1 + $0x3fa8] sm:$0xff]  ;;  %v46_v12 = vld [vmem:[%s15951_s0 + $0xf8] sm:$0xff] }
 0x419   :  { %9439 = vmatpush3.msra.mxu0 %v1970_v15  ;;  %9474 = vmatpush3.msra.mxu1 %v2002_v16  ;;  %v2036_v13 = vld [vmem:[%s15952_s1 + $0x3e28] sm:$0xff]  ;;  %v2051_v15 = vld [vmem:[%s15952_s1 + $0x3ea0] sm:$0xff] }
 0x41a   :  { %9440 = vmatprep.subr.mxu0 %v1985_v17  ;;  %9475 = vmatprep.subr.mxu1 %v2017_v18  ;;  %v2083_v16 = vld [vmem:[%s15952_s1 + $0x3fa0] sm:$0xff] }
 0x41b   :  { %9441 = vmatpush3.msra.mxu0 %v1969_v20  ;;  %9476 = vmatpush3.msra.mxu1 %v2001_v21  ;;  %v2035_v17 = vld [vmem:[%s15952_s1 + $0x3e20] sm:$0xff]  ;;  %v2050_v20 = vld [vmem:[%s15952_s1 + $0x3e98] sm:$0xff] }
 0x41c   :  { %9442 = vmatprep.subr.mxu0 %v1984_v22  ;;  %9477 = vmatprep.subr.mxu1 %v2016_v23  ;;  %v2067_v18 = vld [vmem:[%s15952_s1 + $0x3f20] sm:$0xff]  ;;  %v2082_v21 = vld [vmem:[%s15952_s1 + $0x3f98] sm:$0xff] }
 0x41d   :  { %9443 = vmatpush3.msra.mxu0 %v1968_v25  ;;  %9478 = vmatpush3.msra.mxu1 %v2000_v26  ;;  %v2034_v22 = vld [vmem:[%s15952_s1 + $0x3e18] sm:$0xff]  ;;  %v2081_v25 = vld [vmem:[%s15952_s1 + $0x3f90] sm:$0xff]  ;;  %v2668_v26 = vrot.slane %v46_v12, %v9774_v51 }
 0x41e   :  { %9444 = vmatprep.subr.mxu0 %v1983_v27  ;;  %9479 = vmatprep.subr.mxu1 %v2015_v28  ;;  %v2066_v23 = vld [vmem:[%s15952_s1 + $0x3f18] sm:$0xff]  ;;  %v2033_v27 = vld [vmem:[%s15952_s1 + $0x3e10] sm:$0xff] }
 0x41f   :  { %9445 = vmatpush3.msra.mxu0 %v1967_v30  ;;  %7070 = vmatprep.mubr.f32.mxu0 %v2659_v29  ;;  %v2065_v28 = vld [vmem:[%s15952_s1 + $0x3f10] sm:$0xff]  ;;  %v2048_v30 = vld [vmem:[%s15952_s1 + $0x3e88] sm:$0xff] }
 0x420   :  { %9480 = vmatpush3.msra.mxu1 %v1999_v31  ;;  %7071 = vmatmul.mubr.f32.vlgmr.msra.gmra.mxu0 %v2651_v19  ;;  %v2661_v19 = vcombine.high %v46_v12, %v46_v12  ;;  %v2080_v31 = vld [vmem:[%s15952_s1 + $0x3f88] sm:$0xff] }
 0x421   :  { %7140 = vmatprep.mubr.f32.mxu1 %v2660_v32  ;;  %9484 = vmatprep.subr.mxu0 %v2062_v33  ;;  %v2032_v32 = vld [vmem:[%s15952_s1 + $0x3e08] sm:$0xff]  ;;  %v2047_v33 = vld [vmem:[%s15952_s1 + $0x3e80] sm:$0xff] }
 0x422   :  { %9519 = vmatprep.subr.mxu1 %v2094_v34  ;;  %7141 = vmatmul.mubr.f32.vlgmr.msra.gmra.mxu1 %v2658_v24  ;;  %v2049_v24 = vld [vmem:[%s15952_s1 + $0x3e90] sm:$0xff]  ;;  %v2675_v29 = vrot.slane %v2661_v19, %v9774_v51  ;;  %v2064_v51 = vld [vmem:[%s15952_s1 + $0x3f08] sm:$0xff]  ;;  %v2079_v34 = vld [vmem:[%s15952_s1 + $0x3f80] sm:$0xff] }
 0x423   :  { %9485 = vmatpush3.msra.mxu0 %v2046_v35  ;;  %9520 = vmatpush3.msra.mxu1 %v2078_v36  ;;  %v2676_v35 = vcombine.high %v2668_v26, %v2668_v26  ;;  %v2031_v36 = vld [vmem:[%s15952_s1 + $0x3e00] sm:$0xff] }
 0x424   :  { %9486 = vmatprep.subr.mxu0 %v2061_v37  ;;  %9521 = vmatprep.subr.mxu1 %v2093_v38  ;;  %v2677_v37 = vcombine.high %v2675_v29, %v2675_v29  ;;  %v2063_v38 = vld [vmem:[%s15952_s1 + $0x3f00] sm:$0xff]  ;;  %s9615_s1 = smov [#allocation2]  }
 0x425   :  { %9487 = vmatpush3.msra.mxu0 %v2045_v39  ;;  %9522 = vmatpush3.msra.mxu1 %v2077_v40  ;;  %v7346_v39 = vpop.f32.mrf.mxu0  ;;  %v7381_v40 = vpop.f32.mrf.mxu1 }
 0x426   :  { %9488 = vmatprep.subr.mxu0 %v2060_v41  ;;  %9523 = vmatprep.subr.mxu1 %v2092_v42 }
 0x427   :  { %9489 = vmatpush3.msra.mxu0 %v2044_v43  ;;  %9524 = vmatpush3.msra.mxu1 %v2076_v44  ;;  %v7347_v41 = vpop.f32.mrf.mxu0  ;;  %v7313_v44 = vld [vmem:[%s15953_s2] ss:$0 sm:$0xff]  ;;  %s7305_s2 = sshll.u32 %s9615_s1, 4  ;;  %s7306_s2 = int_to_ptr.vmem [resolvable:$true] %s7305_s2 }
 0x428   :  { %9490 = vmatprep.subr.mxu0 %v2059_v45  ;;  %9525 = vmatprep.subr.mxu1 %v2091_v46  ;;  %v7348_v43 = vadd.f32 %v7347_v41, %v7346_v39  ;;  %v7382_v45 = vpop.f32.mrf.mxu1  ;;  %s9592_s14 = scalar_lea.vmem %s7306_s2, 32  ;;  %p9597_p1 = scmp.lt.s32.totalorder %s7306_s2, %s7306_s2 }
 0x429   :  { %9491 = vmatpush3.msra.mxu0 %v2043_v47  ;;  %9526 = vmatpush3.msra.mxu1 %v2075_v48  ;;  %v7416_v42 = vpop.f32.mrf.mxu0  ;;  %p9593_p0 = scmp.ne.s32.totalorder %s7306_s2, %s9592_s14  ;;  %p9598_p2 = scmp.lt.s32.totalorder %s9592_s14, %s9592_s14 }
 0x42a   :  { %9492 = vmatprep.subr.mxu0 %v2058_v49  ;;  %9527 = vmatprep.subr.mxu1 %v2090_v50  ;;  %v7451_v46 = vpop.f32.mrf.mxu1  ;;  %v2873_v48 = vadd.f32 %v7348_v43, %v7313_v44  ;;  %v7383_v49 = vadd.f32 %v7382_v45, %v7381_v40 }
 0x42b   :  { %9493 = vmatpush3.msra.mxu0 %v2042_v52  ;;  %9528 = vmatpush3.msra.mxu1 %v2074_v53  ;;  %v7417_v47 = vpop.f32.mrf.mxu0  ;;  %p9599_p3 = por %p9598_p2, %p9597_p1 }
 0x42c   :  { %9494 = vmatprep.subr.mxu0 %v2057_v54  ;;  %9529 = vmatprep.subr.mxu1 %v2089_v55  ;;  %v7418_v52 = vadd.f32 %v7417_v47, %v7416_v42  ;;  %v7452_v53 = vpop.f32.mrf.mxu1  ;;  %v2943_v54 = vadd.f32 %v7383_v49, %v2873_v48 }
 0x42d   :  { %9495 = vmatpush3.msra.mxu0 %v2041_v56  ;;  %9530 = vmatpush3.msra.mxu1 %v2073_v57  ;;  %v7486_v50 = vpop.f32.mrf.mxu0  ;;  %p9600_p4 = pnand %p9599_p3, %p9593_p0 }
 0x42e   :  { %9496 = vmatprep.subr.mxu0 %v2056_v58  ;;  %9531 = vmatprep.subr.mxu1 %v2088_v59  ;;  %v7521_v55 = vpop.f32.mrf.mxu1  ;;  %v3013_v57 = vadd.f32 %v7418_v52, %v2943_v54  ;;  %v7453_v58 = vadd.f32 %v7452_v53, %v7451_v46 }
 0x42f   :  { %9497 = vmatpush3.msra.mxu0 %v2040_v60  ;;  %9532 = vmatpush3.msra.mxu1 %v2072_v61  ;;  %v7487_v56 = vpop.f32.mrf.mxu0 }
 0x430   :  { %9498 = vmatprep.subr.mxu0 %v2055_v62  ;;  %9533 = vmatprep.subr.mxu1 %v2087_v63  ;;  %v7488_v60 = vadd.f32 %v7487_v56, %v7486_v50  ;;  %v7522_v61 = vpop.f32.mrf.mxu1  ;;  %v3083_v62 = vadd.f32 %v7453_v58, %v3013_v57 }
 0x431   :  { %9499 = vmatpush3.msra.mxu0 %v2039_v0  ;;  %9534 = vmatpush3.msra.mxu1 %v2071_v1  ;;  %v7556_v59 = vpop.f32.mrf.mxu0 }
 0x432   :  { %9500 = vmatprep.subr.mxu0 %v2054_v2  ;;  %9535 = vmatprep.subr.mxu1 %v2086_v3  ;;  %v7591_v63 = vpop.f32.mrf.mxu1  ;;  %v3153_v1 = vadd.f32 %v7488_v60, %v3083_v62  ;;  %v7523_v2 = vadd.f32 %v7522_v61, %v7521_v55 }
 0x433   :  { %9501 = vmatpush3.msra.mxu0 %v2038_v4  ;;  %9536 = vmatpush3.msra.mxu1 %v2070_v5  ;;  %v7557_v0 = vpop.f32.mrf.mxu0 }
 0x434   :  { %9502 = vmatprep.subr.mxu0 %v2053_v6  ;;  %9537 = vmatprep.subr.mxu1 %v2085_v7  ;;  %v7558_v4 = vadd.f32 %v7557_v0, %v7556_v59  ;;  %v7592_v5 = vpop.f32.mrf.mxu1  ;;  %v3223_v6 = vadd.f32 %v7523_v2, %v3153_v1 }
 0x435   :  { %9503 = vmatpush3.msra.mxu0 %v2037_v8  ;;  %9538 = vmatpush3.msra.mxu1 %v2069_v9  ;;  %v7626_v3 = vpop.f32.mrf.mxu0 }
 0x436   :  { %9504 = vmatprep.subr.mxu0 %v2052_v10  ;;  %9539 = vmatprep.subr.mxu1 %v2084_v11  ;;  %v7661_v7 = vpop.f32.mrf.mxu1  ;;  %v3293_v9 = vadd.f32 %v7558_v4, %v3223_v6  ;;  %v7593_v10 = vadd.f32 %v7592_v5, %v7591_v63 }
 0x437   :  { %9505 = vmatpush3.msra.mxu0 %v2036_v13  ;;  %9540 = vmatpush3.msra.mxu1 %v2068_v14  ;;  %v7627_v8 = vpop.f32.mrf.mxu0 }
 0x438   :  { %9506 = vmatprep.subr.mxu0 %v2051_v15  ;;  %9541 = vmatprep.subr.mxu1 %v2083_v16  ;;  %v7628_v12 = vadd.f32 %v7627_v8, %v7626_v3  ;;  %v7662_v13 = vpop.f32.mrf.mxu1  ;;  %v3363_v14 = vadd.f32 %v7593_v10, %v3293_v9 }
 0x439   :  { %9507 = vmatpush3.msra.mxu0 %v2035_v17  ;;  %9542 = vmatpush3.msra.mxu1 %v2067_v18  ;;  %v7696_v11 = vpop.f32.mrf.mxu0  ;;  %v7663_v18 = vadd.f32 %v7662_v13, %v7661_v7 }
 0x43a   :  { %9508 = vmatprep.subr.mxu0 %v2050_v20  ;;  %9543 = vmatprep.subr.mxu1 %v2082_v21  ;;  %v7731_v15 = vpop.f32.mrf.mxu1  ;;  %v3433_v17 = vadd.f32 %v7628_v12, %v3363_v14 }
 0x43b   :  { %9509 = vmatpush3.msra.mxu0 %v2034_v22  ;;  %9544 = vmatpush3.msra.mxu1 %v2066_v23  ;;  %v7697_v16 = vpop.f32.mrf.mxu0 }
 0x43c   :  { %9510 = vmatprep.subr.mxu0 %v2049_v24  ;;  %9545 = vmatprep.subr.mxu1 %v2081_v25  ;;  %v7698_v20 = vadd.f32 %v7697_v16, %v7696_v11  ;;  %v7732_v21 = vpop.f32.mrf.mxu1  ;;  %v3503_v22 = vadd.f32 %v7663_v18, %v3433_v17 }
 0x43d   :  { %9511 = vmatpush3.msra.mxu0 %v2033_v27  ;;  %9546 = vmatpush3.msra.mxu1 %v2065_v28  ;;  %v7766_v19 = vpop.f32.mrf.mxu0 }
 0x43e   :  { %9512 = vmatprep.subr.mxu0 %v2048_v30  ;;  %9547 = vmatprep.subr.mxu1 %v2080_v31  ;;  %v7801_v23 = vpop.f32.mrf.mxu1  ;;  %v3573_v25 = vadd.f32 %v7698_v20, %v3503_v22 }
 0x43f   :  { %9513 = vmatpush3.msra.mxu0 %v2032_v32  ;;  %9548 = vmatpush3.msra.mxu1 %v2064_v51  ;;  %v7767_v24 = vpop.f32.mrf.mxu0 }
 0x440   :  { %9514 = vmatprep.subr.mxu0 %v2047_v33  ;;  %9549 = vmatprep.subr.mxu1 %v2079_v34  ;;  %v7768_v28 = vadd.f32 %v7767_v24, %v7766_v19 }
 0x441   :  { %9515 = vmatpush3.msra.mxu0 %v2031_v36  ;;  %7210 = vmatprep.mubr.f32.mxu0 %v2676_v35  ;;  %v7836_v27 = vpop.f32.mrf.mxu0 }
 0x442   :  { %9550 = vmatpush3.msra.mxu1 %v2063_v38  ;;  %7280 = vmatprep.mubr.f32.mxu1 %v2677_v37 }
 0x443   :  { %7211 = vmatmul.mubr.f32.vlgmr.msra.gmra.mxu0 %v2668_v26  ;;  %7281 = vmatmul.mubr.f32.vlgmr.msra.gmra.mxu1 %v2675_v29  ;;  %v7733_v26 = vadd.f32 %v7732_v21, %v7731_v15  ;;  %v7802_v29 = vpop.f32.mrf.mxu1  ;;  %v7837_v32 = vpop.f32.mrf.mxu0 }
 0x444   :  { %v7803_v33 = vadd.f32 %v7802_v29, %v7801_v23  ;;  %v7838_v35 = vadd.f32 %v7837_v32, %v7836_v27 }
 0x445   :  { %v3643_v30 = vadd.f32 %v7733_v26, %v3573_v25  ;;  %v7871_v31 = vpop.f32.mrf.mxu1  ;;  %v7906_v34 = vpop.f32.mrf.mxu0 }
 0x447   :  { %v3713_v51 = vadd.f32 %v7768_v28, %v3643_v30  ;;  %v7872_v36 = vpop.f32.mrf.mxu1  ;;  %v7907_v39 = vpop.f32.mrf.mxu0 }
 0x448   :  { %v7873_v41 = vadd.f32 %v7872_v36, %v7871_v31  ;;  %v7908_v43 = vadd.f32 %v7907_v39, %v7906_v34 }
 0x449   :  { %v3783_v37 = vadd.f32 %v7803_v33, %v3713_v51  ;;  %v7941_v38 = vpop.f32.mrf.mxu1  ;;  %v7976_v42 = vpop.f32.mrf.mxu0 }
 0x44b   :  { %v3853_v40 = vadd.f32 %v7838_v35, %v3783_v37  ;;  %v7942_v44 = vpop.f32.mrf.mxu1  ;;  %v7977_v47 = vpop.f32.mrf.mxu0 }
 0x44c   :  { %v7943_v49 = vadd.f32 %v7942_v44, %v7941_v38  ;;  %v7978_v52 = vadd.f32 %v7977_v47, %v7976_v42 }
 0x44d   :  { %v3923_v45 = vadd.f32 %v7873_v41, %v3853_v40  ;;  %v8011_v46 = vpop.f32.mrf.mxu1  ;;  %v8046_v50 = vpop.f32.mrf.mxu0 }
 0x44f   :  { %v3993_v48 = vadd.f32 %v7908_v43, %v3923_v45  ;;  %v8012_v53 = vpop.f32.mrf.mxu1  ;;  %v8047_v56 = vpop.f32.mrf.mxu0 }
 0x450   :  { %v8013_v58 = vadd.f32 %v8012_v53, %v8011_v46  ;;  %v8048_v60 = vadd.f32 %v8047_v56, %v8046_v50 }
 0x451   :  { %v4063_v54 = vadd.f32 %v7943_v49, %v3993_v48  ;;  %v8081_v55 = vpop.f32.mrf.mxu1  ;;  %v8116_v59 = vpop.f32.mrf.mxu0 }
 0x453   :  { %v4133_v57 = vadd.f32 %v7978_v52, %v4063_v54  ;;  %v8082_v61 = vpop.f32.mrf.mxu1  ;;  %v8117_v0 = vpop.f32.mrf.mxu0 }
 0x454   :  { %v8083_v2 = vadd.f32 %v8082_v61, %v8081_v55  ;;  %v8118_v4 = vadd.f32 %v8117_v0, %v8116_v59 }
 0x455   :  { %v4203_v62 = vadd.f32 %v8013_v58, %v4133_v57  ;;  %v8151_v63 = vpop.f32.mrf.mxu1  ;;  %v8186_v3 = vpop.f32.mrf.mxu0 }
 0x457   :  { %v4273_v1 = vadd.f32 %v8048_v60, %v4203_v62  ;;  %v8152_v5 = vpop.f32.mrf.mxu1  ;;  %v8187_v8 = vpop.f32.mrf.mxu0 }
 0x458   :  { %v8153_v10 = vadd.f32 %v8152_v5, %v8151_v63  ;;  %v8188_v12 = vadd.f32 %v8187_v8, %v8186_v3 }
 0x459   :  { %v4343_v6 = vadd.f32 %v8083_v2, %v4273_v1  ;;  %v8221_v7 = vpop.f32.mrf.mxu1  ;;  %v8256_v11 = vpop.f32.mrf.mxu0 }
 0x45b   :  { %v4413_v9 = vadd.f32 %v8118_v4, %v4343_v6  ;;  %v8222_v13 = vpop.f32.mrf.mxu1  ;;  %v8257_v16 = vpop.f32.mrf.mxu0 }
 0x45c   :  { %v8223_v18 = vadd.f32 %v8222_v13, %v8221_v7  ;;  %v8258_v20 = vadd.f32 %v8257_v16, %v8256_v11 }
 0x45d   :  { %v4483_v14 = vadd.f32 %v8153_v10, %v4413_v9  ;;  %v8291_v15 = vpop.f32.mrf.mxu1  ;;  %v8326_v19 = vpop.f32.mrf.mxu0 }
 0x45f   :  { %v4553_v17 = vadd.f32 %v8188_v12, %v4483_v14  ;;  %v8292_v21 = vpop.f32.mrf.mxu1  ;;  %v8327_v24 = vpop.f32.mrf.mxu0 }
 0x460   :  { %v8293_v26 = vadd.f32 %v8292_v21, %v8291_v15  ;;  %v8328_v28 = vadd.f32 %v8327_v24, %v8326_v19 }
 0x461   :  { %v4623_v22 = vadd.f32 %v8223_v18, %v4553_v17  ;;  %v8361_v23 = vpop.f32.mrf.mxu1  ;;  %v8396_v27 = vpop.f32.mrf.mxu0 }
 0x463   :  { %v4693_v25 = vadd.f32 %v8258_v20, %v4623_v22  ;;  %v8362_v29 = vpop.f32.mrf.mxu1  ;;  %v8397_v32 = vpop.f32.mrf.mxu0 }
 0x464   :  { %v8363_v33 = vadd.f32 %v8362_v29, %v8361_v23  ;;  %v8398_v35 = vadd.f32 %v8397_v32, %v8396_v27 }
 0x465   :  { %v4763_v30 = vadd.f32 %v8293_v26, %v4693_v25  ;;  %v8431_v31 = vpop.f32.mrf.mxu1  ;;  %v8466_v34 = vpop.f32.mrf.mxu0 }
 0x467   :  { %v4833_v51 = vadd.f32 %v8328_v28, %v4763_v30  ;;  %v8432_v36 = vpop.f32.mrf.mxu1  ;;  %v8467_v39 = vpop.f32.mrf.mxu0 }
 0x468   :  { %v8433_v41 = vadd.f32 %v8432_v36, %v8431_v31  ;;  %v8468_v43 = vadd.f32 %v8467_v39, %v8466_v34 }
 0x469   :  { %v4903_v37 = vadd.f32 %v8363_v33, %v4833_v51  ;;  %v8501_v38 = vpop.f32.mrf.mxu1  ;;  %v8536_v42 = vpop.f32.mrf.mxu0 }
 0x46b   :  { %v4973_v40 = vadd.f32 %v8398_v35, %v4903_v37  ;;  %v8502_v44 = vpop.f32.mrf.mxu1  ;;  %v8537_v47 = vpop.f32.mrf.mxu0 }
 0x46c   :  { %v8503_v49 = vadd.f32 %v8502_v44, %v8501_v38  ;;  %v8538_v52 = vadd.f32 %v8537_v47, %v8536_v42 }
 0x46d   :  { %v5043_v45 = vadd.f32 %v8433_v41, %v4973_v40  ;;  %v8571_v46 = vpop.f32.mrf.mxu1  ;;  %v8606_v50 = vpop.f32.mrf.mxu0 }
 0x46f   :  { %v5113_v48 = vadd.f32 %v8468_v43, %v5043_v45  ;;  %v8572_v53 = vpop.f32.mrf.mxu1  ;;  %v8607_v56 = vpop.f32.mrf.mxu0 }
 0x470   :  { %v8573_v58 = vadd.f32 %v8572_v53, %v8571_v46  ;;  %v8608_v60 = vadd.f32 %v8607_v56, %v8606_v50 }
 0x471   :  { %v5183_v54 = vadd.f32 %v8503_v49, %v5113_v48  ;;  %v8641_v55 = vpop.f32.mrf.mxu1  ;;  %v8676_v59 = vpop.f32.mrf.mxu0 }
 0x473   :  { %v5253_v57 = vadd.f32 %v8538_v52, %v5183_v54  ;;  %v8642_v61 = vpop.f32.mrf.mxu1  ;;  %v8677_v0 = vpop.f32.mrf.mxu0 }
 0x474   :  { %v8643_v2 = vadd.f32 %v8642_v61, %v8641_v55  ;;  %v8678_v4 = vadd.f32 %v8677_v0, %v8676_v59 }
 0x475   :  { %v5323_v62 = vadd.f32 %v8573_v58, %v5253_v57  ;;  %v8711_v63 = vpop.f32.mrf.mxu1  ;;  %v8746_v3 = vpop.f32.mrf.mxu0 }
 0x477   :  { %v5393_v1 = vadd.f32 %v8608_v60, %v5323_v62  ;;  %v8712_v5 = vpop.f32.mrf.mxu1  ;;  %v8747_v8 = vpop.f32.mrf.mxu0 }
 0x478   :  { %v8713_v10 = vadd.f32 %v8712_v5, %v8711_v63  ;;  %v8748_v12 = vadd.f32 %v8747_v8, %v8746_v3 }
 0x479   :  { %v5463_v6 = vadd.f32 %v8643_v2, %v5393_v1  ;;  %v8781_v7 = vpop.f32.mrf.mxu1  ;;  %v8816_v11 = vpop.f32.mrf.mxu0 }
 0x47b   :  { %v5533_v9 = vadd.f32 %v8678_v4, %v5463_v6  ;;  %v8782_v13 = vpop.f32.mrf.mxu1  ;;  %v8817_v16 = vpop.f32.mrf.mxu0 }
 0x47c   :  { %v8783_v18 = vadd.f32 %v8782_v13, %v8781_v7  ;;  %v8818_v20 = vadd.f32 %v8817_v16, %v8816_v11 }
 0x47d   :  { %v5603_v14 = vadd.f32 %v8713_v10, %v5533_v9  ;;  %v8851_v15 = vpop.f32.mrf.mxu1  ;;  %v8886_v19 = vpop.f32.mrf.mxu0 }
 0x47f   :  { %v5673_v17 = vadd.f32 %v8748_v12, %v5603_v14  ;;  %v8852_v21 = vpop.f32.mrf.mxu1  ;;  %v8887_v24 = vpop.f32.mrf.mxu0 }
 0x480   :  { %v8853_v26 = vadd.f32 %v8852_v21, %v8851_v15  ;;  %v8888_v28 = vadd.f32 %v8887_v24, %v8886_v19 }
 0x481   :  { %v5743_v22 = vadd.f32 %v8783_v18, %v5673_v17  ;;  %v8921_v23 = vpop.f32.mrf.mxu1  ;;  %v8956_v27 = vpop.f32.mrf.mxu0 }
 0x483   :  { %v5813_v25 = vadd.f32 %v8818_v20, %v5743_v22  ;;  %v8922_v29 = vpop.f32.mrf.mxu1  ;;  %v8957_v32 = vpop.f32.mrf.mxu0 }
 0x484   :  { %v8923_v33 = vadd.f32 %v8922_v29, %v8921_v23  ;;  %v8958_v35 = vadd.f32 %v8957_v32, %v8956_v27 }
 0x485   :  { %v5883_v30 = vadd.f32 %v8853_v26, %v5813_v25  ;;  %v8991_v31 = vpop.f32.mrf.mxu1  ;;  %v9026_v34 = vpop.f32.mrf.mxu0 }
 0x487   :  { %v5953_v51 = vadd.f32 %v8888_v28, %v5883_v30  ;;  %v8992_v36 = vpop.f32.mrf.mxu1  ;;  %v9027_v39 = vpop.f32.mrf.mxu0 }
 0x488   :  { %v8993_v41 = vadd.f32 %v8992_v36, %v8991_v31  ;;  %v9028_v43 = vadd.f32 %v9027_v39, %v9026_v34 }
 0x489   :  { %v6023_v37 = vadd.f32 %v8923_v33, %v5953_v51  ;;  %v9061_v38 = vpop.f32.mrf.mxu1  ;;  %v9096_v42 = vpop.f32.mrf.mxu0 }
 0x48b   :  { %v6093_v40 = vadd.f32 %v8958_v35, %v6023_v37  ;;  %v9062_v44 = vpop.f32.mrf.mxu1  ;;  %v9097_v47 = vpop.f32.mrf.mxu0 }
 0x48c   :  { %v9063_v49 = vadd.f32 %v9062_v44, %v9061_v38  ;;  %v9098_v52 = vadd.f32 %v9097_v47, %v9096_v42 }
 0x48d   :  { %v6163_v45 = vadd.f32 %v8993_v41, %v6093_v40  ;;  %v9131_v46 = vpop.f32.mrf.mxu1  ;;  %v9166_v50 = vpop.f32.mrf.mxu0 }
 0x48f   :  { %v6233_v48 = vadd.f32 %v9028_v43, %v6163_v45  ;;  %v9132_v53 = vpop.f32.mrf.mxu1  ;;  %v9167_v56 = vpop.f32.mrf.mxu0 }
 0x490   :  { %v9133_v58 = vadd.f32 %v9132_v53, %v9131_v46  ;;  %v9168_v60 = vadd.f32 %v9167_v56, %v9166_v50 }
 0x491   :  { %v6303_v54 = vadd.f32 %v9063_v49, %v6233_v48  ;;  %v9201_v55 = vpop.f32.mrf.mxu1  ;;  %v9236_v59 = vpop.f32.mrf.mxu0 }
 0x493   :  { %v6373_v57 = vadd.f32 %v9098_v52, %v6303_v54  ;;  %v9202_v61 = vpop.f32.mrf.mxu1  ;;  %v9237_v0 = vpop.f32.mrf.mxu0 }
 0x494   :  { %v9203_v2 = vadd.f32 %v9202_v61, %v9201_v55  ;;  %v9238_v4 = vadd.f32 %v9237_v0, %v9236_v59 }
 0x495   :  { %v6443_v62 = vadd.f32 %v9133_v58, %v6373_v57  ;;  %v9271_v63 = vpop.f32.mrf.mxu1 }
 0x497   :  { %v6513_v1 = vadd.f32 %v9168_v60, %v6443_v62  ;;  %v9272_v5 = vpop.f32.mrf.mxu1 }
 0x498   :  { %v9273_v10 = vadd.f32 %v9272_v5, %v9271_v63 }
 0x499   :  { %v6583_v6 = vadd.f32 %v9203_v2, %v6513_v1 }
 0x49b   :  { %v6653_v9 = vadd.f32 %v9238_v4, %v6583_v6 }
 0x49c   :  { %v9306_v3 = vpop.f32.mrf.mxu0 }
 0x49d   :  { %v6723_v14 = vadd.f32 %v9273_v10, %v6653_v9 }
 0x49e   :  { %v9341_v7 = vpop.f32.mrf.mxu1  ;;  %v9307_v8 = vpop.f32.mrf.mxu0 }
 0x49f   :  { %v9308_v12 = vadd.f32 %v9307_v8, %v9306_v3 }
 0x4a0   :  { %v9342_v13 = vpop.f32.mrf.mxu1 }
 0x4a1   :  { %v6793_v17 = vadd.f32 %v9308_v12, %v6723_v14  ;;  %v9343_v18 = vadd.f32 %v9342_v13, %v9341_v7 }
 0x4a3   :  { %v6863_v22 = vadd.f32 %v9343_v18, %v6793_v17 }
 0x4be   :  { %v9376_v11 = vpop.f32.mrf.mxu0 }
 0x4c0   :  { %v9411_v15 = vpop.f32.mrf.mxu1  ;;  %v9377_v16 = vpop.f32.mrf.mxu0 }
 0x4c1   :  { %v9378_v20 = vadd.f32 %v9377_v16, %v9376_v11 }
 0x4c2   :  { %v9412_v21 = vpop.f32.mrf.mxu1 }
 0x4c3   :  { %v6933_v25 = vadd.f32 %v9378_v20, %v6863_v22  ;;  %v9413_v26 = vadd.f32 %v9412_v21, %v9411_v15 }
 0x4c5   :  { %v7003_v29 = vadd.f32 %v9413_v26, %v6933_v25 }
 0x4e0   :  { %v9446_v19 = vpop.f32.mrf.mxu0 }
 0x4e2   :  { %v9481_v23 = vpop.f32.mrf.mxu1  ;;  %v9447_v24 = vpop.f32.mrf.mxu0 }
 0x4e3   :  { %v9448_v27 = vadd.f32 %v9447_v24, %v9446_v19 }
 0x4e4   :  { %v9482_v28 = vpop.f32.mrf.mxu1 }
 0x4e5   :  { %v7073_v30 = vadd.f32 %v9448_v27, %v7003_v29  ;;  %v9483_v31 = vadd.f32 %v9482_v28, %v9481_v23 }
 0x4e7   :  { %v7143_v35 = vadd.f32 %v9483_v31, %v7073_v30 }
 0x503   :  { %v9516_v32 = vpop.f32.mrf.mxu0  ;;  %v9551_v51 = vpop.f32.mrf.mxu1 }
 0x505   :  { %v9517_v33 = vpop.f32.mrf.mxu0  ;;  %v9552_v34 = vpop.f32.mrf.mxu1 }
 0x506   :  { %v9518_v36 = vadd.f32 %v9517_v33, %v9516_v32  ;;  %v9553_v38 = vadd.f32 %v9552_v34, %v9551_v51 }
 0x508   :  { %v7213_v37 = vadd.f32 %v9518_v36, %v7143_v35 }
 0x50a   :  { %v7283_v39 = vadd.f32 %v9553_v38, %v7213_v37 }
 0x50c   :  { %v7287_v40 = vsel %vm7286_vm0, %v7283_v39, -inf }
 0x50d   :  { %7288 = vmax.xlane.f32.xlu0 %v7287_v40 }
 0x596   :  { %v7289_v41 = vpop.xlane.xlu0 %7288 }
 0x597   :  { %v7290_v42 = vsub.f32 %v7283_v39, %v7289_v41 }
 0x599   :  { %v7291_v43 = vmul.f32 1.442695, %v7290_v42 }
 0x59b   :  { %9588 = vpow2.f32 %v7291_v43 }
 0x5a8   :  { %v9589_v44 = vpop.eup %9588 }
 0x5a9   :  { %v7293_v45 = vsel %vm7286_vm0, %v9589_v44, 0.0 }
 0x5aa   :  { %7294 = vadd.xlane.f32.xlu0 %v7293_v45 }
 0x633   :  { %v7295_v46 = vpop.xlane.xlu0 %7294 }
 0x634   :  { %9590 = vrcp.f32 %v7295_v46 }
 0x641   :  { %v9591_v47 = vpop.eup %9590 }
 0x642   :  { %v7297_v48 = vmul.f32 %v9591_v47, %v9589_v44 }
 0x644   :  { %7298 = vst.msk [vmem:[#allocation2] sm:$0x3] %vm7286_vm0, %v7297_v48 }
 0x645   :  { %9603 = shalt.err (!%p9600_p4)
}
 0x646   :  { %7308 = dma.vmem_to_hbm [thread:$0]  %s7306_s2, 32, %s15954_s3, [#allocation3]  }
 0x647   :  { %9612 = dma.done.wait [#allocation3], 32  }
 0x648   :  { %9613 = vsyncadd [#allocation3], 4294967264 }
 0x649   :  { %7312 = vsyncpa [#allocation3], 1 }

</bundles_post_ra>
